<compile_context>
chip_gen: v7x
topology: tpu7x:2x2x1
jax: 0.10.0
libtpu: 0.0.40
codegen_flags: <defaults>
</compile_context>

<pallas_src>
import functools

import jax
import jax.numpy as jnp
from jax import lax
from jax.experimental import pallas as pl
from jax.experimental.pallas import tpu as pltpu

LANE = 128
EPS = 1e-5


def _round_up(x, m):
    return (x + m - 1) // m * m


def _pick_batch_block(n, per_image_bytes, budget_bytes=8 * 1024 * 1024):
    """Largest divisor of n whose double-buffered image blocks fit the budget."""
    best = 1
    for cand in range(1, n + 1):
        if n % cand == 0 and cand * per_image_bytes <= budget_bytes:
            best = cand
    return best


# ----------------------------- Pallas kernels ------------------------------

def _conv3x3_stats_kernel(x_ref, w_ref, mask_ref, y_ref, s_ref, acc_ref,
                          *, bblk, row, span_start, m_rows):
    """Fused 3x3 conv (flat-padded layout) + per-channel sum / sum-sq stats.

    x_ref    : (bblk, Lpad, Cin_p)  bf16   flat-padded images
    w_ref    : (9, Cin_p, Cout_p)   bf16   taps in (dy*3 + dx) order
    mask_ref : (m_rows, 1)          f32    1.0 on valid pixels of the output span
    y_ref    : (bblk, Lpad, Cout_p) bf16   pre-BN conv output (same flat layout)
    s_ref    : (2, Cout_p)          f32    [sum; sum_sq] accumulated over grid
    acc_ref  : (m_rows, Cout_p)     f32    VMEM scratch accumulator
    """
    @pl.when(pl.program_id(0) == 0)
    def _():
        s_ref[...] = jnp.zeros_like(s_ref)

    # Zero the whole y block once (guard/halo rows); interior overwritten below.
    y_ref[...] = jnp.zeros_like(y_ref)

    mask = mask_ref[...]                                   # (m_rows, 1) f32

    for b in range(bblk):                                  # static unroll, small
        for tap in range(9):                               # unrolled 9 taps
            dy, dx = tap // 3, tap % 3
            start = span_start + (dy - 1) * row + (dx - 1)
            # Contiguous offset slice of the flat bf16 buffer: no dim-merge
            # relayout, operands stay bf16 into the MXU, f32 accumulation.
            xs = x_ref[b, pl.ds(start, m_rows), :]
            contrib = jnp.dot(xs, w_ref[tap],
                              preferred_element_type=jnp.float32)
            if tap == 0:
                acc_ref[...] = contrib
            else:
                acc_ref[...] += contrib
        # NOTE: conv bias intentionally omitted — cancelled by batch-stat BN.

        acc = acc_ref[...]                                 # (m_rows, Cout_p) f32
        y_ref[b, pl.ds(span_start, m_rows), :] = acc.astype(y_ref.dtype)

        masked = acc * mask                                # junk columns -> 0
        s_ref[...] += jnp.concatenate(
            [jnp.sum(masked, axis=0, keepdims=True),
             jnp.sum(masked * acc, axis=0, keepdims=True)],
            axis=0,
        )


def _bn_relu_mask_kernel(y_ref, scale_ref, shift_ref, mask_ref, o_ref):
    """Fused affine-BN + ReLU + halo/junk zeroing on the flat-padded layout.

    y_ref     : (bblk, Lpad, C) bf16 pre-BN conv output
    scale/shift : (1, C) f32
    mask_ref  : (Lpad, 1) f32   1.0 on valid pixels, 0.0 on halo / guards / junk
    o_ref     : (bblk, Lpad, C) out_dtype — directly usable as next-stage input
    """
    a = y_ref[...].astype(jnp.float32) * scale_ref[...] + shift_ref[...]
    a = jnp.maximum(a, 0.0) * mask_ref[...]
    o_ref[...] = a.astype(o_ref.dtype)


# ------------------------------ Pallas wrappers ----------------------------

def conv3x3_stats(x_flat, w_taps, span_mask, *, row, h, bblk, vmem_limit):
    n, lpad, cin_p = x_flat.shape
    cout_p = w_taps.shape[2]
    m_rows = h * row
    span_start = 2 * row

    kernel = functools.partial(_conv3x3_stats_kernel, bblk=bblk, row=row,
                               span_start=span_start, m_rows=m_rows)

    flops = 2 * n * 9 * m_rows * cin_p * cout_p
    bytes_accessed = (x_flat.size * 2 + w_taps.size * 2 + span_mask.size * 4
                      + n * lpad * cout_p * 2 + 2 * cout_p * 4)

    return pl.pallas_call(
        kernel,
        out_shape=(
            jax.ShapeDtypeStruct((n, lpad, cout_p), jnp.bfloat16),
            jax.ShapeDtypeStruct((2, cout_p), jnp.float32),
        ),
        grid=(n // bblk,),
        in_specs=[
            pl.BlockSpec((bblk, lpad, cin_p), lambda i: (i, 0, 0)),
            pl.BlockSpec((9, cin_p, cout_p), lambda i: (0, 0, 0)),
            pl.BlockSpec((m_rows, 1), lambda i: (0, 0)),
        ],
        out_specs=(
            pl.BlockSpec((bblk, lpad, cout_p), lambda i: (i, 0, 0)),
            pl.BlockSpec((2, cout_p), lambda i: (0, 0)),   # resident accumulator
        ),
        scratch_shapes=[pltpu.VMEM((m_rows, cout_p), jnp.float32)],
        compiler_params=pltpu.CompilerParams(
            dimension_semantics=("arbitrary",),            # stats accumulator axis
            vmem_limit_bytes=vmem_limit),
        cost_estimate=pl.CostEstimate(
            flops=int(flops), transcendentals=0,
            bytes_accessed=int(bytes_accessed)),
    )(x_flat, w_taps, span_mask)


def bn_relu_mask(y, scale, shift, full_mask, out_dtype, *, bblk, vmem_limit):
    n, lpad, c = y.shape
    return pl.pallas_call(
        _bn_relu_mask_kernel,
        out_shape=jax.ShapeDtypeStruct((n, lpad, c), out_dtype),
        grid=(n // bblk,),
        in_specs=[
            pl.BlockSpec((bblk, lpad, c), lambda i: (i, 0, 0)),
            pl.BlockSpec((1, c), lambda i: (0, 0)),
            pl.BlockSpec((1, c), lambda i: (0, 0)),
            pl.BlockSpec((lpad, 1), lambda i: (0, 0)),
        ],
        out_specs=pl.BlockSpec((bblk, lpad, c), lambda i: (i, 0, 0)),
        compiler_params=pltpu.CompilerParams(
            dimension_semantics=("parallel",),
            vmem_limit_bytes=vmem_limit),
    )(y, scale, shift, full_mask)


# ------------------------------ glue (plain JAX) ---------------------------

def _prep_conv_weight(w_oihw, cin_p, cout_p):
    """(Cout, Cin, 3, 3) -> zero-padded (9, Cin_p, Cout_p) bf16, tap = dy*3+dx."""
    cout, cin = w_oihw.shape[0], w_oihw.shape[1]
    wt = jnp.transpose(w_oihw, (2, 3, 1, 0)).reshape(9, cin, cout)
    wt = jnp.pad(wt, ((0, 0), (0, cin_p - cin), (0, cout_p - cout)))
    return wt.astype(jnp.bfloat16)


def init_params(key, cin, cout):
    ks = jax.random.split(key, 8)
    w1 = jax.random.normal(ks[0], (cout, cin, 3, 3), jnp.float32) * 0.1
    b1 = jax.random.normal(ks[1], (cout,), jnp.float32) * 0.1
    w2 = jax.random.normal(ks[2], (cout, cout, 3, 3), jnp.float32) * 0.1
    b2 = jax.random.normal(ks[3], (cout,), jnp.float32) * 0.1
    g1 = 1.0 + 0.1 * jax.random.normal(ks[4], (cout,), jnp.float32)
    be1 = 0.1 * jax.random.normal(ks[5], (cout,), jnp.float32)
    g2 = 1.0 + 0.1 * jax.random.normal(ks[6], (cout,), jnp.float32)
    be2 = 0.1 * jax.random.normal(ks[7], (cout,), jnp.float32)
    return dict(w1=w1, b1=b1, w2=w2, b2=b2, g1=g1, be1=be1, g2=g2, be2=be2)


def double_conv_forward(x_nchw, params):
    n, cin, h, w = x_nchw.shape
    cout = params["w1"].shape[0]
    cin_p = _round_up(cin, LANE)
    cout_p = _round_up(cout, LANE)

    # Flat-padded layout: row width R = W+2, 1 guard row on top, spatially
    # padded image (H+2 rows), guard / fill rows at the bottom.  Valid pixel
    # (y, x) lives at flat index (y+2)*R + (x+1); conv taps are contiguous
    # offset slices of length M = H*R starting near 2*R.
    row = w + 2
    lpad = _round_up((h + 4) * row, 8)
    m_rows = h * row
    span_start = 2 * row
    m_valid = n * h * w

    # Validity masks (valid image pixels only; halo / guards / junk cols = 0).
    flat_idx = jnp.arange(lpad, dtype=jnp.int32)
    col = flat_idx % row
    rowi = flat_idx // row                      # 0 = top guard, 1..h+2 = image rows
    full_mask = ((rowi >= 2) & (rowi <= h + 1)
                 & (col >= 1) & (col <= w)).astype(jnp.float32).reshape(lpad, 1)
    span_mask = full_mask[span_start:span_start + m_rows]      # (m_rows, 1)

    # Batch packing + VMEM budget (per-image x & y blocks, double-buffered).
    per_image_bytes = 2 * lpad * (cin_p + cout_p) * 2
    bblk = _pick_batch_block(n, per_image_bytes)
    assert n % bblk == 0
    est = (bblk * per_image_bytes
           + 2 * 9 * max(cin_p, cout_p) * cout_p * 2          # weights, 2 buffers
           + m_rows * cout_p * 4)                              # f32 scratch acc
    vmem_limit = int(min(max(2 * est, 32 * 2 ** 20), 64 * 2 ** 20))

    def stage(x_stage, w_oihw, gamma, beta, in_cp, out_dtype):
        w_taps = _prep_conv_weight(w_oihw, in_cp, cout_p)
        y, s = conv3x3_stats(x_stage, w_taps, span_mask,
                             row=row, h=h, bblk=bblk, vmem_limit=vmem_limit)
        # BN finalize (tiny XLA ops).  Conv bias cancels under batch-stat BN.
        mean = s[0] / m_valid
        var = jnp.maximum(s[1] / m_valid - mean * mean, 0.0)   # clamp cancellation
        inv_std = lax.rsqrt(var + EPS)
        g = jnp.pad(gamma, (0, cout_p - cout))
        b = jnp.pad(beta, (0, cout_p - cout))
        scale = (g * inv_std).reshape(1, cout_p).astype(jnp.float32)
        shift = (b - mean * g * inv_std).reshape(1, cout_p).astype(jnp.float32)
        # Fused BN + ReLU + halo zeroing; output is already in the flat-padded
        # layout the next conv stage consumes (no XLA pad between stages).
        return bn_relu_mask(y, scale, shift, full_mask, out_dtype,
                            bblk=bblk, vmem_limit=vmem_limit)

    # Build the stage-1 flat-padded bf16 input once (NCHW -> NHWC -> flat).
    x = jnp.transpose(x_nchw, (0, 2, 3, 1))
    x = jnp.pad(x, ((0, 0), (1, 1), (1, 1), (0, cin_p - cin)))
    x = x.reshape(n, (h + 2) * row, cin_p)
    x = jnp.pad(x, ((0, 0), (row, lpad - (h + 3) * row), (0, 0)))
    x_flat = x.astype(jnp.bfloat16)

    # --- conv1 + bn1 + relu --- (bf16 activation, flat-padded, halo already 0)
    a1 = stage(x_flat, params["w1"], params["g1"], params["be1"], cin_p,
               jnp.bfloat16)
    # --- conv2 + bn2 + relu ---
    a2 = stage(a1, params["w2"], params["g2"], params["be2"], cout_p,
               jnp.float32)

    # Un-flatten: drop guards / halo columns / channel padding, back to NCHW.
    core = a2[:, span_start:span_start + m_rows, :cout]
    core = core.reshape(n, h, row, cout)[:, :, 1:w + 1, :]
    return jnp.transpose(core, (0, 3, 1, 2))


# ------------------------------ pure-JAX reference -------------------------

def double_conv_reference(x_nchw, params, eps=EPS, cast=None):
    """f32 reference. cast=jnp.bfloat16 rounds conv inputs/weights (and the
    inter-stage activation) to bf16 to mirror the kernel's MXU numerics."""
    def c(t):
        return t.astype(cast).astype(jnp.float32) if cast is not None else t

    def conv(x, wgt, b):
        y = lax.conv_general_dilated(
            c(x), c(wgt), window_strides=(1, 1), padding="SAME",
            dimension_numbers=("NCHW", "OIHW", "NCHW"))
        return y + b.reshape(1, -1, 1, 1)

    def bn_relu_ref(y, g, be):
        mean = y.mean(axis=(0, 2, 3), keepdims=True)
        var = y.var(axis=(0, 2, 3), keepdims=True)  # biased (training BN)
        yn = (y - mean) / jnp.sqrt(var + eps)
        return jnp.maximum(yn * g.reshape(1, -1, 1, 1) + be.reshape(1, -1, 1, 1), 0.0)

    y = conv(x_nchw, params["w1"], params["b1"])
    y = bn_relu_ref(y, params["g1"], params["be1"])
    y = conv(y, params["w2"], params["b2"])
    y = bn_relu_ref(y, params["g2"], params["be2"])
    return y


# ----------------------------------- main -----------------------------------

if __name__ == "__main__":
    key = jax.random.PRNGKey(0)
    kx, kp = jax.random.split(key)

    N, CIN, COUT, H, W = 2, 4, 8, 16, 16
    x = jax.random.normal(kx, (N, CIN, H, W), jnp.float32)
    params = init_params(kp, CIN, COUT)

    fwd = jax.jit(double_conv_forward)
    out = jax.block_until_ready(fwd(x, params))
    assert out.shape == (N, COUT, H, W), out.shape

    # Check vs. a bf16-consistent reference (same operand rounding points; the
    # kernel additionally stores the pre-BN activation in bf16, hence 4e-2).
    ref_b = jax.block_until_ready(double_conv_reference(x, params, cast=jnp.bfloat16))
    err_b = float(jnp.max(jnp.abs(out - ref_b)))
    assert err_b < 4e-2, f"mismatch vs bf16-consistent reference: {err_b}"

    # Loose check vs. the pure-f32 reference (bf16 MXU operand rounding).
    ref_f = jax.block_until_ready(double_conv_reference(x, params))
    err_f = float(jnp.max(jnp.abs(out - ref_f)))
    assert err_f < 1.5e-1, f"mismatch vs f32 reference: {err_f}"

    print("KERNEL_OK")
</pallas_src>

<mosaic_0001>
module attributes {stable_mosaic.version = 11 : i64} {
  func.func @_conv3x3_stats_kernel(%arg0: i32, %arg1: memref<2x360x128xbf16, #tpu.memory_space<vmem>>, %arg2: memref<9x128x128xbf16, #tpu.memory_space<vmem>>, %arg3: memref<288x1xf32, #tpu.memory_space<vmem>>, %arg4: memref<2x360x128xbf16, #tpu.memory_space<vmem>>, %arg5: memref<2x128xf32, #tpu.memory_space<vmem>>, %arg6: memref<288x128xf32, #tpu.memory_space<vmem>>) attributes {dimension_semantics = [#tpu.dimension_semantics<arbitrary>], iteration_bounds = array<i64: 1>, scalar_prefetch = 0 : i64, scratch_operands = 1 : i64, tpu.core_type = #tpu.core_type<tc>, window_params = [{transform_indices = @transform_0, window_bounds = array<i64: 2, 360, 128>}, {pipeline_mode = #tpu.pipeline_mode<synchronous>, transform_indices = @transform_1, window_bounds = array<i64: 9, 128, 128>}, {pipeline_mode = #tpu.pipeline_mode<synchronous>, transform_indices = @transform_2, window_bounds = array<i64: 288, 1>}, {transform_indices = @transform_3, window_bounds = array<i64: 2, 360, 128>}, {pipeline_mode = #tpu.pipeline_mode<synchronous>, transform_indices = @transform_4, window_bounds = array<i64: 2, 128>}]} {
    %c0_i32 = arith.constant 0 : i32
    %0 = arith.cmpi eq, %arg0, %c0_i32 : i32
    %1 = arith.extui %0 : i1 to i32
    %c0_i32_0 = arith.constant 0 : i32
    %2 = arith.cmpi ne, %1, %c0_i32_0 : i32
    scf.if %2 {
      %cst_204 = arith.constant 0.000000e+00 : f32
      %178 = vector.broadcast %cst_204 : f32 to vector<2x128xf32>
      %c0_205 = arith.constant 0 : index
      %c0_206 = arith.constant 0 : index
      %179 = vector.load %arg5[%c0_205, %c0_206] : memref<2x128xf32, #tpu.memory_space<vmem>>, vector<2x128xf32>
      tpu.vector_store %arg5[%c0_205, %c0_206], %178 {strides = array<i32>} : memref<2x128xf32, #tpu.memory_space<vmem>>, vector<2x128xf32>,
    } else {
    }
    %cst = arith.constant 0.000000e+00 : bf16
    %3 = vector.broadcast %cst : bf16 to vector<2x360x128xbf16>
    %c0 = arith.constant 0 : index
    %c0_1 = arith.constant 0 : index
    %c0_2 = arith.constant 0 : index
    %4 = vector.load %arg4[%c0, %c0_1, %c0_2] : memref<2x360x128xbf16, #tpu.memory_space<vmem>>, vector<2x360x128xbf16>
    tpu.vector_store %arg4[%c0, %c0_1, %c0_2], %3 {strides = array<i32>} : memref<2x360x128xbf16, #tpu.memory_space<vmem>>, vector<2x360x128xbf16>,
    %c0_3 = arith.constant 0 : index
    %c0_4 = arith.constant 0 : index
    %5 = vector.load %arg3[%c0_3, %c0_4] : memref<288x1xf32, #tpu.memory_space<vmem>>, vector<288x1xf32>
    %c0_5 = arith.constant 0 : index
    %c17 = arith.constant 17 : index
    %c0_6 = arith.constant 0 : index
    %6 = vector.load %arg1[%c0_5, %c17, %c0_6] : memref<2x360x128xbf16, #tpu.memory_space<vmem>>, vector<1x288x128xbf16>
    %7 = vector.shape_cast %6 : vector<1x288x128xbf16> to vector<288x128xbf16>
    %c0_7 = arith.constant 0 : index
    %c0_8 = arith.constant 0 : index
    %c0_9 = arith.constant 0 : index
    %8 = vector.load %arg2[%c0_7, %c0_8, %c0_9] : memref<9x128x128xbf16, #tpu.memory_space<vmem>>, vector<1x128x128xbf16>
    %9 = vector.shape_cast %8 : vector<1x128x128xbf16> to vector<128x128xbf16>
    %cst_10 = arith.constant dense<0.000000e+00> : vector<288x128xf32>
    %10 = tpu.matmul %7, %9, %cst_10 {dimension_numbers = #tpu.dot_dimension_numbers<[1], [0], [0], [1], [0, 0, 1, 1], [], []>} : vector<288x128xbf16>, vector<128x128xbf16>, vector<288x128xf32> -> vector<288x128xf32>
    %c0_11 = arith.constant 0 : index
    %c0_12 = arith.constant 0 : index
    %11 = vector.load %arg6[%c0_11, %c0_12] : memref<288x128xf32, #tpu.memory_space<vmem>>, vector<288x128xf32>
    tpu.vector_store %arg6[%c0_11, %c0_12], %10 {strides = array<i32>} : memref<288x128xf32, #tpu.memory_space<vmem>>, vector<288x128xf32>,
    %c0_13 = arith.constant 0 : index
    %c18 = arith.constant 18 : index
    %c0_14 = arith.constant 0 : index
    %12 = vector.load %arg1[%c0_13, %c18, %c0_14] : memref<2x360x128xbf16, #tpu.memory_space<vmem>>, vector<1x288x128xbf16>
    %13 = vector.shape_cast %12 : vector<1x288x128xbf16> to vector<288x128xbf16>
    %c1 = arith.constant 1 : index
    %c0_15 = arith.constant 0 : index
    %c0_16 = arith.constant 0 : index
    %14 = vector.load %arg2[%c1, %c0_15, %c0_16] : memref<9x128x128xbf16, #tpu.memory_space<vmem>>, vector<1x128x128xbf16>
    %15 = vector.shape_cast %14 : vector<1x128x128xbf16> to vector<128x128xbf16>
    %cst_17 = arith.constant dense<0.000000e+00> : vector<288x128xf32>
    %16 = tpu.matmul %13, %15, %cst_17 {dimension_numbers = #tpu.dot_dimension_numbers<[1], [0], [0], [1], [0, 0, 1, 1], [], []>} : vector<288x128xbf16>, vector<128x128xbf16>, vector<288x128xf32> -> vector<288x128xf32>
    %c0_18 = arith.constant 0 : index
    %c0_19 = arith.constant 0 : index
    %17 = vector.load %arg6[%c0_18, %c0_19] : memref<288x128xf32, #tpu.memory_space<vmem>>, vector<288x128xf32>
    %18 = arith.addf %17, %16 : vector<288x128xf32>
    %c0_20 = arith.constant 0 : index
    %c0_21 = arith.constant 0 : index
    %19 = vector.load %arg6[%c0_20, %c0_21] : memref<288x128xf32, #tpu.memory_space<vmem>>, vector<288x128xf32>
    tpu.vector_store %arg6[%c0_20, %c0_21], %18 {strides = array<i32>} : memref<288x128xf32, #tpu.memory_space<vmem>>, vector<288x128xf32>,
    %c0_22 = arith.constant 0 : index
    %c19 = arith.constant 19 : index
    %c0_23 = arith.constant 0 : index
    %20 = vector.load %arg1[%c0_22, %c19, %c0_23] : memref<2x360x128xbf16, #tpu.memory_space<vmem>>, vector<1x288x128xbf16>
    %21 = vector.shape_cast %20 : vector<1x288x128xbf16> to vector<288x128xbf16>
    %c2 = arith.constant 2 : index
    %c0_24 = arith.constant 0 : index
    %c0_25 = arith.constant 0 : index
    %22 = vector.load %arg2[%c2, %c0_24, %c0_25] : memref<9x128x128xbf16, #tpu.memory_space<vmem>>, vector<1x128x128xbf16>
    %23 = vector.shape_cast %22 : vector<1x128x128xbf16> to vector<128x128xbf16>
    %cst_26 = arith.constant dense<0.000000e+00> : vector<288x128xf32>
    %24 = tpu.matmul %21, %23, %cst_26 {dimension_numbers = #tpu.dot_dimension_numbers<[1], [0], [0], [1], [0, 0, 1, 1], [], []>} : vector<288x128xbf16>, vector<128x128xbf16>, vector<288x128xf32> -> vector<288x128xf32>
    %c0_27 = arith.constant 0 : index
    %c0_28 = arith.constant 0 : index
    %25 = vector.load %arg6[%c0_27, %c0_28] : memref<288x128xf32, #tpu.memory_space<vmem>>, vector<288x128xf32>
    %26 = arith.addf %25, %24 : vector<288x128xf32>
    %c0_29 = arith.constant 0 : index
    %c0_30 = arith.constant 0 : index
    %27 = vector.load %arg6[%c0_29, %c0_30] : memref<288x128xf32, #tpu.memory_space<vmem>>, vector<288x128xf32>
    tpu.vector_store %arg6[%c0_29, %c0_30], %26 {strides = array<i32>} : memref<288x128xf32, #tpu.memory_space<vmem>>, vector<288x128xf32>,
    %c0_31 = arith.constant 0 : index
    %c35 = arith.constant 35 : index
    %c0_32 = arith.constant 0 : index
    %28 = vector.load %arg1[%c0_31, %c35, %c0_32] : memref<2x360x128xbf16, #tpu.memory_space<vmem>>, vector<1x288x128xbf16>
    %29 = vector.shape_cast %28 : vector<1x288x128xbf16> to vector<288x128xbf16>
    %c3 = arith.constant 3 : index
    %c0_33 = arith.constant 0 : index
    %c0_34 = arith.constant 0 : index
    %30 = vector.load %arg2[%c3, %c0_33, %c0_34] : memref<9x128x128xbf16, #tpu.memory_space<vmem>>, vector<1x128x128xbf16>
    %31 = vector.shape_cast %30 : vector<1x128x128xbf16> to vector<128x128xbf16>
    %cst_35 = arith.constant dense<0.000000e+00> : vector<288x128xf32>
    %32 = tpu.matmul %29, %31, %cst_35 {dimension_numbers = #tpu.dot_dimension_numbers<[1], [0], [0], [1], [0, 0, 1, 1], [], []>} : vector<288x128xbf16>, vector<128x128xbf16>, vector<288x128xf32> -> vector<288x128xf32>
    %c0_36 = arith.constant 0 : index
    %c0_37 = arith.constant 0 : index
    %33 = vector.load %arg6[%c0_36, %c0_37] : memref<288x128xf32, #tpu.memory_space<vmem>>, vector<288x128xf32>
    %34 = arith.addf %33, %32 : vector<288x128xf32>
    %c0_38 = arith.constant 0 : index
    %c0_39 = arith.constant 0 : index
    %35 = vector.load %arg6[%c0_38, %c0_39] : memref<288x128xf32, #tpu.memory_space<vmem>>, vector<288x128xf32>
    tpu.vector_store %arg6[%c0_38, %c0_39], %34 {strides = array<i32>} : memref<288x128xf32, #tpu.memory_space<vmem>>, vector<288x128xf32>,
    %c0_40 = arith.constant 0 : index
    %c36 = arith.constant 36 : index
    %c0_41 = arith.constant 0 : index
    %36 = vector.load %arg1[%c0_40, %c36, %c0_41] : memref<2x360x128xbf16, #tpu.memory_space<vmem>>, vector<1x288x128xbf16>
    %37 = vector.shape_cast %36 : vector<1x288x128xbf16> to vector<288x128xbf16>
    %c4 = arith.constant 4 : index
    %c0_42 = arith.constant 0 : index
    %c0_43 = arith.constant 0 : index
    %38 = vector.load %arg2[%c4, %c0_42, %c0_43] : memref<9x128x128xbf16, #tpu.memory_space<vmem>>, vector<1x128x128xbf16>
    %39 = vector.shape_cast %38 : vector<1x128x128xbf16> to vector<128x128xbf16>
    %cst_44 = arith.constant dense<0.000000e+00> : vector<288x128xf32>
    %40 = tpu.matmul %37, %39, %cst_44 {dimension_numbers = #tpu.dot_dimension_numbers<[1], [0], [0], [1], [0, 0, 1, 1], [], []>} : vector<288x128xbf16>, vector<128x128xbf16>, vector<288x128xf32> -> vector<288x128xf32>
    %c0_45 = arith.constant 0 : index
    %c0_46 = arith.constant 0 : index
    %41 = vector.load %arg6[%c0_45, %c0_46] : memref<288x128xf32, #tpu.memory_space<vmem>>, vector<288x128xf32>
    %42 = arith.addf %41, %40 : vector<288x128xf32>
    %c0_47 = arith.constant 0 : index
    %c0_48 = arith.constant 0 : index
    %43 = vector.load %arg6[%c0_47, %c0_48] : memref<288x128xf32, #tpu.memory_space<vmem>>, vector<288x128xf32>
    tpu.vector_store %arg6[%c0_47, %c0_48], %42 {strides = array<i32>} : memref<288x128xf32, #tpu.memory_space<vmem>>, vector<288x128xf32>,
    %c0_49 = arith.constant 0 : index
    %c37 = arith.constant 37 : index
    %c0_50 = arith.constant 0 : index
    %44 = vector.load %arg1[%c0_49, %c37, %c0_50] : memref<2x360x128xbf16, #tpu.memory_space<vmem>>, vector<1x288x128xbf16>
    %45 = vector.shape_cast %44 : vector<1x288x128xbf16> to vector<288x128xbf16>
    %c5 = arith.constant 5 : index
    %c0_51 = arith.constant 0 : index
    %c0_52 = arith.constant 0 : index
    %46 = vector.load %arg2[%c5, %c0_51, %c0_52] : memref<9x128x128xbf16, #tpu.memory_space<vmem>>, vector<1x128x128xbf16>
    %47 = vector.shape_cast %46 : vector<1x128x128xbf16> to vector<128x128xbf16>
    %cst_53 = arith.constant dense<0.000000e+00> : vector<288x128xf32>
    %48 = tpu.matmul %45, %47, %cst_53 {dimension_numbers = #tpu.dot_dimension_numbers<[1], [0], [0], [1], [0, 0, 1, 1], [], []>} : vector<288x128xbf16>, vector<128x128xbf16>, vector<288x128xf32> -> vector<288x128xf32>
    %c0_54 = arith.constant 0 : index
    %c0_55 = arith.constant 0 : index
    %49 = vector.load %arg6[%c0_54, %c0_55] : memref<288x128xf32, #tpu.memory_space<vmem>>, vector<288x128xf32>
    %50 = arith.addf %49, %48 : vector<288x128xf32>
    %c0_56 = arith.constant 0 : index
    %c0_57 = arith.constant 0 : index
    %51 = vector.load %arg6[%c0_56, %c0_57] : memref<288x128xf32, #tpu.memory_space<vmem>>, vector<288x128xf32>
    tpu.vector_store %arg6[%c0_56, %c0_57], %50 {strides = array<i32>} : memref<288x128xf32, #tpu.memory_space<vmem>>, vector<288x128xf32>,
    %c0_58 = arith.constant 0 : index
    %c53 = arith.constant 53 : index
    %c0_59 = arith.constant 0 : index
    %52 = vector.load %arg1[%c0_58, %c53, %c0_59] : memref<2x360x128xbf16, #tpu.memory_space<vmem>>, vector<1x288x128xbf16>
    %53 = vector.shape_cast %52 : vector<1x288x128xbf16> to vector<288x128xbf16>
    %c6 = arith.constant 6 : index
    %c0_60 = arith.constant 0 : index
    %c0_61 = arith.constant 0 : index
    %54 = vector.load %arg2[%c6, %c0_60, %c0_61] : memref<9x128x128xbf16, #tpu.memory_space<vmem>>, vector<1x128x128xbf16>
    %55 = vector.shape_cast %54 : vector<1x128x128xbf16> to vector<128x128xbf16>
    %cst_62 = arith.constant dense<0.000000e+00> : vector<288x128xf32>
    %56 = tpu.matmul %53, %55, %cst_62 {dimension_numbers = #tpu.dot_dimension_numbers<[1], [0], [0], [1], [0, 0, 1, 1], [], []>} : vector<288x128xbf16>, vector<128x128xbf16>, vector<288x128xf32> -> vector<288x128xf32>
    %c0_63 = arith.constant 0 : index
    %c0_64 = arith.constant 0 : index
    %57 = vector.load %arg6[%c0_63, %c0_64] : memref<288x128xf32, #tpu.memory_space<vmem>>, vector<288x128xf32>
    %58 = arith.addf %57, %56 : vector<288x128xf32>
    %c0_65 = arith.constant 0 : index
    %c0_66 = arith.constant 0 : index
    %59 = vector.load %arg6[%c0_65, %c0_66] : memref<288x128xf32, #tpu.memory_space<vmem>>, vector<288x128xf32>
    tpu.vector_store %arg6[%c0_65, %c0_66], %58 {strides = array<i32>} : memref<288x128xf32, #tpu.memory_space<vmem>>, vector<288x128xf32>,
    %c0_67 = arith.constant 0 : index
    %c54 = arith.constant 54 : index
    %c0_68 = arith.constant 0 : index
    %60 = vector.load %arg1[%c0_67, %c54, %c0_68] : memref<2x360x128xbf16, #tpu.memory_space<vmem>>, vector<1x288x128xbf16>
    %61 = vector.shape_cast %60 : vector<1x288x128xbf16> to vector<288x128xbf16>
    %c7 = arith.constant 7 : index
    %c0_69 = arith.constant 0 : index
    %c0_70 = arith.constant 0 : index
    %62 = vector.load %arg2[%c7, %c0_69, %c0_70] : memref<9x128x128xbf16, #tpu.memory_space<vmem>>, vector<1x128x128xbf16>
    %63 = vector.shape_cast %62 : vector<1x128x128xbf16> to vector<128x128xbf16>
    %cst_71 = arith.constant dense<0.000000e+00> : vector<288x128xf32>
    %64 = tpu.matmul %61, %63, %cst_71 {dimension_numbers = #tpu.dot_dimension_numbers<[1], [0], [0], [1], [0, 0, 1, 1], [], []>} : vector<288x128xbf16>, vector<128x128xbf16>, vector<288x128xf32> -> vector<288x128xf32>
    %c0_72 = arith.constant 0 : index
    %c0_73 = arith.constant 0 : index
    %65 = vector.load %arg6[%c0_72, %c0_73] : memref<288x128xf32, #tpu.memory_space<vmem>>, vector<288x128xf32>
    %66 = arith.addf %65, %64 : vector<288x128xf32>
    %c0_74 = arith.constant 0 : index
    %c0_75 = arith.constant 0 : index
    %67 = vector.load %arg6[%c0_74, %c0_75] : memref<288x128xf32, #tpu.memory_space<vmem>>, vector<288x128xf32>
    tpu.vector_store %arg6[%c0_74, %c0_75], %66 {strides = array<i32>} : memref<288x128xf32, #tpu.memory_space<vmem>>, vector<288x128xf32>,
    %c0_76 = arith.constant 0 : index
    %c55 = arith.constant 55 : index
    %c0_77 = arith.constant 0 : index
    %68 = vector.load %arg1[%c0_76, %c55, %c0_77] : memref<2x360x128xbf16, #tpu.memory_space<vmem>>, vector<1x288x128xbf16>
    %69 = vector.shape_cast %68 : vector<1x288x128xbf16> to vector<288x128xbf16>
    %c8 = arith.constant 8 : index
    %c0_78 = arith.constant 0 : index
    %c0_79 = arith.constant 0 : index
    %70 = vector.load %arg2[%c8, %c0_78, %c0_79] : memref<9x128x128xbf16, #tpu.memory_space<vmem>>, vector<1x128x128xbf16>
    %71 = vector.shape_cast %70 : vector<1x128x128xbf16> to vector<128x128xbf16>
    %cst_80 = arith.constant dense<0.000000e+00> : vector<288x128xf32>
    %72 = tpu.matmul %69, %71, %cst_80 {dimension_numbers = #tpu.dot_dimension_numbers<[1], [0], [0], [1], [0, 0, 1, 1], [], []>} : vector<288x128xbf16>, vector<128x128xbf16>, vector<288x128xf32> -> vector<288x128xf32>
    %c0_81 = arith.constant 0 : index
    %c0_82 = arith.constant 0 : index
    %73 = vector.load %arg6[%c0_81, %c0_82] : memref<288x128xf32, #tpu.memory_space<vmem>>, vector<288x128xf32>
    %74 = arith.addf %73, %72 : vector<288x128xf32>
    %c0_83 = arith.constant 0 : index
    %c0_84 = arith.constant 0 : index
    %75 = vector.load %arg6[%c0_83, %c0_84] : memref<288x128xf32, #tpu.memory_space<vmem>>, vector<288x128xf32>
    tpu.vector_store %arg6[%c0_83, %c0_84], %74 {strides = array<i32>} : memref<288x128xf32, #tpu.memory_space<vmem>>, vector<288x128xf32>,
    %c0_85 = arith.constant 0 : index
    %c0_86 = arith.constant 0 : index
    %76 = vector.load %arg6[%c0_85, %c0_86] : memref<288x128xf32, #tpu.memory_space<vmem>>, vector<288x128xf32>
    %77 = arith.truncf %76 : vector<288x128xf32> to vector<288x128xbf16>
    %c0_87 = arith.constant 0 : index
    %c36_88 = arith.constant 36 : index
    %c0_89 = arith.constant 0 : index
    %78 = vector.load %arg4[%c0_87, %c36_88, %c0_89] : memref<2x360x128xbf16, #tpu.memory_space<vmem>>, vector<1x288x128xbf16>
    %79 = vector.shape_cast %78 : vector<1x288x128xbf16> to vector<288x128xbf16>
    %80 = vector.shape_cast %77 : vector<288x128xbf16> to vector<1x288x128xbf16>
    tpu.vector_store %arg4[%c0_87, %c36_88, %c0_89], %80 {strides = array<i32>} : memref<2x360x128xbf16, #tpu.memory_space<vmem>>, vector<1x288x128xbf16>,
    %81 = vector.broadcast %5 : vector<288x1xf32> to vector<288x128xf32>
    %82 = arith.mulf %76, %81 : vector<288x128xf32>
    %c0_90 = arith.constant 0 : index
    %c0_91 = arith.constant 0 : index
    %83 = vector.load %arg5[%c0_90, %c0_91] : memref<2x128xf32, #tpu.memory_space<vmem>>, vector<2x128xf32>
    %cst_92 = arith.constant dense<0.000000e+00> : vector<128xf32>
    %84 = vector.multi_reduction <add>, %82, %cst_92 [0] : vector<288x128xf32> to vector<128xf32>
    %85 = vector.shape_cast %84 : vector<128xf32> to vector<1x128xf32>
    %86 = arith.mulf %82, %76 : vector<288x128xf32>
    %cst_93 = arith.constant dense<0.000000e+00> : vector<128xf32>
    %87 = vector.multi_reduction <add>, %86, %cst_93 [0] : vector<288x128xf32> to vector<128xf32>
    %88 = vector.shape_cast %87 : vector<128xf32> to vector<1x128xf32>
    %89 = tpu.concatenate %85, %88 in 0 : vector<1x128xf32>, vector<1x128xf32> -> vector<2x128xf32>
    %90 = arith.addf %83, %89 : vector<2x128xf32>
    %c0_94 = arith.constant 0 : index
    %c0_95 = arith.constant 0 : index
    %91 = vector.load %arg5[%c0_94, %c0_95] : memref<2x128xf32, #tpu.memory_space<vmem>>, vector<2x128xf32>
    tpu.vector_store %arg5[%c0_94, %c0_95], %90 {strides = array<i32>} : memref<2x128xf32, #tpu.memory_space<vmem>>, vector<2x128xf32>,
    %c1_96 = arith.constant 1 : index
    %c17_97 = arith.constant 17 : index
    %c0_98 = arith.constant 0 : index
    %92 = vector.load %arg1[%c1_96, %c17_97, %c0_98] : memref<2x360x128xbf16, #tpu.memory_space<vmem>>, vector<1x288x128xbf16>
    %93 = vector.shape_cast %92 : vector<1x288x128xbf16> to vector<288x128xbf16>
    %c0_99 = arith.constant 0 : index
    %c0_100 = arith.constant 0 : index
    %c0_101 = arith.constant 0 : index
    %94 = vector.load %arg2[%c0_99, %c0_100, %c0_101] : memref<9x128x128xbf16, #tpu.memory_space<vmem>>, vector<1x128x128xbf16>
    %95 = vector.shape_cast %94 : vector<1x128x128xbf16> to vector<128x128xbf16>
    %cst_102 = arith.constant dense<0.000000e+00> : vector<288x128xf32>
    %96 = tpu.matmul %93, %95, %cst_102 {dimension_numbers = #tpu.dot_dimension_numbers<[1], [0], [0], [1], [0, 0, 1, 1], [], []>} : vector<288x128xbf16>, vector<128x128xbf16>, vector<288x128xf32> -> vector<288x128xf32>
    %c0_103 = arith.constant 0 : index
    %c0_104 = arith.constant 0 : index
    %97 = vector.load %arg6[%c0_103, %c0_104] : memref<288x128xf32, #tpu.memory_space<vmem>>, vector<288x128xf32>
    tpu.vector_store %arg6[%c0_103, %c0_104], %96 {strides = array<i32>} : memref<288x128xf32, #tpu.memory_space<vmem>>, vector<288x128xf32>,
    %c1_105 = arith.constant 1 : index
    %c18_106 = arith.constant 18 : index
    %c0_107 = arith.constant 0 : index
    %98 = vector.load %arg1[%c1_105, %c18_106, %c0_107] : memref<2x360x128xbf16, #tpu.memory_space<vmem>>, vector<1x288x128xbf16>
    %99 = vector.shape_cast %98 : vector<1x288x128xbf16> to vector<288x128xbf16>
    %c1_108 = arith.constant 1 : index
    %c0_109 = arith.constant 0 : index
    %c0_110 = arith.constant 0 : index
    %100 = vector.load %arg2[%c1_108, %c0_109, %c0_110] : memref<9x128x128xbf16, #tpu.memory_space<vmem>>, vector<1x128x128xbf16>
    %101 = vector.shape_cast %100 : vector<1x128x128xbf16> to vector<128x128xbf16>
    %cst_111 = arith.constant dense<0.000000e+00> : vector<288x128xf32>
    %102 = tpu.matmul %99, %101, %cst_111 {dimension_numbers = #tpu.dot_dimension_numbers<[1], [0], [0], [1], [0, 0, 1, 1], [], []>} : vector<288x128xbf16>, vector<128x128xbf16>, vector<288x128xf32> -> vector<288x128xf32>
    %c0_112 = arith.constant 0 : index
    %c0_113 = arith.constant 0 : index
    %103 = vector.load %arg6[%c0_112, %c0_113] : memref<288x128xf32, #tpu.memory_space<vmem>>, vector<288x128xf32>
    %104 = arith.addf %103, %102 : vector<288x128xf32>
    %c0_114 = arith.constant 0 : index
    %c0_115 = arith.constant 0 : index
    %105 = vector.load %arg6[%c0_114, %c0_115] : memref<288x128xf32, #tpu.memory_space<vmem>>, vector<288x128xf32>
    tpu.vector_store %arg6[%c0_114, %c0_115], %104 {strides = array<i32>} : memref<288x128xf32, #tpu.memory_space<vmem>>, vector<288x128xf32>,
    %c1_116 = arith.constant 1 : index
    %c19_117 = arith.constant 19 : index
    %c0_118 = arith.constant 0 : index
    %106 = vector.load %arg1[%c1_116, %c19_117, %c0_118] : memref<2x360x128xbf16, #tpu.memory_space<vmem>>, vector<1x288x128xbf16>
    %107 = vector.shape_cast %106 : vector<1x288x128xbf16> to vector<288x128xbf16>
    %c2_119 = arith.constant 2 : index
    %c0_120 = arith.constant 0 : index
    %c0_121 = arith.constant 0 : index
    %108 = vector.load %arg2[%c2_119, %c0_120, %c0_121] : memref<9x128x128xbf16, #tpu.memory_space<vmem>>, vector<1x128x128xbf16>
    %109 = vector.shape_cast %108 : vector<1x128x128xbf16> to vector<128x128xbf16>
    %cst_122 = arith.constant dense<0.000000e+00> : vector<288x128xf32>
    %110 = tpu.matmul %107, %109, %cst_122 {dimension_numbers = #tpu.dot_dimension_numbers<[1], [0], [0], [1], [0, 0, 1, 1], [], []>} : vector<288x128xbf16>, vector<128x128xbf16>, vector<288x128xf32> -> vector<288x128xf32>
    %c0_123 = arith.constant 0 : index
    %c0_124 = arith.constant 0 : index
    %111 = vector.load %arg6[%c0_123, %c0_124] : memref<288x128xf32, #tpu.memory_space<vmem>>, vector<288x128xf32>
    %112 = arith.addf %111, %110 : vector<288x128xf32>
    %c0_125 = arith.constant 0 : index
    %c0_126 = arith.constant 0 : index
    %113 = vector.load %arg6[%c0_125, %c0_126] : memref<288x128xf32, #tpu.memory_space<vmem>>, vector<288x128xf32>
    tpu.vector_store %arg6[%c0_125, %c0_126], %112 {strides = array<i32>} : memref<288x128xf32, #tpu.memory_space<vmem>>, vector<288x128xf32>,
    %c1_127 = arith.constant 1 : index
    %c35_128 = arith.constant 35 : index
    %c0_129 = arith.constant 0 : index
    %114 = vector.load %arg1[%c1_127, %c35_128, %c0_129] : memref<2x360x128xbf16, #tpu.memory_space<vmem>>, vector<1x288x128xbf16>
    %115 = vector.shape_cast %114 : vector<1x288x128xbf16> to vector<288x128xbf16>
    %c3_130 = arith.constant 3 : index
    %c0_131 = arith.constant 0 : index
    %c0_132 = arith.constant 0 : index
    %116 = vector.load %arg2[%c3_130, %c0_131, %c0_132] : memref<9x128x128xbf16, #tpu.memory_space<vmem>>, vector<1x128x128xbf16>
    %117 = vector.shape_cast %116 : vector<1x128x128xbf16> to vector<128x128xbf16>
    %cst_133 = arith.constant dense<0.000000e+00> : vector<288x128xf32>
    %118 = tpu.matmul %115, %117, %cst_133 {dimension_numbers = #tpu.dot_dimension_numbers<[1], [0], [0], [1], [0, 0, 1, 1], [], []>} : vector<288x128xbf16>, vector<128x128xbf16>, vector<288x128xf32> -> vector<288x128xf32>
    %c0_134 = arith.constant 0 : index
    %c0_135 = arith.constant 0 : index
    %119 = vector.load %arg6[%c0_134, %c0_135] : memref<288x128xf32, #tpu.memory_space<vmem>>, vector<288x128xf32>
    %120 = arith.addf %119, %118 : vector<288x128xf32>
    %c0_136 = arith.constant 0 : index
    %c0_137 = arith.constant 0 : index
    %121 = vector.load %arg6[%c0_136, %c0_137] : memref<288x128xf32, #tpu.memory_space<vmem>>, vector<288x128xf32>
    tpu.vector_store %arg6[%c0_136, %c0_137], %120 {strides = array<i32>} : memref<288x128xf32, #tpu.memory_space<vmem>>, vector<288x128xf32>,
    %c1_138 = arith.constant 1 : index
    %c36_139 = arith.constant 36 : index
    %c0_140 = arith.constant 0 : index
    %122 = vector.load %arg1[%c1_138, %c36_139, %c0_140] : memref<2x360x128xbf16, #tpu.memory_space<vmem>>, vector<1x288x128xbf16>
    %123 = vector.shape_cast %122 : vector<1x288x128xbf16> to vector<288x128xbf16>
    %c4_141 = arith.constant 4 : index
    %c0_142 = arith.constant 0 : index
    %c0_143 = arith.constant 0 : index
    %124 = vector.load %arg2[%c4_141, %c0_142, %c0_143] : memref<9x128x128xbf16, #tpu.memory_space<vmem>>, vector<1x128x128xbf16>
    %125 = vector.shape_cast %124 : vector<1x128x128xbf16> to vector<128x128xbf16>
    %cst_144 = arith.constant dense<0.000000e+00> : vector<288x128xf32>
    %126 = tpu.matmul %123, %125, %cst_144 {dimension_numbers = #tpu.dot_dimension_numbers<[1], [0], [0], [1], [0, 0, 1, 1], [], []>} : vector<288x128xbf16>, vector<128x128xbf16>, vector<288x128xf32> -> vector<288x128xf32>
    %c0_145 = arith.constant 0 : index
    %c0_146 = arith.constant 0 : index
    %127 = vector.load %arg6[%c0_145, %c0_146] : memref<288x128xf32, #tpu.memory_space<vmem>>, vector<288x128xf32>
    %128 = arith.addf %127, %126 : vector<288x128xf32>
    %c0_147 = arith.constant 0 : index
    %c0_148 = arith.constant 0 : index
    %129 = vector.load %arg6[%c0_147, %c0_148] : memref<288x128xf32, #tpu.memory_space<vmem>>, vector<288x128xf32>
    tpu.vector_store %arg6[%c0_147, %c0_148], %128 {strides = array<i32>} : memref<288x128xf32, #tpu.memory_space<vmem>>, vector<288x128xf32>,
    %c1_149 = arith.constant 1 : index
    %c37_150 = arith.constant 37 : index
    %c0_151 = arith.constant 0 : index
    %130 = vector.load %arg1[%c1_149, %c37_150, %c0_151] : memref<2x360x128xbf16, #tpu.memory_space<vmem>>, vector<1x288x128xbf16>
    %131 = vector.shape_cast %130 : vector<1x288x128xbf16> to vector<288x128xbf16>
    %c5_152 = arith.constant 5 : index
    %c0_153 = arith.constant 0 : index
    %c0_154 = arith.constant 0 : index
    %132 = vector.load %arg2[%c5_152, %c0_153, %c0_154] : memref<9x128x128xbf16, #tpu.memory_space<vmem>>, vector<1x128x128xbf16>
    %133 = vector.shape_cast %132 : vector<1x128x128xbf16> to vector<128x128xbf16>
    %cst_155 = arith.constant dense<0.000000e+00> : vector<288x128xf32>
    %134 = tpu.matmul %131, %133, %cst_155 {dimension_numbers = #tpu.dot_dimension_numbers<[1], [0], [0], [1], [0, 0, 1, 1], [], []>} : vector<288x128xbf16>, vector<128x128xbf16>, vector<288x128xf32> -> vector<288x128xf32>
    %c0_156 = arith.constant 0 : index
    %c0_157 = arith.constant 0 : index
    %135 = vector.load %arg6[%c0_156, %c0_157] : memref<288x128xf32, #tpu.memory_space<vmem>>, vector<288x128xf32>
    %136 = arith.addf %135, %134 : vector<288x128xf32>
    %c0_158 = arith.constant 0 : index
    %c0_159 = arith.constant 0 : index
    %137 = vector.load %arg6[%c0_158, %c0_159] : memref<288x128xf32, #tpu.memory_space<vmem>>, vector<288x128xf32>
    tpu.vector_store %arg6[%c0_158, %c0_159], %136 {strides = array<i32>} : memref<288x128xf32, #tpu.memory_space<vmem>>, vector<288x128xf32>,
    %c1_160 = arith.constant 1 : index
    %c53_161 = arith.constant 53 : index
    %c0_162 = arith.constant 0 : index
    %138 = vector.load %arg1[%c1_160, %c53_161, %c0_162] : memref<2x360x128xbf16, #tpu.memory_space<vmem>>, vector<1x288x128xbf16>
    %139 = vector.shape_cast %138 : vector<1x288x128xbf16> to vector<288x128xbf16>
    %c6_163 = arith.constant 6 : index
    %c0_164 = arith.constant 0 : index
    %c0_165 = arith.constant 0 : index
    %140 = vector.load %arg2[%c6_163, %c0_164, %c0_165] : memref<9x128x128xbf16, #tpu.memory_space<vmem>>, vector<1x128x128xbf16>
    %141 = vector.shape_cast %140 : vector<1x128x128xbf16> to vector<128x128xbf16>
    %cst_166 = arith.constant dense<0.000000e+00> : vector<288x128xf32>
    %142 = tpu.matmul %139, %141, %cst_166 {dimension_numbers = #tpu.dot_dimension_numbers<[1], [0], [0], [1], [0, 0, 1, 1], [], []>} : vector<288x128xbf16>, vector<128x128xbf16>, vector<288x128xf32> -> vector<288x128xf32>
    %c0_167 = arith.constant 0 : index
    %c0_168 = arith.constant 0 : index
    %143 = vector.load %arg6[%c0_167, %c0_168] : memref<288x128xf32, #tpu.memory_space<vmem>>, vector<288x128xf32>
    %144 = arith.addf %143, %142 : vector<288x128xf32>
    %c0_169 = arith.constant 0 : index
    %c0_170 = arith.constant 0 : index
    %145 = vector.load %arg6[%c0_169, %c0_170] : memref<288x128xf32, #tpu.memory_space<vmem>>, vector<288x128xf32>
    tpu.vector_store %arg6[%c0_169, %c0_170], %144 {strides = array<i32>} : memref<288x128xf32, #tpu.memory_space<vmem>>, vector<288x128xf32>,
    %c1_171 = arith.constant 1 : index
    %c54_172 = arith.constant 54 : index
    %c0_173 = arith.constant 0 : index
    %146 = vector.load %arg1[%c1_171, %c54_172, %c0_173] : memref<2x360x128xbf16, #tpu.memory_space<vmem>>, vector<1x288x128xbf16>
    %147 = vector.shape_cast %146 : vector<1x288x128xbf16> to vector<288x128xbf16>
    %c7_174 = arith.constant 7 : index
    %c0_175 = arith.constant 0 : index
    %c0_176 = arith.constant 0 : index
    %148 = vector.load %arg2[%c7_174, %c0_175, %c0_176] : memref<9x128x128xbf16, #tpu.memory_space<vmem>>, vector<1x128x128xbf16>
    %149 = vector.shape_cast %148 : vector<1x128x128xbf16> to vector<128x128xbf16>
    %cst_177 = arith.constant dense<0.000000e+00> : vector<288x128xf32>
    %150 = tpu.matmul %147, %149, %cst_177 {dimension_numbers = #tpu.dot_dimension_numbers<[1], [0], [0], [1], [0, 0, 1, 1], [], []>} : vector<288x128xbf16>, vector<128x128xbf16>, vector<288x128xf32> -> vector<288x128xf32>
    %c0_178 = arith.constant 0 : index
    %c0_179 = arith.constant 0 : index
    %151 = vector.load %arg6[%c0_178, %c0_179] : memref<288x128xf32, #tpu.memory_space<vmem>>, vector<288x128xf32>
    %152 = arith.addf %151, %150 : vector<288x128xf32>
    %c0_180 = arith.constant 0 : index
    %c0_181 = arith.constant 0 : index
    %153 = vector.load %arg6[%c0_180, %c0_181] : memref<288x128xf32, #tpu.memory_space<vmem>>, vector<288x128xf32>
    tpu.vector_store %arg6[%c0_180, %c0_181], %152 {strides = array<i32>} : memref<288x128xf32, #tpu.memory_space<vmem>>, vector<288x128xf32>,
    %c1_182 = arith.constant 1 : index
    %c55_183 = arith.constant 55 : index
    %c0_184 = arith.constant 0 : index
    %154 = vector.load %arg1[%c1_182, %c55_183, %c0_184] : memref<2x360x128xbf16, #tpu.memory_space<vmem>>, vector<1x288x128xbf16>
    %155 = vector.shape_cast %154 : vector<1x288x128xbf16> to vector<288x128xbf16>
    %c8_185 = arith.constant 8 : index
    %c0_186 = arith.constant 0 : index
    %c0_187 = arith.constant 0 : index
    %156 = vector.load %arg2[%c8_185, %c0_186, %c0_187] : memref<9x128x128xbf16, #tpu.memory_space<vmem>>, vector<1x128x128xbf16>
    %157 = vector.shape_cast %156 : vector<1x128x128xbf16> to vector<128x128xbf16>
    %cst_188 = arith.constant dense<0.000000e+00> : vector<288x128xf32>
    %158 = tpu.matmul %155, %157, %cst_188 {dimension_numbers = #tpu.dot_dimension_numbers<[1], [0], [0], [1], [0, 0, 1, 1], [], []>} : vector<288x128xbf16>, vector<128x128xbf16>, vector<288x128xf32> -> vector<288x128xf32>
    %c0_189 = arith.constant 0 : index
    %c0_190 = arith.constant 0 : index
    %159 = vector.load %arg6[%c0_189, %c0_190] : memref<288x128xf32, #tpu.memory_space<vmem>>, vector<288x128xf32>
    %160 = arith.addf %159, %158 : vector<288x128xf32>
    %c0_191 = arith.constant 0 : index
    %c0_192 = arith.constant 0 : index
    %161 = vector.load %arg6[%c0_191, %c0_192] : memref<288x128xf32, #tpu.memory_space<vmem>>, vector<288x128xf32>
    tpu.vector_store %arg6[%c0_191, %c0_192], %160 {strides = array<i32>} : memref<288x128xf32, #tpu.memory_space<vmem>>, vector<288x128xf32>,
    %c0_193 = arith.constant 0 : index
    %c0_194 = arith.constant 0 : index
    %162 = vector.load %arg6[%c0_193, %c0_194] : memref<288x128xf32, #tpu.memory_space<vmem>>, vector<288x128xf32>
    %163 = arith.truncf %162 : vector<288x128xf32> to vector<288x128xbf16>
    %c1_195 = arith.constant 1 : index
    %c36_196 = arith.constant 36 : index
    %c0_197 = arith.constant 0 : index
    %164 = vector.load %arg4[%c1_195, %c36_196, %c0_197] : memref<2x360x128xbf16, #tpu.memory_space<vmem>>, vector<1x288x128xbf16>
    %165 = vector.shape_cast %164 : vector<1x288x128xbf16> to vector<288x128xbf16>
    %166 = vector.shape_cast %163 : vector<288x128xbf16> to vector<1x288x128xbf16>
    tpu.vector_store %arg4[%c1_195, %c36_196, %c0_197], %166 {strides = array<i32>} : memref<2x360x128xbf16, #tpu.memory_space<vmem>>, vector<1x288x128xbf16>,
    %167 = vector.broadcast %5 : vector<288x1xf32> to vector<288x128xf32>
    %168 = arith.mulf %162, %167 : vector<288x128xf32>
    %c0_198 = arith.constant 0 : index
    %c0_199 = arith.constant 0 : index
    %169 = vector.load %arg5[%c0_198, %c0_199] : memref<2x128xf32, #tpu.memory_space<vmem>>, vector<2x128xf32>
    %cst_200 = arith.constant dense<0.000000e+00> : vector<128xf32>
    %170 = vector.multi_reduction <add>, %168, %cst_200 [0] : vector<288x128xf32> to vector<128xf32>
    %171 = vector.shape_cast %170 : vector<128xf32> to vector<1x128xf32>
    %172 = arith.mulf %168, %162 : vector<288x128xf32>
    %cst_201 = arith.constant dense<0.000000e+00> : vector<128xf32>
    %173 = vector.multi_reduction <add>, %172, %cst_201 [0] : vector<288x128xf32> to vector<128xf32>
    %174 = vector.shape_cast %173 : vector<128xf32> to vector<1x128xf32>
    %175 = tpu.concatenate %171, %174 in 0 : vector<1x128xf32>, vector<1x128xf32> -> vector<2x128xf32>
    %176 = arith.addf %169, %175 : vector<2x128xf32>
    %c0_202 = arith.constant 0 : index
    %c0_203 = arith.constant 0 : index
    %177 = vector.load %arg5[%c0_202, %c0_203] : memref<2x128xf32, #tpu.memory_space<vmem>>, vector<2x128xf32>
    tpu.vector_store %arg5[%c0_202, %c0_203], %176 {strides = array<i32>} : memref<2x128xf32, #tpu.memory_space<vmem>>, vector<2x128xf32>,
    return
  }
  func.func @transform_0(%arg0: i32) -> (i32, i32, i32) {
    %c0_i32 = arith.constant 0 : i32
    %c0_i32_0 = arith.constant 0 : i32
    %c0_i32_1 = arith.constant 0 : i32
    return %arg0, %c0_i32, %c0_i32_0 : i32, i32, i32
  }
  func.func @transform_1(%arg0: i32) -> (i32, i32, i32) {
    %c0_i32 = arith.constant 0 : i32
    %c0_i32_0 = arith.constant 0 : i32
    %c0_i32_1 = arith.constant 0 : i32
    %c0_i32_2 = arith.constant 0 : i32
    return %c0_i32, %c0_i32_0, %c0_i32_1 : i32, i32, i32
  }
  func.func @transform_2(%arg0: i32) -> (i32, i32) {
    %c0_i32 = arith.constant 0 : i32
    %c0_i32_0 = arith.constant 0 : i32
    %c0_i32_1 = arith.constant 0 : i32
    return %c0_i32, %c0_i32_0 : i32, i32
  }
  func.func @transform_3(%arg0: i32) -> (i32, i32, i32) {
    %c0_i32 = arith.constant 0 : i32
    %c0_i32_0 = arith.constant 0 : i32
    %c0_i32_1 = arith.constant 0 : i32
    return %arg0, %c0_i32, %c0_i32_0 : i32, i32, i32
  }
  func.func @transform_4(%arg0: i32) -> (i32, i32) {
    %c0_i32 = arith.constant 0 : i32
    %c0_i32_0 = arith.constant 0 : i32
    %c0_i32_1 = arith.constant 0 : i32
    return %c0_i32, %c0_i32_0 : i32, i32
  }
}

module attributes {stable_mosaic.version = 11 : i64} {
  func.func @_bn_relu_mask_kernel(%arg0: i32, %arg1: memref<2x360x128xbf16, #tpu.memory_space<vmem>>, %arg2: memref<1x128xf32, #tpu.memory_space<vmem>>, %arg3: memref<1x128xf32, #tpu.memory_space<vmem>>, %arg4: memref<360x1xf32, #tpu.memory_space<vmem>>, %arg5: memref<2x360x128xbf16, #tpu.memory_space<vmem>>) attributes {dimension_semantics = [#tpu.dimension_semantics<parallel>], iteration_bounds = array<i64: 1>, scalar_prefetch = 0 : i64, scratch_operands = 0 : i64, tpu.core_type = #tpu.core_type<tc>, window_params = [{transform_indices = @transform_0, window_bounds = array<i64: 2, 360, 128>}, {pipeline_mode = #tpu.pipeline_mode<synchronous>, transform_indices = @transform_1, window_bounds = array<i64: 1, 128>}, {pipeline_mode = #tpu.pipeline_mode<synchronous>, transform_indices = @transform_2, window_bounds = array<i64: 1, 128>}, {pipeline_mode = #tpu.pipeline_mode<synchronous>, transform_indices = @transform_3, window_bounds = array<i64: 360, 1>}, {transform_indices = @transform_4, window_bounds = array<i64: 2, 360, 128>}]} {
    %c0 = arith.constant 0 : index
    %c0_0 = arith.constant 0 : index
    %c0_1 = arith.constant 0 : index
    %0 = vector.load %arg1[%c0, %c0_0, %c0_1] : memref<2x360x128xbf16, #tpu.memory_space<vmem>>, vector<2x360x128xbf16>
    %1 = arith.extf %0 : vector<2x360x128xbf16> to vector<2x360x128xf32>
    %c0_2 = arith.constant 0 : index
    %c0_3 = arith.constant 0 : index
    %2 = vector.load %arg2[%c0_2, %c0_3] : memref<1x128xf32, #tpu.memory_space<vmem>>, vector<1x128xf32>
    %3 = vector.shape_cast %2 : vector<1x128xf32> to vector<1x1x128xf32>
    %4 = vector.broadcast %3 : vector<1x1x128xf32> to vector<2x360x128xf32>
    %5 = arith.mulf %1, %4 : vector<2x360x128xf32>
    %c0_4 = arith.constant 0 : index
    %c0_5 = arith.constant 0 : index
    %6 = vector.load %arg3[%c0_4, %c0_5] : memref<1x128xf32, #tpu.memory_space<vmem>>, vector<1x128xf32>
    %7 = vector.shape_cast %6 : vector<1x128xf32> to vector<1x1x128xf32>
    %8 = vector.broadcast %7 : vector<1x1x128xf32> to vector<2x360x128xf32>
    %9 = arith.addf %5, %8 : vector<2x360x128xf32>
    %cst = arith.constant 0.000000e+00 : f32
    %10 = vector.broadcast %cst : f32 to vector<2x360x128xf32>
    %11 = arith.maximumf %9, %10 : vector<2x360x128xf32>
    %c0_6 = arith.constant 0 : index
    %c0_7 = arith.constant 0 : index
    %12 = vector.load %arg4[%c0_6, %c0_7] : memref<360x1xf32, #tpu.memory_space<vmem>>, vector<360x1xf32>
    %13 = vector.shape_cast %12 : vector<360x1xf32> to vector<1x360x1xf32>
    %14 = vector.broadcast %13 : vector<1x360x1xf32> to vector<2x360x128xf32>
    %15 = arith.mulf %11, %14 : vector<2x360x128xf32>
    %16 = arith.truncf %15 : vector<2x360x128xf32> to vector<2x360x128xbf16>
    %c0_8 = arith.constant 0 : index
    %c0_9 = arith.constant 0 : index
    %c0_10 = arith.constant 0 : index
    %17 = vector.load %arg5[%c0_8, %c0_9, %c0_10] : memref<2x360x128xbf16, #tpu.memory_space<vmem>>, vector<2x360x128xbf16>
    tpu.vector_store %arg5[%c0_8, %c0_9, %c0_10], %16 {strides = array<i32>} : memref<2x360x128xbf16, #tpu.memory_space<vmem>>, vector<2x360x128xbf16>,
    return
  }
  func.func @transform_0(%arg0: i32) -> (i32, i32, i32) {
    %c0_i32 = arith.constant 0 : i32
    %c0_i32_0 = arith.constant 0 : i32
    %c0_i32_1 = arith.constant 0 : i32
    return %arg0, %c0_i32, %c0_i32_0 : i32, i32, i32
  }
  func.func @transform_1(%arg0: i32) -> (i32, i32) {
    %c0_i32 = arith.constant 0 : i32
    %c0_i32_0 = arith.constant 0 : i32
    %c0_i32_1 = arith.constant 0 : i32
    return %c0_i32, %c0_i32_0 : i32, i32
  }
  func.func @transform_2(%arg0: i32) -> (i32, i32) {
    %c0_i32 = arith.constant 0 : i32
    %c0_i32_0 = arith.constant 0 : i32
    %c0_i32_1 = arith.constant 0 : i32
    return %c0_i32, %c0_i32_0 : i32, i32
  }
  func.func @transform_3(%arg0: i32) -> (i32, i32) {
    %c0_i32 = arith.constant 0 : i32
    %c0_i32_0 = arith.constant 0 : i32
    %c0_i32_1 = arith.constant 0 : i32
    return %c0_i32, %c0_i32_0 : i32, i32
  }
  func.func @transform_4(%arg0: i32) -> (i32, i32, i32) {
    %c0_i32 = arith.constant 0 : i32
    %c0_i32_0 = arith.constant 0 : i32
    %c0_i32_1 = arith.constant 0 : i32
    return %arg0, %c0_i32, %c0_i32_0 : i32, i32, i32
  }
}

module attributes {stable_mosaic.version = 11 : i64} {
  func.func @_bn_relu_mask_kernel(%arg0: i32, %arg1: memref<2x360x128xbf16, #tpu.memory_space<vmem>>, %arg2: memref<1x128xf32, #tpu.memory_space<vmem>>, %arg3: memref<1x128xf32, #tpu.memory_space<vmem>>, %arg4: memref<360x1xf32, #tpu.memory_space<vmem>>, %arg5: memref<2x360x128xf32, #tpu.memory_space<vmem>>) attributes {dimension_semantics = [#tpu.dimension_semantics<parallel>], iteration_bounds = array<i64: 1>, scalar_prefetch = 0 : i64, scratch_operands = 0 : i64, tpu.core_type = #tpu.core_type<tc>, window_params = [{transform_indices = @transform_0, window_bounds = array<i64: 2, 360, 128>}, {pipeline_mode = #tpu.pipeline_mode<synchronous>, transform_indices = @transform_1, window_bounds = array<i64: 1, 128>}, {pipeline_mode = #tpu.pipeline_mode<synchronous>, transform_indices = @transform_2, window_bounds = array<i64: 1, 128>}, {pipeline_mode = #tpu.pipeline_mode<synchronous>, transform_indices = @transform_3, window_bounds = array<i64: 360, 1>}, {transform_indices = @transform_4, window_bounds = array<i64: 2, 360, 128>}]} {
    %c0 = arith.constant 0 : index
    %c0_0 = arith.constant 0 : index
    %c0_1 = arith.constant 0 : index
    %0 = vector.load %arg1[%c0, %c0_0, %c0_1] : memref<2x360x128xbf16, #tpu.memory_space<vmem>>, vector<2x360x128xbf16>
    %1 = arith.extf %0 : vector<2x360x128xbf16> to vector<2x360x128xf32>
    %c0_2 = arith.constant 0 : index
    %c0_3 = arith.constant 0 : index
    %2 = vector.load %arg2[%c0_2, %c0_3] : memref<1x128xf32, #tpu.memory_space<vmem>>, vector<1x128xf32>
    %3 = vector.shape_cast %2 : vector<1x128xf32> to vector<1x1x128xf32>
    %4 = vector.broadcast %3 : vector<1x1x128xf32> to vector<2x360x128xf32>
    %5 = arith.mulf %1, %4 : vector<2x360x128xf32>
    %c0_4 = arith.constant 0 : index
    %c0_5 = arith.constant 0 : index
    %6 = vector.load %arg3[%c0_4, %c0_5] : memref<1x128xf32, #tpu.memory_space<vmem>>, vector<1x128xf32>
    %7 = vector.shape_cast %6 : vector<1x128xf32> to vector<1x1x128xf32>
    %8 = vector.broadcast %7 : vector<1x1x128xf32> to vector<2x360x128xf32>
    %9 = arith.addf %5, %8 : vector<2x360x128xf32>
    %cst = arith.constant 0.000000e+00 : f32
    %10 = vector.broadcast %cst : f32 to vector<2x360x128xf32>
    %11 = arith.maximumf %9, %10 : vector<2x360x128xf32>
    %c0_6 = arith.constant 0 : index
    %c0_7 = arith.constant 0 : index
    %12 = vector.load %arg4[%c0_6, %c0_7] : memref<360x1xf32, #tpu.memory_space<vmem>>, vector<360x1xf32>
    %13 = vector.shape_cast %12 : vector<360x1xf32> to vector<1x360x1xf32>
    %14 = vector.broadcast %13 : vector<1x360x1xf32> to vector<2x360x128xf32>
    %15 = arith.mulf %11, %14 : vector<2x360x128xf32>
    %c0_8 = arith.constant 0 : index
    %c0_9 = arith.constant 0 : index
    %c0_10 = arith.constant 0 : index
    %16 = vector.load %arg5[%c0_8, %c0_9, %c0_10] : memref<2x360x128xf32, #tpu.memory_space<vmem>>, vector<2x360x128xf32>
    tpu.vector_store %arg5[%c0_8, %c0_9, %c0_10], %15 {strides = array<i32>} : memref<2x360x128xf32, #tpu.memory_space<vmem>>, vector<2x360x128xf32>,
    return
  }
  func.func @transform_0(%arg0: i32) -> (i32, i32, i32) {
    %c0_i32 = arith.constant 0 : i32
    %c0_i32_0 = arith.constant 0 : i32
    %c0_i32_1 = arith.constant 0 : i32
    return %arg0, %c0_i32, %c0_i32_0 : i32, i32, i32
  }
  func.func @transform_1(%arg0: i32) -> (i32, i32) {
    %c0_i32 = arith.constant 0 : i32
    %c0_i32_0 = arith.constant 0 : i32
    %c0_i32_1 = arith.constant 0 : i32
    return %c0_i32, %c0_i32_0 : i32, i32
  }
  func.func @transform_2(%arg0: i32) -> (i32, i32) {
    %c0_i32 = arith.constant 0 : i32
    %c0_i32_0 = arith.constant 0 : i32
    %c0_i32_1 = arith.constant 0 : i32
    return %c0_i32, %c0_i32_0 : i32, i32
  }
  func.func @transform_3(%arg0: i32) -> (i32, i32) {
    %c0_i32 = arith.constant 0 : i32
    %c0_i32_0 = arith.constant 0 : i32
    %c0_i32_1 = arith.constant 0 : i32
    return %c0_i32, %c0_i32_0 : i32, i32
  }
  func.func @transform_4(%arg0: i32) -> (i32, i32, i32) {
    %c0_i32 = arith.constant 0 : i32
    %c0_i32_0 = arith.constant 0 : i32
    %c0_i32_1 = arith.constant 0 : i32
    return %arg0, %c0_i32, %c0_i32_0 : i32, i32, i32
  }
}

</mosaic_0001>

<bundles_post_ra>
// kernel: double_conv_forward.5
= control target key start
LH: loop header
LB: loop body
LE: loop exit
PB: predicated region body
PF: predicated region fallthrough
CT: control target
= control target key end

     0   :  { %v1978_v0 = vmov 0   ;;  %s3040_s3 = inlined_call_operand.vmem [shape: f32[360,1], index: 3, kind: input, shape index: {}]   ;;  %s3041_s0 = inlined_call_operand.vmem [shape: bf16[2,360,128], index: 0, kind: input, shape index: {}]   ;;  %s3042_s1 = inlined_call_operand.vmem [shape: f32[1,128], index: 1, kind: input, shape index: {}]   ;;  %s3043_s2 = inlined_call_operand.vmem [shape: f32[1,128], index: 2, kind: input, shape index: {}]   ;;  %s3044_s4 = inlined_call_operand.vmem [shape: bf16[2,360,128], index: 4, kind: output, shape index: {}]  }
   0x1   :  { %1974 = vset.pattern.permute.xlu1 %v1978_v0  ;;  %1973 = vset.pattern.permute.xlu0 %v1978_v0  ;;  %v483_v1 = vld [vmem:[%s3040_s3 + $0x10] sm:$0xff]  ;;  %v481_v2 = vld [vmem:[%s3040_s3] sm:$0xff]  ;;  %v484_v3 = vld [vmem:[%s3040_s3 + $0x18] sm:$0xff] }
   0x2   :  { %538 = vperm.xlu1 %1974, %v483_v1   ;;  %528 = vperm.xlu0 %1973, %v481_v2   ;;  %v482_v4 = vld [vmem:[%s3040_s3 + $0x8] sm:$0xff]  ;;  %v485_v6 = vld [vmem:[%s3040_s3 + $0x20] sm:$0xff]  ;;  %v488_v7 = vld [vmem:[%s3040_s3 + $0x38] sm:$0xff] }
   0x3   :  { %v486_v5 = vld [vmem:[%s3040_s3 + $0x28] sm:$0xff]  ;;  %v487_v8 = vld [vmem:[%s3040_s3 + $0x30] sm:$0xff]  ;;  %v489_v10 = vld [vmem:[%s3040_s3 + $0x40] sm:$0xff] }
   0x4   :  { %v490_v9 = vld [vmem:[%s3040_s3 + $0x48] sm:$0xff]  ;;  %v492_v11 = vld [vmem:[%s3040_s3 + $0x58] sm:$0xff]  ;;  %v491_v12 = vld [vmem:[%s3040_s3 + $0x50] sm:$0xff] }
   0x5   :  { %v494_v13 = vld [vmem:[%s3040_s3 + $0x68] sm:$0xff]  ;;  %v493_v14 = vld [vmem:[%s3040_s3 + $0x60] sm:$0xff]  ;;  %v496_v15 = vld [vmem:[%s3040_s3 + $0x78] sm:$0xff] }
   0x6   :  { %543 = vperm.xlu1 %1974, %v484_v3   ;;  %533 = vperm.xlu0 %1973, %v482_v4   ;;  %v495_v16 = vld [vmem:[%s3040_s3 + $0x70] sm:$0xff]  ;;  %v498_v17 = vld [vmem:[%s3040_s3 + $0x88] sm:$0xff]  ;;  %v497_v18 = vld [vmem:[%s3040_s3 + $0x80] sm:$0xff] }
   0x7   :  { %v500_v19 = vld [vmem:[%s3040_s3 + $0x98] sm:$0xff]  ;;  %v499_v20 = vld [vmem:[%s3040_s3 + $0x90] sm:$0xff]  ;;  %v502_v21 = vld [vmem:[%s3040_s3 + $0xa8] sm:$0xff] }
   0x8   :  { %v501_v22 = vld [vmem:[%s3040_s3 + $0xa0] sm:$0xff]  ;;  %v504_v23 = vld [vmem:[%s3040_s3 + $0xb8] sm:$0xff]  ;;  %v503_v24 = vld [vmem:[%s3040_s3 + $0xb0] sm:$0xff] }
   0x9   :  { %v506_v25 = vld [vmem:[%s3040_s3 + $0xc8] sm:$0xff]  ;;  %v505_v26 = vld [vmem:[%s3040_s3 + $0xc0] sm:$0xff]  ;;  %v508_v27 = vld [vmem:[%s3040_s3 + $0xd8] sm:$0xff] }
   0xa   :  { %553 = vperm.xlu1 %1974, %v486_v5   ;;  %548 = vperm.xlu0 %1973, %v485_v6   ;;  %v507_v28 = vld [vmem:[%s3040_s3 + $0xd0] sm:$0xff]  ;;  %v510_v29 = vld [vmem:[%s3040_s3 + $0xe8] sm:$0xff]  ;;  %v509_v30 = vld [vmem:[%s3040_s3 + $0xe0] sm:$0xff] }
   0xb   :  { %v512_v31 = vld [vmem:[%s3040_s3 + $0xf8] sm:$0xff]  ;;  %v511_v32 = vld [vmem:[%s3040_s3 + $0xf0] sm:$0xff]  ;;  %v514_v33 = vld [vmem:[%s3040_s3 + $0x108] sm:$0xff] }
   0xc   :  { %v513_v34 = vld [vmem:[%s3040_s3 + $0x100] sm:$0xff]  ;;  %v516_v35 = vld [vmem:[%s3040_s3 + $0x118] sm:$0xff]  ;;  %v515_v36 = vld [vmem:[%s3040_s3 + $0x110] sm:$0xff] }
   0xd   :  { %v518_v37 = vld [vmem:[%s3040_s3 + $0x128] sm:$0xff]  ;;  %v517_v38 = vld [vmem:[%s3040_s3 + $0x120] sm:$0xff]  ;;  %v520_v39 = vld [vmem:[%s3040_s3 + $0x138] sm:$0xff] }
   0xe   :  { %563 = vperm.xlu1 %1974, %v488_v7   ;;  %558 = vperm.xlu0 %1973, %v487_v8   ;;  %v519_v40 = vld [vmem:[%s3040_s3 + $0x130] sm:$0xff]  ;;  %v522_v41 = vld [vmem:[%s3040_s3 + $0x148] sm:$0xff]  ;;  %v521_v42 = vld [vmem:[%s3040_s3 + $0x140] sm:$0xff] }
   0xf   :  { %v1884_v43 = vld [vmem:[%s3041_s0 + $0x8] sm:$0xff]   ;;  %v524_v44 = vld [vmem:[%s3040_s3 + $0x158] sm:$0xff]  ;;  %v523_v46 = vld [vmem:[%s3040_s3 + $0x150] sm:$0xff] }
  0x10   :  { %v1906_v45 = vld [vmem:[%s3041_s0 + $0xb8] sm:$0xff]   ;;  %v1480_v47 = vld [vmem:[%s3041_s0] sm:$0xff]   ;;  %v1905_v48 = vld [vmem:[%s3041_s0 + $0xb0] sm:$0xff]   ;;  %v1485_v49 = vunpack.c.l.bf16 %v1884_v43  ;;  %v1486_v54 = vunpack.c.h.bf16 %v1884_v43 }
  0x11   :  { %v1574_v50 = vunpack.c.h.bf16 %v1906_v45  ;;  %v1907_v51 = vld [vmem:[%s3041_s0 + $0xc0] sm:$0xff]   ;;  %v1481_v52 = vunpack.c.l.bf16 %v1480_v47  ;;  %v1570_v53 = vunpack.c.h.bf16 %v1905_v48  ;;  %v1482_v59 = vunpack.c.h.bf16 %v1480_v47  ;;  %v1885_v0 = vld [vmem:[%s3041_s0 + $0x10] sm:$0xff]   ;;  %v1908_v6 = vld [vmem:[%s3041_s0 + $0xc8] sm:$0xff]  }
  0x12   :  { %573 = vperm.xlu1 %1974, %v490_v9   ;;  %568 = vperm.xlu0 %1973, %v489_v10   ;;  %v525_v55 = vld [vmem:[%s3040_s3 + $0x160] sm:$0xff]  ;;  %v1577_v58 = vunpack.c.l.bf16 %v1907_v51  ;;  %v1573_v2 = vunpack.c.l.bf16 %v1906_v45  ;;  %v1490_v8 = vunpack.c.h.bf16 %v1885_v0 }
  0x13   :  { %v2157_v56 = vld [vmem:[%s3042_s1] ss:$0 sm:$0xff] }
  0x14   :  { %v206_v57 = vmul.f32 %v1485_v49, %v2157_v56  ;;  %v251_v60 = vmul.f32 %v1574_v50, %v2157_v56  ;;  %v204_v61 = vmul.f32 %v1481_v52, %v2157_v56  ;;  %v249_v62 = vmul.f32 %v1570_v53, %v2157_v56  ;;  %v2170_v1 = vld [vmem:[%s3043_s2] ss:$0 sm:$0xff] }
  0x15   :  { %v207_v63 = vmul.f32 %v1486_v54, %v2157_v56  ;;  %v252_v4 = vmul.f32 %v1577_v58, %v2157_v56  ;;  %v205_v5 = vmul.f32 %v1482_v59, %v2157_v56 }
  0x16   :  { %583 = vperm.xlu1 %1974, %v492_v11   ;;  %578 = vperm.xlu0 %1973, %v491_v12   ;;  %v2173_v3 = vadd.f32 %v2170_v1, %v206_v57  ;;  %v2181_v7 = vadd.f32 %v2170_v1, %v251_v60  ;;  %v2184_v9 = vadd.f32 %v2170_v1, %v204_v61 }
  0x17   :  { %v2187_v10 = vadd.f32 %v2170_v1, %v249_v62  ;;  %v2190_v11 = vadd.f32 %v2170_v1, %v207_v63  ;;  %v250_v12 = vmul.f32 %v1573_v2, %v2157_v56 }
  0x1a   :  { %593 = vperm.xlu1 %1974, %v494_v13   ;;  %588 = vperm.xlu0 %1973, %v493_v14   ;;  %v1581_v13 = vunpack.c.l.bf16 %v1908_v6  ;;  %v1886_v14 = vld [vmem:[%s3041_s0 + $0x18] sm:$0xff]  }
  0x1e   :  { %603 = vperm.xlu1 %1974, %v496_v15   ;;  %598 = vperm.xlu0 %1973, %v495_v16   ;;  %v393_v15 = vmax.f32 %v2173_v3, 0.0  ;;  %v2198_v16 = vadd.f32 %v2170_v1, %v252_v4  ;;  %v3050_v3 = vmax.f32 %v2184_v9, 0.0 }
  0x22   :  { %613 = vperm.xlu1 %1974, %v498_v17   ;;  %608 = vperm.xlu0 %1973, %v497_v18   ;;  %v2201_v17 = vadd.f32 %v2170_v1, %v205_v5  ;;  %v1909_v18 = vld [vmem:[%s3041_s0 + $0xd0] sm:$0xff]  }
  0x23   :  { %v1586_v45 = vunpack.c.h.bf16 %v1909_v18 }
  0x25   :  { %v257_v62 = vmul.f32 %v1586_v45, %v2157_v56  ;;  %v1913_v45 = vld [vmem:[%s3041_s0 + $0xf0] sm:$0xff]  }
  0x26   :  { %623 = vperm.xlu1 %1974, %v500_v19   ;;  %618 = vperm.xlu0 %1973, %v499_v20   ;;  %v438_v19 = vmax.f32 %v2181_v7, 0.0  ;;  %v209_v20 = vmul.f32 %v1490_v8, %v2157_v56  ;;  %v3051_v7 = vmax.f32 %v2190_v11, 0.0 }
  0x2a   :  { %633 = vperm.xlu1 %1974, %v502_v21   ;;  %628 = vperm.xlu0 %1973, %v501_v22   ;;  %v1489_v21 = vunpack.c.l.bf16 %v1885_v0  ;;  %v1578_v22 = vunpack.c.h.bf16 %v1907_v51  ;;  %v1889_v0 = vld [vmem:[%s3041_s0 + $0x30] sm:$0xff]  }
  0x2e   :  { %643 = vperm.xlu1 %1974, %v504_v23   ;;  %638 = vperm.xlu0 %1973, %v503_v24   ;;  %v1887_v23 = vld [vmem:[%s3041_s0 + $0x20] sm:$0xff]  }
  0x32   :  { %653 = vperm.xlu1 %1974, %v506_v25   ;;  %648 = vperm.xlu0 %1973, %v505_v26   ;;  %v436_v25 = vmax.f32 %v2187_v10, 0.0 }
  0x36   :  { %663 = vperm.xlu1 %1974, %v508_v27   ;;  %658 = vperm.xlu0 %1973, %v507_v28   ;;  %v1494_v27 = vunpack.c.h.bf16 %v1886_v14  ;;  %v1910_v28 = vld [vmem:[%s3041_s0 + $0xd8] sm:$0xff]  }
  0x38   :  { %v211_v43 = vmul.f32 %v1494_v27, %v2157_v56 }
  0x3a   :  { %673 = vperm.xlu1 %1974, %v510_v29   ;;  %668 = vperm.xlu0 %1973, %v509_v30   ;;  %v2218_v29 = vadd.f32 %v2170_v1, %v250_v12  ;;  %v254_v30 = vmul.f32 %v1581_v13, %v2157_v56  ;;  %v2255_v60 = vadd.f32 %v2170_v1, %v211_v43 }
  0x3c   :  { %v2239_v48 = vadd.f32 %v2170_v1, %v254_v30  ;;  %v2291_v30 = vadd.f32 %v2170_v1, %v257_v62  ;;  %v1914_v62 = vld [vmem:[%s3041_s0 + $0xf8] sm:$0xff]  }
  0x3e   :  { %683 = vperm.xlu1 %1974, %v512_v31   ;;  %678 = vperm.xlu0 %1973, %v511_v32   ;;  %v1585_v31 = vunpack.c.l.bf16 %v1909_v18  ;;  %v1493_v32 = vunpack.c.l.bf16 %v1886_v14  ;;  %v1912_v18 = vld [vmem:[%s3041_s0 + $0xe8] sm:$0xff]  }
  0x40   :  { %v256_v49 = vmul.f32 %v1585_v31, %v2157_v56  ;;  %v210_v50 = vmul.f32 %v1493_v32, %v2157_v56  ;;  %v1602_v32 = vunpack.c.h.bf16 %v1913_v45 }
  0x42   :  { %693 = vperm.xlu1 %1974, %v514_v33   ;;  %688 = vperm.xlu0 %1973, %v513_v34   ;;  %v1888_v33 = vld [vmem:[%s3041_s0 + $0x28] sm:$0xff]   ;;  %v2265_v4 = vadd.f32 %v2170_v1, %v256_v49  ;;  %v2268_v5 = vadd.f32 %v2170_v1, %v210_v50  ;;  %v1505_v50 = vunpack.c.l.bf16 %v1889_v0 }
  0x43   :  { %v1501_v54 = vunpack.c.l.bf16 %v1888_v33 }
  0x45   :  { %v214_v14 = vmul.f32 %v1501_v54, %v2157_v56 }
  0x46   :  { %703 = vperm.xlu1 %1974, %v516_v35   ;;  %698 = vperm.xlu0 %1973, %v515_v36   ;;  %v1582_v36 = vunpack.c.h.bf16 %v1908_v6  ;;  %v1590_v6 = vunpack.c.h.bf16 %v1910_v28 }
  0x48   :  { %v255_v51 = vmul.f32 %v1582_v36, %v2157_v56  ;;  %v259_v36 = vmul.f32 %v1590_v6, %v2157_v56 }
  0x4a   :  { %713 = vperm.xlu1 %1974, %v518_v37   ;;  %708 = vperm.xlu0 %1973, %v517_v38   ;;  %v1498_v37 = vunpack.c.h.bf16 %v1887_v23  ;;  %v2227_v38 = vadd.f32 %v2170_v1, %v209_v20  ;;  %v2271_v8 = vadd.f32 %v2170_v1, %v255_v51 }
  0x4c   :  { %v213_v52 = vmul.f32 %v1498_v37, %v2157_v56  ;;  %v1597_v37 = vunpack.c.l.bf16 %v1912_v18 }
  0x4e   :  { %723 = vperm.xlu1 %1974, %v520_v39   ;;  %718 = vperm.xlu0 %1973, %v519_v40   ;;  %v208_v39 = vmul.f32 %v1489_v21, %v2157_v56  ;;  %v253_v40 = vmul.f32 %v1578_v22, %v2157_v56  ;;  %v2274_v12 = vadd.f32 %v2170_v1, %v213_v52  ;;  %v1891_v52 = vld [vmem:[%s3041_s0 + $0x40] sm:$0xff]  }
  0x50   :  { %v2248_v57 = vadd.f32 %v2170_v1, %v208_v39  ;;  %v2251_v58 = vadd.f32 %v2170_v1, %v253_v40  ;;  %v1890_v39 = vld [vmem:[%s3041_s0 + $0x38] sm:$0xff]  }
  0x51   :  { %v1509_v6 = vunpack.c.l.bf16 %v1890_v39 }
  0x52   :  { %733 = vperm.xlu1 %1974, %v522_v41   ;;  %728 = vperm.xlu0 %1973, %v521_v42   ;;  %v1589_v41 = vunpack.c.l.bf16 %v1910_v28  ;;  %v2234_v42 = vld [vmem:[%s3041_s0 + $0xe0] sm:$0xff]  }
  0x53   :  { %v1593_v53 = vunpack.c.l.bf16 %v2234_v42  ;;  %v1594_v51 = vunpack.c.h.bf16 %v2234_v42  ;;  %v262_v42 = vmul.f32 %v1597_v37, %v2157_v56  ;;  %v1605_v37 = vunpack.c.l.bf16 %v1914_v62 }
  0x54   :  { %v258_v59 = vmul.f32 %v1589_v41, %v2157_v56 }
  0x55   :  { %v260_v13 = vmul.f32 %v1593_v53, %v2157_v56  ;;  %v261_v53 = vmul.f32 %v1594_v51, %v2157_v56  ;;  %v218_v51 = vmul.f32 %v1509_v6, %v2157_v56 }
  0x56   :  { %743 = vperm.xlu1 %1974, %v524_v44   ;;  %738 = vperm.xlu0 %1973, %v523_v46   ;;  %v1497_v44 = vunpack.c.l.bf16 %v1887_v23  ;;  %v1502_v46 = vunpack.c.h.bf16 %v1888_v33  ;;  %v2284_v22 = vadd.f32 %v2170_v1, %v258_v59  ;;  %v1506_v23 = vunpack.c.h.bf16 %v1889_v0 }
  0x57   :  { %v2305_v43 = vadd.f32 %v2170_v1, %v260_v13  ;;  %v1601_v0 = vunpack.c.l.bf16 %v1913_v45  ;;  %v1892_v13 = vld [vmem:[%s3041_s0 + $0x48] sm:$0xff]   ;;  %v1598_v59 = vunpack.c.h.bf16 %v1912_v18 }
  0x58   :  { %v212_v61 = vmul.f32 %v1497_v44, %v2157_v56  ;;  %v215_v63 = vmul.f32 %v1502_v46, %v2157_v56  ;;  %v2308_v44 = vadd.f32 %v2170_v1, %v214_v14  ;;  %v217_v49 = vmul.f32 %v1506_v23, %v2157_v56 }
  0x59   :  { %v1514_v46 = vunpack.c.h.bf16 %v1891_v52  ;;  %v1513_v14 = vunpack.c.l.bf16 %v1891_v52  ;;  %v1518_v23 = vunpack.c.h.bf16 %v1892_v13  ;;  %v263_v40 = vmul.f32 %v1598_v59, %v2157_v56 }
  0x5a   :  { %748 = vperm.xlu0 %1973, %v525_v55   ;;  %v2288_v28 = vadd.f32 %v2170_v1, %v212_v61  ;;  %v2294_v31 = vadd.f32 %v2170_v1, %v215_v63  ;;  %v1510_v61 = vunpack.c.h.bf16 %v1890_v39  ;;  %v2326_v63 = vadd.f32 %v2170_v1, %v259_v36  ;;  %v2342_v39 = vld [vmem:[%s3041_s0 + $0x100] sm:$0xff]  }
  0x5b   :  { %v2335_v54 = vadd.f32 %v2170_v1, %v217_v49  ;;  %v216_v36 = vmul.f32 %v1505_v50, %v2157_v56  ;;  %v2347_v49 = vadd.f32 %v2170_v1, %v262_v42  ;;  %v264_v50 = vmul.f32 %v1601_v0, %v2157_v56 }
  0x5c   :  { %v219_v41 = vmul.f32 %v1510_v61, %v2157_v56  ;;  %v221_v33 = vmul.f32 %v1514_v46, %v2157_v56  ;;  %v1609_v27 = vunpack.c.l.bf16 %v2342_v39  ;;  %v1517_v2 = vunpack.c.l.bf16 %v1892_v13  ;;  %v1893_v13 = vld [vmem:[%s3041_s0 + $0x50] sm:$0xff]  }
  0x5d   :  { %v2356_v45 = vadd.f32 %v2170_v1, %v216_v36  ;;  %v2359_v61 = vadd.f32 %v2170_v1, %v261_v53  ;;  %v266_v42 = vmul.f32 %v1605_v37, %v2157_v56  ;;  %v220_v59 = vmul.f32 %v1513_v14, %v2157_v56  ;;  %v2389_v36 = vld [vmem:[%s3041_s0 + $0x108] sm:$0xff]  }
  0x5e   :  { %v2363_v0 = vadd.f32 %v2170_v1, %v219_v41  ;;  %v265_v46 = vmul.f32 %v1602_v32, %v2157_v56  ;;  %v223_v6 = vmul.f32 %v1518_v23, %v2157_v56  ;;  %v2373_v53 = vadd.f32 %v2170_v1, %v264_v50 }
  0x5f   :  { %v2376_v37 = vadd.f32 %v2170_v1, %v218_v51  ;;  %v1606_v41 = vunpack.c.h.bf16 %v1914_v62  ;;  %v2379_v52 = vadd.f32 %v2170_v1, %v263_v40  ;;  %v2382_v32 = vadd.f32 %v2170_v1, %v221_v33 }
  0x60   :  { %v268_v14 = vmul.f32 %v1609_v27, %v2157_v56  ;;  %v222_v23 = vmul.f32 %v1517_v2, %v2157_v56  ;;  %v2394_v62 = vadd.f32 %v2170_v1, %v266_v42  ;;  %v1522_v40 = vunpack.c.h.bf16 %v1893_v13 }
  0x61   :  { %v2398_v18 = vadd.f32 %v2170_v1, %v220_v59  ;;  %v2401_v2 = vadd.f32 %v2170_v1, %v265_v46  ;;  %v2404_v27 = vadd.f32 %v2170_v1, %v223_v6  ;;  %v267_v51 = vmul.f32 %v1606_v41, %v2157_v56  ;;  %v1894_v6 = vld [vmem:[%s3041_s0 + $0x58] sm:$0xff]   ;;  %v2424_v41 = vld [vmem:[%s3041_s0 + $0x110] sm:$0xff]  }
  0x62   :  { %v1613_v42 = vunpack.c.l.bf16 %v2389_v36  ;;  %v2413_v59 = vadd.f32 %v2170_v1, %v268_v14  ;;  %v2416_v46 = vadd.f32 %v2170_v1, %v222_v23  ;;  %v225_v33 = vmul.f32 %v1522_v40, %v2157_v56 }
  0x63   :  { %v1521_v14 = vunpack.c.l.bf16 %v1893_v13  ;;  %v1610_v55 = vunpack.c.h.bf16 %v2342_v39  ;;  %v2437_v26 = vadd.f32 %v2170_v1, %v267_v51  ;;  %v1526_v24 = vunpack.c.h.bf16 %v1894_v6 }
  0x64   :  { %3047 = vst [vmem:[#allocation2_spill] sm:$0xff] %v2413_v59  ;;  %3048 = vst [vmem:[#allocation3_spill] sm:$0xff] %v2416_v46  ;;  %v270_v20 = vmul.f32 %v1613_v42, %v2157_v56  ;;  %v1617_v13 = vunpack.c.l.bf16 %v2424_v41  ;;  %v2448_v51 = vadd.f32 %v2170_v1, %v225_v33  ;;  %v3053_v40 = vmax.f32 %v2218_v29, 0.0 }
  0x65   :  { %v224_v42 = vmul.f32 %v1521_v14, %v2157_v56  ;;  %v269_v34 = vmul.f32 %v1610_v55, %v2157_v56  ;;  %v454_v33 = vmax.f32 %v2437_v26, 0.0  ;;  %v227_v55 = vmul.f32 %v1526_v24, %v2157_v56  ;;  %v2740_v26 = vld [vmem:[%s3041_s0 + $0x140] sm:$0xff]  }
  0x66   :  { %v2462_v46 = vadd.f32 %v2170_v1, %v270_v20  ;;  %v1614_v11 = vunpack.c.h.bf16 %v2389_v36  ;;  %v2481_v36 = vld [vmem:[%s3041_s0 + $0x118] sm:$0xff]  }
  0x67   :  { %v2472_v20 = vadd.f32 %v2170_v1, %v224_v42  ;;  %v2475_v24 = vadd.f32 %v2170_v1, %v269_v34  ;;  %v3055_v34 = vmax.f32 %v2227_v38, 0.0 }
  0x68   :  { %v457_v42 = vmax.f32 %v2462_v46, 0.0  ;;  %v271_v38 = vmul.f32 %v1614_v11, %v2157_v56  ;;  %v3059_v11 = vmax.f32 %v2255_v60, 0.0  ;;  %v1901_v46 = vld [vmem:[%s3041_s0 + $0x90] sm:$0xff]  }
  0x81   :  { %v539_v21 = vpop.permute.xlu1 %538  ;;  %v529_v50 = vpop.permute.xlu0 %528 }
  0x82   :  { %v2431_v23 = vmul.f32 %v529_v50, %v436_v25  ;;  %v753_v39 = vmul.f32 %v539_v21, %v393_v15  ;;  %v798_v10 = vmul.f32 %v539_v21, %v438_v19  ;;  %v751_v15 = vmul.f32 %v529_v50, %v3050_v3 }
  0x83   :  { %v3052_v21 = vmax.f32 %v2201_v17, 0.0  ;;  %v1895_v17 = vld [vmem:[%s3041_s0 + $0x60] sm:$0xff]   ;;  %v2502_v3 = vadd.f32 %v2170_v1, %v227_v55  ;;  %v456_v55 = vmax.f32 %v2475_v24, 0.0 }
  0x84   :  { %3049 = vst [vmem:[#allocation4_spill] sm:$0xff] %v2431_v23  ;;  %v1525_v23 = vunpack.c.l.bf16 %v1894_v6  ;;  %v272_v6 = vmul.f32 %v1617_v13, %v2157_v56 }
  0x85   :  { %v544_v47 = vpop.permute.xlu1 %543  ;;  %v534_v35 = vpop.permute.xlu0 %533 }
  0x86   :  { %v754_v19 = vmul.f32 %v544_v47, %v3051_v7  ;;  %v752_v25 = vmul.f32 %v534_v35, %v3052_v21  ;;  %v797_v59 = vmul.f32 %v534_v35, %v3053_v40  ;;  %v412_v40 = vmax.f32 %v2448_v51, 0.0 }
  0x87   :  { %v226_v13 = vmul.f32 %v1525_v23, %v2157_v56  ;;  %v1530_v7 = vunpack.c.h.bf16 %v1895_v17 }
  0x88   :  { %v1667_v9 = vpack.c.bf16 %v754_v19, %v753_v39  ;;  %v1662_v50 = vpack.c.bf16 %v752_v25, %v751_v15  ;;  %v1777_v14 = vpack.c.bf16 %v798_v10, %v797_v59  ;;  %v3054_v59 = vmax.f32 %v2198_v16, 0.0 }
  0x89   :  { %v554_v29 = vpop.permute.xlu1 %553  ;;  %v549_v35 = vpop.permute.xlu0 %548  ;;  %v3056_v10 = vmax.f32 %v2248_v57, 0.0  ;;  %v3057_v16 = vmax.f32 %v2251_v58, 0.0  ;;  %v2505_v15 = vadd.f32 %v2170_v1, %v272_v6  ;;  %v1896_v57 = vld [vmem:[%s3041_s0 + $0x68] sm:$0xff]   ;;  %v2515_v6 = vadd.f32 %v2170_v1, %v226_v13 }
  0x8a   :  { %v799_v39 = vmul.f32 %v544_v47, %v3054_v59  ;;  %1928 = vst [vmem:[%s3044_s4 + $0x8] sm:$0xff] %v1667_v9   ;;  %1663 = vst [vmem:[%s3044_s4] sm:$0xff] %v1662_v50   ;;  %v756_v23 = vmul.f32 %v554_v29, %v3055_v34  ;;  %v1621_v9 = vunpack.c.l.bf16 %v2481_v36  ;;  %v3058_v59 = vmax.f32 %v2239_v48, 0.0  ;;  %v2534_v48 = vld [vmem:[%s3041_s0 + $0x120] sm:$0xff]  }
  0x8b   :  { %1950 = vst [vmem:[%s3044_s4 + $0xb8] sm:$0xff] %v1777_v14   ;;  %v755_v25 = vmul.f32 %v549_v35, %v3056_v10  ;;  %v800_v47 = vmul.f32 %v549_v35, %v3057_v16  ;;  %v411_v14 = vmax.f32 %v2472_v20, 0.0  ;;  %v1529_v35 = vunpack.c.l.bf16 %v1895_v17 }
  0x8c   :  { %v3061_v13 = vmax.f32 %v2271_v8, 0.0  ;;  %v1618_v16 = vunpack.c.h.bf16 %v2424_v41  ;;  %v274_v8 = vmul.f32 %v1621_v9, %v2157_v56 }
  0x8d   :  { %v1672_v19 = vpack.c.bf16 %v756_v23, %v755_v25  ;;  %v1782_v21 = vpack.c.bf16 %v800_v47, %v799_v39  ;;  %v564_v58 = vpop.permute.xlu1 %563  ;;  %v559_v50 = vpop.permute.xlu0 %558  ;;  %v801_v39 = vmul.f32 %v554_v29, %v3058_v59  ;;  %v3060_v23 = vmax.f32 %v2268_v5, 0.0 }
  0x8e   :  { %v758_v34 = vmul.f32 %v564_v58, %v3059_v11  ;;  %v802_v17 = vmul.f32 %v559_v50, %v3061_v13  ;;  %v414_v29 = vmax.f32 %v2502_v3, 0.0  ;;  %v229_v25 = vmul.f32 %v1530_v7, %v2157_v56 }
  0x8f   :  { %1929 = vst [vmem:[%s3044_s4 + $0x10] sm:$0xff] %v1672_v19   ;;  %1951 = vst [vmem:[%s3044_s4 + $0xc0] sm:$0xff] %v1782_v21   ;;  %v757_v10 = vmul.f32 %v559_v50, %v3060_v23  ;;  %v1534_v47 = vunpack.c.h.bf16 %v1896_v57  ;;  %v2540_v5 = vadd.f32 %v2170_v1, %v271_v38  ;;  %v459_v59 = vmax.f32 %v2505_v15, 0.0  ;;  %v1902_v15 = vld [vmem:[%s3041_s0 + $0x98] sm:$0xff]  }
  0x90   :  { %v1787_v19 = vpack.c.bf16 %v802_v17, %v801_v39  ;;  %v228_v11 = vmul.f32 %v1529_v35, %v2157_v56  ;;  %v1625_v23 = vunpack.c.l.bf16 %v2534_v48  ;;  %v1533_v13 = vunpack.c.l.bf16 %v1896_v57 }
  0x91   :  { %v1677_v60 = vpack.c.bf16 %v758_v34, %v757_v10  ;;  %v574_v21 = vpop.permute.xlu1 %573  ;;  %v569_v50 = vpop.permute.xlu0 %568  ;;  %v3062_v7 = vmax.f32 %v2265_v4, 0.0  ;;  %v3063_v38 = vmax.f32 %v2274_v12, 0.0  ;;  %v3064_v39 = vmax.f32 %v2288_v28, 0.0  ;;  %v1897_v28 = vld [vmem:[%s3041_s0 + $0x70] sm:$0xff]  }
  0x92   :  { %1952 = vst [vmem:[%s3044_s4 + $0xc8] sm:$0xff] %v1787_v19   ;;  %v3065_v34 = vmax.f32 %v2291_v30, 0.0  ;;  %v413_v4 = vmax.f32 %v2515_v6, 0.0  ;;  %v273_v10 = vmul.f32 %v1618_v16, %v2157_v56  ;;  %v231_v17 = vmul.f32 %v1534_v47, %v2157_v56 }
  0x93   :  { %v803_v41 = vmul.f32 %v564_v58, %v3062_v7  ;;  %1930 = vst [vmem:[%s3044_s4 + $0x18] sm:$0xff] %v1677_v60   ;;  %v760_v9 = vmul.f32 %v574_v21, %v3063_v38  ;;  %v759_v35 = vmul.f32 %v569_v50, %v3064_v39  ;;  %v2562_v58 = vadd.f32 %v2170_v1, %v229_v25 }
  0x94   :  { %v804_v57 = vmul.f32 %v569_v50, %v3065_v34  ;;  %v458_v12 = vmax.f32 %v2540_v5, 0.0  ;;  %v2568_v7 = vadd.f32 %v2170_v1, %v274_v8  ;;  %v2574_v25 = vadd.f32 %v2170_v1, %v228_v11  ;;  %v2582_v8 = vld [vmem:[%s3041_s0 + $0x128] sm:$0xff]  }
  0x95   :  { %v1682_v60 = vpack.c.bf16 %v760_v9, %v759_v35  ;;  %v584_v30 = vpop.permute.xlu1 %583  ;;  %v579_v50 = vpop.permute.xlu0 %578  ;;  %v276_v16 = vmul.f32 %v1625_v23, %v2157_v56  ;;  %v1622_v47 = vunpack.c.h.bf16 %v2481_v36  ;;  %v3066_v38 = vmax.f32 %v2284_v22, 0.0 }
  0x96   :  { %v1792_v19 = vpack.c.bf16 %v804_v57, %v803_v41  ;;  %v230_v41 = vmul.f32 %v1533_v13, %v2157_v56  ;;  %v3067_v36 = vmax.f32 %v2294_v31, 0.0  ;;  %v3068_v23 = vmax.f32 %v2308_v44, 0.0 }
  0x97   :  { %v805_v9 = vmul.f32 %v574_v21, %v3066_v38  ;;  %1931 = vst [vmem:[%s3044_s4 + $0x20] sm:$0xff] %v1682_v60   ;;  %v3069_v39 = vmax.f32 %v2326_v63, 0.0  ;;  %v416_v22 = vmax.f32 %v2562_v58, 0.0  ;;  %v2600_v21 = vadd.f32 %v2170_v1, %v273_v10 }
  0x98   :  { %1953 = vst [vmem:[%s3044_s4 + $0xd0] sm:$0xff] %v1792_v19   ;;  %v762_v11 = vmul.f32 %v584_v30, %v3067_v36  ;;  %v761_v13 = vmul.f32 %v579_v50, %v3068_v23  ;;  %v2603_v34 = vadd.f32 %v2170_v1, %v231_v17  ;;  %v1538_v57 = vunpack.c.h.bf16 %v1897_v28 }
  0x99   :  { %v806_v35 = vmul.f32 %v579_v50, %v3069_v39  ;;  %v1629_v38 = vunpack.c.l.bf16 %v2582_v8  ;;  %v594_v44 = vpop.permute.xlu1 %593  ;;  %v589_v36 = vpop.permute.xlu0 %588  ;;  %v2609_v50 = vadd.f32 %v2170_v1, %v276_v16  ;;  %v275_v10 = vmul.f32 %v1622_v47, %v2157_v56 }
  0x9a   :  { %v1687_v60 = vpack.c.bf16 %v762_v11, %v761_v13  ;;  %v2613_v23 = vadd.f32 %v2170_v1, %v230_v41  ;;  %v3070_v17 = vmax.f32 %v2305_v43, 0.0  ;;  %v3072_v13 = vmax.f32 %v2356_v45, 0.0  ;;  %v1898_v43 = vld [vmem:[%s3041_s0 + $0x78] sm:$0xff]  }
  0x9b   :  { %v1797_v19 = vpack.c.bf16 %v806_v35, %v805_v9  ;;  %v3071_v9 = vmax.f32 %v2335_v54, 0.0  ;;  %v3073_v41 = vmax.f32 %v2359_v61, 0.0  ;;  %v1537_v45 = vunpack.c.l.bf16 %v1897_v28 }
  0x9c   :  { %v807_v11 = vmul.f32 %v584_v30, %v3070_v17  ;;  %1932 = vst [vmem:[%s3044_s4 + $0x28] sm:$0xff] %v1687_v60   ;;  %v763_v47 = vmul.f32 %v589_v36, %v3072_v13  ;;  %v2635_v30 = vld [vmem:[%s3041_s0 + $0x130] sm:$0xff]   ;;  %v233_v60 = vmul.f32 %v1538_v57, %v2157_v56  ;;  %v278_v61 = vmul.f32 %v1629_v38, %v2157_v56 }
  0x9d   :  { %1954 = vst [vmem:[%s3044_s4 + $0xd8] sm:$0xff] %v1797_v19   ;;  %v764_v16 = vmul.f32 %v594_v44, %v3071_v9  ;;  %v808_v39 = vmul.f32 %v589_v36, %v3073_v41  ;;  %v1626_v36 = vunpack.c.h.bf16 %v2534_v48  ;;  %v604_v9 = vpop.permute.xlu1 %603  ;;  %v599_v13 = vpop.permute.xlu0 %598  ;;  %v463_v41 = vmax.f32 %v2609_v50, 0.0 }
  0x9e   :  { %v2644_v31 = vadd.f32 %v2170_v1, %v275_v10  ;;  %v1542_v63 = vunpack.c.h.bf16 %v1898_v43  ;;  %v1633_v35 = vunpack.c.l.bf16 %v2635_v30  ;;  %v3074_v54 = vmax.f32 %v2347_v49, 0.0 }
  0x9f   :  { %v1692_v19 = vpack.c.bf16 %v764_v16, %v763_v47  ;;  %v1802_v17 = vpack.c.bf16 %v808_v39, %v807_v11  ;;  %v3075_v48 = vmax.f32 %v2363_v0, 0.0  ;;  %v3076_v38 = vmax.f32 %v2376_v37, 0.0 }
  0xa0   :  { %v809_v57 = vmul.f32 %v594_v44, %v3074_v54  ;;  %v3077_v11 = vmax.f32 %v2379_v52, 0.0  ;;  %v417_v49 = vmax.f32 %v2613_v23, 0.0  ;;  %v2663_v44 = vadd.f32 %v2170_v1, %v233_v60  ;;  %v1899_v52 = vld [vmem:[%s3041_s0 + $0x80] sm:$0xff]  }
  0xa1   :  { %1933 = vst [vmem:[%s3044_s4 + $0x30] sm:$0xff] %v1692_v19   ;;  %1955 = vst [vmem:[%s3044_s4 + $0xe0] sm:$0xff] %v1802_v17   ;;  %v766_v28 = vmul.f32 %v604_v9, %v3075_v48  ;;  %v765_v10 = vmul.f32 %v599_v13, %v3076_v38  ;;  %v232_v47 = vmul.f32 %v1537_v45, %v2157_v56  ;;  %v1541_v39 = vunpack.c.l.bf16 %v1898_v43  ;;  %v614_v37 = vpop.permute.xlu1 %613 }
  0xa2   :  { %v810_v16 = vmul.f32 %v599_v13, %v3077_v11  ;;  %v2667_v17 = vadd.f32 %v2170_v1, %v278_v61  ;;  %v277_v0 = vmul.f32 %v1626_v36, %v2157_v56  ;;  %v609_v13 = vpop.permute.xlu0 %608  ;;  %v462_v48 = vmax.f32 %v2644_v31, 0.0 }
  0xa3   :  { %v1697_v54 = vpack.c.bf16 %v766_v28, %v765_v10  ;;  %v235_v60 = vmul.f32 %v1542_v63, %v2157_v56  ;;  %v280_v45 = vmul.f32 %v1633_v35, %v2157_v56  ;;  %v1630_v43 = vunpack.c.h.bf16 %v2582_v8 }
  0xa4   :  { %v1807_v19 = vpack.c.bf16 %v810_v16, %v809_v57  ;;  %v3078_v57 = vmax.f32 %v2373_v53, 0.0  ;;  %v3079_v36 = vmax.f32 %v2382_v32, 0.0  ;;  %v3080_v63 = vmax.f32 %v2398_v18, 0.0  ;;  %v2694_v53 = vld [vmem:[%s3041_s0 + $0x138] sm:$0xff]  }
  0xa5   :  { %1934 = vst [vmem:[%s3044_s4 + $0x38] sm:$0xff] %v1697_v54   ;;  %v3081_v35 = vmax.f32 %v2401_v2, 0.0  ;;  %v2698_v10 = vadd.f32 %v2170_v1, %v232_v47  ;;  %v234_v11 = vmul.f32 %v1541_v39, %v2157_v56  ;;  %v1546_v32 = vunpack.c.h.bf16 %v1899_v52 }
  0xa6   :  { %v811_v61 = vmul.f32 %v604_v9, %v3078_v57  ;;  %1956 = vst [vmem:[%s3044_s4 + $0xe8] sm:$0xff] %v1807_v19   ;;  %v768_v28 = vmul.f32 %v614_v37, %v3079_v36  ;;  %v767_v38 = vmul.f32 %v609_v13, %v3080_v63  ;;  %v420_v9 = vmax.f32 %v2663_v44, 0.0  ;;  %v624_v19 = vpop.permute.xlu1 %623 }
  0xa7   :  { %v812_v8 = vmul.f32 %v609_v13, %v3081_v35  ;;  %v465_v18 = vmax.f32 %v2667_v17, 0.0  ;;  %v2703_v2 = vadd.f32 %v2170_v1, %v277_v0  ;;  %v619_v13 = vpop.permute.xlu0 %618  ;;  %v2706_v57 = vadd.f32 %v2170_v1, %v235_v60  ;;  %v1926_v17 = vld [vmem:[%s3041_s0 + $0x158] sm:$0xff]  }
  0xa8   :  { %v1702_v16 = vpack.c.bf16 %v768_v28, %v767_v38  ;;  %v2709_v36 = vadd.f32 %v2170_v1, %v280_v45  ;;  %v279_v47 = vmul.f32 %v1630_v43, %v2157_v56  ;;  %v1637_v39 = vunpack.c.l.bf16 %v2694_v53  ;;  %v3084_v45 = vld [vmem:[#allocation3_spill] sm:$0xff] }
  0xa9   :  { %v1812_v54 = vpack.c.bf16 %v812_v8, %v811_v61  ;;  %v3082_v28 = vmax.f32 %v2394_v62, 0.0  ;;  %v3083_v0 = vmax.f32 %v2404_v27, 0.0  ;;  %v3085_v63 = vmax.f32 %v3084_v45, 0.0  ;;  %v1900_v62 = vld [vmem:[%s3041_s0 + $0x88] sm:$0xff]  }
  0xaa   :  { %1935 = vst [vmem:[%s3044_s4 + $0x40] sm:$0xff] %v1702_v16   ;;  %v814_v43 = vmul.f32 %v619_v13, %v454_v33  ;;  %v2732_v35 = vadd.f32 %v2170_v1, %v234_v11  ;;  %v237_v8 = vmul.f32 %v1546_v32, %v2157_v56  ;;  %v1545_v16 = vunpack.c.l.bf16 %v1899_v52  ;;  %v634_v33 = vpop.permute.xlu1 %633 }
  0xab   :  { %v813_v61 = vmul.f32 %v614_v37, %v3082_v28  ;;  %1957 = vst [vmem:[%s3044_s4 + $0xf0] sm:$0xff] %v1812_v54   ;;  %v770_v60 = vmul.f32 %v624_v19, %v3083_v0  ;;  %v769_v38 = vmul.f32 %v619_v13, %v3085_v63  ;;  %v419_v37 = vmax.f32 %v2698_v10, 0.0  ;;  %v629_v13 = vpop.permute.xlu0 %628  ;;  %v1903_v10 = vld [vmem:[%s3041_s0 + $0xa0] sm:$0xff]  }
  0xac   :  { %v464_v28 = vmax.f32 %v2703_v2, 0.0  ;;  %v1634_v0 = vunpack.c.h.bf16 %v2635_v30  ;;  %v422_v45 = vmax.f32 %v2706_v57, 0.0  ;;  %v2744_v11 = vadd.f32 %v2170_v1, %v279_v47 }
  0xad   :  { %v1707_v27 = vpack.c.bf16 %v770_v60, %v769_v38  ;;  %v1817_v54 = vpack.c.bf16 %v814_v43, %v813_v61  ;;  %v282_v52 = vmul.f32 %v1637_v39, %v2157_v56  ;;  %v1550_v32 = vunpack.c.h.bf16 %v1900_v62  ;;  %v3086_v61 = vld [vmem:[#allocation2_spill] sm:$0xff] }
  0xae   :  { %v3087_v60 = vmax.f32 %v3086_v61, 0.0  ;;  %v772_v30 = vmul.f32 %v634_v33, %v412_v40  ;;  %v771_v47 = vmul.f32 %v629_v13, %v411_v14  ;;  %v816_v39 = vmul.f32 %v629_v13, %v456_v55 }
  0xaf   :  { %1936 = vst [vmem:[%s3044_s4 + $0x48] sm:$0xff] %v1707_v27   ;;  %1958 = vst [vmem:[%s3044_s4 + $0xf8] sm:$0xff] %v1817_v54   ;;  %v467_v38 = vmax.f32 %v2709_v36, 0.0  ;;  %v236_v43 = vmul.f32 %v1545_v16, %v2157_v56  ;;  %v1641_v27 = vunpack.c.l.bf16 %v2740_v26  ;;  %v281_v51 = vmul.f32 %v1634_v0, %v2157_v56  ;;  %v639_v20 = vpop.permute.xlu0 %638 }
  0xb0   :  { %v815_v63 = vmul.f32 %v624_v19, %v3087_v60  ;;  %v2763_v19 = vadd.f32 %v2170_v1, %v237_v8  ;;  %v1712_v61 = vpack.c.bf16 %v772_v30, %v771_v47  ;;  %v1549_v40 = vunpack.c.l.bf16 %v1900_v62  ;;  %v644_v60 = vpop.permute.xlu1 %643 }
  0xb1   :  { %v421_v14 = vmax.f32 %v2732_v35, 0.0  ;;  %v466_v24 = vmax.f32 %v2744_v11, 0.0  ;;  %v2771_v55 = vadd.f32 %v2170_v1, %v282_v52  ;;  %v239_v8 = vmul.f32 %v1550_v32, %v2157_v56  ;;  %v1904_v11 = vld [vmem:[%s3041_s0 + $0xa8] sm:$0xff]  }
  0xb2   :  { %v1822_v54 = vpack.c.bf16 %v816_v39, %v815_v63  ;;  %v817_v16 = vmul.f32 %v634_v33, %v457_v42  ;;  %1937 = vst [vmem:[%s3044_s4 + $0x50] sm:$0xff] %v1712_v61   ;;  %v774_v62 = vmul.f32 %v644_v60, %v414_v29  ;;  %v773_v0 = vmul.f32 %v639_v20, %v413_v4  ;;  %v2794_v42 = vld [vmem:[%s3041_s0 + $0x148] sm:$0xff]  }
  0xb3   :  { %v818_v13 = vmul.f32 %v639_v20, %v458_v12  ;;  %v424_v33 = vmax.f32 %v2763_v19, 0.0  ;;  %v2798_v3 = vadd.f32 %v2170_v1, %v236_v43  ;;  %v284_v6 = vmul.f32 %v1641_v27, %v2157_v56  ;;  %v649_v63 = vpop.permute.xlu0 %648  ;;  %v1976_v19 = vld [vmem:[%s3042_s1] ss:$0 sm:$0xff] }
  0xb4   :  { %1959 = vst [vmem:[%s3044_s4 + $0x100] sm:$0xff] %v1822_v54   ;;  %v1638_v29 = vunpack.c.h.bf16 %v2694_v53  ;;  %v1717_v5 = vpack.c.bf16 %v774_v62, %v773_v0  ;;  %v2803_v12 = vadd.f32 %v2170_v1, %v281_v51  ;;  %v238_v52 = vmul.f32 %v1549_v40, %v2157_v56  ;;  %v654_v32 = vpop.permute.xlu1 %653 }
  0xb5   :  { %v1827_v4 = vpack.c.bf16 %v818_v13, %v817_v16  ;;  %v469_v30 = vmax.f32 %v2771_v55, 0.0  ;;  %v2808_v47 = vadd.f32 %v2170_v1, %v239_v8  ;;  %v1554_v39 = vunpack.c.h.bf16 %v1901_v46 }
  0xb6   :  { %v1645_v43 = vunpack.c.l.bf16 %v2794_v42  ;;  %v819_v53 = vmul.f32 %v644_v60, %v459_v59  ;;  %1938 = vst [vmem:[%s3044_s4 + $0x58] sm:$0xff] %v1717_v5   ;;  %v776_v27 = vmul.f32 %v654_v32, %v416_v22  ;;  %v3088_v61 = vmax.f32 %v2574_v25, 0.0 }
  0xb7   :  { %1960 = vst [vmem:[%s3044_s4 + $0x108] sm:$0xff] %v1827_v4   ;;  %v3089_v51 = vmax.f32 %v2600_v21, 0.0  ;;  %v423_v59 = vmax.f32 %v2798_v3, 0.0  ;;  %v2830_v60 = vadd.f32 %v2170_v1, %v284_v6  ;;  %v283_v20 = vmul.f32 %v1638_v29, %v2157_v56  ;;  %v2840_v21 = vld [vmem:[%s3041_s0 + $0x150] sm:$0xff]   ;;  %v659_v0 = vpop.permute.xlu0 %658 }
  0xb8   :  { %v775_v54 = vmul.f32 %v649_v63, %v3088_v61  ;;  %v1553_v8 = vunpack.c.l.bf16 %v1901_v46  ;;  %v468_v25 = vmax.f32 %v2803_v12, 0.0  ;;  %v2835_v16 = vadd.f32 %v2170_v1, %v238_v52  ;;  %v664_v62 = vpop.permute.xlu1 %663  ;;  %v1927_v12 = vld [vmem:[%s3041_s0 + $0x160] sm:$0xff]  }
  0xb9   :  { %v820_v40 = vmul.f32 %v649_v63, %v3089_v51  ;;  %v241_v13 = vmul.f32 %v1554_v39, %v2157_v56  ;;  %v286_v6 = vmul.f32 %v1645_v43, %v2157_v56  ;;  %v1642_v46 = vunpack.c.h.bf16 %v2740_v26 }
  0xba   :  { %v1722_v58 = vpack.c.bf16 %v776_v27, %v775_v54  ;;  %v1558_v29 = vunpack.c.h.bf16 %v1902_v15  ;;  %v3090_v5 = vmax.f32 %v2568_v7, 0.0  ;;  %v3091_v52 = vmax.f32 %v2603_v34, 0.0 }
  0xbb   :  { %v1832_v22 = vpack.c.bf16 %v820_v40, %v819_v53  ;;  %v777_v39 = vmul.f32 %v659_v0, %v417_v49  ;;  %v822_v26 = vmul.f32 %v659_v0, %v462_v48  ;;  %v426_v7 = vmax.f32 %v2808_v47, 0.0  ;;  %v669_v23 = vpop.permute.xlu0 %668 }
  0xbc   :  { %v821_v4 = vmul.f32 %v654_v32, %v3090_v5  ;;  %1939 = vst [vmem:[%s3044_s4 + $0x60] sm:$0xff] %v1722_v58   ;;  %v778_v63 = vmul.f32 %v664_v62, %v3091_v52  ;;  %v471_v32 = vmax.f32 %v2830_v60, 0.0  ;;  %v240_v43 = vmul.f32 %v1553_v8, %v2157_v56  ;;  %v674_v51 = vpop.permute.xlu1 %673 }
  0xbd   :  { %1961 = vst [vmem:[%s3044_s4 + $0x110] sm:$0xff] %v1832_v22   ;;  %v1649_v53 = vunpack.c.l.bf16 %v2840_v21  ;;  %v2864_v54 = vadd.f32 %v2170_v1, %v283_v20  ;;  %v1557_v34 = vunpack.c.l.bf16 %v1902_v15  ;;  %v2867_v49 = vadd.f32 %v2170_v1, %v241_v13 }
  0xbe   :  { %v1727_v27 = vpack.c.bf16 %v778_v63, %v777_v39  ;;  %v1837_v61 = vpack.c.bf16 %v822_v26, %v821_v4  ;;  %v2870_v31 = vadd.f32 %v2170_v1, %v286_v6  ;;  %v285_v48 = vmul.f32 %v1642_v46, %v2157_v56 }
  0xbf   :  { %v243_v40 = vmul.f32 %v1558_v29, %v2157_v56  ;;  %v823_v8 = vmul.f32 %v664_v62, %v463_v41  ;;  %v780_v15 = vmul.f32 %v674_v51, %v420_v9  ;;  %v779_v20 = vmul.f32 %v669_v23, %v419_v37  ;;  %v679_v37 = vpop.permute.xlu0 %678 }
  0xc0   :  { %1940 = vst [vmem:[%s3044_s4 + $0x68] sm:$0xff] %v1727_v27   ;;  %1962 = vst [vmem:[%s3044_s4 + $0x118] sm:$0xff] %v1837_v61   ;;  %v824_v58 = vmul.f32 %v669_v23, %v464_v28  ;;  %v425_v50 = vmax.f32 %v2835_v16, 0.0  ;;  %v2890_v41 = vadd.f32 %v2170_v1, %v240_v43  ;;  %v288_v22 = vmul.f32 %v1649_v53, %v2157_v56  ;;  %v684_v2 = vpop.permute.xlu1 %683  ;;  %v1977_v16 = vld [vmem:[%s3041_s0 + $0xb0] sm:$0xff]  }
  0xc1   :  { %v1646_v62 = vunpack.c.h.bf16 %v2794_v42  ;;  %v1732_v0 = vpack.c.bf16 %v780_v15, %v779_v20  ;;  %v470_v44 = vmax.f32 %v2864_v54, 0.0  ;;  %v242_v9 = vmul.f32 %v1557_v34, %v2157_v56 }
  0xc2   :  { %v1842_v13 = vpack.c.bf16 %v824_v58, %v823_v8  ;;  %v428_v28 = vmax.f32 %v2867_v49, 0.0  ;;  %v473_v6 = vmax.f32 %v2870_v31, 0.0  ;;  %v2902_v46 = vadd.f32 %v2170_v1, %v285_v48 }
  0xc3   :  { %v2905_v42 = vadd.f32 %v2170_v1, %v243_v40  ;;  %v825_v29 = vmul.f32 %v674_v51, %v465_v18  ;;  %1941 = vst [vmem:[%s3044_s4 + $0x70] sm:$0xff] %v1732_v0   ;;  %v782_v5 = vmul.f32 %v684_v2, %v422_v45  ;;  %v781_v4 = vmul.f32 %v679_v37, %v421_v14  ;;  %v689_v43 = vpop.permute.xlu0 %688 }
  0xc4   :  { %1963 = vst [vmem:[%s3044_s4 + $0x120] sm:$0xff] %v1842_v13   ;;  %v826_v52 = vmul.f32 %v679_v37, %v466_v24  ;;  %v427_v18 = vmax.f32 %v2890_v41, 0.0  ;;  %v2926_v63 = vadd.f32 %v2170_v1, %v288_v22  ;;  %v287_v39 = vmul.f32 %v1646_v62, %v2157_v56  ;;  %v694_v24 = vpop.permute.xlu1 %693 }
  0xc5   :  { %v1562_v26 = vunpack.c.h.bf16 %v1903_v10  ;;  %v1737_v57 = vpack.c.bf16 %v782_v5, %v781_v4  ;;  %v2930_v35 = vadd.f32 %v2170_v1, %v242_v9  ;;  %v1561_v14 = vunpack.c.l.bf16 %v1903_v10 }
  0xc6   :  { %v1847_v45 = vpack.c.bf16 %v826_v52, %v825_v29  ;;  %v472_v53 = vmax.f32 %v2902_v46, 0.0  ;;  %v430_v27 = vmax.f32 %v2905_v42, 0.0  ;;  %v1653_v61 = vunpack.c.l.bf16 %v1926_v17 }
  0xc7   :  { %v1650_v56 = vunpack.c.h.bf16 %v2840_v21  ;;  %v827_v54 = vmul.f32 %v684_v2, %v467_v38  ;;  %1942 = vst [vmem:[%s3044_s4 + $0x78] sm:$0xff] %v1737_v57   ;;  %v784_v1 = vmul.f32 %v694_v24, %v424_v33  ;;  %v783_v34 = vmul.f32 %v689_v43, %v423_v59  ;;  %v2956_v38 = vld [vmem:[%s3043_s2] ss:$0 sm:$0xff]  ;;  %v699_v8 = vpop.permute.xlu0 %698 }
  0xc8   :  { %1964 = vst [vmem:[%s3044_s4 + $0x128] sm:$0xff] %v1847_v45   ;;  %v828_v21 = vmul.f32 %v689_v43, %v468_v25  ;;  %v475_v36 = vmax.f32 %v2926_v63, 0.0  ;;  %v384_v51 = vadd.f32 %v2956_v38, %v287_v39  ;;  %v245_v33 = vmul.f32 %v1976_v19, %v1562_v26  ;;  %v704_v40 = vpop.permute.xlu1 %703 }
  0xc9   :  { %v1566_v23 = vunpack.c.h.bf16 %v1904_v11  ;;  %v1742_v3 = vpack.c.bf16 %v784_v1, %v783_v34  ;;  %v244_v48 = vmul.f32 %v1976_v19, %v1561_v14  ;;  %v1565_v25 = vunpack.c.l.bf16 %v1904_v11 }
  0xca   :  { %v1852_v59 = vpack.c.bf16 %v828_v21, %v827_v54  ;;  %v429_v15 = vmax.f32 %v2930_v35, 0.0  ;;  %v290_v20 = vmul.f32 %v1976_v19, %v1653_v61  ;;  %v289_v58 = vmul.f32 %v1976_v19, %v1650_v56 }
  0xcb   :  { %v1654_v22 = vunpack.c.h.bf16 %v1926_v17  ;;  %v829_v62 = vmul.f32 %v694_v24, %v469_v30  ;;  %1943 = vst [vmem:[%s3044_s4 + $0x80] sm:$0xff] %v1742_v3   ;;  %v786_v0 = vmul.f32 %v704_v40, %v426_v7  ;;  %v785_v13 = vmul.f32 %v699_v8, %v425_v50  ;;  %v709_v52 = vpop.permute.xlu0 %708 }
  0xcc   :  { %1965 = vst [vmem:[%s3044_s4 + $0x130] sm:$0xff] %v1852_v59   ;;  %v830_v9 = vmul.f32 %v699_v8, %v470_v44  ;;  %v474_v10 = vmax.f32 %v384_v51, 0.0  ;;  %v342_v2 = vadd.f32 %v2956_v38, %v245_v33  ;;  %v1657_v55 = vunpack.c.l.bf16 %v1927_v12  ;;  %v714_v4 = vpop.permute.xlu1 %713 }
  0xcd   :  { %v247_v30 = vmul.f32 %v1976_v19, %v1566_v23  ;;  %v1747_v37 = vpack.c.bf16 %v786_v0, %v785_v13  ;;  %v341_v29 = vadd.f32 %v2956_v38, %v244_v48  ;;  %v246_v5 = vmul.f32 %v1976_v19, %v1565_v25 }
  0xce   :  { %v1857_v46 = vpack.c.bf16 %v830_v9, %v829_v62  ;;  %v386_v17 = vadd.f32 %v2956_v38, %v289_v58  ;;  %v291_v47 = vmul.f32 %v1976_v19, %v1654_v22  ;;  %v1569_v7 = vunpack.c.l.bf16 %v1977_v16 }
  0xcf   :  { %v1658_v50 = vunpack.c.h.bf16 %v1927_v12  ;;  %v831_v44 = vmul.f32 %v704_v40, %v471_v32  ;;  %1944 = vst [vmem:[%s3044_s4 + $0x88] sm:$0xff] %v1747_v37   ;;  %v788_v39 = vmul.f32 %v714_v4, %v428_v28  ;;  %v787_v26 = vmul.f32 %v709_v52, %v427_v18  ;;  %v719_v56 = vpop.permute.xlu0 %718 }
  0xd0   :  { %1966 = vst [vmem:[%s3044_s4 + $0x138] sm:$0xff] %v1857_v46   ;;  %v832_v57 = vmul.f32 %v709_v52, %v472_v53  ;;  %v387_v45 = vadd.f32 %v2956_v38, %v290_v20  ;;  %v432_v35 = vmax.f32 %v342_v2, 0.0  ;;  %v292_v60 = vmul.f32 %v1976_v19, %v1657_v55  ;;  %v724_v61 = vpop.permute.xlu1 %723  ;;  %v3092_v46 = vld [vmem:[#allocation4_spill] sm:$0xff] }
  0xd1   :  { %v344_v32 = vadd.f32 %v2956_v38, %v247_v30  ;;  %v1752_v14 = vpack.c.bf16 %v788_v39, %v787_v26  ;;  %v431_v24 = vmax.f32 %v341_v29, 0.0  ;;  %v343_v43 = vadd.f32 %v2956_v38, %v246_v5 }
  0xd2   :  { %v1862_v11 = vpack.c.bf16 %v832_v57, %v831_v44  ;;  %v476_v54 = vmax.f32 %v386_v17, 0.0  ;;  %v388_v49 = vadd.f32 %v2956_v38, %v291_v47  ;;  %v248_v28 = vmul.f32 %v1976_v19, %v1569_v7 }
  0xd3   :  { %v293_v41 = vmul.f32 %v1976_v19, %v1658_v50  ;;  %v833_v18 = vmul.f32 %v714_v4, %v473_v6  ;;  %1945 = vst [vmem:[%s3044_s4 + $0x90] sm:$0xff] %v1752_v14   ;;  %v790_v53 = vmul.f32 %v724_v61, %v430_v27  ;;  %v789_v1 = vmul.f32 %v719_v56, %v429_v15  ;;  %v729_v23 = vpop.permute.xlu0 %728 }
  0xd4   :  { %1967 = vst [vmem:[%s3044_s4 + $0x140] sm:$0xff] %v1862_v11   ;;  %v834_v34 = vmul.f32 %v719_v56, %v474_v10  ;;  %v477_v21 = vmax.f32 %v387_v45, 0.0  ;;  %v389_v19 = vadd.f32 %v2956_v38, %v292_v60  ;;  %v434_v31 = vmax.f32 %v344_v32, 0.0  ;;  %v734_v6 = vpop.permute.xlu1 %733 }
  0xd5   :  { %v1757_v51 = vpack.c.bf16 %v790_v53, %v789_v1  ;;  %v433_v3 = vmax.f32 %v343_v43, 0.0  ;;  %v478_v59 = vmax.f32 %v388_v49, 0.0  ;;  %v345_v48 = vadd.f32 %v2956_v38, %v248_v28 }
  0xd6   :  { %v1867_v33 = vpack.c.bf16 %v834_v34, %v833_v18  ;;  %v390_v12 = vadd.f32 %v2956_v38, %v293_v41  ;;  %v835_v42 = vmul.f32 %v724_v61, %v475_v36  ;;  %v792_v27 = vmul.f32 %v734_v6, %v432_v35 }
  0xd7   :  { %1946 = vst [vmem:[%s3044_s4 + $0x98] sm:$0xff] %v1757_v51   ;;  %v791_v25 = vmul.f32 %v729_v23, %v431_v24  ;;  %v836_v40 = vmul.f32 %v729_v23, %v476_v54  ;;  %v479_v58 = vmax.f32 %v389_v19, 0.0  ;;  %v739_v22 = vpop.permute.xlu0 %738  ;;  %v435_v38 = vmax.f32 %v345_v48, 0.0 }
  0xd8   :  { %1968 = vst [vmem:[%s3044_s4 + $0x148] sm:$0xff] %v1867_v33   ;;  %v744_v20 = vpop.permute.xlu1 %743  ;;  %v480_v62 = vmax.f32 %v390_v12, 0.0  ;;  %v837_v63 = vmul.f32 %v734_v6, %v477_v21  ;;  %v793_v0 = vmul.f32 %v739_v22, %v433_v3  ;;  %v838_v13 = vmul.f32 %v739_v22, %v478_v59 }
  0xd9   :  { %v1762_v8 = vpack.c.bf16 %v792_v27, %v791_v25  ;;  %v1872_v15 = vpack.c.bf16 %v836_v40, %v835_v42  ;;  %v794_v36 = vmul.f32 %v744_v20, %v434_v31  ;;  %v839_v55 = vmul.f32 %v744_v20, %v479_v58 }
  0xda   :  { %v1877_v10 = vpack.c.bf16 %v838_v13, %v837_v63 }
  0xdb   :  { %1947 = vst [vmem:[%s3044_s4 + $0xa0] sm:$0xff] %v1762_v8   ;;  %1969 = vst [vmem:[%s3044_s4 + $0x150] sm:$0xff] %v1872_v15   ;;  %v1767_v9 = vpack.c.bf16 %v794_v36, %v793_v0  ;;  %v749_v2 = vpop.permute.xlu0 %748 }
  0xdc   :  { %1970 = vst [vmem:[%s3044_s4 + $0x158] sm:$0xff] %v1877_v10   ;;  %v795_v30 = vmul.f32 %v749_v2, %v435_v38  ;;  %v840_v37 = vmul.f32 %v749_v2, %v480_v62 }
  0xdd   :  { %1948 = vst [vmem:[%s3044_s4 + $0xa8] sm:$0xff] %v1767_v9  }
  0xde   :  { %v1772_v29 = vpack.c.bf16 %v3092_v46, %v795_v30  ;;  %v1882_v5 = vpack.c.bf16 %v840_v37, %v839_v55 }
  0xe0   :  { %1949 = vst [vmem:[%s3044_s4 + $0xb0] sm:$0xff] %v1772_v29   ;;  %1971 = vst [vmem:[%s3044_s4 + $0x160] sm:$0xff] %v1882_v5  }

// kernel: double_conv_forward.7
= control target key start
LH: loop header
LB: loop body
LE: loop exit
PB: predicated region body
PF: predicated region fallthrough
CT: control target
= control target key end

     0   :  { %v1167_v0 = vmov 0   ;;  %s2370_s3 = inlined_call_operand.vmem [shape: f32[360,1], index: 3, kind: input, shape index: {}]   ;;  %s2371_s0 = inlined_call_operand.vmem [shape: bf16[2,360,128], index: 0, kind: input, shape index: {}]   ;;  %s2372_s1 = inlined_call_operand.vmem [shape: f32[1,128], index: 1, kind: input, shape index: {}]   ;;  %s2373_s2 = inlined_call_operand.vmem [shape: f32[1,128], index: 2, kind: input, shape index: {}]   ;;  %s2374_s4 = inlined_call_operand.vmem [shape: f32[2,360,128], index: 4, kind: output, shape index: {}]  }
   0x1   :  { %1163 = vset.pattern.permute.xlu1 %v1167_v0  ;;  %1162 = vset.pattern.permute.xlu0 %v1167_v0  ;;  %v483_v1 = vld [vmem:[%s2370_s3 + $0x10] sm:$0xff]  ;;  %v481_v2 = vld [vmem:[%s2370_s3] sm:$0xff]  ;;  %v484_v3 = vld [vmem:[%s2370_s3 + $0x18] sm:$0xff] }
   0x2   :  { %538 = vperm.xlu1 %1163, %v483_v1   ;;  %528 = vperm.xlu0 %1162, %v481_v2   ;;  %v482_v4 = vld [vmem:[%s2370_s3 + $0x8] sm:$0xff]  ;;  %v485_v6 = vld [vmem:[%s2370_s3 + $0x20] sm:$0xff]  ;;  %v488_v7 = vld [vmem:[%s2370_s3 + $0x38] sm:$0xff] }
   0x3   :  { %v486_v5 = vld [vmem:[%s2370_s3 + $0x28] sm:$0xff]  ;;  %v487_v8 = vld [vmem:[%s2370_s3 + $0x30] sm:$0xff]  ;;  %v489_v10 = vld [vmem:[%s2370_s3 + $0x40] sm:$0xff] }
   0x4   :  { %v490_v9 = vld [vmem:[%s2370_s3 + $0x48] sm:$0xff]  ;;  %v492_v11 = vld [vmem:[%s2370_s3 + $0x58] sm:$0xff]  ;;  %v491_v12 = vld [vmem:[%s2370_s3 + $0x50] sm:$0xff] }
   0x5   :  { %v494_v13 = vld [vmem:[%s2370_s3 + $0x68] sm:$0xff]  ;;  %v493_v14 = vld [vmem:[%s2370_s3 + $0x60] sm:$0xff]  ;;  %v496_v15 = vld [vmem:[%s2370_s3 + $0x78] sm:$0xff] }
   0x6   :  { %543 = vperm.xlu1 %1163, %v484_v3   ;;  %533 = vperm.xlu0 %1162, %v482_v4   ;;  %v495_v16 = vld [vmem:[%s2370_s3 + $0x70] sm:$0xff]  ;;  %v498_v17 = vld [vmem:[%s2370_s3 + $0x88] sm:$0xff]  ;;  %v497_v18 = vld [vmem:[%s2370_s3 + $0x80] sm:$0xff] }
   0x7   :  { %v500_v19 = vld [vmem:[%s2370_s3 + $0x98] sm:$0xff]  ;;  %v499_v20 = vld [vmem:[%s2370_s3 + $0x90] sm:$0xff]  ;;  %v502_v21 = vld [vmem:[%s2370_s3 + $0xa8] sm:$0xff] }
   0x8   :  { %v501_v22 = vld [vmem:[%s2370_s3 + $0xa0] sm:$0xff]  ;;  %v504_v23 = vld [vmem:[%s2370_s3 + $0xb8] sm:$0xff]  ;;  %v503_v24 = vld [vmem:[%s2370_s3 + $0xb0] sm:$0xff] }
   0x9   :  { %v506_v25 = vld [vmem:[%s2370_s3 + $0xc8] sm:$0xff]  ;;  %v505_v26 = vld [vmem:[%s2370_s3 + $0xc0] sm:$0xff]  ;;  %v508_v27 = vld [vmem:[%s2370_s3 + $0xd8] sm:$0xff] }
   0xa   :  { %553 = vperm.xlu1 %1163, %v486_v5   ;;  %548 = vperm.xlu0 %1162, %v485_v6   ;;  %v507_v28 = vld [vmem:[%s2370_s3 + $0xd0] sm:$0xff]  ;;  %v510_v29 = vld [vmem:[%s2370_s3 + $0xe8] sm:$0xff]  ;;  %v509_v30 = vld [vmem:[%s2370_s3 + $0xe0] sm:$0xff] }
   0xb   :  { %v512_v31 = vld [vmem:[%s2370_s3 + $0xf8] sm:$0xff]  ;;  %v511_v32 = vld [vmem:[%s2370_s3 + $0xf0] sm:$0xff]  ;;  %v514_v33 = vld [vmem:[%s2370_s3 + $0x108] sm:$0xff] }
   0xc   :  { %v513_v34 = vld [vmem:[%s2370_s3 + $0x100] sm:$0xff]  ;;  %v516_v35 = vld [vmem:[%s2370_s3 + $0x118] sm:$0xff]  ;;  %v515_v36 = vld [vmem:[%s2370_s3 + $0x110] sm:$0xff] }
   0xd   :  { %v518_v37 = vld [vmem:[%s2370_s3 + $0x128] sm:$0xff]  ;;  %v517_v38 = vld [vmem:[%s2370_s3 + $0x120] sm:$0xff]  ;;  %v520_v39 = vld [vmem:[%s2370_s3 + $0x138] sm:$0xff] }
   0xe   :  { %563 = vperm.xlu1 %1163, %v488_v7   ;;  %558 = vperm.xlu0 %1162, %v487_v8   ;;  %v519_v40 = vld [vmem:[%s2370_s3 + $0x130] sm:$0xff]  ;;  %v522_v41 = vld [vmem:[%s2370_s3 + $0x148] sm:$0xff]  ;;  %v521_v42 = vld [vmem:[%s2370_s3 + $0x140] sm:$0xff] }
   0xf   :  { %v524_v43 = vld [vmem:[%s2370_s3 + $0x158] sm:$0xff]  ;;  %v523_v44 = vld [vmem:[%s2370_s3 + $0x150] sm:$0xff]  ;;  %v525_v45 = vld [vmem:[%s2370_s3 + $0x160] sm:$0xff] }
  0x10   :  { %v1117_v46 = vld [vmem:[%s2371_s0 + $0x8] sm:$0xff]   ;;  %v1139_v47 = vld [vmem:[%s2371_s0 + $0xb8] sm:$0xff]   ;;  %v938_v49 = vld [vmem:[%s2371_s0] sm:$0xff]  }
  0x11   :  { %v943_v48 = vunpack.c.l.bf16 %v1117_v46  ;;  %v1138_v50 = vld [vmem:[%s2371_s0 + $0xb0] sm:$0xff]   ;;  %v1032_v51 = vunpack.c.h.bf16 %v1139_v47  ;;  %v1140_v52 = vld [vmem:[%s2371_s0 + $0xc0] sm:$0xff]   ;;  %v944_v53 = vunpack.c.h.bf16 %v1117_v46  ;;  %v939_v56 = vunpack.c.l.bf16 %v938_v49  ;;  %v1141_v62 = vld [vmem:[%s2371_s0 + $0xc8] sm:$0xff]  }
  0x12   :  { %573 = vperm.xlu1 %1163, %v490_v9   ;;  %568 = vperm.xlu0 %1162, %v489_v10   ;;  %v1118_v54 = vld [vmem:[%s2371_s0 + $0x10] sm:$0xff]   ;;  %v1349_v55 = vld [vmem:[%s2372_s1] ss:$0 sm:$0xff]  ;;  %v1028_v57 = vunpack.c.h.bf16 %v1138_v50  ;;  %v1035_v59 = vunpack.c.l.bf16 %v1140_v52  ;;  %v940_v60 = vunpack.c.h.bf16 %v938_v49  ;;  %v1031_v61 = vunpack.c.l.bf16 %v1139_v47  ;;  %v1119_v7 = vld [vmem:[%s2371_s0 + $0x18] sm:$0xff]  }
  0x13   :  { %v206_v58 = vmul.f32 %v943_v48, %v1349_v55  ;;  %v251_v63 = vmul.f32 %v1032_v51, %v1349_v55  ;;  %v948_v0 = vunpack.c.h.bf16 %v1118_v54  ;;  %v207_v1 = vmul.f32 %v944_v53, %v1349_v55  ;;  %v1360_v2 = vld [vmem:[%s2373_s2] ss:$0 sm:$0xff]  ;;  %v1370_v8 = vld [vmem:[%s2371_s0 + $0xd0] sm:$0xff]   ;;  %v1121_v49 = vld [vmem:[%s2371_s0 + $0x28] sm:$0xff]  }
  0x14   :  { %v204_v3 = vmul.f32 %v939_v56, %v1349_v55  ;;  %v249_v4 = vmul.f32 %v1028_v57, %v1349_v55  ;;  %v1039_v5 = vunpack.c.l.bf16 %v1141_v62  ;;  %v947_v6 = vunpack.c.l.bf16 %v1118_v54  ;;  %v1144_v50 = vld [vmem:[%s2371_s0 + $0xe0] sm:$0xff]   ;;  %v1122_v56 = vld [vmem:[%s2371_s0 + $0x30] sm:$0xff]  }
  0x15   :  { %v1373_v9 = vadd.f32 %v1360_v2, %v206_v58  ;;  %v252_v10 = vmul.f32 %v1035_v59, %v1349_v55 }
  0x16   :  { %583 = vperm.xlu1 %1163, %v492_v11   ;;  %578 = vperm.xlu0 %1162, %v491_v12   ;;  %v205_v11 = vmul.f32 %v940_v60, %v1349_v55  ;;  %v250_v12 = vmul.f32 %v1031_v61, %v1349_v55  ;;  %v1044_v60 = vunpack.c.h.bf16 %v1370_v8  ;;  %v1457_v61 = vld [vmem:[%s2371_s0 + $0xe8] sm:$0xff]  }
  0x1a   :  { %593 = vperm.xlu1 %1163, %v494_v13   ;;  %588 = vperm.xlu0 %1162, %v493_v14   ;;  %v1379_v13 = vadd.f32 %v1360_v2, %v251_v63  ;;  %v209_v14 = vmul.f32 %v948_v0, %v1349_v55  ;;  %v1051_v63 = vunpack.c.l.bf16 %v1144_v50  ;;  %v959_v0 = vunpack.c.l.bf16 %v1121_v49 }
  0x1e   :  { %603 = vperm.xlu1 %1163, %v496_v15   ;;  %598 = vperm.xlu0 %1162, %v495_v16   ;;  %v1036_v15 = vunpack.c.h.bf16 %v1140_v52  ;;  %v1383_v16 = vadd.f32 %v1360_v2, %v207_v1 }
  0x22   :  { %613 = vperm.xlu1 %1163, %v498_v17   ;;  %608 = vperm.xlu0 %1162, %v497_v18   ;;  %v952_v17 = vunpack.c.h.bf16 %v1119_v7  ;;  %v1043_v18 = vunpack.c.l.bf16 %v1370_v8 }
  0x26   :  { %623 = vperm.xlu1 %1163, %v500_v19   ;;  %618 = vperm.xlu0 %1162, %v499_v20   ;;  %v1387_v19 = vadd.f32 %v1360_v2, %v204_v3  ;;  %v1390_v20 = vadd.f32 %v1360_v2, %v249_v4 }
  0x2a   :  { %633 = vperm.xlu1 %1163, %v502_v21   ;;  %628 = vperm.xlu0 %1162, %v501_v22   ;;  %v254_v21 = vmul.f32 %v1039_v5, %v1349_v55  ;;  %v208_v22 = vmul.f32 %v947_v6, %v1349_v55  ;;  %v964_v6 = vunpack.c.h.bf16 %v1122_v56 }
  0x2e   :  { %643 = vperm.xlu1 %1163, %v504_v23   ;;  %638 = vperm.xlu0 %1162, %v503_v24   ;;  %v393_v23 = vmax.f32 %v1373_v9, 0.0  ;;  %v1396_v24 = vadd.f32 %v1360_v2, %v252_v10 }
  0x32   :  { %653 = vperm.xlu1 %1163, %v506_v25   ;;  %648 = vperm.xlu0 %1162, %v505_v26   ;;  %v1399_v25 = vadd.f32 %v1360_v2, %v205_v11  ;;  %v1402_v26 = vadd.f32 %v1360_v2, %v250_v12  ;;  %v1055_v11 = vunpack.c.l.bf16 %v1457_v61 }
  0x36   :  { %663 = vperm.xlu1 %1163, %v508_v27   ;;  %658 = vperm.xlu0 %1162, %v507_v28   ;;  %v1120_v27 = vld [vmem:[%s2371_s0 + $0x20] sm:$0xff]   ;;  %v438_v28 = vmax.f32 %v1379_v13, 0.0 }
  0x37   :  { %v955_v54 = vunpack.c.l.bf16 %v1120_v27 }
  0x39   :  { %v212_v10 = vmul.f32 %v955_v54, %v1349_v55 }
  0x3a   :  { %673 = vperm.xlu1 %1163, %v510_v29   ;;  %668 = vperm.xlu0 %1162, %v509_v30   ;;  %v1409_v29 = vadd.f32 %v1360_v2, %v209_v14  ;;  %v253_v30 = vmul.f32 %v1036_v15, %v1349_v55  ;;  %v257_v15 = vmul.f32 %v1044_v60, %v1349_v55 }
  0x3c   :  { %v1431_v46 = vadd.f32 %v1360_v2, %v253_v30  ;;  %v1499_v54 = vadd.f32 %v1360_v2, %v257_v15 }
  0x3e   :  { %683 = vperm.xlu1 %1163, %v512_v31   ;;  %678 = vperm.xlu0 %1162, %v511_v32   ;;  %v951_v31 = vunpack.c.l.bf16 %v1119_v7  ;;  %v394_v32 = vmax.f32 %v1383_v16, 0.0  ;;  %v440_v3 = vmax.f32 %v1431_v46, 0.0 }
  0x40   :  { %v210_v47 = vmul.f32 %v951_v31, %v1349_v55  ;;  %v1485_v31 = vld [vmem:[%s2371_s0 + $0xf0] sm:$0xff]  }
  0x42   :  { %693 = vperm.xlu1 %1163, %v514_v33   ;;  %688 = vperm.xlu0 %1162, %v513_v34   ;;  %v211_v33 = vmul.f32 %v952_v17, %v1349_v55  ;;  %v256_v34 = vmul.f32 %v1043_v18, %v1349_v55  ;;  %v1461_v4 = vadd.f32 %v1360_v2, %v210_v47  ;;  %v963_v17 = vunpack.c.l.bf16 %v1122_v56  ;;  %v1123_v18 = vld [vmem:[%s2371_s0 + $0x38] sm:$0xff]  }
  0x43   :  { %v1494_v47 = vadd.f32 %v1360_v2, %v212_v10  ;;  %v967_v10 = vunpack.c.l.bf16 %v1123_v18 }
  0x44   :  { %v1441_v51 = vadd.f32 %v1360_v2, %v211_v33  ;;  %v1444_v52 = vadd.f32 %v1360_v2, %v256_v34  ;;  %v216_v56 = vmul.f32 %v963_v17, %v1349_v55 }
  0x46   :  { %703 = vperm.xlu1 %1163, %v516_v35   ;;  %698 = vperm.xlu0 %1162, %v515_v36   ;;  %v1040_v35 = vunpack.c.h.bf16 %v1141_v62  ;;  %v1143_v36 = vld [vmem:[%s2371_s0 + $0xd8] sm:$0xff]   ;;  %v960_v62 = vunpack.c.h.bf16 %v1121_v49  ;;  %v398_v7 = vmax.f32 %v1441_v51, 0.0  ;;  %v968_v49 = vunpack.c.h.bf16 %v1123_v18 }
  0x47   :  { %v1047_v48 = vunpack.c.l.bf16 %v1143_v36  ;;  %v1048_v1 = vunpack.c.h.bf16 %v1143_v36  ;;  %v1052_v36 = vunpack.c.h.bf16 %v1144_v50 }
  0x48   :  { %v255_v53 = vmul.f32 %v1040_v35, %v1349_v55  ;;  %v217_v35 = vmul.f32 %v964_v6, %v1349_v55  ;;  %v219_v17 = vmul.f32 %v968_v49, %v1349_v55 }
  0x49   :  { %v258_v5 = vmul.f32 %v1047_v48, %v1349_v55  ;;  %v259_v30 = vmul.f32 %v1048_v1, %v1349_v55  ;;  %v262_v48 = vmul.f32 %v1055_v11, %v1349_v55  ;;  %v261_v6 = vmul.f32 %v1052_v36, %v1349_v55 }
  0x4a   :  { %713 = vperm.xlu1 %1163, %v518_v37   ;;  %708 = vperm.xlu0 %1162, %v517_v38   ;;  %v391_v37 = vmax.f32 %v1387_v19, 0.0  ;;  %v1420_v38 = vadd.f32 %v1360_v2, %v254_v21  ;;  %v1466_v8 = vadd.f32 %v1360_v2, %v255_v53  ;;  %v215_v21 = vmul.f32 %v960_v62, %v1349_v55 }
  0x4b   :  { %v1489_v34 = vadd.f32 %v1360_v2, %v258_v5  ;;  %v1520_v5 = vadd.f32 %v1360_v2, %v217_v35  ;;  %v1525_v15 = vadd.f32 %v1360_v2, %v262_v48  ;;  %v1545_v1 = vadd.f32 %v1360_v2, %v261_v6 }
  0x4c   :  { %v441_v57 = vmax.f32 %v1420_v38, 0.0  ;;  %v1504_v60 = vadd.f32 %v1360_v2, %v215_v21  ;;  %v1056_v21 = vunpack.c.h.bf16 %v1457_v61  ;;  %v1551_v53 = vadd.f32 %v1360_v2, %v219_v17  ;;  %v1125_v61 = vld [vmem:[%s2371_s0 + $0x48] sm:$0xff]   ;;  %v1566_v17 = vld [vmem:[%s2371_s0 + $0x100] sm:$0xff]  }
  0x4d   :  { %v976_v12 = vunpack.c.h.bf16 %v1125_v61 }
  0x4e   :  { %723 = vperm.xlu1 %1163, %v520_v39   ;;  %718 = vperm.xlu0 %1162, %v519_v40   ;;  %v1423_v39 = vadd.f32 %v1360_v2, %v208_v22  ;;  %v956_v40 = vunpack.c.h.bf16 %v1120_v27  ;;  %v260_v22 = vmul.f32 %v1051_v63, %v1349_v55  ;;  %v214_v27 = vmul.f32 %v959_v0, %v1349_v55  ;;  %v1124_v0 = vld [vmem:[%s2371_s0 + $0x40] sm:$0xff]  }
  0x4f   :  { %v1513_v63 = vadd.f32 %v1360_v2, %v259_v30  ;;  %v1536_v30 = vadd.f32 %v1360_v2, %v216_v56  ;;  %v972_v35 = vunpack.c.h.bf16 %v1124_v0  ;;  %v263_v48 = vmul.f32 %v1056_v21, %v1349_v55 }
  0x50   :  { %v395_v58 = vmax.f32 %v1423_v39, 0.0  ;;  %v213_v59 = vmul.f32 %v956_v40, %v1349_v55  ;;  %v1507_v50 = vadd.f32 %v1360_v2, %v260_v22  ;;  %v1510_v62 = vadd.f32 %v1360_v2, %v214_v27  ;;  %v1532_v22 = vld [vmem:[%s2371_s0 + $0xf8] sm:$0xff]  }
  0x51   :  { %v218_v27 = vmul.f32 %v967_v10, %v1349_v55  ;;  %v1063_v56 = vunpack.c.l.bf16 %v1532_v22  ;;  %v971_v36 = vunpack.c.l.bf16 %v1124_v0  ;;  %v221_v40 = vmul.f32 %v972_v35, %v1349_v55 }
  0x52   :  { %733 = vperm.xlu1 %1163, %v522_v41   ;;  %728 = vperm.xlu0 %1162, %v521_v42   ;;  %v436_v41 = vmax.f32 %v1390_v20, 0.0  ;;  %v439_v42 = vmax.f32 %v1396_v24, 0.0  ;;  %v1472_v14 = vadd.f32 %v1360_v2, %v213_v59  ;;  %v1059_v59 = vunpack.c.l.bf16 %v1485_v31 }
  0x53   :  { %v448_v35 = vmax.f32 %v1545_v1, 0.0  ;;  %v266_v33 = vmul.f32 %v1063_v56, %v1349_v55  ;;  %v406_v9 = vmax.f32 %v1551_v53, 0.0  ;;  %v1595_v13 = vadd.f32 %v1360_v2, %v263_v48 }
  0x54   :  { %v264_v18 = vmul.f32 %v1059_v59, %v1349_v55  ;;  %v1060_v59 = vunpack.c.h.bf16 %v1485_v31  ;;  %v1578_v31 = vadd.f32 %v1360_v2, %v218_v27  ;;  %v220_v19 = vmul.f32 %v971_v36, %v1349_v55 }
  0x55   :  { %v1067_v20 = vunpack.c.l.bf16 %v1566_v17  ;;  %v975_v27 = vunpack.c.l.bf16 %v1125_v61  ;;  %v1618_v61 = vld [vmem:[%s2371_s0 + $0x108] sm:$0xff]   ;;  %v223_v16 = vmul.f32 %v976_v12, %v1349_v55  ;;  %v1064_v24 = vunpack.c.h.bf16 %v1532_v22 }
  0x56   :  { %743 = vperm.xlu1 %1163, %v524_v43   ;;  %738 = vperm.xlu0 %1162, %v523_v44   ;;  %v392_v43 = vmax.f32 %v1399_v25, 0.0  ;;  %v437_v44 = vmax.f32 %v1402_v26, 0.0  ;;  %v1559_v10 = vadd.f32 %v1360_v2, %v264_v18  ;;  %v450_v25 = vmax.f32 %v1595_v13, 0.0  ;;  %v1131_v13 = vld [vmem:[%s2371_s0 + $0x78] sm:$0xff]  }
  0x57   :  { %v1640_v26 = vadd.f32 %v1360_v2, %v220_v19  ;;  %v222_v22 = vmul.f32 %v975_v27, %v1349_v55 }
  0x59   :  { %v407_v38 = vmax.f32 %v1640_v26, 0.0 }
  0x5a   :  { %748 = vperm.xlu0 %1162, %v525_v45   ;;  %v396_v45 = vmax.f32 %v1409_v29, 0.0  ;;  %v267_v29 = vmul.f32 %v1064_v24, %v1349_v55  ;;  %v2376_v24 = vmax.f32 %v1461_v4, 0.0 }
  0x81   :  { %v539_v11 = vpop.permute.xlu1 %538  ;;  %v529_v49 = vpop.permute.xlu0 %528 }
  0x82   :  { %v753_v0 = vmul.f32 %v539_v11, %v393_v23  ;;  %v798_v21 = vmul.f32 %v539_v11, %v438_v28  ;;  %v751_v6 = vmul.f32 %v529_v49, %v391_v37  ;;  %v796_v18 = vmul.f32 %v529_v49, %v436_v41  ;;  %v1126_v49 = vld [vmem:[%s2371_s0 + $0x50] sm:$0xff]  }
  0x83   :  { %v451_v37 = vmax.f32 %v1559_v10, 0.0  ;;  %v1601_v41 = vadd.f32 %v1360_v2, %v221_v40  ;;  %v265_v11 = vmul.f32 %v1060_v59, %v1349_v55  ;;  %v405_v59 = vmax.f32 %v1578_v31, 0.0 }
  0x84   :  { %843 = vst [vmem:[%s2374_s4 + $0x10] sm:$0xff] %v753_v0  ;;  %888 = vst [vmem:[%s2374_s4 + $0x178] sm:$0xff] %v798_v21  ;;  %v1071_v0 = vunpack.c.l.bf16 %v1618_v61 }
  0x85   :  { %841 = vst [vmem:[%s2374_s4] sm:$0xff] %v751_v6  ;;  %886 = vst [vmem:[%s2374_s4 + $0x168] sm:$0xff] %v796_v18  ;;  %v544_v23 = vpop.permute.xlu1 %543  ;;  %v534_v28 = vpop.permute.xlu0 %533  ;;  %v1622_v6 = vadd.f32 %v1360_v2, %v266_v33  ;;  %v408_v12 = vmax.f32 %v1601_v41, 0.0  ;;  %v1645_v33 = vadd.f32 %v1360_v2, %v265_v11  ;;  %v1662_v11 = vadd.f32 %v1360_v2, %v223_v16 }
  0x86   :  { %v754_v48 = vmul.f32 %v544_v23, %v394_v32  ;;  %v799_v36 = vmul.f32 %v544_v23, %v439_v42  ;;  %v752_v56 = vmul.f32 %v534_v28, %v392_v43  ;;  %v797_v40 = vmul.f32 %v534_v28, %v437_v44  ;;  %v1127_v23 = vld [vmem:[%s2371_s0 + $0x58] sm:$0xff]  }
  0x87   :  { %v268_v32 = vmul.f32 %v1067_v20, %v1349_v55  ;;  %v980_v42 = vunpack.c.h.bf16 %v1126_v49  ;;  %v453_v28 = vmax.f32 %v1622_v6, 0.0 }
  0x88   :  { %844 = vst [vmem:[%s2374_s4 + $0x18] sm:$0xff] %v754_v48  ;;  %889 = vst [vmem:[%s2374_s4 + $0x180] sm:$0xff] %v799_v36  ;;  %v1690_v48 = vadd.f32 %v1360_v2, %v222_v22  ;;  %v270_v36 = vmul.f32 %v1071_v0, %v1349_v55  ;;  %v1703_v22 = vadd.f32 %v1360_v2, %v267_v29 }
  0x89   :  { %842 = vst [vmem:[%s2374_s4 + $0x8] sm:$0xff] %v752_v56  ;;  %887 = vst [vmem:[%s2374_s4 + $0x170] sm:$0xff] %v797_v40  ;;  %v554_v43 = vpop.permute.xlu1 %553  ;;  %v549_v44 = vpop.permute.xlu0 %548  ;;  %v1679_v39 = vadd.f32 %v1360_v2, %v268_v32  ;;  %v225_v46 = vmul.f32 %v980_v42, %v1349_v55  ;;  %v984_v56 = vunpack.c.h.bf16 %v1127_v23  ;;  %v2377_v42 = vmax.f32 %v1466_v8, 0.0  ;;  %v1128_v8 = vld [vmem:[%s2371_s0 + $0x60] sm:$0xff]  }
  0x8a   :  { %v756_v21 = vmul.f32 %v554_v43, %v396_v45  ;;  %v801_v18 = vmul.f32 %v554_v43, %v441_v57  ;;  %v755_v19 = vmul.f32 %v549_v44, %v395_v58  ;;  %v800_v20 = vmul.f32 %v549_v44, %v440_v3  ;;  %v1686_v58 = vld [vmem:[%s2371_s0 + $0x110] sm:$0xff]  }
  0x8b   :  { %v979_v45 = vunpack.c.l.bf16 %v1126_v49  ;;  %v1068_v57 = vunpack.c.h.bf16 %v1566_v17  ;;  %v452_v49 = vmax.f32 %v1645_v33, 0.0  ;;  %v2375_v17 = vmax.f32 %v1444_v52, 0.0 }
  0x8c   :  { %846 = vst [vmem:[%s2374_s4 + $0x28] sm:$0xff] %v756_v21  ;;  %891 = vst [vmem:[%s2374_s4 + $0x190] sm:$0xff] %v801_v18  ;;  %v410_v44 = vmax.f32 %v1662_v11, 0.0  ;;  %v1075_v21 = vunpack.c.l.bf16 %v1686_v58  ;;  %v455_v51 = vmax.f32 %v1679_v39, 0.0  ;;  %v1721_v52 = vadd.f32 %v1360_v2, %v225_v46  ;;  %v1736_v46 = vld [vmem:[%s2371_s0 + $0x118] sm:$0xff]  }
  0x8d   :  { %845 = vst [vmem:[%s2374_s4 + $0x20] sm:$0xff] %v755_v19  ;;  %890 = vst [vmem:[%s2374_s4 + $0x188] sm:$0xff] %v800_v20  ;;  %v564_v3 = vpop.permute.xlu1 %563  ;;  %v559_v27 = vpop.permute.xlu0 %558  ;;  %v224_v0 = vmul.f32 %v979_v45, %v1349_v55  ;;  %v269_v4 = vmul.f32 %v1068_v57, %v1349_v55  ;;  %v409_v20 = vmax.f32 %v1690_v48, 0.0  ;;  %v1729_v29 = vadd.f32 %v1360_v2, %v270_v36 }
  0x8e   :  { %v758_v40 = vmul.f32 %v564_v3, %v398_v7  ;;  %v803_v16 = vmul.f32 %v564_v3, %v2375_v17  ;;  %v757_v32 = vmul.f32 %v559_v27, %v2376_v24  ;;  %v802_v43 = vmul.f32 %v559_v27, %v2377_v42 }
  0x8f   :  { %v983_v7 = vunpack.c.l.bf16 %v1127_v23  ;;  %v227_v45 = vmul.f32 %v984_v56, %v1349_v55  ;;  %v1072_v3 = vunpack.c.h.bf16 %v1618_v61  ;;  %v2378_v23 = vmax.f32 %v1472_v14, 0.0 }
  0x90   :  { %848 = vst [vmem:[%s2374_s4 + $0x38] sm:$0xff] %v758_v40  ;;  %893 = vst [vmem:[%s2374_s4 + $0x1a0] sm:$0xff] %v803_v16  ;;  %v2379_v27 = vmax.f32 %v1489_v34, 0.0  ;;  %v2380_v17 = vmax.f32 %v1494_v47, 0.0  ;;  %v2381_v36 = vmax.f32 %v1499_v54, 0.0  ;;  %v454_v56 = vmax.f32 %v1703_v22, 0.0 }
  0x91   :  { %847 = vst [vmem:[%s2374_s4 + $0x30] sm:$0xff] %v757_v32  ;;  %892 = vst [vmem:[%s2374_s4 + $0x198] sm:$0xff] %v802_v43  ;;  %v574_v18 = vpop.permute.xlu1 %573  ;;  %v569_v19 = vpop.permute.xlu0 %568  ;;  %v1748_v61 = vadd.f32 %v1360_v2, %v224_v0  ;;  %v272_v32 = vmul.f32 %v1075_v21, %v1349_v55  ;;  %v988_v42 = vunpack.c.h.bf16 %v1128_v8  ;;  %v412_v14 = vmax.f32 %v1721_v52, 0.0 }
  0x92   :  { %v760_v57 = vmul.f32 %v574_v18, %v2378_v23  ;;  %v805_v40 = vmul.f32 %v574_v18, %v2379_v27  ;;  %v759_v16 = vmul.f32 %v569_v19, %v2380_v17  ;;  %v804_v24 = vmul.f32 %v569_v19, %v2381_v36 }
  0x93   :  { %v1765_v34 = vadd.f32 %v1360_v2, %v269_v4  ;;  %v226_v47 = vmul.f32 %v983_v7, %v1349_v55  ;;  %v1079_v54 = vunpack.c.l.bf16 %v1736_v46  ;;  %v457_v21 = vmax.f32 %v1729_v29, 0.0 }
  0x94   :  { %850 = vst [vmem:[%s2374_s4 + $0x48] sm:$0xff] %v760_v57  ;;  %895 = vst [vmem:[%s2374_s4 + $0x1b0] sm:$0xff] %v805_v40  ;;  %v1771_v18 = vadd.f32 %v1360_v2, %v227_v45  ;;  %v271_v19 = vmul.f32 %v1072_v3, %v1349_v55  ;;  %v987_v23 = vunpack.c.l.bf16 %v1128_v8  ;;  %v1129_v57 = vld [vmem:[%s2371_s0 + $0x68] sm:$0xff]   ;;  %v2382_v4 = vmax.f32 %v1504_v60, 0.0  ;;  %v1788_v8 = vld [vmem:[%s2371_s0 + $0x120] sm:$0xff]  }
  0x95   :  { %849 = vst [vmem:[%s2374_s4 + $0x40] sm:$0xff] %v759_v16  ;;  %894 = vst [vmem:[%s2374_s4 + $0x1a8] sm:$0xff] %v804_v24  ;;  %v584_v43 = vpop.permute.xlu1 %583  ;;  %v579_v0 = vpop.permute.xlu0 %578  ;;  %v2383_v7 = vmax.f32 %v1507_v50, 0.0  ;;  %v2384_v17 = vmax.f32 %v1510_v62, 0.0  ;;  %v2385_v36 = vmax.f32 %v1513_v63, 0.0  ;;  %v411_v3 = vmax.f32 %v1748_v61, 0.0 }
  0x96   :  { %v762_v27 = vmul.f32 %v584_v43, %v2382_v4  ;;  %v1792_v24 = vadd.f32 %v1360_v2, %v272_v32  ;;  %v229_v60 = vmul.f32 %v988_v42, %v1349_v55  ;;  %v1076_v50 = vunpack.c.h.bf16 %v1686_v58 }
  0x97   :  { %v807_v40 = vmul.f32 %v584_v43, %v2383_v7  ;;  %v761_v16 = vmul.f32 %v579_v0, %v2384_v17  ;;  %v806_v45 = vmul.f32 %v579_v0, %v2385_v36  ;;  %v456_v62 = vmax.f32 %v1765_v34, 0.0 }
  0x98   :  { %852 = vst [vmem:[%s2374_s4 + $0x58] sm:$0xff] %v762_v27  ;;  %v1810_v63 = vadd.f32 %v1360_v2, %v226_v47  ;;  %v274_v58 = vmul.f32 %v1079_v54, %v1349_v55  ;;  %v992_v32 = vunpack.c.h.bf16 %v1129_v57  ;;  %v1815_v4 = vadd.f32 %v1360_v2, %v271_v19  ;;  %v1130_v19 = vld [vmem:[%s2371_s0 + $0x70] sm:$0xff]  }
  0x99   :  { %897 = vst [vmem:[%s2374_s4 + $0x1c0] sm:$0xff] %v807_v40  ;;  %851 = vst [vmem:[%s2374_s4 + $0x50] sm:$0xff] %v761_v16  ;;  %v594_v42 = vpop.permute.xlu1 %593  ;;  %v589_v43 = vpop.permute.xlu0 %588  ;;  %v228_v27 = vmul.f32 %v987_v23, %v1349_v55  ;;  %v1083_v7 = vunpack.c.l.bf16 %v1788_v8  ;;  %v2386_v40 = vmax.f32 %v1520_v5, 0.0  ;;  %v2387_v47 = vmax.f32 %v1525_v15, 0.0 }
  0x9a   :  { %896 = vst [vmem:[%s2374_s4 + $0x1b8] sm:$0xff] %v806_v45  ;;  %v2388_v54 = vmax.f32 %v1536_v30, 0.0  ;;  %v808_v45 = vmul.f32 %v589_v43, %v448_v35  ;;  %v459_v23 = vmax.f32 %v1792_v24, 0.0  ;;  %v1832_v0 = vadd.f32 %v1360_v2, %v229_v60 }
  0x9b   :  { %v764_v17 = vmul.f32 %v594_v42, %v2386_v40  ;;  %v809_v16 = vmul.f32 %v594_v42, %v2387_v47  ;;  %v273_v5 = vmul.f32 %v1076_v50, %v1349_v55  ;;  %v991_v40 = vunpack.c.l.bf16 %v1129_v57  ;;  %v1856_v57 = vld [vmem:[%s2371_s0 + $0x128] sm:$0xff]  }
  0x9c   :  { %v763_v36 = vmul.f32 %v589_v43, %v2388_v54  ;;  %898 = vst [vmem:[%s2374_s4 + $0x1c8] sm:$0xff] %v808_v45  ;;  %v413_v1 = vmax.f32 %v1810_v63, 0.0  ;;  %v1849_v15 = vadd.f32 %v1360_v2, %v274_v58  ;;  %v231_v30 = vmul.f32 %v992_v32, %v1349_v55 }
  0x9d   :  { %854 = vst [vmem:[%s2374_s4 + $0x68] sm:$0xff] %v764_v17  ;;  %899 = vst [vmem:[%s2374_s4 + $0x1d0] sm:$0xff] %v809_v16  ;;  %v1080_v35 = vunpack.c.h.bf16 %v1736_v46  ;;  %v604_v60 = vpop.permute.xlu1 %603  ;;  %v599_v50 = vpop.permute.xlu0 %598  ;;  %v458_v42 = vmax.f32 %v1815_v4, 0.0  ;;  %v1860_v43 = vadd.f32 %v1360_v2, %v228_v27  ;;  %v276_v17 = vmul.f32 %v1083_v7, %v1349_v55 }
  0x9e   :  { %853 = vst [vmem:[%s2374_s4 + $0x60] sm:$0xff] %v763_v36  ;;  %v996_v58 = vunpack.c.h.bf16 %v1130_v19  ;;  %v766_v32 = vmul.f32 %v604_v60, %v406_v9  ;;  %v811_v46 = vmul.f32 %v604_v60, %v451_v37  ;;  %v765_v47 = vmul.f32 %v599_v50, %v405_v59 }
  0x9f   :  { %v810_v16 = vmul.f32 %v599_v50, %v450_v25  ;;  %v416_v54 = vmax.f32 %v1832_v0, 0.0  ;;  %v1873_v27 = vadd.f32 %v1360_v2, %v273_v5  ;;  %v230_v7 = vmul.f32 %v991_v40, %v1349_v55 }
  0xa0   :  { %v1087_v36 = vunpack.c.l.bf16 %v1856_v57  ;;  %856 = vst [vmem:[%s2374_s4 + $0x78] sm:$0xff] %v766_v32  ;;  %901 = vst [vmem:[%s2374_s4 + $0x1e0] sm:$0xff] %v811_v46  ;;  %v461_v53 = vmax.f32 %v1849_v15, 0.0  ;;  %v1891_v10 = vadd.f32 %v1360_v2, %v231_v30  ;;  %v275_v31 = vmul.f32 %v1080_v35, %v1349_v55  ;;  %v1906_v30 = vld [vmem:[%s2371_s0 + $0x130] sm:$0xff]  }
  0xa1   :  { %855 = vst [vmem:[%s2374_s4 + $0x70] sm:$0xff] %v765_v47  ;;  %900 = vst [vmem:[%s2374_s4 + $0x1d8] sm:$0xff] %v810_v16  ;;  %v995_v9 = vunpack.c.l.bf16 %v1130_v19  ;;  %v614_v37 = vpop.permute.xlu1 %613  ;;  %v609_v59 = vpop.permute.xlu0 %608  ;;  %v415_v25 = vmax.f32 %v1860_v43, 0.0  ;;  %v1899_v45 = vadd.f32 %v1360_v2, %v276_v17  ;;  %v233_v5 = vmul.f32 %v996_v58, %v1349_v55  ;;  %v1132_v16 = vld [vmem:[%s2371_s0 + $0x80] sm:$0xff]  }
  0xa2   :  { %v1084_v40 = vunpack.c.h.bf16 %v1788_v8  ;;  %v768_v19 = vmul.f32 %v614_v37, %v408_v12  ;;  %v813_v35 = vmul.f32 %v614_v37, %v453_v28  ;;  %v767_v60 = vmul.f32 %v609_v59, %v407_v38 }
  0xa3   :  { %v812_v50 = vmul.f32 %v609_v59, %v452_v49  ;;  %v460_v17 = vmax.f32 %v1873_v27, 0.0  ;;  %v1918_v8 = vadd.f32 %v1360_v2, %v230_v7  ;;  %v278_v58 = vmul.f32 %v1087_v36, %v1349_v55 }
  0xa4   :  { %v1000_v32 = vunpack.c.h.bf16 %v1131_v13  ;;  %858 = vst [vmem:[%s2374_s4 + $0x88] sm:$0xff] %v768_v19  ;;  %903 = vst [vmem:[%s2374_s4 + $0x1f0] sm:$0xff] %v813_v35  ;;  %v418_v41 = vmax.f32 %v1891_v10, 0.0  ;;  %v1935_v6 = vadd.f32 %v1360_v2, %v275_v31  ;;  %v232_v26 = vmul.f32 %v995_v9, %v1349_v55 }
  0xa5   :  { %857 = vst [vmem:[%s2374_s4 + $0x80] sm:$0xff] %v767_v60  ;;  %902 = vst [vmem:[%s2374_s4 + $0x1e8] sm:$0xff] %v812_v50  ;;  %v1091_v12 = vunpack.c.l.bf16 %v1906_v30  ;;  %v624_v33 = vpop.permute.xlu1 %623  ;;  %v619_v28 = vpop.permute.xlu0 %618  ;;  %v463_v38 = vmax.f32 %v1899_v45, 0.0  ;;  %v1941_v49 = vadd.f32 %v1360_v2, %v233_v5  ;;  %v277_v46 = vmul.f32 %v1084_v40, %v1349_v55 }
  0xa6   :  { %v999_v47 = vunpack.c.l.bf16 %v1131_v13  ;;  %v770_v7 = vmul.f32 %v624_v33, %v410_v44  ;;  %v815_v36 = vmul.f32 %v624_v33, %v455_v51  ;;  %v769_v31 = vmul.f32 %v619_v28, %v409_v20  ;;  %v1958_v13 = vld [vmem:[%s2371_s0 + $0x138] sm:$0xff]  }
  0xa7   :  { %v814_v9 = vmul.f32 %v619_v28, %v454_v56  ;;  %v417_v37 = vmax.f32 %v1918_v8, 0.0  ;;  %v1962_v59 = vadd.f32 %v1360_v2, %v278_v58  ;;  %v235_v11 = vmul.f32 %v1000_v32, %v1349_v55  ;;  %v1133_v32 = vld [vmem:[%s2371_s0 + $0x88] sm:$0xff]  }
  0xa8   :  { %v1088_v39 = vunpack.c.h.bf16 %v1856_v57  ;;  %860 = vst [vmem:[%s2374_s4 + $0x98] sm:$0xff] %v770_v7  ;;  %905 = vst [vmem:[%s2374_s4 + $0x200] sm:$0xff] %v815_v36  ;;  %v462_v48 = vmax.f32 %v1935_v6, 0.0  ;;  %v1980_v44 = vadd.f32 %v1360_v2, %v232_v26  ;;  %v280_v22 = vmul.f32 %v1091_v12, %v1349_v55 }
  0xa9   :  { %859 = vst [vmem:[%s2374_s4 + $0x90] sm:$0xff] %v769_v31  ;;  %904 = vst [vmem:[%s2374_s4 + $0x1f8] sm:$0xff] %v814_v9  ;;  %v1004_v51 = vunpack.c.h.bf16 %v1132_v16  ;;  %v634_v20 = vpop.permute.xlu1 %633  ;;  %v629_v56 = vpop.permute.xlu0 %628  ;;  %v420_v57 = vmax.f32 %v1941_v49, 0.0  ;;  %v1985_v5 = vadd.f32 %v1360_v2, %v277_v46  ;;  %v234_v40 = vmul.f32 %v999_v47, %v1349_v55 }
  0xaa   :  { %v1095_v19 = vunpack.c.l.bf16 %v1958_v13  ;;  %v772_v35 = vmul.f32 %v634_v20, %v412_v14  ;;  %v817_v60 = vmul.f32 %v634_v20, %v457_v21  ;;  %v771_v50 = vmul.f32 %v629_v56, %v411_v3  ;;  %v2026_v3 = vld [vmem:[%s2371_s0 + $0x140] sm:$0xff]  }
  0xab   :  { %v816_v58 = vmul.f32 %v629_v56, %v456_v62  ;;  %v465_v26 = vmax.f32 %v1962_v59, 0.0  ;;  %v2002_v12 = vadd.f32 %v1360_v2, %v235_v11  ;;  %v279_v52 = vmul.f32 %v1088_v39, %v1349_v55 }
  0xac   :  { %v1003_v14 = vunpack.c.l.bf16 %v1132_v16  ;;  %862 = vst [vmem:[%s2374_s4 + $0xa8] sm:$0xff] %v772_v35  ;;  %907 = vst [vmem:[%s2374_s4 + $0x210] sm:$0xff] %v817_v60  ;;  %v419_v29 = vmax.f32 %v1980_v44, 0.0  ;;  %v2019_v61 = vadd.f32 %v1360_v2, %v280_v22  ;;  %v237_v34 = vmul.f32 %v1004_v51, %v1349_v55  ;;  %v2076_v35 = vld [vmem:[%s2371_s0 + $0x148] sm:$0xff]  }
  0xad   :  { %861 = vst [vmem:[%s2374_s4 + $0xa0] sm:$0xff] %v771_v50  ;;  %906 = vst [vmem:[%s2374_s4 + $0x208] sm:$0xff] %v816_v58  ;;  %v1092_v21 = vunpack.c.h.bf16 %v1906_v30  ;;  %v644_v62 = vpop.permute.xlu1 %643  ;;  %v639_v33 = vpop.permute.xlu0 %638  ;;  %v464_v28 = vmax.f32 %v1985_v5, 0.0  ;;  %v2030_v46 = vadd.f32 %v1360_v2, %v234_v40  ;;  %v282_v47 = vmul.f32 %v1095_v19, %v1349_v55  ;;  %v1134_v19 = vld [vmem:[%s2371_s0 + $0x90] sm:$0xff]   ;;  %v1136_v5 = vld [vmem:[%s2371_s0 + $0xa0] sm:$0xff]  }
  0xae   :  { %v1008_v16 = vunpack.c.h.bf16 %v1133_v32  ;;  %v2389_v7 = vmax.f32 %v1771_v18, 0.0  ;;  %v819_v30 = vmul.f32 %v644_v62, %v459_v23  ;;  %v773_v31 = vmul.f32 %v639_v33, %v413_v1 }
  0xaf   :  { %v818_v9 = vmul.f32 %v639_v33, %v458_v42  ;;  %v2042_v11 = vadd.f32 %v1360_v2, %v279_v52  ;;  %v236_v39 = vmul.f32 %v1003_v14, %v1349_v55  ;;  %v1099_v22 = vunpack.c.l.bf16 %v2026_v3  ;;  %v1135_v33 = vld [vmem:[%s2371_s0 + $0x98] sm:$0xff]  }
  0xb0   :  { %v774_v36 = vmul.f32 %v644_v62, %v2389_v7  ;;  %v1007_v51 = vunpack.c.l.bf16 %v1133_v32  ;;  %909 = vst [vmem:[%s2374_s4 + $0x220] sm:$0xff] %v819_v30  ;;  %863 = vst [vmem:[%s2374_s4 + $0xb0] sm:$0xff] %v773_v31  ;;  %v422_v18 = vmax.f32 %v2002_v12, 0.0  ;;  %v467_v24 = vmax.f32 %v2019_v61, 0.0  ;;  %v2128_v30 = vld [vmem:[%s2371_s0 + $0x150] sm:$0xff]  }
  0xb1   :  { %908 = vst [vmem:[%s2374_s4 + $0x218] sm:$0xff] %v818_v9  ;;  %v2061_v63 = vadd.f32 %v1360_v2, %v237_v34  ;;  %v281_v4 = vmul.f32 %v1092_v21, %v1349_v55  ;;  %v654_v23 = vpop.permute.xlu1 %653  ;;  %v649_v1 = vpop.permute.xlu0 %648  ;;  %v421_v42 = vmax.f32 %v2030_v46, 0.0  ;;  %v2066_v20 = vadd.f32 %v1360_v2, %v282_v47 }
  0xb2   :  { %864 = vst [vmem:[%s2374_s4 + $0xb8] sm:$0xff] %v774_v36  ;;  %v239_v56 = vmul.f32 %v1008_v16, %v1349_v55  ;;  %v1096_v40 = vunpack.c.h.bf16 %v1958_v13  ;;  %v776_v60 = vmul.f32 %v654_v23, %v416_v54  ;;  %v821_v50 = vmul.f32 %v654_v23, %v461_v53 }
  0xb3   :  { %v775_v58 = vmul.f32 %v649_v1, %v415_v25  ;;  %v820_v13 = vmul.f32 %v649_v1, %v460_v17  ;;  %v466_v32 = vmax.f32 %v2042_v11, 0.0  ;;  %v2088_v52 = vadd.f32 %v1360_v2, %v236_v39 }
  0xb4   :  { %v284_v14 = vmul.f32 %v1099_v22, %v1349_v55  ;;  %v238_v34 = vmul.f32 %v1007_v51, %v1349_v55  ;;  %866 = vst [vmem:[%s2374_s4 + $0xc8] sm:$0xff] %v776_v60  ;;  %911 = vst [vmem:[%s2374_s4 + $0x230] sm:$0xff] %v821_v50  ;;  %v424_v0 = vmax.f32 %v2061_v63, 0.0  ;;  %v2106_v15 = vadd.f32 %v1360_v2, %v281_v4  ;;  %v1165_v63 = vld [vmem:[%s2372_s1] ss:$0 sm:$0xff] }
  0xb5   :  { %865 = vst [vmem:[%s2374_s4 + $0xc0] sm:$0xff] %v775_v58  ;;  %910 = vst [vmem:[%s2374_s4 + $0x228] sm:$0xff] %v820_v13  ;;  %v1012_v43 = vunpack.c.h.bf16 %v1134_v19  ;;  %v1103_v54 = vunpack.c.l.bf16 %v2076_v35  ;;  %v664_v27 = vpop.permute.xlu1 %663  ;;  %v659_v53 = vpop.permute.xlu0 %658  ;;  %v469_v25 = vmax.f32 %v2066_v20, 0.0  ;;  %v2111_v17 = vadd.f32 %v1360_v2, %v239_v56 }
  0xb6   :  { %v283_v21 = vmul.f32 %v1096_v40, %v1349_v55  ;;  %v1011_v62 = vunpack.c.l.bf16 %v1134_v19  ;;  %v778_v47 = vmul.f32 %v664_v27, %v418_v41  ;;  %v823_v16 = vmul.f32 %v664_v27, %v463_v38 }
  0xb7   :  { %v777_v7 = vmul.f32 %v659_v53, %v417_v37  ;;  %v822_v36 = vmul.f32 %v659_v53, %v462_v48  ;;  %v423_v31 = vmax.f32 %v2088_v52, 0.0  ;;  %v2132_v9 = vadd.f32 %v1360_v2, %v284_v14 }
  0xb8   :  { %v2135_v10 = vadd.f32 %v1360_v2, %v238_v34  ;;  %v1100_v45 = vunpack.c.h.bf16 %v2026_v3  ;;  %868 = vst [vmem:[%s2374_s4 + $0xd8] sm:$0xff] %v778_v47  ;;  %913 = vst [vmem:[%s2374_s4 + $0x240] sm:$0xff] %v823_v16  ;;  %v468_v8 = vmax.f32 %v2106_v15, 0.0  ;;  %v241_v41 = vmul.f32 %v1012_v43, %v1349_v55  ;;  %v1137_v47 = vld [vmem:[%s2371_s0 + $0xa8] sm:$0xff]   ;;  %v2248_v16 = vld [vmem:[%s2371_s0 + $0x160] sm:$0xff]  }
  0xb9   :  { %867 = vst [vmem:[%s2374_s4 + $0xd0] sm:$0xff] %v777_v7  ;;  %912 = vst [vmem:[%s2374_s4 + $0x238] sm:$0xff] %v822_v36  ;;  %v286_v6 = vmul.f32 %v1103_v54, %v1349_v55  ;;  %v1016_v38 = vunpack.c.h.bf16 %v1135_v33  ;;  %v674_v37 = vpop.permute.xlu1 %673  ;;  %v669_v48 = vpop.permute.xlu0 %668  ;;  %v2154_v3 = vadd.f32 %v1360_v2, %v283_v21  ;;  %v240_v39 = vmul.f32 %v1011_v62, %v1349_v55 }
  0xba   :  { %v1107_v22 = vunpack.c.l.bf16 %v2128_v30  ;;  %v1015_v51 = vunpack.c.l.bf16 %v1135_v33  ;;  %v780_v4 = vmul.f32 %v674_v37, %v420_v57  ;;  %v825_v23 = vmul.f32 %v674_v37, %v465_v26  ;;  %v2196_v26 = vld [vmem:[%s2371_s0 + $0x158] sm:$0xff]  }
  0xbb   :  { %v779_v1 = vmul.f32 %v669_v48, %v419_v29  ;;  %v824_v56 = vmul.f32 %v669_v48, %v464_v28  ;;  %v426_v40 = vmax.f32 %v2111_v17, 0.0  ;;  %v471_v19 = vmax.f32 %v2132_v9, 0.0 }
  0xbc   :  { %v285_v60 = vmul.f32 %v1100_v45, %v1349_v55  ;;  %v1104_v50 = vunpack.c.h.bf16 %v2076_v35  ;;  %870 = vst [vmem:[%s2374_s4 + $0xe8] sm:$0xff] %v780_v4  ;;  %915 = vst [vmem:[%s2374_s4 + $0x250] sm:$0xff] %v825_v23  ;;  %v425_v49 = vmax.f32 %v2135_v10, 0.0  ;;  %v2184_v59 = vadd.f32 %v1360_v2, %v241_v41  ;;  %v2260_v45 = vld [vmem:[%s2373_s2] ss:$0 sm:$0xff] }
  0xbd   :  { %869 = vst [vmem:[%s2374_s4 + $0xe0] sm:$0xff] %v779_v1  ;;  %914 = vst [vmem:[%s2374_s4 + $0x248] sm:$0xff] %v824_v56  ;;  %v2187_v44 = vadd.f32 %v1360_v2, %v286_v6  ;;  %v243_v57 = vmul.f32 %v1016_v38, %v1349_v55  ;;  %v684_v29 = vpop.permute.xlu1 %683  ;;  %v679_v28 = vpop.permute.xlu0 %678  ;;  %v470_v35 = vmax.f32 %v2154_v3, 0.0  ;;  %v2200_v58 = vadd.f32 %v1360_v2, %v240_v39 }
  0xbe   :  { %v288_v13 = vmul.f32 %v1107_v22, %v1349_v55  ;;  %v242_v14 = vmul.f32 %v1015_v51, %v1349_v55  ;;  %v782_v34 = vmul.f32 %v684_v29, %v422_v18  ;;  %v827_v15 = vmul.f32 %v684_v29, %v467_v24 }
  0xbf   :  { %v781_v43 = vmul.f32 %v679_v28, %v421_v42  ;;  %v826_v54 = vmul.f32 %v679_v28, %v466_v32  ;;  %v2213_v27 = vadd.f32 %v1360_v2, %v285_v60  ;;  %v287_v53 = vmul.f32 %v1104_v50, %v1349_v55 }
  0xc0   :  { %v1020_v21 = vunpack.c.h.bf16 %v1136_v5  ;;  %v1111_v62 = vunpack.c.l.bf16 %v2196_v26  ;;  %872 = vst [vmem:[%s2374_s4 + $0xf8] sm:$0xff] %v782_v34  ;;  %917 = vst [vmem:[%s2374_s4 + $0x260] sm:$0xff] %v827_v15  ;;  %v428_v55 = vmax.f32 %v2184_v59, 0.0  ;;  %v473_v12 = vmax.f32 %v2187_v44, 0.0 }
  0xc1   :  { %871 = vst [vmem:[%s2374_s4 + $0xf0] sm:$0xff] %v781_v43  ;;  %916 = vst [vmem:[%s2374_s4 + $0x258] sm:$0xff] %v826_v54  ;;  %v2232_v61 = vadd.f32 %v1360_v2, %v243_v57  ;;  %v1019_v46 = vunpack.c.l.bf16 %v1136_v5  ;;  %v694_v11 = vpop.permute.xlu1 %693  ;;  %v689_v18 = vpop.permute.xlu0 %688  ;;  %v427_v24 = vmax.f32 %v2200_v58, 0.0  ;;  %v2236_v42 = vadd.f32 %v1360_v2, %v288_v13  ;;  %v1166_v5 = vld [vmem:[%s2371_s0 + $0xb0] sm:$0xff]  }
  0xc2   :  { %v2239_v32 = vadd.f32 %v1360_v2, %v242_v14  ;;  %v1108_v33 = vunpack.c.h.bf16 %v2128_v30  ;;  %v784_v7 = vmul.f32 %v694_v11, %v424_v0  ;;  %v829_v36 = vmul.f32 %v694_v11, %v469_v25 }
  0xc3   :  { %v783_v2 = vmul.f32 %v689_v18, %v423_v31  ;;  %v828_v10 = vmul.f32 %v689_v18, %v468_v8  ;;  %v472_v30 = vmax.f32 %v2213_v27, 0.0  ;;  %v2263_v41 = vadd.f32 %v2260_v45, %v287_v53 }
  0xc4   :  { %v245_v20 = vmul.f32 %v1165_v63, %v1020_v21  ;;  %v290_v0 = vmul.f32 %v1165_v63, %v1111_v62  ;;  %874 = vst [vmem:[%s2374_s4 + $0x108] sm:$0xff] %v784_v7  ;;  %919 = vst [vmem:[%s2374_s4 + $0x270] sm:$0xff] %v829_v36  ;;  %v244_v52 = vmul.f32 %v1165_v63, %v1019_v46  ;;  %v1024_v25 = vunpack.c.h.bf16 %v1137_v47 }
  0xc5   :  { %873 = vst [vmem:[%s2374_s4 + $0x100] sm:$0xff] %v783_v2  ;;  %918 = vst [vmem:[%s2374_s4 + $0x268] sm:$0xff] %v828_v10  ;;  %v1115_v31 = vunpack.c.l.bf16 %v2248_v16  ;;  %v1023_v8 = vunpack.c.l.bf16 %v1137_v47  ;;  %v704_v6 = vpop.permute.xlu1 %703  ;;  %v699_v38 = vpop.permute.xlu0 %698  ;;  %v430_v37 = vmax.f32 %v2232_v61, 0.0  ;;  %v475_v48 = vmax.f32 %v2236_v42, 0.0 }
  0xc6   :  { %v289_v3 = vmul.f32 %v1165_v63, %v1108_v33  ;;  %v1112_v39 = vunpack.c.h.bf16 %v2196_v26  ;;  %v786_v22 = vmul.f32 %v704_v6, %v426_v40  ;;  %v831_v51 = vmul.f32 %v704_v6, %v471_v19 }
  0xc7   :  { %v785_v4 = vmul.f32 %v699_v38, %v425_v49  ;;  %v830_v23 = vmul.f32 %v699_v38, %v470_v35  ;;  %v429_v1 = vmax.f32 %v2239_v32, 0.0  ;;  %v474_v56 = vmax.f32 %v2263_v41, 0.0 }
  0xc8   :  { %v342_v60 = vadd.f32 %v2260_v45, %v245_v20  ;;  %v387_v50 = vadd.f32 %v2260_v45, %v290_v0  ;;  %876 = vst [vmem:[%s2374_s4 + $0x118] sm:$0xff] %v786_v22  ;;  %921 = vst [vmem:[%s2374_s4 + $0x280] sm:$0xff] %v831_v51  ;;  %v341_v17 = vadd.f32 %v2260_v45, %v244_v52  ;;  %v1027_v26 = vunpack.c.l.bf16 %v1166_v5 }
  0xc9   :  { %875 = vst [vmem:[%s2374_s4 + $0x110] sm:$0xff] %v785_v4  ;;  %920 = vst [vmem:[%s2374_s4 + $0x278] sm:$0xff] %v830_v23  ;;  %v247_v9 = vmul.f32 %v1165_v63, %v1024_v25  ;;  %v292_v40 = vmul.f32 %v1165_v63, %v1115_v31  ;;  %v246_v19 = vmul.f32 %v1165_v63, %v1023_v8  ;;  %v714_v49 = vpop.permute.xlu1 %713  ;;  %v709_v59 = vpop.permute.xlu0 %708  ;;  %v1116_v29 = vunpack.c.h.bf16 %v2248_v16 }
  0xca   :  { %v386_v44 = vadd.f32 %v2260_v45, %v289_v3  ;;  %v291_v57 = vmul.f32 %v1165_v63, %v1112_v39  ;;  %v788_v28 = vmul.f32 %v714_v49, %v428_v55  ;;  %v833_v35 = vmul.f32 %v714_v49, %v473_v12 }
  0xcb   :  { %v787_v58 = vmul.f32 %v709_v59, %v427_v24  ;;  %v832_v13 = vmul.f32 %v709_v59, %v472_v30  ;;  %v432_v14 = vmax.f32 %v342_v60, 0.0  ;;  %v477_v34 = vmax.f32 %v387_v50, 0.0 }
  0xcc   :  { %878 = vst [vmem:[%s2374_s4 + $0x128] sm:$0xff] %v788_v28  ;;  %923 = vst [vmem:[%s2374_s4 + $0x290] sm:$0xff] %v833_v35  ;;  %v431_v15 = vmax.f32 %v341_v17, 0.0  ;;  %v344_v43 = vadd.f32 %v2260_v45, %v247_v9  ;;  %v389_v54 = vadd.f32 %v2260_v45, %v292_v40  ;;  %v343_v27 = vadd.f32 %v2260_v45, %v246_v19 }
  0xcd   :  { %877 = vst [vmem:[%s2374_s4 + $0x120] sm:$0xff] %v787_v58  ;;  %922 = vst [vmem:[%s2374_s4 + $0x288] sm:$0xff] %v832_v13  ;;  %v724_v53 = vpop.permute.xlu1 %723  ;;  %v719_v21 = vpop.permute.xlu0 %718  ;;  %v476_v62 = vmax.f32 %v386_v44, 0.0  ;;  %v388_v55 = vadd.f32 %v2260_v45, %v291_v57  ;;  %v248_v12 = vmul.f32 %v1165_v63, %v1027_v26  ;;  %v293_v61 = vmul.f32 %v1165_v63, %v1116_v29 }
  0xce   :  { %v790_v46 = vmul.f32 %v724_v53, %v430_v37  ;;  %v835_v11 = vmul.f32 %v724_v53, %v475_v48  ;;  %v789_v18 = vmul.f32 %v719_v21, %v429_v1  ;;  %v834_v24 = vmul.f32 %v719_v21, %v474_v56 }
  0xcf   :  { %v434_v42 = vmax.f32 %v344_v43, 0.0  ;;  %v479_v32 = vmax.f32 %v389_v54, 0.0  ;;  %v433_v16 = vmax.f32 %v343_v27, 0.0  ;;  %v478_v7 = vmax.f32 %v388_v55, 0.0 }
  0xd0   :  { %880 = vst [vmem:[%s2374_s4 + $0x138] sm:$0xff] %v790_v46  ;;  %925 = vst [vmem:[%s2374_s4 + $0x2a0] sm:$0xff] %v835_v11  ;;  %v345_v36 = vadd.f32 %v2260_v45, %v248_v12  ;;  %v390_v2 = vadd.f32 %v2260_v45, %v293_v61 }
  0xd1   :  { %879 = vst [vmem:[%s2374_s4 + $0x130] sm:$0xff] %v789_v18  ;;  %924 = vst [vmem:[%s2374_s4 + $0x298] sm:$0xff] %v834_v24  ;;  %v734_v33 = vpop.permute.xlu1 %733  ;;  %v729_v47 = vpop.permute.xlu0 %728 }
  0xd2   :  { %v792_v10 = vmul.f32 %v734_v33, %v432_v14  ;;  %v837_v30 = vmul.f32 %v734_v33, %v477_v34  ;;  %v791_v41 = vmul.f32 %v729_v47, %v431_v15  ;;  %v836_v63 = vmul.f32 %v729_v47, %v476_v62 }
  0xd3   :  { %v435_v0 = vmax.f32 %v345_v36, 0.0  ;;  %v480_v52 = vmax.f32 %v390_v2, 0.0 }
  0xd4   :  { %882 = vst [vmem:[%s2374_s4 + $0x148] sm:$0xff] %v792_v10  ;;  %927 = vst [vmem:[%s2374_s4 + $0x2b0] sm:$0xff] %v837_v30 }
  0xd5   :  { %881 = vst [vmem:[%s2374_s4 + $0x140] sm:$0xff] %v791_v41  ;;  %926 = vst [vmem:[%s2374_s4 + $0x2a8] sm:$0xff] %v836_v63  ;;  %v744_v45 = vpop.permute.xlu1 %743  ;;  %v739_v20 = vpop.permute.xlu0 %738 }
  0xd6   :  { %v794_v25 = vmul.f32 %v744_v45, %v434_v42  ;;  %v839_v31 = vmul.f32 %v744_v45, %v479_v32  ;;  %v793_v8 = vmul.f32 %v739_v20, %v433_v16  ;;  %v838_v6 = vmul.f32 %v739_v20, %v478_v7 }
  0xd8   :  { %884 = vst [vmem:[%s2374_s4 + $0x158] sm:$0xff] %v794_v25  ;;  %929 = vst [vmem:[%s2374_s4 + $0x2c0] sm:$0xff] %v839_v31 }
  0xd9   :  { %883 = vst [vmem:[%s2374_s4 + $0x150] sm:$0xff] %v793_v8  ;;  %928 = vst [vmem:[%s2374_s4 + $0x2b8] sm:$0xff] %v838_v6  ;;  %v749_v38 = vpop.permute.xlu0 %748 }
  0xda   :  { %v795_v37 = vmul.f32 %v749_v38, %v435_v0  ;;  %v840_v48 = vmul.f32 %v749_v38, %v480_v52 }
  0xdc   :  { %885 = vst [vmem:[%s2374_s4 + $0x160] sm:$0xff] %v795_v37  ;;  %930 = vst [vmem:[%s2374_s4 + $0x2c8] sm:$0xff] %v840_v48 }

// kernel: double_conv_forward.4
= control target key start
LH: loop header
LB: loop body
LE: loop exit
PB: predicated region body
PF: predicated region fallthrough
CT: control target
= control target key end

     0   :  { %vm294_vm0 = vsmask.f32 7424  ;;  %vm869_vm1 = vcmask 1046528   ;;  %vm1405_vm2 = vsmask.f32 6400  ;;  %vm2742_vm3 = vcmask 1045504   ;;  %s19562_s1 = inlined_call_operand.vmem [shape: bf16[9,128,128], index: 1, kind: input, shape index: {}]   ;;  %s19563_s0 = inlined_call_operand.vmem [shape: bf16[2,360,128], index: 0, kind: input, shape index: {}]   ;;  %s19564_s2 = inlined_call_operand.vmem [shape: f32[288,1], index: 2, kind: input, shape index: {}]   ;;  %s19565_s3 = inlined_call_operand.vmem [shape: bf16[2,360,128], index: 3, kind: output, shape index: {0}]   ;;  %s19566_s4 = inlined_call_operand.vmem [shape: f32[2,128], index: 4, kind: output, shape index: {1}]  }
   0x1   :  { %v15583_v0 = vld [vmem:[%s19562_s1] sm:$0xff]   ;;  %v15585_v2 = vld [vmem:[%s19562_s1 + $0x8] sm:$0xff]   ;;  %v15587_v4 = vld [vmem:[%s19562_s1 + $0x10] sm:$0xff]   ;;  %vm3278_vm4 = vsmask.f32 5376  ;;  %vm4615_vm5 = vcmask 1044480  }
   0x2   :  { %v15584_v1 = vld [vmem:[%s19562_s1] sm:$0xff]   ;;  %14067 = vmatprep.subr.bf16.mxu0 %v15583_v0  ;;  %v15586_v3 = vld [vmem:[%s19562_s1 + $0x8] sm:$0xff]   ;;  %v15588_v5 = vld [vmem:[%s19562_s1 + $0x10] sm:$0xff]   ;;  %vm5151_vm6 = vsmask.f32 4352  ;;  %vm5817_vm7 = vcmask 1041408  }
   0x3   :  { %14535 = vmatprep.subr.bf16.mxu1 %v15584_v1  ;;  %14068 = vmatpush3.bf16.msra.mxu0 %v15583_v0  ;;  %v15589_v6 = vld [vmem:[%s19562_s1 + $0x18] sm:$0xff]   ;;  %v15591_v8 = vld [vmem:[%s19562_s1 + $0x20] sm:$0xff]   ;;  %v15593_v10 = vld [vmem:[%s19562_s1 + $0x28] sm:$0xff]   ;;  %vm5818_vm8 = vcmask 1045508   ;;  %vm6336_vm10 = vcmask 1040384  }
   0x4   :  { %14536 = vmatpush3.bf16.msra.mxu1 %v15584_v1  ;;  %14069 = vmatprep.subr.bf16.mxu0 %v15585_v2  ;;  %v15590_v7 = vld [vmem:[%s19562_s1 + $0x18] sm:$0xff]   ;;  %v15592_v9 = vld [vmem:[%s19562_s1 + $0x20] sm:$0xff]   ;;  %v15594_v11 = vld [vmem:[%s19562_s1 + $0x28] sm:$0xff]  }
   0x5   :  { %14537 = vmatprep.subr.bf16.mxu1 %v15586_v3  ;;  %v15599_v12 = vld [vmem:[%s19563_s0 + $0x8] sm:$0xff]   ;;  %v15600_v13 = vld [vmem:[%s19563_s0 + $0x10] sm:$0xff]   ;;  %v15601_v18 = vld [vmem:[%s19563_s0 + $0xbc] sm:$0xff]  }
   0x6   :  { %v15595_v14 = vld [vmem:[%s19562_s1 + $0x30] sm:$0xff]   ;;  %v296_v15 = vshrl.u32 %v15599_v12, 16  ;;  %v298_v16 = vshll.u32 %v15599_v12, 16  ;;  %v303_v17 = vshll.u32 %v15600_v13, 16  ;;  %v15602_v19 = vld [vmem:[%s19563_s0 + $0xc4] sm:$0xff]   ;;  %v307_v20 = vshrl.u32 %v15600_v13, 16  ;;  %vm18640_vm9 = vmor %vm5817_vm7, %vm5818_vm8 }
   0x7   :  { %14070 = vmatpush3.bf16.msra.mxu0 %v15585_v2  ;;  %v15596_v21 = vld [vmem:[%s19562_s1 + $0x30] sm:$0xff]   ;;  %v6488_v24 = vshrl.u32 %v15601_v18, 16  ;;  %v6490_v25 = vshll.u32 %v15601_v18, 16  ;;  %v15603_v26 = vld [vmem:[%s19563_s0 + $0x18] sm:$0xff]   ;;  %v6495_v28 = vshll.u32 %v15602_v19, 16  ;;  %v6499_v34 = vshrl.u32 %v15602_v19, 16 }
   0x8   :  { %14538 = vmatpush3.bf16.msra.mxu1 %v15586_v3  ;;  %14071 = vmatprep.subr.bf16.mxu0 %v15587_v4  ;;  %v300_v22 = vrot.slane %v298_v16, 1  ;;  %v305_v23 = vrot.slane %v303_v17, 1  ;;  %v15597_v27 = vld [vmem:[%s19562_s1 + $0x38] sm:$0xff]   ;;  %v15605_v29 = vld [vmem:[%s19563_s0 + $0xcc] sm:$0xff]   ;;  %v311_v32 = vshll.u32 %v15603_v26, 16  ;;  %v15606_v36 = vld [vmem:[%s19563_s0 + $0x20] sm:$0xff]  }
   0x9   :  { %14539 = vmatprep.subr.bf16.mxu1 %v15588_v5  ;;  %v6492_v31 = vrot.slane %v6490_v25, 1  ;;  %v6497_v33 = vrot.slane %v6495_v28, 1  ;;  %v6503_v35 = vshll.u32 %v15605_v29, 16  ;;  %v15598_v37 = vld [vmem:[%s19562_s1 + $0x38] sm:$0xff]   ;;  %v315_v40 = vshrl.u32 %v15603_v26, 16  ;;  %v15604_v42 = vld [vmem:[%s19562_s1 + $0x40] sm:$0xff]  }
   0xa   :  { %v301_v30 = vor.u32 %v300_v22, %v296_v15  ;;  %v313_v41 = vrot.slane %v311_v32, 1  ;;  %v319_v43 = vshll.u32 %v15606_v36, 16  ;;  %v15607_v44 = vld [vmem:[%s19563_s0 + $0xd4] sm:$0xff]   ;;  %v6507_v45 = vshrl.u32 %v15605_v29, 16  ;;  %v15608_v49 = vld [vmem:[%s19563_s0 + $0x28] sm:$0xff]   ;;  %v15609_v57 = vld [vmem:[%s19563_s0 + $0xdc] sm:$0xff]  }
   0xb   :  { %14072 = vmatpush3.bf16.msra.mxu0 %v15587_v4  ;;  %v6493_v39 = vor.u32 %v6492_v31, %v6488_v24  ;;  %v309_v47 = vor.u32 %v307_v20, %v305_v23  ;;  %v6505_v48 = vrot.slane %v6503_v35, 1  ;;  %v6501_v50 = vor.u32 %v6499_v34, %v6497_v33  ;;  %v15611_v60 = vld [vmem:[%s19562_s1 + $0x40] sm:$0xff]   ;;  %v15610_v63 = vld [vmem:[%s19562_s1 + $0x48] sm:$0xff]   ;;  %v15612_v1 = vld [vmem:[%s19563_s0 + $0x30] sm:$0xff]  }
   0xc   :  { %14540 = vmatpush3.bf16.msra.mxu1 %v15588_v5  ;;  %14073 = vmatprep.subr.bf16.mxu0 %v15589_v6  ;;  %v306_v38 = vsel %vm294_vm0, %v301_v30, %v305_v23  ;;  %v317_v51 = vor.u32 %v315_v40, %v313_v41  ;;  %v6511_v52 = vshll.u32 %v15607_v44, 16  ;;  %v323_v53 = vshrl.u32 %v15606_v36, 16  ;;  %v15613_v5 = vld [vmem:[%s19563_s0 + $0xe4] sm:$0xff]   ;;  %v15615_v17 = vld [vmem:[%s19563_s0 + $0xec] sm:$0xff]   ;;  %v15619_v31 = vld [vmem:[%s19563_s0 + $0xf4] sm:$0xff]  }
   0xd   :  { %14541 = vmatprep.subr.bf16.mxu1 %v15590_v7  ;;  %14083 = vmatprep.mubr.bf16.mxu0 %v306_v38  ;;  %v6498_v46 = vsel %vm294_vm0, %v6493_v39, %v6497_v33  ;;  %v321_v54 = vrot.slane %v319_v43, 1  ;;  %v6509_v55 = vor.u32 %v6507_v45, %v6505_v48  ;;  %v327_v56 = vshll.u32 %v15608_v49, 16  ;;  %v15616_v18 = vld [vmem:[%s19562_s1 + $0x50] sm:$0xff]   ;;  %v15617_v22 = vld [vmem:[%s19562_s1 + $0x48] sm:$0xff]   ;;  %v15618_v26 = vld [vmem:[%s19563_s0 + $0x40] sm:$0xff]  }
   0xe   :  { %14551 = vmatprep.mubr.bf16.mxu1 %v6498_v46  ;;  %v6515_v58 = vshrl.u32 %v15607_v44, 16  ;;  %v6513_v59 = vrot.slane %v6511_v52, 1  ;;  %v314_v61 = vsel %vm294_vm0, %v309_v47, %v313_v41  ;;  %v6519_v62 = vshll.u32 %v15609_v57, 16  ;;  %v15620_v36 = vld [vmem:[%s19563_s0 + $0x48] sm:$0xff]   ;;  %v15621_v39 = vld [vmem:[%s19563_s0 + $0xfc] sm:$0xff]   ;;  %v15623_v46 = vld [vmem:[%s19562_s1 + $0x50] sm:$0xff]  }
   0xf   :  { %14074 = vmatpush3.bf16.msra.mxu0 %v15589_v6  ;;  %v6506_v0 = vsel %vm294_vm0, %v6501_v50, %v6505_v48  ;;  %v331_v2 = vshrl.u32 %v15608_v49, 16  ;;  %v322_v3 = vsel %vm294_vm0, %v317_v51, %v321_v54  ;;  %v6523_v6 = vshrl.u32 %v15609_v57, 16  ;;  %v15622_v40 = vld [vmem:[%s19562_s1 + $0x58] sm:$0xff]   ;;  %v15624_v48 = vld [vmem:[%s19563_s0 + $0x50] sm:$0xff]  }
  0x10   :  { %14542 = vmatpush3.bf16.msra.mxu1 %v15590_v7  ;;  %14075 = vmatprep.subr.bf16.mxu0 %v15591_v8  ;;  %v6514_v4 = vsel %vm294_vm0, %v6509_v55, %v6513_v59  ;;  %v15614_v7 = vld [vmem:[%s19563_s0 + $0x38] sm:$0xff]   ;;  %v6521_v12 = vrot.slane %v6519_v62, 1  ;;  %v6527_v13 = vshll.u32 %v15613_v5, 16  ;;  %v6535_v25 = vshll.u32 %v15615_v17, 16 }
  0x11   :  { %14543 = vmatprep.subr.bf16.mxu1 %v15592_v9  ;;  %v343_v16 = vshll.u32 %v15614_v7, 16  ;;  %v6531_v29 = vshrl.u32 %v15613_v5, 16  ;;  %v347_v30 = vshrl.u32 %v15614_v7, 16  ;;  %v351_v33 = vshll.u32 %v15618_v26, 16  ;;  %v15626_v62 = vld [vmem:[%s19563_s0 + $0x58] sm:$0xff]  }
  0x12   :  { %v6525_v19 = vor.u32 %v6523_v6, %v6521_v12  ;;  %v6529_v20 = vrot.slane %v6527_v13, 1  ;;  %v6539_v34 = vshrl.u32 %v15615_v17, 16  ;;  %v6543_v35 = vshll.u32 %v15619_v31, 16  ;;  %v15629_v6 = vld [vmem:[%s19562_s1 + $0x58] sm:$0xff]  }
  0x13   :  { %14076 = vmatpush3.bf16.msra.mxu0 %v15591_v8  ;;  %v329_v8 = vrot.slane %v327_v56, 1  ;;  %v345_v28 = vrot.slane %v343_v16, 1  ;;  %v6537_v38 = vrot.slane %v6535_v25, 1  ;;  %v353_v43 = vrot.slane %v351_v33, 1  ;;  %v15636_v33 = vld [vmem:[%s19563_s0 + $0x70] sm:$0xff]  }
  0x14   :  { %14544 = vmatpush3.bf16.msra.mxu1 %v15592_v9  ;;  %14077 = vmatprep.subr.bf16.mxu0 %v15593_v10  ;;  %v335_v9 = vshll.u32 %v15612_v1, 16  ;;  %v6530_v32 = vsel %vm294_vm0, %v6525_v19, %v6529_v20  ;;  %v6533_v41 = vor.u32 %v6531_v29, %v6529_v20  ;;  %v6545_v45 = vrot.slane %v6543_v35, 1 }
  0x15   :  { %14545 = vmatprep.subr.bf16.mxu1 %v15594_v11  ;;  %v6541_v44 = vor.u32 %v6539_v34, %v6537_v38  ;;  %v359_v47 = vshll.u32 %v15620_v36, 16  ;;  %v355_v50 = vshrl.u32 %v15618_v26, 16  ;;  %v6547_v51 = vshrl.u32 %v15619_v31, 16  ;;  %v15633_v26 = vld [vmem:[%s19563_s0 + $0x11c] sm:$0xff]  }
  0x16   :  { %v337_v15 = vrot.slane %v335_v9, 1  ;;  %v6551_v52 = vshll.u32 %v15621_v39, 16  ;;  %v363_v56 = vshrl.u32 %v15620_v36, 16  ;;  %v367_v57 = vshll.u32 %v15624_v48, 16  ;;  %v15630_v9 = vld [vmem:[%s19563_s0 + $0x60] sm:$0xff]  }
  0x17   :  { %14078 = vmatpush3.bf16.msra.mxu0 %v15593_v10  ;;  %v325_v10 = vor.u32 %v323_v53, %v321_v54  ;;  %v15625_v53 = vld [vmem:[%s19563_s0 + $0x104] sm:$0xff]   ;;  %v6538_v54 = vsel %vm294_vm0, %v6533_v41, %v6537_v38  ;;  %v383_v19 = vshll.u32 %v15630_v9, 16  ;;  %v6583_v38 = vshll.u32 %v15633_v26, 16 }
  0x18   :  { %14546 = vmatpush3.bf16.msra.mxu1 %v15594_v11  ;;  %14079 = vmatprep.subr.bf16.mxu0 %v15595_v14  ;;  %v6517_v11 = vor.u32 %v6515_v58, %v6513_v59  ;;  %v6546_v58 = vsel %vm294_vm0, %v6541_v44, %v6545_v45  ;;  %v6555_v59 = vshrl.u32 %v15621_v39, 16  ;;  %v369_v5 = vrot.slane %v367_v57, 1  ;;  %v15637_v36 = vld [vmem:[%s19563_s0 + $0x124] sm:$0xff]  }
  0x19   :  { %14547 = vmatprep.subr.bf16.mxu1 %v15596_v21  ;;  %v330_v23 = vsel %vm294_vm0, %v325_v10, %v329_v8  ;;  %v371_v10 = vshrl.u32 %v15624_v48, 16  ;;  %v387_v41 = vshrl.u32 %v15630_v9, 16 }
  0x1a   :  { %v6522_v24 = vsel %vm294_vm0, %v6517_v11, %v6521_v12  ;;  %v375_v11 = vshll.u32 %v15626_v62, 16  ;;  %v15631_v12 = vld [vmem:[%s19563_s0 + $0x114] sm:$0xff]  }
  0x1b   :  { %14080 = vmatpush3.bf16.msra.mxu0 %v15595_v14  ;;  %v333_v14 = vor.u32 %v331_v2, %v329_v8  ;;  %v15627_v2 = vld [vmem:[%s19563_s0 + $0x10c] sm:$0xff]   ;;  %v6579_v44 = vshrl.u32 %v15631_v12, 16 }
  0x1c   :  { %14548 = vmatpush3.bf16.msra.mxu1 %v15596_v21  ;;  %14081 = vmatprep.subr.bf16.mxu0 %v15597_v27  ;;  %v339_v21 = vshrl.u32 %v15612_v1, 16  ;;  %v6553_v1 = vrot.slane %v6551_v52, 1  ;;  %v377_v25 = vrot.slane %v375_v11, 1  ;;  %v6585_v52 = vrot.slane %v6583_v38, 1 }
  0x1d   :  { %14549 = vmatprep.subr.bf16.mxu1 %v15598_v37 }
  0x1e   :  { %v6557_v7 = vor.u32 %v6555_v59, %v6553_v1 }
  0x1f   :  { %14082 = vmatpush3.bf16.msra.mxu0 %v15597_v27  ;;  %v338_v27 = vsel %vm294_vm0, %v333_v14, %v337_v15  ;;  %v6563_v14 = vshrl.u32 %v15625_v53, 16 }
  0x20   :  { %14550 = vmatpush3.bf16.msra.mxu1 %v15598_v37  ;;  %14119 = vmatprep.subr.bf16.mxu0 %v15604_v42  ;;  %v341_v37 = vor.u32 %v339_v21, %v337_v15  ;;  %v6567_v15 = vshll.u32 %v15627_v2, 16  ;;  %v6571_v21 = vshrl.u32 %v15627_v2, 16  ;;  %v403_v2 = vshrl.u32 %v15636_v33, 16 }
  0x21   :  { %14587 = vmatprep.subr.bf16.mxu1 %v15611_v60 }
  0x22   :  { %14084 = vmatmul.mubr.bf16.vlgmr.msra.gmra.mrb[0].mxu0 %v314_v61  ;;  %v346_v49 = vsel %vm294_vm0, %v341_v37, %v345_v28  ;;  %v361_v61 = vrot.slane %v359_v47, 1  ;;  %v6569_v29 = vrot.slane %v6567_v15, 1  ;;  %v15640_v47 = vld [vmem:[%s19562_s1 + $0x70] sm:$0xff]   ;;  %v15645_v15 = vld [vmem:[%s19563_s0 + $0x13c] sm:$0xff]  }
  0x23   :  { %14552 = vmatmul.mubr.bf16.vlgmr.msra.gmra.mrb[0].mxu1 %v6506_v0  ;;  %14120 = vmatpush3.bf16.msra.mxu0 %v15604_v42  ;;  %v349_v42 = vor.u32 %v347_v30, %v345_v28  ;;  %v357_v0 = vor.u32 %v355_v50, %v353_v43  ;;  %v15635_v30 = vld [vmem:[%s19562_s1 + $0x60] sm:$0xff]   ;;  %v6591_v50 = vshll.u32 %v15637_v36, 16  ;;  %v6619_v38 = vshrl.u32 %v15645_v15, 16 }
  0x24   :  { %14087 = vmatprep.mubr.bf16.mxu0 %v322_v3  ;;  %14555 = vmatprep.mubr.bf16.mxu1 %v6514_v4  ;;  %v6549_v3 = vor.u32 %v6547_v51, %v6545_v45  ;;  %v365_v4 = vor.u32 %v363_v56, %v361_v61  ;;  %v6573_v34 = vor.u32 %v6571_v21, %v6569_v29  ;;  %v15643_v56 = vld [vmem:[%s19562_s1 + $0x68] sm:$0xff]  }
  0x25   :  { %14121 = vmatprep.subr.bf16.mxu0 %v15610_v63  ;;  %14588 = vmatpush3.bf16.msra.mxu1 %v15611_v60  ;;  %v354_v55 = vsel %vm294_vm0, %v349_v42, %v353_v43  ;;  %v6559_v60 = vshll.u32 %v15625_v53, 16  ;;  %v362_v13 = vsel %vm294_vm0, %v357_v0, %v361_v61  ;;  %v15638_v42 = vld [vmem:[%s19563_s0 + $0x78] sm:$0xff]   ;;  %v15639_v53 = vld [vmem:[%s19563_s0 + $0x12c] sm:$0xff]  }
  0x26   :  { %14589 = vmatprep.subr.bf16.mxu1 %v15617_v22  ;;  %v6554_v16 = vsel %vm294_vm0, %v6549_v3, %v6553_v1  ;;  %v370_v17 = vsel %vm294_vm0, %v365_v4, %v369_v5  ;;  %v6599_v0 = vshll.u32 %v15639_v53, 16  ;;  %v6595_v3 = vshrl.u32 %v15637_v36, 16 }
  0x27   :  { %14122 = vmatpush3.bf16.msra.mxu0 %v15610_v63  ;;  %v15628_v63 = vld [vmem:[%s19562_s1 + $0x60] sm:$0xff]   ;;  %v6561_v8 = vrot.slane %v6559_v60, 1  ;;  %v411_v4 = vshrl.u32 %v15638_v42, 16 }
  0x28   :  { %14123 = vmatprep.subr.bf16.mxu0 %v15616_v18  ;;  %v15641_v60 = vld [vmem:[%s19563_s0 + $0x80] sm:$0xff]  }
  0x29   :  { %14590 = vmatpush3.bf16.msra.mxu1 %v15617_v22  ;;  %v6562_v20 = vsel %vm294_vm0, %v6557_v7, %v6561_v8  ;;  %v6575_v22 = vshll.u32 %v15631_v12, 16  ;;  %v6565_v28 = vor.u32 %v6563_v14, %v6561_v8  ;;  %v415_v7 = vshll.u32 %v15641_v60, 16  ;;  %v15644_v12 = vld [vmem:[%s19563_s0 + $0x88] sm:$0xff]  }
  0x2a   :  { %14088 = vmatmul.mubr.bf16.gmra.mrb[4].mxu0 %v330_v23  ;;  %14591 = vmatprep.subr.bf16.mxu1 %v15623_v46  ;;  %v15632_v23 = vld [vmem:[%s19563_s0 + $0x68] sm:$0xff]   ;;  %v6603_v8 = vshrl.u32 %v15639_v53, 16  ;;  %v6601_v14 = vrot.slane %v6599_v0, 1 }
  0x2b   :  { %14556 = vmatmul.mubr.bf16.gmra.mrb[4].mxu1 %v6522_v24  ;;  %14091 = vmatprep.mubr.bf16.mxu0 %v338_v27  ;;  %v15634_v24 = vld [vmem:[%s19562_s1 + $0x68] sm:$0xff]   ;;  %v373_v27 = vor.u32 %v371_v10, %v369_v5  ;;  %v6577_v35 = vrot.slane %v6575_v22, 1  ;;  %v391_v37 = vshll.u32 %v15632_v23, 16  ;;  %v395_v45 = vshrl.u32 %v15632_v23, 16 }
  0x2c   :  { %14559 = vmatprep.mubr.bf16.mxu1 %v6530_v32  ;;  %14124 = vmatpush3.bf16.msra.mxu0 %v15616_v18  ;;  %v379_v18 = vshrl.u32 %v15626_v62, 16  ;;  %v385_v32 = vrot.slane %v383_v19, 1  ;;  %v6593_v62 = vrot.slane %v6591_v50, 1  ;;  %v6605_v21 = vor.u32 %v6603_v8, %v6601_v14  ;;  %v15648_v22 = vld [vmem:[%s19563_s0 + $0x144] sm:$0xff]   ;;  %v15659_v8 = vld [vmem:[%s19563_s0 + $0xcc] sm:$0xff]  }
  0x2d   :  { %14125 = vmatprep.subr.bf16.mxu0 %v15622_v40  ;;  %14592 = vmatpush3.bf16.msra.mxu1 %v15623_v46  ;;  %v378_v39 = vsel %vm294_vm0, %v373_v27, %v377_v25  ;;  %v399_v46 = vshll.u32 %v15636_v33, 16  ;;  %v6578_v48 = vsel %vm294_vm0, %v6573_v34, %v6577_v35  ;;  %v393_v51 = vrot.slane %v391_v37, 1  ;;  %v15658_v50 = vld [vmem:[%s19562_s1 + $0x80] sm:$0xff]  }
  0x2e   :  { %14593 = vmatprep.subr.bf16.mxu1 %v15629_v6  ;;  %v381_v31 = vor.u32 %v379_v18, %v377_v25  ;;  %v6581_v57 = vor.u32 %v6579_v44, %v6577_v35  ;;  %v6597_v18 = vor.u32 %v6595_v3, %v6593_v62  ;;  %v423_v25 = vshll.u32 %v15644_v12, 16  ;;  %v15665_v3 = vld [vmem:[%s19562_s1 + $0x80] sm:$0xff]  }
  0x2f   :  { %v401_v59 = vrot.slane %v399_v46, 1  ;;  %v6615_v27 = vshll.u32 %v15645_v15, 16  ;;  %v427_v35 = vshrl.u32 %v15644_v12, 16  ;;  %v6623_v36 = vshll.u32 %v15648_v22, 16 }
  0x30   :  { %14126 = vmatpush3.bf16.msra.mxu0 %v15622_v40  ;;  %v6570_v40 = vsel %vm294_vm0, %v6565_v28, %v6569_v29  ;;  %v386_v43 = vsel %vm294_vm0, %v381_v31, %v385_v32  ;;  %v6586_v5 = vsel %vm294_vm0, %v6581_v57, %v6585_v52  ;;  %v15651_v28 = vld [vmem:[%s19562_s1 + $0x70] sm:$0xff]   ;;  %v15649_v31 = vld [vmem:[%s19563_s0 + $0x98] ss:$0 sps:$4 sm:$0x11]   ;;  %v6602_v33 = vsel %vm294_vm0, %v6597_v18, %v6601_v14  ;;  %v15662_v18 = vld [vmem:[%s19563_s0 + $0x28] sm:$0xff]  }
  0x31   :  { %14127 = vmatprep.subr.bf16.mxu0 %v15628_v63  ;;  %14594 = vmatpush3.bf16.msra.mxu1 %v15629_v6  ;;  %v6625_v46 = vrot.slane %v6623_v36, 1  ;;  %v6627_v57 = vshrl.u32 %v15648_v22, 16  ;;  %v7063_v15 = vrot.slane %v15659_v8, 1 }
  0x32   :  { %14092 = vmatmul.mubr.bf16.gmra.mrb[8].mxu0 %v346_v49  ;;  %14595 = vmatprep.subr.bf16.mxu1 %v15635_v30  ;;  %v6587_v49 = vshrl.u32 %v15633_v26, 16 }
  0x33   :  { %14560 = vmatmul.mubr.bf16.gmra.mrb[8].mxu1 %v6538_v54  ;;  %14095 = vmatprep.mubr.bf16.mxu0 %v354_v55  ;;  %v389_v54 = vor.u32 %v387_v41, %v385_v32  ;;  %v407_v55 = vshll.u32 %v15638_v42, 16  ;;  %v15652_v32 = vld [vmem:[%s19562_s1 + $0x78] sm:$0xff]   ;;  %v6617_v42 = vrot.slane %v6615_v27, 1  ;;  %v15671_v27 = vld [vmem:[%s19562_s1 + $0x88] sm:$0xff]  }
  0x34   :  { %14563 = vmatprep.mubr.bf16.mxu1 %v6546_v58  ;;  %14128 = vmatpush3.bf16.msra.mxu0 %v15628_v63  ;;  %v397_v58 = vor.u32 %v395_v45, %v393_v51  ;;  %v6589_v61 = vor.u32 %v6587_v49, %v6585_v52  ;;  %v15642_v63 = vld [vmem:[%s19563_s0 + $0x134] sm:$0xff]   ;;  %v439_v49 = vshll.u32 %v15649_v31, 16 }
  0x35   :  { %14129 = vmatprep.subr.bf16.mxu0 %v15634_v24  ;;  %14596 = vmatpush3.bf16.msra.mxu1 %v15635_v30  ;;  %v394_v1 = vsel %vm294_vm0, %v389_v54, %v393_v51  ;;  %v409_v10 = vrot.slane %v407_v55, 1  ;;  %v6607_v11 = vshll.u32 %v15642_v63, 16  ;;  %v6611_v26 = vshrl.u32 %v15642_v63, 16  ;;  %v15654_v52 = vld [vmem:[%s19563_s0 + $0x10] sm:$0xff]   ;;  %v15653_v54 = vld [vmem:[%s19563_s0 + $0x8] sm:$0xfe]  }
  0x36   :  { %14597 = vmatprep.subr.bf16.mxu1 %v15643_v56  ;;  %v402_v6 = vsel %vm294_vm0, %v397_v58, %v401_v59  ;;  %v6594_v9 = vsel %vm294_vm0, %v6589_v61, %v6593_v62  ;;  %v15656_v58 = vld [vmem:[%s19563_s0 + $0xc4] sm:$0xff]   ;;  %v441_v61 = vrot.slane %v439_v49, 1  ;;  %v871_v0 = vrot.slane %v15654_v52, 1  ;;  %v15670_v31 = vld [vmem:[%s19562_s1 + $0x90] sm:$0xff]   ;;  %v15675_v49 = vld [vmem:[%s19563_s0 + $0xfc] sm:$0xff]  }
  0x37   :  { %v413_v19 = vor.u32 %v411_v4, %v409_v10  ;;  %v6609_v23 = vrot.slane %v6607_v11, 1  ;;  %v15660_v11 = vld [vmem:[%s19563_s0 + $0x20] sm:$0xff]  }
  0x38   :  { %14130 = vmatpush3.bf16.msra.mxu0 %v15634_v24  ;;  %v419_v24 = vshrl.u32 %v15641_v60, 16  ;;  %v15655_v60 = vld [vmem:[%s19563_s0 + $0xbc] sm:$0xfe]  }
  0x39   :  { %14131 = vmatprep.subr.bf16.mxu0 %v15640_v47  ;;  %14598 = vmatpush3.bf16.msra.mxu1 %v15643_v56  ;;  %v6610_v37 = vsel %vm294_vm0, %v6605_v21, %v6609_v23  ;;  %v6613_v44 = vor.u32 %v6611_v26, %v6609_v23  ;;  %v7060_v4 = vrot.slane %v15655_v60, 1  ;;  %v15664_v21 = vld [vmem:[%s19562_s1 + $0x88] sm:$0xff]   ;;  %v15666_v23 = vld [vmem:[%s19563_s0 + $0x30] sm:$0xff]   ;;  %v7075_v60 = vrot.slane %v15675_v49, 1 }
  0x3a   :  { %14096 = vmatmul.mubr.bf16.gmra.mrb[12].mxu0 %v362_v13  ;;  %v15647_v13 = vld [vmem:[%s19562_s1 + $0x78] sm:$0xff]   ;;  %14599 = vmatprep.subr.bf16.mxu1 %v15651_v28  ;;  %v15667_v26 = vld [vmem:[%s19563_s0 + $0xe4] sm:$0xff]   ;;  %v16545_v49 = vld [vmem:[%s19563_s0 + $0x14c] ss:$0 sps:$4 sm:$0x11]  }
  0x3b   :  { %14564 = vmatmul.mubr.bf16.gmra.mrb[12].mxu1 %v6554_v16  ;;  %14099 = vmatprep.mubr.bf16.mxu0 %v370_v17  ;;  %v405_v16 = vor.u32 %v403_v2, %v401_v59  ;;  %v15646_v17 = vld [vmem:[%s19563_s0 + $0x90] sm:$0xff]   ;;  %v6618_v55 = vsel %vm294_vm0, %v6613_v44, %v6617_v42  ;;  %v870_v2 = vrot.slane %v15653_v54, 1 }
  0x3c   :  { %14567 = vmatprep.mubr.bf16.mxu1 %v6562_v20  ;;  %14132 = vmatpush3.bf16.msra.mxu0 %v15640_v47  ;;  %v417_v20 = vrot.slane %v415_v7, 1  ;;  %v431_v30 = vshll.u32 %v15646_v17, 16  ;;  %v435_v47 = vshrl.u32 %v15646_v17, 16 }
  0x3d   :  { %14133 = vmatprep.subr.bf16.mxu0 %v15647_v13  ;;  %v410_v29 = vsel %vm294_vm0, %v405_v16, %v409_v10  ;;  %14600 = vmatpush3.bf16.msra.mxu1 %v15651_v28  ;;  %v872_v10 = vsel %vm869_vm1, %v870_v2, %v871_v0  ;;  %v875_v16 = vrot.slane %v15660_v11, 1  ;;  %v877_v28 = vrot.slane %v15662_v18, 1  ;;  %v15681_v2 = vld [vmem:[%s19563_s0 + $0x10c] sm:$0xff]   ;;  %v15687_v18 = vld [vmem:[%s19563_s0 + $0x11c] sm:$0xff]  }
  0x3e   :  { %v418_v34 = vsel %vm294_vm0, %v413_v19, %v417_v20  ;;  %14601 = vmatprep.subr.bf16.mxu1 %v15652_v32  ;;  %v421_v41 = vor.u32 %v419_v24, %v417_v20  ;;  %v15663_v19 = vld [vmem:[%s19563_s0 + $0xdc] sm:$0xff]  }
  0x3f   :  { %v878_v36 = vsel %vm869_vm1, %v875_v16, %v877_v28 }
  0x40   :  { %14134 = vmatpush3.bf16.msra.mxu0 %v15647_v13  ;;  %v15661_v13 = vld [vmem:[%s19563_s0 + $0xd4] sm:$0xff]  }
  0x41   :  { %14602 = vmatpush3.bf16.msra.mxu1 %v15652_v32  ;;  %14171 = vmatprep.subr.bf16.mxu0 %v15658_v50  ;;  %v7065_v17 = vrot.slane %v15661_v13, 1  ;;  %v7069_v32 = vrot.slane %v15667_v26, 1 }
  0x42   :  { %14100 = vmatmul.mubr.bf16.gmra.mrb[16].mxu0 %v378_v39  ;;  %v15650_v39 = vld [vmem:[%s19563_s0 + $0x14c] ss:$0 sps:$4 sm:$0x11]   ;;  %14639 = vmatprep.subr.bf16.mxu1 %v15665_v3 }
  0x43   :  { %14568 = vmatmul.mubr.bf16.gmra.mrb[16].mxu1 %v6570_v40  ;;  %14103 = vmatprep.mubr.bf16.mxu0 %v386_v43  ;;  %v425_v40 = vrot.slane %v423_v25, 1  ;;  %v433_v43 = vrot.slane %v431_v30, 1  ;;  %v6631_v51 = vshll.u32 %v15650_v39, 16  ;;  %v7066_v25 = vsel %vm869_vm1, %v7063_v15, %v7065_v17 }
  0x44   :  { %14571 = vmatprep.mubr.bf16.mxu1 %v6578_v48  ;;  %v6621_v48 = vor.u32 %v6619_v38, %v6617_v42  ;;  %v879_v30 = vrot.slane %v15666_v23, 1  ;;  %v15676_v42 = vld [vmem:[%s19562_s1 + $0x98] sm:$0xff]   ;;  %v15691_v23 = vld [vmem:[%s19563_s0 + $0x124] sm:$0xff]  }
  0x45   :  { %v429_v45 = vor.u32 %v427_v35, %v425_v40  ;;  %v426_v53 = vsel %vm294_vm0, %v421_v41, %v425_v40  ;;  %v437_v62 = vor.u32 %v435_v47, %v433_v43  ;;  %v6633_v63 = vrot.slane %v6631_v51, 1  ;;  %v15677_v35 = vld [vmem:[%s19562_s1 + $0x90] sm:$0xff]   ;;  %v15689_v51 = vld [vmem:[%s19562_s1 + $0xa0] sm:$0xff]  }
  0x46   :  { %v6626_v59 = vsel %vm294_vm0, %v6621_v48, %v6625_v46  ;;  %v880_v39 = vsel %vm869_vm1, %v877_v28, %v879_v30  ;;  %v15673_v40 = vld [vmem:[%s19563_s0 + $0xf4] sm:$0xff]   ;;  %v15674_v48 = vld [vmem:[%s19563_s0 + $0x48] sm:$0xff]   ;;  %v7085_v28 = vrot.slane %v15691_v23, 1 }
  0x47   :  { %v434_v56 = vsel %vm294_vm0, %v429_v45, %v433_v43  ;;  %v442_v7 = vsel %vm294_vm0, %v437_v62, %v441_v61  ;;  %v15683_v43 = vld [vmem:[%s19562_s1 + $0x98] sm:$0xff]   ;;  %v7073_v47 = vrot.slane %v15673_v40, 1  ;;  %v15697_v62 = vld [vmem:[%s19562_s1 + $0xa8] sm:$0xff]  }
  0x4a   :  { %14104 = vmatmul.mubr.bf16.gmra.mrb[20].mxu0 %v394_v1  ;;  %v6629_v1 = vor.u32 %v6627_v57, %v6625_v46 }
  0x4b   :  { %14572 = vmatmul.mubr.bf16.gmra.mrb[20].mxu1 %v6586_v5  ;;  %14107 = vmatprep.mubr.bf16.mxu0 %v402_v6  ;;  %v7061_v5 = vrot.slane %v15656_v58, 1  ;;  %v15657_v6 = vld [vmem:[%s19563_s0 + $0x18] sm:$0xff]   ;;  %v15688_v58 = vld [vmem:[%s19562_s1 + $0xa8] sm:$0xff]  }
  0x4c   :  { %14575 = vmatprep.mubr.bf16.mxu1 %v6594_v9  ;;  %v6634_v9 = vsel %vm294_vm0, %v6629_v1, %v6633_v63  ;;  %v873_v14 = vrot.slane %v15657_v6, 1  ;;  %v15694_v1 = vld [vmem:[%s19562_s1 + $0xb0] sm:$0xff]  }
  0x4d   :  { %v7062_v12 = vsel %vm869_vm1, %v7060_v4, %v7061_v5  ;;  %v7064_v22 = vsel %vm869_vm1, %v7061_v5, %v7063_v15  ;;  %v15684_v4 = vld [vmem:[%s19563_s0 + $0x60] sm:$0xff]   ;;  %v7076_v5 = vsel %vm869_vm1, %v7073_v47, %v7075_v60 }
  0x4e   :  { %v874_v20 = vsel %vm869_vm1, %v871_v0, %v873_v14  ;;  %v876_v24 = vsel %vm869_vm1, %v873_v14, %v875_v16  ;;  %v15680_v0 = vld [vmem:[%s19563_s0 + $0x58] sm:$0xff]   ;;  %v891_v13 = vrot.slane %v15684_v4, 1 }
  0x4f   :  { %v889_v11 = vrot.slane %v15680_v0, 1  ;;  %v15706_v14 = vld [vmem:[%s19562_s1 + $0xb8] sm:$0xff]  }
  0x52   :  { %14108 = vmatmul.mubr.bf16.gmra.mrb[24].mxu0 %v410_v29  ;;  %v7067_v29 = vrot.slane %v15663_v19, 1 }
  0x53   :  { %14576 = vmatmul.mubr.bf16.gmra.mrb[24].mxu1 %v6602_v33  ;;  %14111 = vmatprep.mubr.bf16.mxu0 %v418_v34  ;;  %v15668_v33 = vld [vmem:[%s19563_s0 + $0x38] sm:$0xff]   ;;  %v15669_v34 = vld [vmem:[%s19563_s0 + $0xec] sm:$0xff]  }
  0x54   :  { %14579 = vmatprep.mubr.bf16.mxu1 %v6610_v37  ;;  %v15672_v37 = vld [vmem:[%s19563_s0 + $0x40] sm:$0xff]   ;;  %v7068_v38 = vsel %vm869_vm1, %v7065_v17, %v7067_v29  ;;  %v7070_v41 = vsel %vm869_vm1, %v7067_v29, %v7069_v32  ;;  %v881_v44 = vrot.slane %v15668_v33, 1  ;;  %v7071_v45 = vrot.slane %v15669_v34, 1  ;;  %v15686_v17 = vld [vmem:[%s19563_s0 + $0x68] sm:$0xff]   ;;  %v15692_v29 = vld [vmem:[%s19563_s0 + $0x78] sm:$0xff]  }
  0x55   :  { %v883_v46 = vrot.slane %v15672_v37, 1  ;;  %v15696_v33 = vld [vmem:[%s19563_s0 + $0x134] sm:$0xff]   ;;  %v897_v40 = vrot.slane %v15692_v29, 1 }
  0x56   :  { %v882_v52 = vsel %vm869_vm1, %v879_v30, %v881_v44  ;;  %v7072_v54 = vsel %vm869_vm1, %v7069_v32, %v7071_v45  ;;  %v7074_v57 = vsel %vm869_vm1, %v7071_v45, %v7073_v47  ;;  %v15693_v30 = vld [vmem:[%s19563_s0 + $0x12c] sm:$0xff]   ;;  %v15695_v32 = vld [vmem:[%s19563_s0 + $0x80] sm:$0xff]   ;;  %v7089_v45 = vrot.slane %v15696_v33, 1 }
  0x5a   :  { %14112 = vmatmul.mubr.bf16.gmra.mrb[28].mxu0 %v426_v53  ;;  %v15678_v53 = vld [vmem:[%s19563_s0 + $0x50] sm:$0xff]  }
  0x5b   :  { %14580 = vmatmul.mubr.bf16.gmra.mrb[28].mxu1 %v6618_v55  ;;  %14115 = vmatprep.mubr.bf16.mxu0 %v434_v56  ;;  %v884_v55 = vsel %vm869_vm1, %v881_v44, %v883_v46  ;;  %v15679_v56 = vld [vmem:[%s19563_s0 + $0x104] sm:$0xff]   ;;  %v887_v61 = vrot.slane %v15678_v53, 1  ;;  %v899_v44 = vrot.slane %v15695_v32, 1 }
  0x5c   :  { %14583 = vmatprep.mubr.bf16.mxu1 %v6626_v59  ;;  %v885_v59 = vrot.slane %v15674_v48, 1  ;;  %v7077_v63 = vrot.slane %v15679_v56, 1  ;;  %v15709_v56 = vld [vmem:[%s19563_s0 + $0xbc] sm:$0xfe]  }
  0x5d   :  { %v890_v16 = vsel %vm869_vm1, %v887_v61, %v889_v11  ;;  %v7595_v4 = vshrl.u32 %v15709_v56, 16 }
  0x5e   :  { %v888_v6 = vsel %vm869_vm1, %v885_v59, %v887_v61  ;;  %v7078_v8 = vsel %vm869_vm1, %v7075_v60, %v7077_v63  ;;  %v15710_v60 = vld [vmem:[%s19563_s0 + $0xc4] sm:$0xff]  }
  0x62   :  { %14116 = vmatmul.mubr.bf16.gmra.mrb[32].mxu0 %v442_v7  ;;  %v15685_v7 = vld [vmem:[%s19563_s0 + $0x114] sm:$0xff]  }
  0x63   :  { %14584 = vmatmul.mubr.bf16.gmra.mrb[32].mxu1 %v6634_v9  ;;  %14135 = vmatprep.mubr.bf16.mxu0 %v872_v10  ;;  %v15701_v9 = vld [vmem:[%s19562_s1 + $0xb8] sm:$0xff]   ;;  %v15705_v10 = vld [vmem:[%s19562_s1 + $0xb0] sm:$0xff]   ;;  %v7081_v15 = vrot.slane %v15685_v7, 1  ;;  %v7606_v7 = vshll.u32 %v15710_v60, 16 }
  0x64   :  { %14603 = vmatprep.mubr.bf16.mxu1 %v7062_v12  ;;  %v7079_v12 = vrot.slane %v15681_v2, 1  ;;  %v7095_v2 = vrot.slane %v16545_v49, 1 }
  0x66   :  { %v7080_v19 = vsel %vm869_vm1, %v7077_v63, %v7079_v12 }
  0x6a   :  { %14136 = vmatmul.mubr.bf16.vlgmr.msra.gmra.mrb[0].mxu0 %v874_v20  ;;  %v892_v20 = vsel %vm869_vm1, %v889_v11, %v891_v13  ;;  %v15713_v11 = vld [vmem:[%s19563_s0 + $0xcc] sm:$0xff]  }
  0x6b   :  { %14604 = vmatmul.mubr.bf16.vlgmr.msra.gmra.mrb[0].mxu1 %v7064_v22  ;;  %14172 = vmatpush3.bf16.msra.mxu0 %v15658_v50  ;;  %v15682_v50 = vld [vmem:[%s19562_s1 + $0xa0] sm:$0xff]   ;;  %v7082_v22 = vsel %vm869_vm1, %v7079_v12, %v7081_v15 }
  0x6c   :  { %14139 = vmatprep.mubr.bf16.mxu0 %v876_v24  ;;  %14607 = vmatprep.mubr.bf16.mxu1 %v7066_v25  ;;  %v893_v24 = vrot.slane %v15686_v17, 1  ;;  %v7083_v25 = vrot.slane %v15687_v18, 1  ;;  %v15715_v18 = vld [vmem:[%s19563_s0 + $0xd4] sm:$0xff]  }
  0x6d   :  { %14173 = vmatprep.subr.bf16.mxu0 %v15664_v21  ;;  %14640 = vmatpush3.bf16.msra.mxu1 %v15665_v3  ;;  %v886_v3 = vsel %vm869_vm1, %v883_v46, %v885_v59  ;;  %v16540_v46 = vld [vmem:[%s19563_s0 + $0x98] ss:$0 sps:$4 sm:$0x11]  }
  0x6e   :  { %14641 = vmatprep.subr.bf16.mxu1 %v15671_v27  ;;  %v7084_v34 = vsel %vm869_vm1, %v7081_v15, %v7083_v25  ;;  %v7086_v37 = vsel %vm869_vm1, %v7083_v25, %v7085_v28  ;;  %v905_v0 = vrot.slane %v16540_v46, 1  ;;  %v7597_v15 = vrot.slane %v7595_v4, 1  ;;  %v15721_v46 = vld [vmem:[%s19563_s0 + $0xe4] sm:$0xff]  }
  0x6f   :  { %14174 = vmatpush3.bf16.msra.mxu0 %v15664_v21  ;;  %v15690_v21 = vld [vmem:[%s19563_s0 + $0x70] sm:$0xff]   ;;  %v7615_v25 = vshll.u32 %v15713_v11, 16 }
  0x70   :  { %14175 = vmatprep.subr.bf16.mxu0 %v15670_v31  ;;  %v895_v26 = vrot.slane %v15690_v21, 1 }
  0x71   :  { %14642 = vmatpush3.bf16.msra.mxu1 %v15671_v27  ;;  %v16499_v27 = vld [vmem:[%s19562_s1 + $0xc0] sm:$0xff]  }
  0x72   :  { %14140 = vmatmul.mubr.bf16.gmra.mrb[4].mxu0 %v878_v36  ;;  %14643 = vmatprep.subr.bf16.mxu1 %v15677_v35  ;;  %v15698_v36 = vld [vmem:[%s19563_s0 + $0x88] sm:$0xff]   ;;  %v898_v53 = vsel %vm869_vm1, %v895_v26, %v897_v40 }
  0x73   :  { %14608 = vmatmul.mubr.bf16.gmra.mrb[4].mxu1 %v7068_v38  ;;  %14143 = vmatprep.mubr.bf16.mxu0 %v880_v39  ;;  %v15699_v38 = vld [vmem:[%s19563_s0 + $0x13c] sm:$0xff]   ;;  %v16527_v39 = vld [vmem:[%s19563_s0 + $0x90] sm:$0xff]   ;;  %v901_v47 = vrot.slane %v15698_v36, 1 }
  0x74   :  { %14611 = vmatprep.mubr.bf16.mxu1 %v7070_v41  ;;  %14176 = vmatpush3.bf16.msra.mxu0 %v15670_v31  ;;  %v894_v31 = vsel %vm869_vm1, %v891_v13, %v893_v24  ;;  %v7087_v41 = vrot.slane %v15693_v30, 1  ;;  %v7091_v48 = vrot.slane %v15699_v38, 1  ;;  %v15714_v13 = vld [vmem:[%s19563_s0 + $0x20] sm:$0xff]   ;;  %v7621_v30 = vshrl.u32 %v15715_v18, 16 }
  0x75   :  { %14177 = vmatprep.subr.bf16.mxu0 %v15676_v42  ;;  %14644 = vmatpush3.bf16.msra.mxu1 %v15677_v35  ;;  %v896_v35 = vsel %vm869_vm1, %v893_v24, %v895_v26  ;;  %v7612_v24 = vshrl.u32 %v15713_v11, 16  ;;  %v1433_v26 = vshrl.u32 %v15714_v13, 16  ;;  %v15717_v36 = vld [vmem:[%s19563_s0 + $0xdc] sm:$0xff]   ;;  %v15727_v11 = vld [vmem:[%s19563_s0 + $0xf4] sm:$0xff]  }
  0x76   :  { %14645 = vmatprep.subr.bf16.mxu1 %v15683_v43  ;;  %v7090_v61 = vsel %vm869_vm1, %v7087_v41, %v7089_v45 }
  0x77   :  { %v7614_v38 = vrot.slane %v7612_v24, 1  ;;  %v15724_v24 = vld [vmem:[%s19562_s1 + $0xd0] sm:$0xff]  }
  0x78   :  { %14178 = vmatpush3.bf16.msra.mxu0 %v15676_v42  ;;  %v16532_v42 = vld [vmem:[%s19563_s0 + $0x144] sm:$0xff]  }
  0x79   :  { %14179 = vmatprep.subr.bf16.mxu0 %v15682_v50  ;;  %14646 = vmatpush3.bf16.msra.mxu1 %v15683_v43  ;;  %v15708_v43 = vld [vmem:[%s19563_s0 + $0x10] sm:$0xff]  }
  0x7a   :  { %14144 = vmatmul.mubr.bf16.gmra.mrb[8].mxu0 %v882_v52  ;;  %14647 = vmatprep.subr.bf16.mxu1 %v15689_v51  ;;  %v16554_v52 = vld [vmem:[%s19562_s1 + $0xc0] sm:$0xff]   ;;  %v1418_v59 = vshll.u32 %v15708_v43, 16 }
  0x7b   :  { %14612 = vmatmul.mubr.bf16.gmra.mrb[8].mxu1 %v7072_v54  ;;  %14147 = vmatprep.mubr.bf16.mxu0 %v884_v55  ;;  %v7093_v54 = vrot.slane %v16532_v42, 1  ;;  %v1415_v55 = vshrl.u32 %v15708_v43, 16  ;;  %v15720_v43 = vld [vmem:[%s19563_s0 + $0x30] sm:$0xff]  }
  0x7c   :  { %14615 = vmatprep.mubr.bf16.mxu1 %v7074_v57  ;;  %14180 = vmatpush3.bf16.msra.mxu0 %v15682_v50  ;;  %v15707_v50 = vld [vmem:[%s19563_s0 + $0x8] sm:$0xfe]   ;;  %v7088_v57 = vsel %vm869_vm1, %v7085_v28, %v7087_v41  ;;  %v1436_v28 = vshll.u32 %v15714_v13, 16  ;;  %v7624_v41 = vshll.u32 %v15715_v18, 16 }
  0x7d   :  { %14181 = vmatprep.subr.bf16.mxu0 %v15688_v58  ;;  %14648 = vmatpush3.bf16.msra.mxu1 %v15689_v51  ;;  %v903_v51 = vrot.slane %v16527_v39, 1  ;;  %v1410_v63 = vshll.u32 %v15707_v50, 16  ;;  %v7094_v23 = vsel %vm869_vm1, %v7091_v48, %v7093_v54  ;;  %v15718_v13 = vld [vmem:[%s19562_s1 + $0xc8] sm:$0xff]  }
  0x7e   :  { %14649 = vmatprep.subr.bf16.mxu1 %v15697_v62 }
  0x80   :  { %14182 = vmatpush3.bf16.msra.mxu0 %v15688_v58  ;;  %v900_v58 = vsel %vm869_vm1, %v897_v40, %v899_v44  ;;  %v7617_v40 = vrot.slane %v7615_v25, 2  ;;  %v15725_v25 = vld [vmem:[%s19562_s1 + $0xc8] sm:$0xff]  }
  0x81   :  { %14183 = vmatprep.subr.bf16.mxu0 %v15694_v1  ;;  %14650 = vmatpush3.bf16.msra.mxu1 %v15697_v62  ;;  %v1407_v62 = vshrl.u32 %v15707_v50, 16 }
  0x82   :  { %14148 = vmatmul.mubr.bf16.gmra.mrb[12].mxu0 %v886_v3  ;;  %14651 = vmatprep.subr.bf16.mxu1 %v15705_v10  ;;  %v1417_v3 = vrot.slane %v1415_v55, 1 }
  0x83   :  { %14616 = vmatmul.mubr.bf16.gmra.mrb[12].mxu1 %v7076_v5  ;;  %14151 = vmatprep.mubr.bf16.mxu0 %v888_v6  ;;  %v7598_v5 = vshll.u32 %v15709_v56, 16  ;;  %v7603_v6 = vshrl.u32 %v15710_v60, 16  ;;  %v7630_v56 = vshrl.u32 %v15717_v36, 16  ;;  %v7639_v60 = vshrl.u32 %v15721_v46, 16 }
  0x84   :  { %14619 = vmatprep.mubr.bf16.mxu1 %v7078_v8  ;;  %14184 = vmatpush3.bf16.msra.mxu0 %v15694_v1  ;;  %v15711_v1 = vld [vmem:[%s19563_s0 + $0x18] sm:$0xff]   ;;  %v1409_v8 = vrot.slane %v1407_v62, 1 }
  0x85   :  { %14185 = vmatprep.subr.bf16.mxu0 %v15701_v9  ;;  %14652 = vmatpush3.bf16.msra.mxu1 %v15705_v10  ;;  %v1420_v10 = vrot.slane %v1418_v59, 2  ;;  %v1424_v12 = vshrl.u32 %v15711_v1, 16  ;;  %v1427_v17 = vshll.u32 %v15711_v1, 16  ;;  %v7605_v21 = vrot.slane %v7603_v6, 1 }
  0x86   :  { %14653 = vmatprep.subr.bf16.mxu1 %v15706_v14  ;;  %v1454_v59 = vshll.u32 %v15720_v43, 16  ;;  %v7632_v1 = vrot.slane %v7630_v56, 1 }
  0x87   :  { %v1421_v29 = vor.u32 %v1420_v10, %v1417_v3  ;;  %v15726_v3 = vld [vmem:[%s19563_s0 + $0x40] sm:$0xff]  }
  0x88   :  { %14186 = vmatpush3.bf16.msra.mxu0 %v15701_v9  ;;  %v1412_v9 = vrot.slane %v1410_v63, 2  ;;  %v7618_v63 = vor.u32 %v7617_v40, %v7614_v38  ;;  %v1469_v18 = vshrl.u32 %v15726_v3, 16  ;;  %v15732_v40 = vld [vmem:[%s19563_s0 + $0x50] sm:$0xff]  }
  0x89   :  { %14654 = vmatpush3.bf16.msra.mxu1 %v15706_v14  ;;  %14223 = vmatprep.subr.bf16.mxu0 %v16499_v27  ;;  %v902_v14 = vsel %vm869_vm1, %v899_v44, %v901_v47  ;;  %v906_v44 = vsel %vm869_vm1, %v903_v51, %v905_v0 }
  0x8a   :  { %14152 = vmatmul.mubr.bf16.gmra.mrb[16].mxu0 %v890_v16  ;;  %14691 = vmatprep.subr.bf16.mxu1 %v16554_v52  ;;  %v7600_v16 = vrot.slane %v7598_v5, 2  ;;  %v1413_v32 = vor.u32 %v1412_v9, %v1409_v8  ;;  %v1456_v8 = vrot.slane %v1454_v59, 2  ;;  %v7641_v9 = vrot.slane %v7639_v60, 1 }
  0x8b   :  { %14620 = vmatmul.mubr.bf16.gmra.mrb[16].mxu1 %v7080_v19  ;;  %14155 = vmatprep.mubr.bf16.mxu0 %v892_v20  ;;  %v7092_v19 = vsel %vm869_vm1, %v7089_v45, %v7091_v48  ;;  %v904_v20 = vsel %vm869_vm1, %v901_v47, %v903_v51  ;;  %v1435_v45 = vrot.slane %v1433_v26, 1  ;;  %v1438_v47 = vrot.slane %v1436_v28, 2  ;;  %v15728_v28 = vld [vmem:[%s19563_s0 + $0x48] sm:$0xff]  }
  0x8c   :  { %14623 = vmatprep.mubr.bf16.mxu1 %v7082_v22  ;;  %v7608_v22 = vrot.slane %v7606_v7, 2  ;;  %v7601_v33 = vor.u32 %v7600_v16, %v7597_v15  ;;  %v7623_v48 = vrot.slane %v7621_v30, 1  ;;  %v1422_v55 = vsel %vm1405_vm2, %v1413_v32, %v1421_v29 }
  0x8d   :  { %v7626_v51 = vrot.slane %v7624_v41, 2  ;;  %v1439_v4 = vor.u32 %v1438_v47, %v1435_v45  ;;  %v7642_v7 = vshll.u32 %v15721_v46, 16  ;;  %v7657_v26 = vshrl.u32 %v15727_v11, 16  ;;  %v15731_v45 = vld [vmem:[%s19562_s1 + $0xd0] sm:$0xff]  }
  0x8e   :  { %v1490_v60 = vshll.u32 %v15732_v40, 16 }
  0x8f   :  { %v7627_v5 = vor.u32 %v7626_v51, %v7623_v48  ;;  %v7659_v41 = vrot.slane %v7657_v26, 1  ;;  %v16668_v51 = vld [vmem:[%s19563_s0 + $0x10c] sm:$0xff]  }
  0x92   :  { %14156 = vmatmul.mubr.bf16.gmra.mrb[20].mxu0 %v894_v31  ;;  %v15716_v31 = vld [vmem:[%s19563_s0 + $0x28] sm:$0xff]  }
  0x93   :  { %14624 = vmatmul.mubr.bf16.gmra.mrb[20].mxu1 %v7084_v34  ;;  %14159 = vmatprep.mubr.bf16.mxu0 %v896_v35  ;;  %v1426_v34 = vrot.slane %v1424_v12, 1  ;;  %v1429_v35 = vrot.slane %v1427_v17, 2  ;;  %v1442_v49 = vshrl.u32 %v15716_v31, 16  ;;  %v1445_v50 = vshll.u32 %v15716_v31, 16 }
  0x94   :  { %14627 = vmatprep.mubr.bf16.mxu1 %v7086_v37  ;;  %v7609_v37 = vor.u32 %v7608_v22, %v7605_v21  ;;  %v7644_v21 = vrot.slane %v7642_v7, 2  ;;  %v1472_v22 = vshll.u32 %v15726_v3, 16 }
  0x95   :  { %v1430_v42 = vor.u32 %v1429_v35, %v1426_v34  ;;  %v1444_v62 = vrot.slane %v1442_v49, 1  ;;  %v1447_v0 = vrot.slane %v1445_v50, 2 }
  0x96   :  { %v7610_v39 = vsel %vm1405_vm2, %v7601_v33, %v7609_v37  ;;  %v7619_v16 = vsel %vm1405_vm2, %v7609_v37, %v7618_v63  ;;  %v15729_v33 = vld [vmem:[%s19563_s0 + $0xfc] sm:$0xff]   ;;  %v7660_v37 = vshll.u32 %v15727_v11, 16  ;;  %v7645_v38 = vor.u32 %v7644_v21, %v7641_v9 }
  0x97   :  { %v1431_v12 = vsel %vm1405_vm2, %v1421_v29, %v1430_v42  ;;  %v1448_v29 = vor.u32 %v1447_v0, %v1444_v62  ;;  %v7666_v47 = vshrl.u32 %v15729_v33, 16  ;;  %v7669_v50 = vshll.u32 %v15729_v33, 16 }
  0x98   :  { %v7662_v56 = vrot.slane %v7660_v37, 2  ;;  %v7684_v9 = vshrl.u32 %v16668_v51, 16 }
  0x99   :  { %v1449_v46 = vsel %vm1405_vm2, %v1439_v4, %v1448_v29 }
  0x9a   :  { %14160 = vmatmul.mubr.bf16.gmra.mrb[24].mxu0 %v898_v53  ;;  %v7096_v53 = vsel %vm869_vm1, %v7093_v54, %v7095_v2  ;;  %v15723_v54 = vld [vmem:[%s19563_s0 + $0xec] sm:$0xff]   ;;  %v7686_v26 = vrot.slane %v7684_v9, 1 }
  0x9b   :  { %14628 = vmatmul.mubr.bf16.gmra.mrb[24].mxu1 %v7088_v57  ;;  %14163 = vmatprep.mubr.bf16.mxu0 %v900_v58  ;;  %v7633_v57 = vshll.u32 %v15717_v36, 16  ;;  %v1451_v58 = vshrl.u32 %v15720_v43, 16  ;;  %v7648_v15 = vshrl.u32 %v15723_v54, 16  ;;  %v7651_v17 = vshll.u32 %v15723_v54, 16 }
  0x9c   :  { %14631 = vmatprep.mubr.bf16.mxu1 %v7090_v61  ;;  %v15722_v61 = vld [vmem:[%s19563_s0 + $0x38] sm:$0xff]   ;;  %v1471_v36 = vrot.slane %v1469_v18, 1  ;;  %v1478_v43 = vshrl.u32 %v15728_v28, 16  ;;  %v7687_v18 = vshll.u32 %v16668_v51, 16 }
  0x9d   :  { %v7635_v2 = vrot.slane %v7633_v57, 2  ;;  %v1453_v6 = vrot.slane %v1451_v58, 1  ;;  %v1460_v10 = vshrl.u32 %v15722_v61, 16  ;;  %v7650_v34 = vrot.slane %v7648_v15, 1  ;;  %v15730_v57 = vld [vmem:[%s19562_s1 + $0xd8] sm:$0xff]  }
  0x9e   :  { %v7653_v35 = vrot.slane %v7651_v17, 2  ;;  %v1480_v62 = vrot.slane %v1478_v43, 1  ;;  %v15739_v15 = vld [vmem:[%s19563_s0 + $0x114] sm:$0xff]  }
  0x9f   :  { %v7636_v30 = vor.u32 %v7635_v2, %v7632_v1  ;;  %v16639_v31 = vor.u32 %v1456_v8, %v1453_v6  ;;  %v7668_v1 = vrot.slane %v7666_v47, 1  ;;  %v7671_v2 = vrot.slane %v7669_v50, 2  ;;  %v15736_v6 = vld [vmem:[%s19562_s1 + $0xe0] sm:$0xff]  }
  0xa0   :  { %v7654_v59 = vor.u32 %v7653_v35, %v7650_v34  ;;  %v1492_v8 = vrot.slane %v1490_v60, 2 }
  0xa1   :  { %v7637_v48 = vsel %vm1405_vm2, %v7627_v5, %v7636_v30  ;;  %v1458_v49 = vsel %vm1405_vm2, %v1448_v29, %v16639_v31  ;;  %v7672_v33 = vor.u32 %v7671_v2, %v7668_v1 }
  0xa2   :  { %14164 = vmatmul.mubr.bf16.gmra.mrb[28].mxu0 %v902_v14  ;;  %v1463_v14 = vshll.u32 %v15722_v61, 16  ;;  %v15737_v61 = vld [vmem:[%s19562_s1 + $0xd8] sm:$0xff]  }
  0xa3   :  { %14632 = vmatmul.mubr.bf16.gmra.mrb[28].mxu1 %v7092_v19  ;;  %14167 = vmatprep.mubr.bf16.mxu0 %v904_v20  ;;  %v1440_v19 = vsel %vm1405_vm2, %v1430_v42, %v1439_v4  ;;  %v7628_v20 = vsel %vm1405_vm2, %v7618_v63, %v7627_v5  ;;  %v7663_v4 = vor.u32 %v7662_v56, %v7659_v41  ;;  %v15748_v41 = vld [vmem:[%s19562_s1 + $0xf0] sm:$0xff]   ;;  %v15746_v56 = vld [vmem:[%s19563_s0 + $0x78] sm:$0xff]  }
  0xa4   :  { %14635 = vmatprep.mubr.bf16.mxu1 %v7094_v23  ;;  %v1462_v23 = vrot.slane %v1460_v10, 1  ;;  %v1465_v32 = vrot.slane %v1463_v14, 2  ;;  %v15743_v10 = vld [vmem:[%s19562_s1 + $0xe0] sm:$0xff]  }
  0xa5   :  { %v15738_v14 = vld [vmem:[%s19563_s0 + $0x60] sm:$0xff]  }
  0xa6   :  { %v1466_v58 = vor.u32 %v1465_v32, %v1462_v23  ;;  %v15741_v23 = vld [vmem:[%s19563_s0 + $0x11c] sm:$0xff]   ;;  %v1505_v29 = vshrl.u32 %v15738_v14, 16  ;;  %v7696_v32 = vshll.u32 %v15739_v15, 16 }
  0xa8   :  { %v1467_v11 = vsel %vm1405_vm2, %v16639_v31, %v1466_v58  ;;  %v7693_v31 = vshrl.u32 %v15739_v15, 16 }
  0xaa   :  { %14168 = vmatmul.mubr.bf16.gmra.mrb[32].mxu0 %v906_v44  ;;  %v1481_v44 = vshll.u32 %v15728_v28, 16  ;;  %v15751_v28 = vld [vmem:[%s19562_s1 + $0xe8] sm:$0xff]  }
  0xab   :  { %14636 = vmatmul.mubr.bf16.gmra.mrb[32].mxu1 %v7096_v53  ;;  %14187 = vmatprep.mubr.bf16.mxu0 %v1422_v55  ;;  %v15734_v53 = vld [vmem:[%s19563_s0 + $0x58] sm:$0xff]   ;;  %v7646_v55 = vsel %vm1405_vm2, %v7636_v30, %v7645_v38  ;;  %v1508_v30 = vshll.u32 %v15738_v14, 16 }
  0xac   :  { %14655 = vmatprep.mubr.bf16.mxu1 %v7610_v39  ;;  %v1487_v39 = vshrl.u32 %v15732_v40, 16  ;;  %v1483_v0 = vrot.slane %v1481_v44, 2  ;;  %v1496_v3 = vshrl.u32 %v15734_v53, 16  ;;  %v1499_v5 = vshll.u32 %v15734_v53, 16  ;;  %v15745_v40 = vld [vmem:[%s19563_s0 + $0x124] sm:$0xff]  }
  0xad   :  { %v7702_v44 = vshrl.u32 %v15741_v23, 16  ;;  %v1510_v47 = vrot.slane %v1508_v30, 2 }
  0xae   :  { %v1489_v7 = vrot.slane %v1487_v39, 1  ;;  %v1498_v21 = vrot.slane %v1496_v3, 1  ;;  %v7714_v3 = vshll.u32 %v15745_v40, 16 }
  0xb0   :  { %v1493_v34 = vor.u32 %v1492_v8, %v1489_v7  ;;  %v1535_v7 = vshll.u32 %v15746_v56, 16 }
  0xb2   :  { %14188 = vmatmul.mubr.bf16.vlgmr.msra.gmra.mrb[0].mxu0 %v1431_v12 }
  0xb3   :  { %14656 = vmatmul.mubr.bf16.vlgmr.msra.gmra.mrb[0].mxu1 %v7619_v16  ;;  %14224 = vmatpush3.bf16.msra.mxu0 %v16499_v27  ;;  %v1474_v27 = vrot.slane %v1472_v22, 2  ;;  %v7655_v16 = vsel %vm1405_vm2, %v7645_v38, %v7654_v59  ;;  %v1501_v22 = vrot.slane %v1499_v5, 2  ;;  %v7689_v38 = vrot.slane %v7687_v18, 2  ;;  %v15750_v5 = vld [vmem:[%s19563_s0 + $0x134] sm:$0xff]  }
  0xb4   :  { %14191 = vmatprep.mubr.bf16.mxu0 %v1440_v19  ;;  %14659 = vmatprep.mubr.bf16.mxu1 %v7628_v20  ;;  %v15740_v19 = vld [vmem:[%s19563_s0 + $0x68] sm:$0xff]   ;;  %v7664_v20 = vsel %vm1405_vm2, %v7654_v59, %v7663_v4  ;;  %v7704_v59 = vrot.slane %v7702_v44, 1  ;;  %v7716_v18 = vrot.slane %v7714_v3, 2 }
  0xb5   :  { %14225 = vmatprep.subr.bf16.mxu0 %v15718_v13  ;;  %14692 = vmatpush3.bf16.msra.mxu1 %v16554_v52  ;;  %v15733_v52 = vld [vmem:[%s19563_s0 + $0x104] sm:$0xff]   ;;  %v1475_v42 = vor.u32 %v1474_v27, %v1471_v36  ;;  %v1514_v35 = vshrl.u32 %v15740_v19, 16  ;;  %v15744_v36 = vld [vmem:[%s19563_s0 + $0x70] sm:$0xff]   ;;  %v1517_v27 = vshll.u32 %v15740_v19, 16  ;;  %v7729_v19 = vshrl.u32 %v15750_v5, 16 }
  0xb6   :  { %14693 = vmatprep.subr.bf16.mxu1 %v15725_v25  ;;  %v7675_v54 = vshrl.u32 %v15733_v52, 16  ;;  %v7678_v63 = vshll.u32 %v15733_v52, 16  ;;  %v7695_v52 = vrot.slane %v7693_v31, 1  ;;  %v1523_v60 = vshrl.u32 %v15744_v36, 16  ;;  %v15756_v31 = vld [vmem:[%s19563_s0 + $0x144] sm:$0xff]  }
  0xb7   :  { %14226 = vmatpush3.bf16.msra.mxu0 %v15718_v13  ;;  %v1476_v17 = vsel %vm1405_vm2, %v1466_v58, %v1475_v42  ;;  %v1516_v53 = vrot.slane %v1514_v35, 1  ;;  %v1519_v51 = vrot.slane %v1517_v27, 2  ;;  %v15755_v58 = vld [vmem:[%s19562_s1 + $0xf8] sm:$0xff]   ;;  %v7732_v35 = vshll.u32 %v15750_v5, 16 }
  0xb8   :  { %14227 = vmatprep.subr.bf16.mxu0 %v15724_v24  ;;  %v7677_v12 = vrot.slane %v7675_v54, 1  ;;  %v7680_v13 = vrot.slane %v7678_v63, 2  ;;  %v15760_v54 = vld [vmem:[%s19562_s1 + $0xf8] sm:$0xff]   ;;  %v1502_v63 = vor.u32 %v1501_v22, %v1498_v21  ;;  %v1525_v9 = vrot.slane %v1523_v60, 1 }
  0xb9   :  { %14694 = vmatpush3.bf16.msra.mxu1 %v15725_v25  ;;  %v1484_v25 = vor.u32 %v1483_v0, %v1480_v62  ;;  %v15749_v62 = vld [vmem:[%s19563_s0 + $0x80] sm:$0xff]   ;;  %v7690_v0 = vor.u32 %v7689_v38, %v7686_v26  ;;  %v15754_v26 = vld [vmem:[%s19563_s0 + $0x90] sm:$0xff]  }
  0xba   :  { %14192 = vmatmul.mubr.bf16.gmra.mrb[4].mxu0 %v1449_v46  ;;  %14695 = vmatprep.subr.bf16.mxu1 %v15731_v45  ;;  %v7681_v37 = vor.u32 %v7680_v13, %v7677_v12  ;;  %v1507_v46 = vrot.slane %v1505_v29, 1  ;;  %v1503_v13 = vsel %vm1405_vm2, %v1493_v34, %v1502_v63  ;;  %v1541_v14 = vshrl.u32 %v15749_v62, 16  ;;  %v15753_v21 = vld [vmem:[%s19563_s0 + $0x13c] sm:$0xff]  }
  0xbb   :  { %14660 = vmatmul.mubr.bf16.gmra.mrb[4].mxu1 %v7637_v48  ;;  %14195 = vmatprep.mubr.bf16.mxu0 %v1458_v49  ;;  %v1485_v43 = vsel %vm1405_vm2, %v1475_v42, %v1484_v25  ;;  %v7698_v48 = vrot.slane %v7696_v32, 2  ;;  %v7673_v49 = vsel %vm1405_vm2, %v7663_v4, %v7672_v33  ;;  %v1494_v50 = vsel %vm1405_vm2, %v1484_v25, %v1493_v34 }
  0xbc   :  { %14663 = vmatprep.mubr.bf16.mxu1 %v7646_v55  ;;  %14228 = vmatpush3.bf16.msra.mxu0 %v15724_v24  ;;  %v15742_v24 = vld [vmem:[%s19562_s1 + $0xe8] sm:$0xff]   ;;  %v7705_v55 = vshll.u32 %v15741_v23, 16  ;;  %v7682_v39 = vsel %vm1405_vm2, %v7672_v33, %v7681_v37  ;;  %v7711_v42 = vshrl.u32 %v15745_v40, 16  ;;  %v1511_v1 = vor.u32 %v1510_v47, %v1507_v46 }
  0xbd   :  { %14229 = vmatprep.subr.bf16.mxu0 %v15730_v57  ;;  %14696 = vmatpush3.bf16.msra.mxu1 %v15731_v45  ;;  %v15759_v45 = vld [vmem:[%s19562_s1 + $0xf0] sm:$0xff]   ;;  %v1532_v4 = vshrl.u32 %v15746_v56, 16  ;;  %v1544_v15 = vshll.u32 %v15749_v62, 16  ;;  %v1543_v33 = vrot.slane %v1541_v14, 1  ;;  %v7738_v40 = vshrl.u32 %v15753_v21, 16 }
  0xbe   :  { %14697 = vmatprep.subr.bf16.mxu1 %v15737_v61  ;;  %v7707_v2 = vrot.slane %v7705_v55, 2  ;;  %v1559_v44 = vshrl.u32 %v15754_v26, 16  ;;  %v7747_v46 = vshrl.u32 %v15756_v31, 16  ;;  %v7734_v55 = vrot.slane %v7732_v35, 2 }
  0xbf   :  { %v1534_v23 = vrot.slane %v1532_v4, 1  ;;  %v1546_v34 = vrot.slane %v1544_v15, 2  ;;  %v15758_v56 = vld [vmem:[%s19563_s0 + $0x14c] ss:$0 sps:$4 sm:$0x33]  }
  0xc0   :  { %14230 = vmatpush3.bf16.msra.mxu0 %v15730_v57  ;;  %v15747_v57 = vld [vmem:[%s19563_s0 + $0x12c] sm:$0xff]   ;;  %v7708_v29 = vor.u32 %v7707_v2, %v7704_v59  ;;  %v15762_v59 = vld [vmem:[%s19563_s0 + $0x18] sm:$0xff]   ;;  %v7749_v62 = vrot.slane %v7747_v46, 1  ;;  %v7756_v5 = vshrl.u32 %v15758_v56, 16 }
  0xc1   :  { %14231 = vmatprep.subr.bf16.mxu0 %v15736_v6  ;;  %14698 = vmatpush3.bf16.msra.mxu1 %v15737_v61  ;;  %v1526_v61 = vshll.u32 %v15744_v36, 16  ;;  %v7720_v8 = vshrl.u32 %v15747_v57, 16  ;;  %v7723_v12 = vshll.u32 %v15747_v57, 16  ;;  %v16757_v36 = vld [vmem:[%s19562_s1 + $0x100] sm:$0xff]   ;;  %v15761_v2 = vld [vmem:[%s19563_s0 + $0x10] sm:$0xfe]  }
  0xc2   :  { %14196 = vmatmul.mubr.bf16.gmra.mrb[8].mxu0 %v1467_v11  ;;  %14699 = vmatprep.subr.bf16.mxu1 %v15743_v10  ;;  %v7713_v11 = vrot.slane %v7711_v42, 1  ;;  %v2075_v14 = vshrl.u32 %v15761_v2, 16  ;;  %v2086_v15 = vshll.u32 %v15762_v59, 16 }
  0xc3   :  { %14664 = vmatmul.mubr.bf16.gmra.mrb[8].mxu1 %v7655_v16  ;;  %14199 = vmatprep.mubr.bf16.mxu0 %v1476_v17  ;;  %v7691_v16 = vsel %vm1405_vm2, %v7681_v37, %v7690_v0  ;;  %v1512_v17 = vsel %vm1405_vm2, %v1502_v63, %v1511_v1  ;;  %v7722_v25 = vrot.slane %v7720_v8, 1  ;;  %v7725_v30 = vrot.slane %v7723_v12, 2 }
  0xc4   :  { %14667 = vmatprep.mubr.bf16.mxu1 %v7664_v20  ;;  %14232 = vmatpush3.bf16.msra.mxu0 %v15736_v6  ;;  %v7699_v6 = vor.u32 %v7698_v48, %v7695_v52  ;;  %v15752_v20 = vld [vmem:[%s19563_s0 + $0x88] sm:$0xff]   ;;  %v7731_v37 = vrot.slane %v7729_v19, 1  ;;  %v7750_v52 = vshll.u32 %v15756_v31, 16  ;;  %v15757_v48 = vld [vmem:[%s19563_s0 + $0x98] ss:$0 sps:$4 sm:$0x33]   ;;  %v1547_v63 = vor.u32 %v1546_v34, %v1543_v33 }
  0xc5   :  { %14233 = vmatprep.subr.bf16.mxu0 %v15742_v24  ;;  %14700 = vmatpush3.bf16.msra.mxu1 %v15743_v10  ;;  %v1528_v10 = vrot.slane %v1526_v61, 2  ;;  %v1550_v38 = vshrl.u32 %v15752_v20, 16  ;;  %v1553_v27 = vshll.u32 %v15752_v20, 16  ;;  %v1561_v61 = vrot.slane %v1559_v44, 1  ;;  %v15765_v20 = vld [vmem:[%s19563_s0 + $0x20] sm:$0xff]  }
  0xc6   :  { %14701 = vmatprep.subr.bf16.mxu1 %v15751_v28  ;;  %v7700_v22 = vsel %vm1405_vm2, %v7690_v0, %v7699_v6  ;;  %v7752_v0 = vrot.slane %v7750_v52, 2  ;;  %v7735_v3 = vor.u32 %v7734_v55, %v7731_v37  ;;  %v1571_v4 = vshll.u32 %v15757_v48, 16 }
  0xc7   :  { %v1529_v32 = vor.u32 %v1528_v10, %v1525_v9  ;;  %v7759_v8 = vshll.u32 %v15758_v56, 16  ;;  %v2083_v9 = vshrl.u32 %v15762_v59, 16  ;;  %v2078_v19 = vshll.u32 %v15761_v2, 16 }
  0xc8   :  { %14234 = vmatpush3.bf16.msra.mxu0 %v15742_v24  ;;  %v1537_v24 = vrot.slane %v1535_v7, 2  ;;  %v16782_v7 = vld [vmem:[%s19562_s1 + $0x100] sm:$0xff]   ;;  %v2077_v31 = vrot.slane %v2075_v14, 1  ;;  %v2088_v33 = vrot.slane %v2086_v15, 2  ;;  %v7753_v35 = vor.u32 %v7752_v0, %v7749_v62 }
  0xc9   :  { %14235 = vmatprep.subr.bf16.mxu0 %v15748_v41  ;;  %14702 = vmatpush3.bf16.msra.mxu1 %v15751_v28  ;;  %v1520_v28 = vor.u32 %v1519_v51, %v1516_v53  ;;  %v1555_v51 = vrot.slane %v1553_v27, 2  ;;  %v2080_v37 = vrot.slane %v2078_v19, 2 }
  0xca   :  { %14200 = vmatmul.mubr.bf16.gmra.mrb[12].mxu0 %v1485_v43  ;;  %14703 = vmatprep.subr.bf16.mxu1 %v15759_v45  ;;  %v7741_v43 = vshll.u32 %v15753_v21, 16  ;;  %v1538_v57 = vor.u32 %v1537_v24, %v1534_v23 }
  0xcb   :  { %14668 = vmatmul.mubr.bf16.gmra.mrb[12].mxu1 %v7673_v49  ;;  %14203 = vmatprep.mubr.bf16.mxu0 %v1494_v50  ;;  %v1521_v47 = vsel %vm1405_vm2, %v1511_v1, %v1520_v28  ;;  %v7709_v49 = vsel %vm1405_vm2, %v7699_v6, %v7708_v29  ;;  %v1530_v50 = vsel %vm1405_vm2, %v1520_v28, %v1529_v32  ;;  %v1568_v1 = vshrl.u32 %v15757_v48, 16  ;;  %v15764_v6 = vld [vmem:[%s19563_s0 + $0xcc] sm:$0xff]  }
  0xcc   :  { %14671 = vmatprep.mubr.bf16.mxu1 %v7682_v39  ;;  %14236 = vmatpush3.bf16.msra.mxu0 %v15748_v41  ;;  %v7717_v41 = vor.u32 %v7716_v18, %v7713_v11  ;;  %v1552_v39 = vrot.slane %v1550_v38, 1  ;;  %v7743_v60 = vrot.slane %v7741_v43, 2  ;;  %v1539_v10 = vsel %vm1405_vm2, %v1529_v32, %v1538_v57  ;;  %v15763_v11 = vld [vmem:[%s19563_s0 + $0xc4] sm:$0xfe]  }
  0xcd   :  { %14237 = vmatprep.subr.bf16.mxu0 %v15755_v58  ;;  %14704 = vmatpush3.bf16.msra.mxu1 %v15759_v45  ;;  %v1562_v45 = vshll.u32 %v15754_v26, 16  ;;  %v1573_v18 = vrot.slane %v1571_v4, 2  ;;  %v8270_v23 = vshrl.u32 %v15764_v6, 16  ;;  %v8273_v24 = vshll.u32 %v15764_v6, 16  ;;  %v15768_v38 = vld [vmem:[%s19563_s0 + $0x28] sm:$0xff]   ;;  %v15774_v4 = vld [vmem:[%s19563_s0 + $0x38] sm:$0xff]  }
  0xce   :  { %14705 = vmatprep.subr.bf16.mxu1 %v15760_v54  ;;  %v7718_v53 = vsel %vm1405_vm2, %v7708_v29, %v7717_v41  ;;  %v1556_v21 = vor.u32 %v1555_v51, %v1552_v39  ;;  %v7758_v26 = vrot.slane %v7756_v5, 1  ;;  %v7761_v28 = vrot.slane %v7759_v8, 2  ;;  %v15770_v51 = vld [vmem:[%s19563_s0 + $0x30] sm:$0xff]  }
  0xcf   :  { %v1564_v42 = vrot.slane %v1562_v45, 2  ;;  %v8262_v29 = vshrl.u32 %v15763_v11, 16  ;;  %v2085_v32 = vrot.slane %v2083_v9, 1  ;;  %v8265_v34 = vshll.u32 %v15763_v11, 16  ;;  %v15775_v11 = vld [vmem:[%s19563_s0 + $0xec] sm:$0xff]  }
  0xd0   :  { %14238 = vmatpush3.bf16.msra.mxu0 %v15755_v58  ;;  %v7740_v58 = vrot.slane %v7738_v40, 1  ;;  %v8272_v27 = vrot.slane %v8270_v23, 1  ;;  %v8275_v40 = vrot.slane %v8273_v24, 2  ;;  %v2095_v43 = vshll.u32 %v15765_v20, 16 }
  0xd1   :  { %14706 = vmatpush3.bf16.msra.mxu1 %v15760_v54  ;;  %14275 = vmatprep.subr.bf16.mxu0 %v16757_v36  ;;  %v7726_v54 = vor.u32 %v7725_v30, %v7722_v25  ;;  %v1565_v25 = vor.u32 %v1564_v42, %v1561_v61  ;;  %v15767_v30 = vld [vmem:[%s19563_s0 + $0xd4] sm:$0xff]   ;;  %v1557_v44 = vsel %vm1405_vm2, %v1547_v63, %v1556_v21  ;;  %v8264_v45 = vrot.slane %v8262_v29, 1  ;;  %v15771_v42 = vld [vmem:[%s19563_s0 + $0xe4] sm:$0xff]  }
  0xd2   :  { %14204 = vmatmul.mubr.bf16.gmra.mrb[16].mxu0 %v1503_v13  ;;  %14743 = vmatprep.subr.bf16.mxu1 %v16782_v7  ;;  %v1548_v13 = vsel %vm1405_vm2, %v1538_v57, %v1547_v63  ;;  %v8279_v46 = vshrl.u32 %v15767_v30, 16  ;;  %v8267_v48 = vrot.slane %v8265_v34, 2  ;;  %v2101_v55 = vshrl.u32 %v15768_v38, 16 }
  0xd3   :  { %14672 = vmatmul.mubr.bf16.gmra.mrb[16].mxu1 %v7691_v16  ;;  %14207 = vmatprep.mubr.bf16.mxu0 %v1512_v17  ;;  %v7727_v12 = vsel %vm1405_vm2, %v7717_v41, %v7726_v54  ;;  %v7736_v16 = vsel %vm1405_vm2, %v7726_v54, %v7735_v3  ;;  %v16792_v17 = vrot.slane %v1568_v1, 1  ;;  %v2092_v41 = vshrl.u32 %v15765_v20, 16 }
  0xd4   :  { %14675 = vmatprep.mubr.bf16.mxu1 %v7700_v22  ;;  %v7744_v22 = vor.u32 %v7743_v60, %v7740_v58  ;;  %v1566_v52 = vsel %vm1405_vm2, %v1556_v21, %v1565_v25  ;;  %v7762_v57 = vor.u32 %v7761_v28, %v7758_v26  ;;  %v2089_v39 = vor.u32 %v2088_v33, %v2085_v32  ;;  %v15777_v28 = vld [vmem:[%s19563_s0 + $0xf4] sm:$0xff]  }
  0xd5   :  { %v1574_v56 = vor.u32 %v1573_v18, %v16792_v17  ;;  %v2081_v58 = vor.u32 %v2080_v37, %v2077_v31  ;;  %v2094_v59 = vrot.slane %v2092_v41, 1  ;;  %v2097_v60 = vrot.slane %v2095_v43, 2  ;;  %v15780_v31 = vld [vmem:[%s19563_s0 + $0x48] sm:$0xff]   ;;  %v15781_v37 = vld [vmem:[%s19563_s0 + $0xfc] sm:$0xff]  }
  0xd6   :  { %v8281_v61 = vrot.slane %v8279_v46, 1  ;;  %v8268_v62 = vor.u32 %v8267_v48, %v8264_v45  ;;  %v8276_v54 = vor.u32 %v8275_v40, %v8272_v27  ;;  %v2104_v63 = vshll.u32 %v15768_v38, 16  ;;  %v15772_v43 = vld [vmem:[%s19562_s1 + $0x108] sm:$0xff]  }
  0xd7   :  { %v2103_v2 = vrot.slane %v2101_v55, 1  ;;  %v2110_v5 = vshrl.u32 %v15770_v51, 16  ;;  %v2113_v6 = vshll.u32 %v15770_v51, 16  ;;  %v1575_v8 = vsel %vm1405_vm2, %v1565_v25, %v1574_v56  ;;  %v15782_v55 = vld [vmem:[%s19563_s0 + $0x50] sm:$0xff]  }
  0xd8   :  { %v7763_v9 = vsel %vm1405_vm2, %v7753_v35, %v7762_v57  ;;  %v2106_v14 = vrot.slane %v2104_v63, 2  ;;  %v8300_v17 = vshll.u32 %v15771_v42, 16  ;;  %v2119_v18 = vshrl.u32 %v15774_v4, 16  ;;  %v15778_v51 = vld [vmem:[%s19562_s1 + $0x110] sm:$0xff]  }
  0xd9   :  { %v2122_v19 = vshll.u32 %v15774_v4, 16  ;;  %v2098_v20 = vor.u32 %v2097_v60, %v2094_v59  ;;  %v2112_v21 = vrot.slane %v2110_v5, 1  ;;  %v2115_v24 = vrot.slane %v2113_v6, 2  ;;  %v15787_v4 = vld [vmem:[%s19563_s0 + $0x10c] sm:$0xff]  }
  0xda   :  { %14208 = vmatmul.mubr.bf16.gmra.mrb[20].mxu0 %v1521_v47  ;;  %v7745_v47 = vsel %vm1405_vm2, %v7735_v3, %v7744_v22  ;;  %v8306_v26 = vshrl.u32 %v15775_v11, 16  ;;  %v2107_v29 = vor.u32 %v2106_v14, %v2103_v2  ;;  %v8302_v33 = vrot.slane %v8300_v17, 2  ;;  %v15785_v6 = vld [vmem:[%s19562_s1 + $0x110] sm:$0xff]  }
  0xdb   :  { %14676 = vmatmul.mubr.bf16.gmra.mrb[20].mxu1 %v7709_v49  ;;  %14211 = vmatprep.mubr.bf16.mxu0 %v1530_v50  ;;  %v15769_v49 = vld [vmem:[%s19563_s0 + $0xdc] sm:$0xff]   ;;  %v7754_v50 = vsel %vm1405_vm2, %v7744_v22, %v7753_v35  ;;  %v2121_v34 = vrot.slane %v2119_v18, 1  ;;  %v2124_v35 = vrot.slane %v2122_v19, 2  ;;  %v2099_v40 = vsel %vm1405_vm2, %v2089_v39, %v2098_v20 }
  0xdc   :  { %14679 = vmatprep.mubr.bf16.mxu1 %v7718_v53  ;;  %v8282_v53 = vshll.u32 %v15767_v30, 16  ;;  %v8288_v0 = vshrl.u32 %v15769_v49, 16  ;;  %v8291_v3 = vshll.u32 %v15769_v49, 16  ;;  %v15776_v22 = vld [vmem:[%s19563_s0 + $0x40] sm:$0xff]   ;;  %v8309_v30 = vshll.u32 %v15775_v11, 16 }
  0xdd   :  { %v2128_v38 = vshrl.u32 %v15776_v22, 16  ;;  %v2131_v27 = vshll.u32 %v15776_v22, 16  ;;  %v8318_v45 = vshll.u32 %v15777_v28, 16  ;;  %v8308_v46 = vrot.slane %v8306_v26, 1  ;;  %v15791_v22 = vld [vmem:[%s19562_s1 + $0x118] sm:$0xff]  }
  0xde   :  { %v8284_v1 = vrot.slane %v8282_v53, 2  ;;  %v8290_v15 = vrot.slane %v8288_v0, 1  ;;  %v2140_v48 = vshll.u32 %v15780_v31, 16  ;;  %v2108_v49 = vsel %vm1405_vm2, %v2098_v20, %v2107_v29  ;;  %v15786_v0 = vld [vmem:[%s19563_s0 + $0x58] sm:$0xff]  }
  0xdf   :  { %v8324_v53 = vshrl.u32 %v15781_v37, 16  ;;  %v2116_v56 = vor.u32 %v2115_v24, %v2112_v21  ;;  %v2130_v57 = vrot.slane %v2128_v38, 1  ;;  %v2149_v5 = vshll.u32 %v15782_v55, 16  ;;  %v15788_v21 = vld [vmem:[%s19563_s0 + $0x60] sm:$0xff]  }
  0xe0   :  { %v8285_v23 = vor.u32 %v8284_v1, %v8281_v61  ;;  %v8320_v61 = vrot.slane %v8318_v45, 2  ;;  %v2142_v1 = vrot.slane %v2140_v48, 2  ;;  %v2155_v14 = vshrl.u32 %v15786_v0, 16  ;;  %v15793_v38 = vld [vmem:[%s19563_s0 + $0x11c] sm:$0xff]   ;;  %v15795_v48 = vld [vmem:[%s19563_s0 + $0x124] sm:$0xff]  }
  0xe1   :  { %v8326_v2 = vrot.slane %v8324_v53, 1  ;;  %v8342_v17 = vshrl.u32 %v15787_v4, 16  ;;  %v8345_v18 = vshll.u32 %v15787_v4, 16  ;;  %v2151_v20 = vrot.slane %v2149_v5, 2 }
  0xe2   :  { %14212 = vmatmul.mubr.bf16.gmra.mrb[24].mxu0 %v1539_v10  ;;  %v8297_v10 = vshrl.u32 %v15771_v42, 16  ;;  %v8286_v41 = vsel %vm1405_vm2, %v8276_v54, %v8285_v23  ;;  %v8327_v42 = vshll.u32 %v15781_v37, 16  ;;  %v15792_v37 = vld [vmem:[%s19563_s0 + $0x68] sm:$0xff]  }
  0xe3   :  { %14680 = vmatmul.mubr.bf16.gmra.mrb[24].mxu1 %v7727_v12  ;;  %14215 = vmatprep.mubr.bf16.mxu0 %v1548_v13  ;;  %v2090_v12 = vsel %vm1405_vm2, %v2081_v58, %v2089_v39  ;;  %v8277_v13 = vsel %vm1405_vm2, %v8268_v62, %v8276_v54  ;;  %v2133_v39 = vrot.slane %v2131_v27, 2  ;;  %v15779_v58 = vld [vmem:[%s19562_s1 + $0x108] sm:$0xff]   ;;  %v2125_v54 = vor.u32 %v2124_v35, %v2121_v34 }
  0xe4   :  { %14683 = vmatprep.mubr.bf16.mxu1 %v7736_v16  ;;  %v8293_v16 = vrot.slane %v8291_v3, 2  ;;  %v8299_v25 = vrot.slane %v8297_v10, 1  ;;  %v15783_v62 = vld [vmem:[%s19563_s0 + $0x104] sm:$0xff]   ;;  %v2146_v3 = vshrl.u32 %v15782_v55, 16  ;;  %v8344_v34 = vrot.slane %v8342_v17, 1 }
  0xe5   :  { %v8336_v10 = vshll.u32 %v15783_v62, 16  ;;  %v2126_v11 = vsel %vm1405_vm2, %v2116_v56, %v2125_v54  ;;  %v8347_v35 = vrot.slane %v8345_v18, 2  ;;  %v2164_v27 = vshrl.u32 %v15788_v21, 16  ;;  %v15800_v17 = vld [vmem:[%s19563_s0 + $0x80] sm:$0xff]   ;;  %v15801_v18 = vld [vmem:[%s19563_s0 + $0x134] sm:$0xff]  }
  0xe6   :  { %v8294_v32 = vor.u32 %v8293_v16, %v8290_v15  ;;  %v8303_v59 = vor.u32 %v8302_v33, %v8299_v25  ;;  %v2158_v15 = vshll.u32 %v15786_v0, 16  ;;  %v2148_v19 = vrot.slane %v2146_v3, 1 }
  0xe7   :  { %v8338_v25 = vrot.slane %v8336_v10, 2 }
  0xe8   :  { %v2152_v53 = vor.u32 %v2151_v20, %v2148_v19 }
  0xea   :  { %14216 = vmatmul.mubr.bf16.gmra.mrb[28].mxu0 %v1557_v44  ;;  %v8315_v44 = vshrl.u32 %v15777_v28, 16 }
  0xeb   :  { %14684 = vmatmul.mubr.bf16.gmra.mrb[28].mxu1 %v7745_v47  ;;  %14219 = vmatprep.mubr.bf16.mxu0 %v1566_v52  ;;  %v8311_v47 = vrot.slane %v8309_v30, 2  ;;  %v2137_v52 = vshrl.u32 %v15780_v31, 16  ;;  %v2160_v30 = vrot.slane %v2158_v15, 2  ;;  %v15789_v31 = vld [vmem:[%s19563_s0 + $0x114] sm:$0xff]  }
  0xec   :  { %14687 = vmatprep.mubr.bf16.mxu1 %v7754_v50  ;;  %v8295_v50 = vsel %vm1405_vm2, %v8285_v23, %v8294_v32  ;;  %v8317_v60 = vrot.slane %v8315_v44, 1  ;;  %v2134_v23 = vor.u32 %v2133_v39, %v2130_v57  ;;  %v15794_v44 = vld [vmem:[%s19563_s0 + $0x70] sm:$0xff]   ;;  %v2166_v57 = vrot.slane %v2164_v27, 1 }
  0xed   :  { %v2139_v63 = vrot.slane %v2137_v52, 1  ;;  %v8354_v52 = vshll.u32 %v15789_v31, 16  ;;  %v2173_v39 = vshrl.u32 %v15792_v37, 16 }
  0xee   :  { %v8321_v26 = vor.u32 %v8320_v61, %v8317_v60  ;;  %v8363_v60 = vshll.u32 %v15793_v38, 16  ;;  %v2182_v61 = vshrl.u32 %v15794_v44, 16 }
  0xef   :  { %v2143_v28 = vor.u32 %v2142_v1, %v2139_v63  ;;  %v8348_v63 = vor.u32 %v8347_v35, %v8344_v34  ;;  %v15798_v1 = vld [vmem:[%s19563_s0 + $0x78] sm:$0xff]   ;;  %v8387_v34 = vshrl.u32 %v15801_v18, 16  ;;  %v8390_v35 = vshll.u32 %v15801_v18, 16  ;;  %v15812_v18 = vld [vmem:[%s19563_s0 + $0x154] ss:$0 sps:$4 sm:$0x33]  }
  0xf0   :  { %v2191_v20 = vshrl.u32 %v15798_v1, 16 }
  0xf1   :  { %v2153_v3 = vsel %vm1405_vm2, %v2143_v28, %v2152_v53 }
  0xf2   :  { %14220 = vmatmul.mubr.bf16.gmra.mrb[32].mxu0 %v1575_v8  ;;  %v2117_v8 = vsel %vm1405_vm2, %v2107_v29, %v2116_v56  ;;  %v2157_v29 = vrot.slane %v2155_v14, 1  ;;  %v2193_v27 = vrot.slane %v2191_v20, 1 }
  0xf3   :  { %14688 = vmatmul.mubr.bf16.gmra.mrb[32].mxu1 %v7763_v9  ;;  %14239 = vmatprep.mubr.bf16.mxu0 %v2090_v12  ;;  %v8304_v9 = vsel %vm1405_vm2, %v8294_v32, %v8303_v59  ;;  %v8329_v12 = vrot.slane %v8327_v42, 2  ;;  %v15790_v32 = vld [vmem:[%s19562_s1 + $0x120] sm:$0xff]   ;;  %v2185_v42 = vshll.u32 %v15794_v44, 16 }
  0xf4   :  { %14707 = vmatprep.mubr.bf16.mxu1 %v8277_v13  ;;  %v15784_v13 = vld [vmem:[%s19562_s1 + $0x118] sm:$0xff]   ;;  %v16910_v56 = vor.u32 %v2160_v30, %v2157_v29  ;;  %v2200_v30 = vshrl.u32 %v15800_v17, 16 }
  0xf5   :  { %v8330_v33 = vor.u32 %v8329_v12, %v8326_v2  ;;  %v15802_v2 = vld [vmem:[%s19562_s1 + $0x130] sm:$0xff]   ;;  %v2187_v14 = vrot.slane %v2185_v42, 2 }
  0xf6   :  { %v2162_v5 = vsel %vm1405_vm2, %v2152_v53, %v16910_v56  ;;  %v15799_v12 = vld [vmem:[%s19563_s0 + $0x12c] sm:$0xff]   ;;  %v16958_v53 = vld [vmem:[%s19562_s1 + $0x140] sm:$0xff]  }
  0xfa   :  { %14240 = vmatmul.mubr.bf16.vlgmr.msra.gmra.mrb[0].mxu0 %v2099_v40  ;;  %v15797_v40 = vld [vmem:[%s19562_s1 + $0x120] sm:$0xff]  }
  0xfb   :  { %14708 = vmatmul.mubr.bf16.vlgmr.msra.gmra.mrb[0].mxu1 %v8286_v41  ;;  %14276 = vmatpush3.bf16.msra.mxu0 %v16757_v36  ;;  %v8312_v36 = vor.u32 %v8311_v47, %v8308_v46  ;;  %v2135_v41 = vsel %vm1405_vm2, %v2125_v54, %v2134_v23  ;;  %v2144_v46 = vsel %vm1405_vm2, %v2134_v23, %v2143_v28  ;;  %v8351_v47 = vshrl.u32 %v15789_v31, 16  ;;  %v15803_v31 = vld [vmem:[%s19563_s0 + $0x88] sm:$0xff]  }
  0xfc   :  { %14243 = vmatprep.mubr.bf16.mxu0 %v2108_v49  ;;  %14711 = vmatprep.mubr.bf16.mxu1 %v8295_v50  ;;  %v15796_v49 = vld [vmem:[%s19562_s1 + $0x128] sm:$0xff]   ;;  %v8331_v50 = vsel %vm1405_vm2, %v8321_v26, %v8330_v33  ;;  %v8372_v54 = vshll.u32 %v15795_v48, 16  ;;  %v2194_v23 = vshll.u32 %v15798_v1, 16 }
  0xfd   :  { %14277 = vmatprep.subr.bf16.mxu0 %v15772_v43  ;;  %14744 = vmatpush3.bf16.msra.mxu1 %v16782_v7  ;;  %v8333_v7 = vshrl.u32 %v15783_v62, 16  ;;  %v8313_v16 = vsel %vm1405_vm2, %v8303_v59, %v8312_v36  ;;  %v8322_v45 = vsel %vm1405_vm2, %v8312_v36, %v8321_v26  ;;  %v8360_v59 = vshrl.u32 %v15793_v38, 16 }
  0xfe   :  { %14745 = vmatprep.subr.bf16.mxu1 %v15779_v58  ;;  %v8369_v62 = vshrl.u32 %v15795_v48, 16  ;;  %v8353_v36 = vrot.slane %v8351_v47, 1  ;;  %v8381_v26 = vshll.u32 %v15799_v12, 16  ;;  %v2209_v47 = vshrl.u32 %v15803_v31, 16 }
  0xff   :  { %14278 = vmatpush3.bf16.msra.mxu0 %v15772_v43  ;;  %v8335_v24 = vrot.slane %v8333_v7, 1  ;;  %v2167_v43 = vshll.u32 %v15788_v21, 16  ;;  %v8362_v10 = vrot.slane %v8360_v59, 1  ;;  %v15809_v21 = vld [vmem:[%s19562_s1 + $0x138] sm:$0xff]  }
 0x100   :  { %14279 = vmatprep.subr.bf16.mxu0 %v15778_v51  ;;  %v8371_v15 = vrot.slane %v8369_v62, 1 }
 0x101   :  { %14746 = vmatpush3.bf16.msra.mxu1 %v15779_v58  ;;  %v8339_v55 = vor.u32 %v8338_v25, %v8335_v24  ;;  %v15805_v58 = vld [vmem:[%s19562_s1 + $0x128] sm:$0xff]   ;;  %v2169_v0 = vrot.slane %v2167_v43, 2  ;;  %v15814_v24 = vld [vmem:[%s19562_s1 + $0x138] sm:$0xff]   ;;  %v8378_v25 = vshrl.u32 %v15799_v12, 16  ;;  %v8383_v43 = vrot.slane %v8381_v26, 2 }
 0x102   :  { %14244 = vmatmul.mubr.bf16.gmra.mrb[4].mxu0 %v2117_v8  ;;  %14747 = vmatprep.subr.bf16.mxu1 %v15785_v6  ;;  %v15813_v8 = vld [vmem:[%s19562_s1 + $0x130] sm:$0xff]  }
 0x103   :  { %14712 = vmatmul.mubr.bf16.gmra.mrb[4].mxu1 %v8304_v9  ;;  %14247 = vmatprep.mubr.bf16.mxu0 %v2126_v11  ;;  %v8340_v4 = vsel %vm1405_vm2, %v8330_v33, %v8339_v55  ;;  %v2175_v9 = vrot.slane %v2173_v39, 1  ;;  %v8365_v11 = vrot.slane %v8363_v60, 2  ;;  %v8349_v19 = vsel %vm1405_vm2, %v8339_v55, %v8348_v63 }
 0x104   :  { %14715 = vmatprep.mubr.bf16.mxu1 %v8313_v16  ;;  %14280 = vmatpush3.bf16.msra.mxu0 %v15778_v51  ;;  %v2176_v51 = vshll.u32 %v15792_v37, 16  ;;  %v8374_v16 = vrot.slane %v8372_v54, 2  ;;  %v2203_v33 = vshll.u32 %v15800_v17, 16  ;;  %v15804_v37 = vld [vmem:[%s19563_s0 + $0x13c] sm:$0xff]   ;;  %v8392_v55 = vrot.slane %v8390_v35, 2 }
 0x105   :  { %14281 = vmatprep.subr.bf16.mxu0 %v15784_v13  ;;  %14748 = vmatpush3.bf16.msra.mxu1 %v15785_v6  ;;  %v8356_v6 = vrot.slane %v8354_v52, 2  ;;  %v8399_v39 = vshll.u32 %v15804_v37, 16  ;;  %v2211_v60 = vrot.slane %v2209_v47, 1  ;;  %v15808_v54 = vld [vmem:[%s19563_s0 + $0x98] sm:$0xff]   ;;  %v8423_v35 = vshrl.u32 %v15812_v18, 16 }
 0x106   :  { %14749 = vmatprep.subr.bf16.mxu1 %v15791_v22  ;;  %v2178_v7 = vrot.slane %v2176_v51, 2  ;;  %v2205_v48 = vrot.slane %v2203_v33, 2  ;;  %v15806_v51 = vld [vmem:[%s19563_s0 + $0x90] sm:$0xff]   ;;  %v2230_v12 = vshll.u32 %v15808_v54, 16  ;;  %v15816_v47 = vld [vmem:[%s19563_s0 + $0x18] sm:$0xff]  }
 0x107   :  { %v8357_v28 = vor.u32 %v8356_v6, %v8353_v36  ;;  %v8401_v1 = vrot.slane %v8399_v39, 2  ;;  %v2218_v6 = vshrl.u32 %v15806_v51, 16 }
 0x108   :  { %14282 = vmatpush3.bf16.msra.mxu0 %v15784_v13  ;;  %v2184_v13 = vrot.slane %v2182_v61, 1  ;;  %v2179_v29 = vor.u32 %v2178_v7, %v2175_v9  ;;  %v15807_v61 = vld [vmem:[%s19563_s0 + $0x144] sm:$0xff]   ;;  %v2232_v26 = vrot.slane %v2230_v12, 2 }
 0x109   :  { %14283 = vmatprep.subr.bf16.mxu0 %v15790_v32  ;;  %14750 = vmatpush3.bf16.msra.mxu1 %v15791_v22  ;;  %v2170_v22 = vor.u32 %v2169_v0, %v2166_v57  ;;  %v8358_v44 = vsel %vm1405_vm2, %v8348_v63, %v8357_v28  ;;  %v15810_v0 = vld [vmem:[%s19563_s0 + $0x14c] sm:$0xff]   ;;  %v8405_v9 = vshrl.u32 %v15807_v61, 16  ;;  %v8408_v7 = vshll.u32 %v15807_v61, 16 }
 0x10a   :  { %14248 = vmatmul.mubr.bf16.gmra.mrb[8].mxu0 %v2135_v41  ;;  %14751 = vmatprep.subr.bf16.mxu1 %v15797_v40  ;;  %v8380_v41 = vrot.slane %v8378_v25, 1  ;;  %v2188_v57 = vor.u32 %v2187_v14, %v2184_v13  ;;  %v15811_v13 = vld [vmem:[%s19563_s0 + $0xa0] ss:$0 sps:$4 sm:$0x33]   ;;  %v8417_v17 = vshll.u32 %v15810_v0, 16  ;;  %v2220_v20 = vrot.slane %v2218_v6, 1 }
 0x10b   :  { %14716 = vmatmul.mubr.bf16.gmra.mrb[8].mxu1 %v8322_v45  ;;  %14251 = vmatprep.mubr.bf16.mxu0 %v2144_v46  ;;  %v2171_v38 = vsel %vm1405_vm2, %v16910_v56, %v2170_v22  ;;  %v2180_v45 = vsel %vm1405_vm2, %v2170_v22, %v2179_v29  ;;  %v2202_v46 = vrot.slane %v2200_v30, 1  ;;  %v8396_v56 = vshrl.u32 %v15804_v37, 16 }
 0x10c   :  { %14719 = vmatprep.mubr.bf16.mxu1 %v8331_v50  ;;  %14284 = vmatpush3.bf16.msra.mxu0 %v15790_v32  ;;  %v8366_v32 = vor.u32 %v8365_v11, %v8362_v10  ;;  %v2212_v50 = vshll.u32 %v15803_v31, 16  ;;  %v8384_v42 = vor.u32 %v8383_v43, %v8380_v41  ;;  %v2189_v36 = vsel %vm1405_vm2, %v2179_v29, %v2188_v57 }
 0x10d   :  { %14285 = vmatprep.subr.bf16.mxu0 %v15796_v49  ;;  %14752 = vmatpush3.bf16.msra.mxu1 %v15797_v40  ;;  %v2196_v40 = vrot.slane %v2194_v23, 2  ;;  %v8398_v63 = vrot.slane %v8396_v56, 1  ;;  %v2206_v10 = vor.u32 %v2205_v48, %v2202_v46  ;;  %v2227_v11 = vshrl.u32 %v15808_v54, 16  ;;  %v15815_v48 = vld [vmem:[%s19563_s0 + $0x10] sm:$0xfc]  }
 0x10e   :  { %14753 = vmatprep.subr.bf16.mxu1 %v15805_v58  ;;  %v8367_v52 = vsel %vm1405_vm2, %v8357_v28, %v8366_v32  ;;  %v2214_v62 = vrot.slane %v2212_v50, 2  ;;  %v8407_v22 = vrot.slane %v8405_v9, 1  ;;  %v8410_v23 = vrot.slane %v8408_v7, 2  ;;  %v15821_v54 = vld [vmem:[%s19563_s0 + $0xd4] sm:$0xff]   ;;  %v15825_v7 = vld [vmem:[%s19563_s0 + $0xe4] sm:$0xff]  }
 0x10f   :  { %v2197_v59 = vor.u32 %v2196_v40, %v2193_v27  ;;  %v2229_v25 = vrot.slane %v2227_v11, 1  ;;  %v8419_v31 = vrot.slane %v8417_v17, 2  ;;  %v2236_v33 = vshrl.u32 %v15811_v13, 16  ;;  %v15824_v9 = vld [vmem:[%s19563_s0 + $0x30] sm:$0xff]   ;;  %v15826_v11 = vld [vmem:[%s19562_s1 + $0x148] sm:$0xff]  }
 0x110   :  { %14286 = vmatpush3.bf16.msra.mxu0 %v15796_v49  ;;  %v8389_v49 = vrot.slane %v8387_v34, 1  ;;  %v2239_v34 = vshll.u32 %v15811_v13, 16  ;;  %v8426_v37 = vshll.u32 %v15812_v18, 16  ;;  %v8411_v27 = vor.u32 %v8410_v23, %v8407_v22  ;;  %v15828_v13 = vld [vmem:[%s19563_s0 + $0x38] sm:$0xff]   ;;  %v15833_v17 = vld [vmem:[%s19562_s1 + $0x148] sm:$0xff]   ;;  %v15830_v23 = vld [vmem:[%s19563_s0 + $0x40] sm:$0xff]  }
 0x111   :  { %14287 = vmatprep.subr.bf16.mxu0 %v15802_v2  ;;  %14754 = vmatpush3.bf16.msra.mxu1 %v15805_v58  ;;  %v8375_v58 = vor.u32 %v8374_v16, %v8371_v15  ;;  %v2215_v15 = vor.u32 %v2214_v62, %v2211_v60  ;;  %v8414_v16 = vshrl.u32 %v15810_v0, 16  ;;  %v2233_v40 = vor.u32 %v2232_v26, %v2229_v25  ;;  %v15835_v26 = vld [vmem:[%s19563_s0 + $0xfc] sm:$0xff]  }
 0x112   :  { %14252 = vmatmul.mubr.bf16.gmra.mrb[12].mxu0 %v2153_v3  ;;  %14755 = vmatprep.subr.bf16.mxu1 %v15813_v8  ;;  %v8393_v14 = vor.u32 %v8392_v55, %v8389_v49  ;;  %v2238_v43 = vrot.slane %v2236_v33, 1  ;;  %v8428_v46 = vrot.slane %v8426_v37, 2  ;;  %v15817_v55 = vld [vmem:[%s19563_s0 + $0xc4] sm:$0xfc]   ;;  %v2750_v18 = vrot.slane %v15824_v9, 2 }
 0x113   :  { %14720 = vmatmul.mubr.bf16.gmra.mrb[12].mxu1 %v8340_v4  ;;  %14255 = vmatprep.mubr.bf16.mxu0 %v2162_v5  ;;  %v8376_v3 = vsel %vm1405_vm2, %v8366_v32, %v8375_v58  ;;  %v2198_v4 = vsel %vm1405_vm2, %v2188_v57, %v2197_v59  ;;  %v8385_v5 = vsel %vm1405_vm2, %v8375_v58, %v8384_v42  ;;  %v8416_v30 = vrot.slane %v8414_v16, 1  ;;  %v15818_v57 = vld [vmem:[%s19563_s0 + $0xcc] sm:$0xff]   ;;  %v17144_v9 = vld [vmem:[%s19562_s1 + $0x180] sm:$0xff]  }
 0x114   :  { %14723 = vmatprep.mubr.bf16.mxu1 %v8349_v19  ;;  %14288 = vmatpush3.bf16.msra.mxu0 %v15802_v2  ;;  %v16977_v2 = vld [vmem:[%s19562_s1 + $0x140] sm:$0xff]   ;;  %v8402_v19 = vor.u32 %v8401_v1, %v8398_v63  ;;  %v8394_v28 = vsel %vm1405_vm2, %v8384_v42, %v8393_v14  ;;  %v2216_v29 = vsel %vm1405_vm2, %v2206_v10, %v2215_v15  ;;  %v2743_v58 = vrot.slane %v15815_v48, 2  ;;  %v15829_v16 = vld [vmem:[%s19563_s0 + $0xec] sm:$0xff]  }
 0x115   :  { %14289 = vmatprep.subr.bf16.mxu0 %v15809_v21  ;;  %14756 = vmatpush3.bf16.msra.mxu1 %v15813_v8  ;;  %v2221_v8 = vshll.u32 %v15806_v51, 16  ;;  %v8420_v41 = vor.u32 %v8419_v31, %v8416_v30  ;;  %v8928_v60 = vrot.slane %v15817_v55, 2  ;;  %v8929_v61 = vrot.slane %v15818_v57, 2  ;;  %v15819_v42 = vld [vmem:[%s19563_s0 + $0x20] sm:$0xff]   ;;  %v15838_v30 = vld [vmem:[%s19562_s1 + $0x158] sm:$0xff]   ;;  %v15850_v48 = vld [vmem:[%s19562_s1 + $0x168] sm:$0xff]  }
 0x116   :  { %14757 = vmatprep.subr.bf16.mxu1 %v15814_v24  ;;  %v8403_v32 = vsel %vm1405_vm2, %v8393_v14, %v8402_v19  ;;  %v8412_v49 = vsel %vm1405_vm2, %v8402_v19, %v8411_v27  ;;  %v8935_v19 = vrot.slane %v15825_v7, 2  ;;  %v8937_v22 = vrot.slane %v15829_v16, 2 }
 0x117   :  { %v8421_v56 = vsel %vm1405_vm2, %v8411_v27, %v8420_v41  ;;  %v8930_v1 = vsel %vm2742_vm3, %v8928_v60, %v8929_v61  ;;  %v2754_v33 = vrot.slane %v15830_v23, 2  ;;  %v8941_v37 = vrot.slane %v15835_v26, 2  ;;  %v15836_v27 = vld [vmem:[%s19563_s0 + $0x50] sm:$0xff]   ;;  %v15857_v23 = vld [vmem:[%s19563_s0 + $0x88] sm:$0xff]  }
 0x118   :  { %14290 = vmatpush3.bf16.msra.mxu0 %v15809_v21  ;;  %v2223_v21 = vrot.slane %v2221_v8, 2  ;;  %v8938_v31 = vsel %vm2742_vm3, %v8935_v19, %v8937_v22  ;;  %v15843_v60 = vld [vmem:[%s19563_s0 + $0x114] sm:$0xff]  }
 0x119   :  { %14758 = vmatpush3.bf16.msra.mxu1 %v15814_v24  ;;  %14327 = vmatprep.subr.bf16.mxu0 %v16958_v53  ;;  %v2207_v24 = vsel %vm1405_vm2, %v2197_v59, %v2206_v10  ;;  %v2744_v59 = vrot.slane %v15816_v47, 2  ;;  %v15841_v47 = vld [vmem:[%s19563_s0 + $0x10c] sm:$0xff]  }
 0x11a   :  { %14256 = vmatmul.mubr.bf16.gmra.mrb[16].mxu0 %v2171_v38  ;;  %14795 = vmatprep.subr.bf16.mxu1 %v16977_v2  ;;  %v2224_v38 = vor.u32 %v2223_v21, %v2220_v20  ;;  %v2752_v20 = vrot.slane %v15828_v13, 2  ;;  %v15832_v21 = vld [vmem:[%s19562_s1 + $0x150] sm:$0xff]   ;;  %v8945_v57 = vrot.slane %v15841_v47, 2 }
 0x11b   :  { %14724 = vmatmul.mubr.bf16.gmra.mrb[16].mxu1 %v8358_v44  ;;  %14259 = vmatprep.mubr.bf16.mxu0 %v2180_v45  ;;  %v2241_v44 = vrot.slane %v2239_v34, 2  ;;  %v8425_v45 = vrot.slane %v8423_v35, 1  ;;  %v2745_v0 = vsel %vm2742_vm3, %v2743_v58, %v2744_v59  ;;  %v15867_v58 = vld [vmem:[%s19562_s1 + $0x170] sm:$0xff]  }
 0x11c   :  { %14727 = vmatprep.mubr.bf16.mxu1 %v8367_v52  ;;  %v2225_v52 = vsel %vm1405_vm2, %v2215_v15, %v2224_v38  ;;  %v2234_v50 = vsel %vm1405_vm2, %v2224_v38, %v2233_v40  ;;  %v15844_v38 = vld [vmem:[%s19562_s1 + $0x160] sm:$0xff]  }
 0x11d   :  { %v2242_v39 = vor.u32 %v2241_v44, %v2238_v43  ;;  %v8429_v51 = vor.u32 %v8428_v46, %v8425_v45  ;;  %v15837_v43 = vld [vmem:[%s19563_s0 + $0x104] sm:$0xff]   ;;  %v15840_v44 = vld [vmem:[%s19563_s0 + $0x58] sm:$0xff]  }
 0x11e   :  { %v8943_v55 = vrot.slane %v15837_v43, 2 }
 0x11f   :  { %v2243_v62 = vsel %vm1405_vm2, %v2233_v40, %v2242_v39  ;;  %v8430_v63 = vsel %vm1405_vm2, %v8420_v41, %v8429_v51  ;;  %v15851_v40 = vld [vmem:[%s19562_s1 + $0x160] sm:$0xff]   ;;  %v2755_v41 = vsel %vm2742_vm3, %v2752_v20, %v2754_v33  ;;  %v15856_v51 = vld [vmem:[%s19562_s1 + $0x170] sm:$0xff]  }
 0x120   :  { %v15842_v39 = vld [vmem:[%s19563_s0 + $0x60] sm:$0xff]  }
 0x122   :  { %14260 = vmatmul.mubr.bf16.gmra.mrb[20].mxu0 %v2189_v36  ;;  %v15822_v36 = vld [vmem:[%s19563_s0 + $0x28] sm:$0xff]  }
 0x123   :  { %14728 = vmatmul.mubr.bf16.gmra.mrb[20].mxu1 %v8376_v3  ;;  %14263 = vmatprep.mubr.bf16.mxu0 %v2198_v4  ;;  %v15823_v3 = vld [vmem:[%s19563_s0 + $0xdc] sm:$0xff]   ;;  %v2746_v4 = vrot.slane %v15819_v42, 2  ;;  %v2748_v6 = vrot.slane %v15822_v36, 2  ;;  %v8944_v42 = vsel %vm2742_vm3, %v8941_v37, %v8943_v55 }
 0x124   :  { %14731 = vmatprep.mubr.bf16.mxu1 %v8385_v5  ;;  %v8931_v5 = vrot.slane %v15821_v54, 2  ;;  %v8933_v8 = vrot.slane %v15823_v3, 2  ;;  %v8946_v54 = vsel %vm2742_vm3, %v8943_v55, %v8945_v57  ;;  %v15868_v36 = vld [vmem:[%s19562_s1 + $0x178] sm:$0xff]   ;;  %v8947_v3 = vrot.slane %v15843_v60, 2 }
 0x125   :  { %v2747_v10 = vsel %vm2742_vm3, %v2744_v59, %v2746_v4  ;;  %v2749_v14 = vsel %vm2742_vm3, %v2746_v4, %v2748_v6  ;;  %v2751_v25 = vsel %vm2742_vm3, %v2748_v6, %v2750_v18  ;;  %v15848_v6 = vld [vmem:[%s19563_s0 + $0x70] sm:$0xff]  }
 0x126   :  { %v8932_v12 = vsel %vm2742_vm3, %v8929_v61, %v8931_v5  ;;  %v8934_v15 = vsel %vm2742_vm3, %v8931_v5, %v8933_v8  ;;  %v15846_v61 = vld [vmem:[%s19563_s0 + $0x68] sm:$0xff]   ;;  %v2766_v16 = vrot.slane %v15848_v6, 2 }
 0x127   :  { %v2764_v4 = vrot.slane %v15846_v61, 2 }
 0x12a   :  { %14264 = vmatmul.mubr.bf16.gmra.mrb[24].mxu0 %v2207_v24  ;;  %v15839_v24 = vld [vmem:[%s19562_s1 + $0x150] sm:$0xff]  }
 0x12b   :  { %14732 = vmatmul.mubr.bf16.gmra.mrb[24].mxu1 %v8394_v28  ;;  %14267 = vmatprep.mubr.bf16.mxu0 %v2216_v29  ;;  %v8936_v28 = vsel %vm2742_vm3, %v8933_v8, %v8935_v19  ;;  %v2753_v29 = vsel %vm2742_vm3, %v2750_v18, %v2752_v20  ;;  %v17139_v8 = vld [vmem:[%s19562_s1 + $0x180] sm:$0xff]  }
 0x12c   :  { %14735 = vmatprep.mubr.bf16.mxu1 %v8403_v32  ;;  %v15845_v32 = vld [vmem:[%s19562_s1 + $0x158] sm:$0xff]   ;;  %v15854_v20 = vld [vmem:[%s19563_s0 + $0x80] sm:$0xff]  }
 0x12d   :  { %v2770_v26 = vrot.slane %v15854_v20, 2 }
 0x132   :  { %14268 = vmatmul.mubr.bf16.gmra.mrb[28].mxu0 %v2225_v52 }
 0x133   :  { %14736 = vmatmul.mubr.bf16.gmra.mrb[28].mxu1 %v8412_v49  ;;  %14271 = vmatprep.mubr.bf16.mxu0 %v2234_v50  ;;  %v15859_v49 = vld [vmem:[%s19562_s1 + $0x168] sm:$0xff]   ;;  %v2758_v50 = vrot.slane %v15836_v27, 2 }
 0x134   :  { %14739 = vmatprep.mubr.bf16.mxu1 %v8421_v56  ;;  %v2760_v56 = vrot.slane %v15840_v44, 2  ;;  %v17207_v27 = vld [vmem:[%s19563_s0 + $0x14c] sm:$0xff]   ;;  %v15871_v44 = vld [vmem:[%s19563_s0 + $0xc4] sm:$0xfc]  }
 0x13a   :  { %14272 = vmatmul.mubr.bf16.gmra.mrb[32].mxu0 %v2243_v62  ;;  %v2761_v62 = vsel %vm2742_vm3, %v2758_v50, %v2760_v56 }
 0x13b   :  { %14740 = vmatmul.mubr.bf16.gmra.mrb[32].mxu1 %v8430_v63  ;;  %14291 = vmatprep.mubr.bf16.mxu0 %v2745_v0  ;;  %v15847_v63 = vld [vmem:[%s19563_s0 + $0x11c] sm:$0xff]  }
 0x13c   :  { %14759 = vmatprep.mubr.bf16.mxu1 %v8930_v1  ;;  %v15863_v0 = vld [vmem:[%s19562_s1 + $0x178] sm:$0xff]   ;;  %v2762_v1 = vrot.slane %v15842_v39, 2  ;;  %v8949_v5 = vrot.slane %v15847_v63, 2 }
 0x13e   :  { %v2763_v7 = vsel %vm2742_vm3, %v2760_v56, %v2762_v1  ;;  %v2765_v13 = vsel %vm2742_vm3, %v2762_v1, %v2764_v4  ;;  %v8961_v56 = vrot.slane %v17207_v27, 2 }
 0x142   :  { %14292 = vmatmul.mubr.bf16.vlgmr.msra.gmra.mrb[0].mxu0 %v2747_v10  ;;  %v15849_v10 = vld [vmem:[%s19563_s0 + $0x124] sm:$0xff]  }
 0x143   :  { %14760 = vmatmul.mubr.bf16.vlgmr.msra.gmra.mrb[0].mxu1 %v8932_v12  ;;  %14328 = vmatpush3.bf16.msra.mxu0 %v16958_v53  ;;  %v15831_v53 = vld [vmem:[%s19563_s0 + $0xf4] sm:$0xff]   ;;  %v8948_v12 = vsel %vm2742_vm3, %v8945_v57, %v8947_v3  ;;  %v15873_v57 = vld [vmem:[%s19563_s0 + $0x20] sm:$0xff]  }
 0x144   :  { %14295 = vmatprep.mubr.bf16.mxu0 %v2749_v14  ;;  %14763 = vmatprep.mubr.bf16.mxu1 %v8934_v15  ;;  %v8939_v34 = vrot.slane %v15831_v53, 2  ;;  %v8950_v14 = vsel %vm2742_vm3, %v8947_v3, %v8949_v5  ;;  %v15853_v15 = vld [vmem:[%s19563_s0 + $0x12c] sm:$0xff]  }
 0x145   :  { %14329 = vmatprep.subr.bf16.mxu0 %v15826_v11  ;;  %14796 = vmatpush3.bf16.msra.mxu1 %v16977_v2  ;;  %v15834_v2 = vld [vmem:[%s19563_s0 + $0x48] sm:$0xff]   ;;  %v8953_v19 = vrot.slane %v15853_v15, 2 }
 0x146   :  { %14797 = vmatprep.subr.bf16.mxu1 %v15833_v17  ;;  %v2756_v35 = vrot.slane %v15834_v2, 2  ;;  %v8940_v45 = vsel %vm2742_vm3, %v8937_v22, %v8939_v34  ;;  %v8942_v52 = vsel %vm2742_vm3, %v8939_v34, %v8941_v37  ;;  %v2767_v22 = vsel %vm2742_vm3, %v2764_v4, %v2766_v16  ;;  %v17192_v34 = vld [vmem:[%s19563_s0 + $0x98] sm:$0xff]   ;;  %v17202_v37 = vld [vmem:[%s19563_s0 + $0x154] ss:$0 sps:$4 sm:$0x33]   ;;  %v15876_v3 = vld [vmem:[%s19563_s0 + $0x28] sm:$0xff]  }
 0x147   :  { %14330 = vmatpush3.bf16.msra.mxu0 %v15826_v11  ;;  %v15852_v11 = vld [vmem:[%s19563_s0 + $0x78] sm:$0xff]   ;;  %v2776_v55 = vrot.slane %v17192_v34, 2  ;;  %v3306_v20 = vshrl.u32 %v15876_v3, 16 }
 0x148   :  { %14331 = vmatprep.subr.bf16.mxu0 %v15832_v21  ;;  %v2757_v46 = vsel %vm2742_vm3, %v2754_v33, %v2756_v35  ;;  %v2759_v59 = vsel %vm2742_vm3, %v2756_v35, %v2758_v50  ;;  %v2768_v18 = vrot.slane %v15852_v11, 2  ;;  %v2772_v33 = vrot.slane %v15857_v23, 2  ;;  %v17197_v35 = vld [vmem:[%s19563_s0 + $0xa0] ss:$0 sps:$4 sm:$0x33]  }
 0x149   :  { %14798 = vmatpush3.bf16.msra.mxu1 %v15833_v17  ;;  %v8951_v17 = vrot.slane %v15849_v10, 2  ;;  %v2778_v39 = vrot.slane %v17197_v35, 2  ;;  %v3308_v34 = vrot.slane %v3306_v20, 2 }
 0x14a   :  { %14296 = vmatmul.mubr.bf16.gmra.mrb[4].mxu0 %v2751_v25  ;;  %14799 = vmatprep.subr.bf16.mxu1 %v15839_v24  ;;  %v15858_v25 = vld [vmem:[%s19563_s0 + $0x13c] sm:$0xff]   ;;  %v2773_v47 = vsel %vm2742_vm3, %v2770_v26, %v2772_v33 }
 0x14b   :  { %14764 = vmatmul.mubr.bf16.gmra.mrb[4].mxu1 %v8936_v28  ;;  %14299 = vmatprep.mubr.bf16.mxu0 %v2753_v29  ;;  %v8952_v53 = vsel %vm2742_vm3, %v8949_v5, %v8951_v17  ;;  %v8954_v2 = vsel %vm2742_vm3, %v8951_v17, %v8953_v19  ;;  %v15860_v28 = vld [vmem:[%s19563_s0 + $0x90] sm:$0xff]   ;;  %v15870_v29 = vld [vmem:[%s19563_s0 + $0x18] sm:$0xff]   ;;  %v3300_v5 = vshll.u32 %v15873_v57, 16 }
 0x14c   :  { %14767 = vmatprep.mubr.bf16.mxu1 %v8938_v31  ;;  %14332 = vmatpush3.bf16.msra.mxu0 %v15832_v21  ;;  %v15855_v21 = vld [vmem:[%s19563_s0 + $0x134] sm:$0xff]   ;;  %v15861_v31 = vld [vmem:[%s19563_s0 + $0x144] sm:$0xff]   ;;  %v3291_v43 = vshll.u32 %v15870_v29, 16 }
 0x14d   :  { %14333 = vmatprep.subr.bf16.mxu0 %v15838_v30  ;;  %14800 = vmatpush3.bf16.msra.mxu1 %v15839_v24  ;;  %v2769_v24 = vsel %vm2742_vm3, %v2766_v16, %v2768_v18  ;;  %v8959_v50 = vrot.slane %v15861_v31, 2 }
 0x14e   :  { %14801 = vmatprep.subr.bf16.mxu1 %v15845_v32  ;;  %v3293_v61 = vrot.slane %v3291_v43, 3 }
 0x150   :  { %14334 = vmatpush3.bf16.msra.mxu0 %v15838_v30  ;;  %v8955_v30 = vrot.slane %v15855_v21, 2  ;;  %v15879_v21 = vld [vmem:[%s19563_s0 + $0xe4] sm:$0xff]  }
 0x151   :  { %14335 = vmatprep.subr.bf16.mxu0 %v15844_v38  ;;  %14802 = vmatpush3.bf16.msra.mxu1 %v15845_v32  ;;  %v15869_v32 = vld [vmem:[%s19563_s0 + $0x10] sm:$0xfc]   ;;  %v9498_v35 = vshrl.u32 %v15879_v21, 16 }
 0x152   :  { %14300 = vmatmul.mubr.bf16.gmra.mrb[8].mxu0 %v2755_v41  ;;  %14803 = vmatprep.subr.bf16.mxu1 %v15851_v40  ;;  %v3280_v41 = vshrl.u32 %v15869_v32, 16 }
 0x153   :  { %14768 = vmatmul.mubr.bf16.gmra.mrb[8].mxu1 %v8940_v45  ;;  %14303 = vmatprep.mubr.bf16.mxu0 %v2757_v46  ;;  %v2771_v45 = vsel %vm2742_vm3, %v2768_v18, %v2770_v26  ;;  %v8956_v46 = vsel %vm2742_vm3, %v8953_v19, %v8955_v30  ;;  %v15878_v18 = vld [vmem:[%s19563_s0 + $0x30] sm:$0xff]   ;;  %v8962_v19 = vsel %vm2742_vm3, %v8959_v50, %v8961_v56  ;;  %v15882_v26 = vld [vmem:[%s19563_s0 + $0x38] sm:$0xff]  }
 0x154   :  { %14771 = vmatprep.mubr.bf16.mxu1 %v8942_v52  ;;  %14336 = vmatpush3.bf16.msra.mxu0 %v15844_v38  ;;  %v8957_v38 = vrot.slane %v15858_v25, 2  ;;  %v2774_v52 = vrot.slane %v15860_v28, 2  ;;  %v3282_v60 = vrot.slane %v3280_v41, 2  ;;  %v3318_v31 = vshll.u32 %v15878_v18, 16  ;;  %v15884_v41 = vld [vmem:[%s19563_s0 + $0x40] sm:$0xff]  }
 0x155   :  { %14337 = vmatprep.subr.bf16.mxu0 %v15850_v48  ;;  %14804 = vmatpush3.bf16.msra.mxu1 %v15851_v40  ;;  %v3288_v40 = vshrl.u32 %v15870_v29, 16 }
 0x156   :  { %14805 = vmatprep.subr.bf16.mxu1 %v15859_v49  ;;  %v2775_v10 = vsel %vm2742_vm3, %v2772_v33, %v2774_v52  ;;  %v8960_v11 = vsel %vm2742_vm3, %v8957_v38, %v8959_v50  ;;  %v15885_v50 = vld [vmem:[%s19563_s0 + $0xf4] sm:$0xff]  }
 0x158   :  { %14338 = vmatpush3.bf16.msra.mxu0 %v15850_v48  ;;  %v15872_v48 = vld [vmem:[%s19563_s0 + $0xcc] sm:$0xff]  }
 0x159   :  { %14339 = vmatprep.subr.bf16.mxu0 %v15856_v51  ;;  %14806 = vmatpush3.bf16.msra.mxu1 %v15859_v49  ;;  %v8958_v49 = vsel %vm2742_vm3, %v8955_v30, %v8957_v38  ;;  %v9471_v63 = vshrl.u32 %v15872_v48, 16  ;;  %v3315_v30 = vshrl.u32 %v15878_v18, 16  ;;  %v2779_v38 = vsel %vm2742_vm3, %v2776_v55, %v2778_v39 }
 0x15a   :  { %14304 = vmatmul.mubr.bf16.gmra.mrb[12].mxu0 %v2759_v59  ;;  %14807 = vmatprep.subr.bf16.mxu1 %v15867_v58  ;;  %v3290_v59 = vrot.slane %v3288_v40, 2  ;;  %v9501_v40 = vshll.u32 %v15879_v21, 16  ;;  %v15894_v21 = vld [vmem:[%s19563_s0 + $0x58] sm:$0xff]  }
 0x15b   :  { %14772 = vmatmul.mubr.bf16.gmra.mrb[12].mxu1 %v8944_v42  ;;  %14307 = vmatprep.mubr.bf16.mxu0 %v2761_v62  ;;  %v9463_v42 = vshrl.u32 %v15871_v44, 16  ;;  %v15875_v62 = vld [vmem:[%s19563_s0 + $0xd4] sm:$0xff]  }
 0x15c   :  { %14775 = vmatprep.mubr.bf16.mxu1 %v8946_v54  ;;  %14340 = vmatpush3.bf16.msra.mxu0 %v15856_v51  ;;  %v8963_v51 = vrot.slane %v17202_v37, 2  ;;  %v9466_v54 = vshll.u32 %v15871_v44, 16  ;;  %v9480_v6 = vshrl.u32 %v15875_v62, 16  ;;  %v9483_v17 = vshll.u32 %v15875_v62, 16  ;;  %v15883_v37 = vld [vmem:[%s19563_s0 + $0xec] sm:$0xff]  }
 0x15d   :  { %14341 = vmatprep.subr.bf16.mxu0 %v15863_v0  ;;  %14808 = vmatpush3.bf16.msra.mxu1 %v15867_v58  ;;  %v3283_v58 = vshll.u32 %v15869_v32, 16  ;;  %v9465_v4 = vrot.slane %v9463_v42, 2  ;;  %v3294_v25 = vor.u32 %v3293_v61, %v3290_v59  ;;  %v9510_v39 = vshll.u32 %v15883_v37, 16  ;;  %v15888_v62 = vld [vmem:[%s19563_s0 + $0x48] sm:$0xff]  }
 0x15e   :  { %14809 = vmatprep.subr.bf16.mxu1 %v15868_v36  ;;  %v9482_v23 = vrot.slane %v9480_v6, 2  ;;  %v9485_v33 = vrot.slane %v9483_v17, 3  ;;  %v8964_v27 = vsel %vm2742_vm3, %v8961_v56, %v8963_v51  ;;  %v9500_v51 = vrot.slane %v9498_v35, 2 }
 0x15f   :  { %v3285_v1 = vrot.slane %v3283_v58, 3  ;;  %v9503_v58 = vrot.slane %v9501_v40, 3  ;;  %v3333_v59 = vshrl.u32 %v15884_v41, 16  ;;  %v9519_v6 = vshll.u32 %v15885_v50, 16 }
 0x160   :  { %14342 = vmatpush3.bf16.msra.mxu0 %v15863_v0  ;;  %v9474_v0 = vshll.u32 %v15872_v48, 16  ;;  %v3317_v48 = vrot.slane %v3315_v30, 2  ;;  %v3360_v40 = vshrl.u32 %v15894_v21, 16 }
 0x161   :  { %14810 = vmatpush3.bf16.msra.mxu1 %v15868_v36  ;;  %14379 = vmatprep.subr.bf16.mxu0 %v17139_v8  ;;  %v3297_v36 = vshrl.u32 %v15873_v57, 16  ;;  %v3286_v28 = vor.u32 %v3285_v1, %v3282_v60  ;;  %v9507_v57 = vshrl.u32 %v15883_v37, 16  ;;  %v3336_v60 = vshll.u32 %v15884_v41, 16  ;;  %v15890_v1 = vld [vmem:[%s19563_s0 + $0x50] sm:$0xff]   ;;  %v15896_v41 = vld [vmem:[%s19563_s0 + $0x60] sm:$0xff]  }
 0x162   :  { %14308 = vmatmul.mubr.bf16.gmra.mrb[16].mxu0 %v2763_v7  ;;  %14847 = vmatprep.subr.bf16.mxu1 %v17144_v9  ;;  %v15877_v7 = vld [vmem:[%s19563_s0 + $0xdc] sm:$0xff]   ;;  %v9476_v15 = vrot.slane %v9474_v0, 3  ;;  %v3351_v20 = vshrl.u32 %v15890_v1, 16 }
 0x163   :  { %14776 = vmatmul.mubr.bf16.gmra.mrb[16].mxu1 %v8948_v12  ;;  %14311 = vmatprep.mubr.bf16.mxu0 %v2765_v13  ;;  %v9468_v12 = vrot.slane %v9466_v54, 3  ;;  %v9473_v13 = vrot.slane %v9471_v63, 2  ;;  %v3299_v16 = vrot.slane %v3297_v36, 2  ;;  %v15889_v54 = vld [vmem:[%s19563_s0 + $0xfc] sm:$0xff]   ;;  %v9486_v63 = vor.u32 %v9485_v33, %v9482_v23 }
 0x164   :  { %14779 = vmatprep.mubr.bf16.mxu1 %v8950_v14  ;;  %v2777_v14 = vsel %vm2742_vm3, %v2774_v52, %v2776_v55  ;;  %v9516_v36 = vshrl.u32 %v15885_v50, 16  ;;  %v9528_v17 = vshll.u32 %v15889_v54, 16 }
 0x165   :  { %v9469_v29 = vor.u32 %v9468_v12, %v9465_v4  ;;  %v9477_v32 = vor.u32 %v9476_v15, %v9473_v13  ;;  %v9509_v4 = vrot.slane %v9507_v57, 2  ;;  %v3338_v12 = vrot.slane %v3336_v60, 3  ;;  %v15880_v13 = vld [vmem:[%s19562_s1 + $0x188] sm:$0xff]  }
 0x166   :  { %v3345_v15 = vshll.u32 %v15888_v62, 16  ;;  %v9518_v23 = vrot.slane %v9516_v36, 2  ;;  %v9530_v37 = vrot.slane %v9528_v17, 3  ;;  %v17330_v57 = vrot.slane %v3360_v40, 2 }
 0x167   :  { %v9478_v55 = vsel %vm3278_vm4, %v9469_v29, %v9477_v32  ;;  %v9487_v18 = vsel %vm3278_vm4, %v9477_v32, %v9486_v63  ;;  %v15886_v29 = vld [vmem:[%s19562_s1 + $0x190] sm:$0xff]   ;;  %v9521_v32 = vrot.slane %v9519_v6, 3 }
 0x169   :  { %v9522_v36 = vor.u32 %v9521_v32, %v9518_v23 }
 0x16a   :  { %14312 = vmatmul.mubr.bf16.gmra.mrb[20].mxu0 %v2767_v22  ;;  %v3302_v22 = vrot.slane %v3300_v5, 3  ;;  %v9512_v5 = vrot.slane %v9510_v39, 3 }
 0x16b   :  { %14780 = vmatmul.mubr.bf16.gmra.mrb[20].mxu1 %v8952_v53  ;;  %14315 = vmatprep.mubr.bf16.mxu0 %v2769_v24  ;;  %v3309_v53 = vshll.u32 %v15876_v3, 16  ;;  %v9489_v24 = vshrl.u32 %v15877_v7, 16 }
 0x16c   :  { %14783 = vmatprep.mubr.bf16.mxu1 %v8954_v2  ;;  %v9492_v2 = vshll.u32 %v15877_v7, 16  ;;  %v3303_v56 = vor.u32 %v3302_v22, %v3299_v16  ;;  %v15891_v7 = vld [vmem:[%s19563_s0 + $0x104] sm:$0xff]   ;;  %v9525_v16 = vshrl.u32 %v15889_v54, 16 }
 0x16d   :  { %v3311_v43 = vrot.slane %v3309_v53, 3  ;;  %v9491_v44 = vrot.slane %v9489_v24, 2  ;;  %v15887_v53 = vld [vmem:[%s19562_s1 + $0x188] sm:$0xff]   ;;  %v3354_v24 = vshll.u32 %v15890_v1, 16  ;;  %v9537_v30 = vshll.u32 %v15891_v7, 16  ;;  %v15898_v1 = vld [vmem:[%s19562_s1 + $0x1a0] sm:$0xff]  }
 0x16e   :  { %v9494_v52 = vrot.slane %v9492_v2, 3  ;;  %v9527_v35 = vrot.slane %v9525_v16, 2  ;;  %v15905_v16 = vld [vmem:[%s19562_s1 + $0x1a0] sm:$0xff]  }
 0x16f   :  { %v3312_v0 = vor.u32 %v3311_v43, %v3308_v34  ;;  %v3347_v34 = vrot.slane %v3345_v15, 3  ;;  %v17306_v43 = vrot.slane %v3354_v24, 3 }
 0x170   :  { %v9495_v3 = vor.u32 %v9494_v52, %v9491_v44  ;;  %v15897_v44 = vld [vmem:[%s19563_s0 + $0x114] sm:$0xff]  }
 0x171   :  { %v9552_v60 = vshrl.u32 %v15897_v44, 16 }
 0x172   :  { %14316 = vmatmul.mubr.bf16.gmra.mrb[24].mxu0 %v2771_v45  ;;  %v3324_v45 = vshrl.u32 %v15882_v26, 16  ;;  %v9496_v22 = vsel %vm3278_vm4, %v9486_v63, %v9495_v3  ;;  %v15899_v63 = vld [vmem:[%s19562_s1 + $0x198] sm:$0xff]  }
 0x173   :  { %14784 = vmatmul.mubr.bf16.gmra.mrb[24].mxu1 %v8956_v46  ;;  %14319 = vmatprep.mubr.bf16.mxu0 %v2773_v47  ;;  %v3327_v46 = vshll.u32 %v15882_v26, 16  ;;  %v3295_v47 = vsel %vm3278_vm4, %v3286_v28, %v3294_v25  ;;  %v9504_v26 = vor.u32 %v9503_v58, %v9500_v51  ;;  %v3369_v51 = vshrl.u32 %v15896_v41, 16 }
 0x174   :  { %14787 = vmatprep.mubr.bf16.mxu1 %v8958_v49  ;;  %v3320_v49 = vrot.slane %v3318_v31, 3  ;;  %v3326_v61 = vrot.slane %v3324_v45, 2  ;;  %v15895_v31 = vld [vmem:[%s19563_s0 + $0x10c] sm:$0xff]   ;;  %v3372_v58 = vshll.u32 %v15896_v41, 16  ;;  %v15909_v41 = vld [vmem:[%s19563_s0 + $0x134] sm:$0xff]  }
 0x175   :  { %v3329_v42 = vrot.slane %v3327_v46, 3  ;;  %v17313_v46 = vrot.slane %v9537_v30, 3  ;;  %v9543_v52 = vshrl.u32 %v15895_v31, 16  ;;  %v9505_v50 = vsel %vm3278_vm4, %v9495_v3, %v9504_v26 }
 0x176   :  { %v3321_v2 = vor.u32 %v3320_v49, %v3317_v48  ;;  %v15900_v48 = vld [vmem:[%s19563_s0 + $0x68] sm:$0xff]   ;;  %v9546_v39 = vshll.u32 %v15895_v31, 16  ;;  %v15908_v31 = vld [vmem:[%s19563_s0 + $0x80] sm:$0xff]  }
 0x177   :  { %v17288_v28 = vor.u32 %v3329_v42, %v3326_v61  ;;  %v9555_v61 = vshll.u32 %v15897_v44, 16  ;;  %v9545_v54 = vrot.slane %v9543_v52, 2  ;;  %v3381_v3 = vshll.u32 %v15900_v48, 16 }
 0x178   :  { %v3322_v49 = vsel %vm3278_vm4, %v3312_v0, %v3321_v2  ;;  %v9548_v6 = vrot.slane %v9546_v39, 3  ;;  %v15911_v39 = vld [vmem:[%s19563_s0 + $0x88] sm:$0xff]  }
 0x179   :  { %v17353_v15 = vrot.slane %v9555_v61, 3  ;;  %v15912_v61 = vld [vmem:[%s19563_s0 + $0x13c] sm:$0xff]  }
 0x17a   :  { %14320 = vmatmul.mubr.bf16.gmra.mrb[28].mxu0 %v2775_v10  ;;  %v3304_v10 = vsel %vm3278_vm4, %v3294_v25, %v3303_v56  ;;  %v9534_v25 = vshrl.u32 %v15891_v7, 16  ;;  %v17341_v7 = vrot.slane %v3369_v51, 2 }
 0x17b   :  { %14788 = vmatmul.mubr.bf16.gmra.mrb[28].mxu1 %v8960_v11  ;;  %14323 = vmatprep.mubr.bf16.mxu0 %v2777_v14  ;;  %v17274_v11 = vrot.slane %v3333_v59, 2  ;;  %v3342_v14 = vshrl.u32 %v15888_v62, 16 }
 0x17c   :  { %14791 = vmatprep.mubr.bf16.mxu1 %v8962_v19  ;;  %v3313_v19 = vsel %vm3278_vm4, %v3303_v56, %v3312_v0  ;;  %v17311_v45 = vrot.slane %v9534_v25, 2  ;;  %v15892_v56 = vld [vmem:[%s19562_s1 + $0x198] sm:$0xff]   ;;  %v3378_v0 = vshrl.u32 %v15900_v48, 16 }
 0x17d   :  { %v3344_v33 = vrot.slane %v3342_v14, 2  ;;  %v3339_v42 = vor.u32 %v3338_v12, %v17274_v11  ;;  %v15903_v11 = vld [vmem:[%s19563_s0 + $0x124] sm:$0xff]   ;;  %v9531_v12 = vor.u32 %v9530_v37, %v9527_v35  ;;  %v17351_v14 = vrot.slane %v9552_v60, 2 }
 0x17e   :  { %v9573_v30 = vshll.u32 %v15903_v11, 16  ;;  %v9540_v35 = vor.u32 %v17313_v46, %v17311_v45  ;;  %v15910_v45 = vld [vmem:[%s19562_s1 + $0x1b0] sm:$0xff]   ;;  %v9588_v60 = vshrl.u32 %v15909_v41, 16 }
 0x17f   :  { %v3340_v17 = vsel %vm3278_vm4, %v17288_v28, %v3339_v42 }
 0x182   :  { %14324 = vmatmul.mubr.bf16.gmra.mrb[32].mxu0 %v2779_v38  ;;  %v17297_v38 = vrot.slane %v3351_v20, 2 }
 0x183   :  { %14792 = vmatmul.mubr.bf16.gmra.mrb[32].mxu1 %v8964_v27  ;;  %14343 = vmatprep.mubr.bf16.mxu0 %v3295_v47  ;;  %v15893_v27 = vld [vmem:[%s19562_s1 + $0x190] sm:$0xff]   ;;  %v3363_v47 = vshll.u32 %v15894_v21, 16  ;;  %v17365_v21 = vrot.slane %v3378_v0, 2  ;;  %v15917_v0 = vld [vmem:[%s19562_s1 + $0x1b8] sm:$0xff]  }
 0x184   :  { %14811 = vmatprep.mubr.bf16.mxu1 %v9478_v55  ;;  %v3331_v55 = vsel %vm3278_vm4, %v3321_v2, %v17288_v28  ;;  %v15904_v28 = vld [vmem:[%s19562_s1 + $0x1a8] sm:$0xff]   ;;  %v3357_v32 = vor.u32 %v17306_v43, %v17297_v38 }
 0x185   :  { %v3365_v62 = vrot.slane %v3363_v47, 3  ;;  %v3405_v47 = vshrl.u32 %v15908_v31, 16 }
 0x187   :  { %v3366_v38 = vor.u32 %v3365_v62, %v17330_v57  ;;  %v17425_v62 = vrot.slane %v3405_v47, 2  ;;  %v15920_v47 = vld [vmem:[%s19563_s0 + $0x154] ss:$0 sps:$4 sm:$0x77]  }
 0x189   :  { %v3367_v51 = vsel %vm3278_vm4, %v3357_v32, %v3366_v38 }
 0x18a   :  { %14344 = vmatmul.mubr.bf16.vlgmr.msra.gmra.mrb[0].mxu0 %v3304_v10  ;;  %v15902_v10 = vld [vmem:[%s19563_s0 + $0x70] sm:$0xff]  }
 0x18b   :  { %14812 = vmatmul.mubr.bf16.vlgmr.msra.gmra.mrb[0].mxu1 %v9487_v18  ;;  %14380 = vmatpush3.bf16.msra.mxu0 %v17139_v8  ;;  %v9513_v8 = vor.u32 %v9512_v5, %v9509_v4  ;;  %v3348_v5 = vor.u32 %v3347_v34, %v3344_v33  ;;  %v3387_v25 = vshrl.u32 %v15902_v10, 16  ;;  %v3390_v2 = vshll.u32 %v15902_v10, 16  ;;  %v15913_v34 = vld [vmem:[%s19562_s1 + $0x1a8] sm:$0xff]  }
 0x18c   :  { %14347 = vmatprep.mubr.bf16.mxu0 %v3313_v19  ;;  %14815 = vmatprep.mubr.bf16.mxu1 %v9496_v22  ;;  %v15906_v19 = vld [vmem:[%s19563_s0 + $0x78] sm:$0xff]   ;;  %v17367_v22 = vrot.slane %v3381_v3, 3 }
 0x18d   :  { %14381 = vmatprep.subr.bf16.mxu0 %v15880_v13  ;;  %14848 = vmatpush3.bf16.msra.mxu1 %v17144_v9  ;;  %v17321_v9 = vld [vmem:[%s19563_s0 + $0x11c] sm:$0xff]   ;;  %v9514_v59 = vsel %vm3278_vm4, %v9504_v26, %v9513_v8  ;;  %v9523_v20 = vsel %vm3278_vm4, %v9513_v8, %v9522_v36  ;;  %v3349_v24 = vsel %vm3278_vm4, %v3339_v42, %v3348_v5  ;;  %v9570_v26 = vshrl.u32 %v15903_v11, 16 }
 0x18e   :  { %14849 = vmatprep.subr.bf16.mxu1 %v15887_v53  ;;  %v9561_v4 = vshrl.u32 %v17321_v9, 16  ;;  %v9564_v18 = vshll.u32 %v17321_v9, 16  ;;  %v3396_v33 = vshrl.u32 %v15906_v19, 16  ;;  %v3399_v37 = vshll.u32 %v15906_v19, 16 }
 0x18f   :  { %14382 = vmatpush3.bf16.msra.mxu0 %v15880_v13  ;;  %v17349_v13 = vrot.slane %v3372_v58, 3  ;;  %v9549_v8 = vor.u32 %v9548_v6, %v9545_v54  ;;  %v17393_v44 = vrot.slane %v3387_v25, 2  ;;  %v3358_v46 = vsel %vm3278_vm4, %v3348_v5, %v3357_v32 }
 0x190   :  { %14383 = vmatprep.subr.bf16.mxu0 %v15886_v29  ;;  %v17369_v23 = vrot.slane %v9561_v4, 2  ;;  %v9566_v43 = vrot.slane %v9564_v18, 3  ;;  %v17399_v52 = vrot.slane %v3390_v2, 3  ;;  %v17401_v48 = vrot.slane %v9570_v26, 2  ;;  %v17461_v18 = vld [vmem:[%s19562_s1 + $0x1c0] sm:$0xff]  }
 0x191   :  { %14850 = vmatpush3.bf16.msra.mxu1 %v15887_v53  ;;  %v15907_v53 = vld [vmem:[%s19563_s0 + $0x12c] sm:$0xff]   ;;  %v3408_v9 = vshll.u32 %v15908_v31, 16  ;;  %v17411_v57 = vrot.slane %v3399_v37, 3  ;;  %v9550_v42 = vsel %vm3278_vm4, %v9540_v35, %v9549_v8  ;;  %v9591_v54 = vshll.u32 %v15909_v41, 16 }
 0x192   :  { %14348 = vmatmul.mubr.bf16.gmra.mrb[4].mxu0 %v3322_v49  ;;  %14851 = vmatprep.subr.bf16.mxu1 %v15893_v27  ;;  %v9582_v40 = vshll.u32 %v15907_v53, 16  ;;  %v15921_v49 = vld [vmem:[%s19562_s1 + $0x1b0] sm:$0xff]   ;;  %v3375_v3 = vor.u32 %v17349_v13, %v17341_v7  ;;  %v3414_v4 = vshrl.u32 %v15911_v39, 16  ;;  %v3417_v5 = vshll.u32 %v15911_v39, 16  ;;  %v15916_v13 = vld [vmem:[%s19563_s0 + $0x98] sm:$0xff]  }
 0x193   :  { %14816 = vmatmul.mubr.bf16.gmra.mrb[4].mxu1 %v9505_v50  ;;  %14351 = vmatprep.mubr.bf16.mxu0 %v3331_v55  ;;  %v9541_v50 = vsel %vm3278_vm4, %v9531_v12, %v9540_v35  ;;  %v17407_v55 = vrot.slane %v9573_v30, 3  ;;  %v9558_v6 = vor.u32 %v17353_v15, %v17351_v14  ;;  %v3384_v10 = vor.u32 %v17367_v22, %v17365_v21  ;;  %v17456_v14 = vld [vmem:[%s19562_s1 + $0x1c0] sm:$0xff]  }
 0x194   :  { %14819 = vmatprep.mubr.bf16.mxu1 %v9514_v59  ;;  %14384 = vmatpush3.bf16.msra.mxu0 %v15886_v29  ;;  %v9532_v29 = vsel %vm3278_vm4, %v9522_v36, %v9531_v12  ;;  %v17419_v59 = vrot.slane %v9582_v40, 3  ;;  %v17433_v36 = vrot.slane %v3408_v9, 3  ;;  %v17444_v11 = vrot.slane %v9588_v60, 2  ;;  %v15915_v12 = vld [vmem:[%s19563_s0 + $0x144] sm:$0xff]  }
 0x195   :  { %14385 = vmatprep.subr.bf16.mxu0 %v15892_v56  ;;  %14852 = vmatpush3.bf16.msra.mxu1 %v15893_v27  ;;  %v9579_v27 = vshrl.u32 %v15907_v53, 16  ;;  %v9600_v7 = vshll.u32 %v15912_v61, 16  ;;  %v3376_v19 = vsel %vm3278_vm4, %v3366_v38, %v3375_v3  ;;  %v3416_v21 = vrot.slane %v3414_v4, 2  ;;  %v15919_v2 = vld [vmem:[%s19563_s0 + $0xa0] ss:$0 sps:$4 sm:$0x77]  }
 0x196   :  { %14853 = vmatprep.subr.bf16.mxu1 %v15899_v63  ;;  %v3419_v22 = vrot.slane %v3417_v5, 3  ;;  %v9559_v53 = vsel %vm3278_vm4, %v9549_v8, %v9558_v6  ;;  %v9606_v31 = vshrl.u32 %v15915_v12, 16  ;;  %v9609_v32 = vshll.u32 %v15915_v12, 16  ;;  %v15925_v4 = vld [vmem:[%s19563_s0 + $0xcc] sm:$0xfc]  }
 0x197   :  { %v17417_v58 = vrot.slane %v9579_v27, 2  ;;  %v3435_v35 = vshll.u32 %v15916_v13, 16  ;;  %v9576_v27 = vor.u32 %v17407_v55, %v17401_v48  ;;  %v3411_v60 = vor.u32 %v17433_v36, %v17425_v62 }
 0x198   :  { %14386 = vmatpush3.bf16.msra.mxu0 %v15892_v56  ;;  %v17409_v56 = vrot.slane %v3396_v33, 2  ;;  %v3432_v33 = vshrl.u32 %v15916_v13, 16 }
 0x199   :  { %14387 = vmatprep.subr.bf16.mxu0 %v15898_v1  ;;  %14854 = vmatpush3.bf16.msra.mxu1 %v15899_v63  ;;  %v15914_v63 = vld [vmem:[%s19563_s0 + $0x90] sm:$0xff]   ;;  %v9585_v8 = vor.u32 %v17419_v59, %v17417_v58  ;;  %v3437_v9 = vrot.slane %v3435_v35, 3  ;;  %v9624_v58 = vshrl.u32 %v15920_v47, 16  ;;  %v15923_v59 = vld [vmem:[%s19563_s0 + $0x18] sm:$0xfc]  }
 0x19a   :  { %14352 = vmatmul.mubr.bf16.gmra.mrb[8].mxu0 %v3340_v17  ;;  %14855 = vmatprep.subr.bf16.mxu1 %v15905_v16  ;;  %v9597_v17 = vshrl.u32 %v15912_v61, 16  ;;  %v3423_v15 = vshrl.u32 %v15914_v63, 16  ;;  %v3426_v25 = vshll.u32 %v15914_v63, 16  ;;  %v3402_v40 = vor.u32 %v17411_v57, %v17409_v56 }
 0x19b   :  { %14820 = vmatmul.mubr.bf16.gmra.mrb[8].mxu1 %v9523_v20  ;;  %14355 = vmatprep.mubr.bf16.mxu0 %v3349_v24  ;;  %v9593_v20 = vrot.slane %v9591_v54, 3  ;;  %v3385_v24 = vsel %vm3278_vm4, %v3375_v3, %v3384_v10  ;;  %v3444_v57 = vshll.u32 %v15919_v2, 16  ;;  %v9586_v39 = vsel %vm3278_vm4, %v9576_v27, %v9585_v8 }
 0x19c   :  { %14823 = vmatprep.mubr.bf16.mxu1 %v9532_v29  ;;  %14388 = vmatpush3.bf16.msra.mxu0 %v15898_v1  ;;  %v15922_v1 = vld [vmem:[%s19562_s1 + $0x1b8] sm:$0xff]   ;;  %v9602_v29 = vrot.slane %v9600_v7, 3  ;;  %v3425_v30 = vrot.slane %v3423_v15, 2  ;;  %v3428_v41 = vrot.slane %v3426_v25, 3  ;;  %v9627_v61 = vshll.u32 %v15920_v47, 16 }
 0x19d   :  { %14389 = vmatprep.subr.bf16.mxu0 %v15904_v28  ;;  %14856 = vmatpush3.bf16.msra.mxu1 %v15905_v16  ;;  %v9567_v16 = vor.u32 %v9566_v43, %v17369_v23  ;;  %v15918_v23 = vld [vmem:[%s19563_s0 + $0x14c] sm:$0xff]   ;;  %v3441_v43 = vshrl.u32 %v15919_v2, 16  ;;  %v9594_v54 = vor.u32 %v9593_v20, %v17444_v11  ;;  %v17507_v5 = vrot.slane %v3444_v57, 3  ;;  %v15929_v15 = vld [vmem:[%s19563_s0 + $0xdc] sm:$0xff]  }
 0x19e   :  { %14857 = vmatprep.subr.bf16.mxu1 %v15913_v34  ;;  %v9615_v37 = vshrl.u32 %v15918_v23, 16  ;;  %v9618_v38 = vshll.u32 %v15918_v23, 16  ;;  %v17509_v62 = vrot.slane %v9624_v58, 2  ;;  %v3948_v36 = vshrl.u32 %v15923_v59, 16  ;;  %v15927_v11 = vld [vmem:[%s19563_s0 + $0x28] sm:$0xff]   ;;  %v15930_v2 = vld [vmem:[%s19563_s0 + $0x30] sm:$0xff]  }
 0x19f   :  { %v9568_v26 = vsel %vm3278_vm4, %v9558_v6, %v9567_v16  ;;  %v3951_v6 = vshll.u32 %v15923_v59, 16  ;;  %v17512_v12 = vrot.slane %v9627_v61, 3  ;;  %v3429_v23 = vor.u32 %v3428_v41, %v3425_v30 }
 0x1a0   :  { %14390 = vmatpush3.bf16.msra.mxu0 %v15904_v28  ;;  %v9599_v28 = vrot.slane %v9597_v17, 2  ;;  %v9617_v48 = vrot.slane %v9615_v37, 2  ;;  %v9620_v56 = vrot.slane %v9618_v38, 3  ;;  %v10133_v25 = vshll.u32 %v15925_v4, 16  ;;  %v15932_v38 = vld [vmem:[%s19563_s0 + $0x38] sm:$0xff]  }
 0x1a1   :  { %14391 = vmatprep.subr.bf16.mxu0 %v15910_v45  ;;  %14858 = vmatpush3.bf16.msra.mxu1 %v15913_v34  ;;  %v3393_v34 = vor.u32 %v17399_v52, %v17393_v44  ;;  %v9608_v44 = vrot.slane %v9606_v31, 2  ;;  %v3434_v52 = vrot.slane %v3432_v33, 2  ;;  %v10150_v33 = vshll.u32 %v15929_v15, 16 }
 0x1a2   :  { %14356 = vmatmul.mubr.bf16.gmra.mrb[12].mxu0 %v3358_v46  ;;  %14859 = vmatprep.subr.bf16.mxu1 %v15921_v49  ;;  %v9603_v3 = vor.u32 %v9602_v29, %v9599_v28  ;;  %v3965_v28 = vshrl.u32 %v15927_v11, 16  ;;  %v3968_v29 = vshll.u32 %v15927_v11, 16  ;;  %v9621_v30 = vor.u32 %v9620_v56, %v9617_v48 }
 0x1a3   :  { %14824 = vmatmul.mubr.bf16.gmra.mrb[12].mxu1 %v9541_v50  ;;  %14359 = vmatprep.mubr.bf16.mxu0 %v3367_v51  ;;  %v3394_v46 = vsel %vm3278_vm4, %v3384_v10, %v3393_v34  ;;  %v9577_v50 = vsel %vm3278_vm4, %v9567_v16, %v9576_v27  ;;  %v3403_v55 = vsel %vm3278_vm4, %v3393_v34, %v3402_v40  ;;  %v17493_v51 = vrot.slane %v3441_v43, 2  ;;  %v15931_v27 = vld [vmem:[%s19563_s0 + $0xe4] sm:$0xff]  }
 0x1a4   :  { %14827 = vmatprep.mubr.bf16.mxu1 %v9550_v42  ;;  %14392 = vmatpush3.bf16.msra.mxu0 %v15910_v45  ;;  %v9611_v45 = vrot.slane %v9609_v32, 3  ;;  %v15926_v42 = vld [vmem:[%s19563_s0 + $0xd4] sm:$0xff]   ;;  %v3412_v10 = vsel %vm3278_vm4, %v3402_v40, %v3411_v60  ;;  %v9595_v16 = vsel %vm3278_vm4, %v9585_v8, %v9594_v54  ;;  %v9604_v20 = vsel %vm3278_vm4, %v9594_v54, %v9603_v3 }
 0x1a5   :  { %14393 = vmatprep.subr.bf16.mxu0 %v15917_v0  ;;  %14860 = vmatpush3.bf16.msra.mxu1 %v15921_v49  ;;  %v15924_v49 = vld [vmem:[%s19563_s0 + $0x20] sm:$0xff]   ;;  %v10138_v13 = vshrl.u32 %v15926_v42, 16  ;;  %v3438_v31 = vor.u32 %v3437_v9, %v3434_v52  ;;  %v10147_v32 = vshrl.u32 %v15929_v15, 16  ;;  %v3974_v41 = vshrl.u32 %v15930_v2, 16 }
 0x1a6   :  { %14861 = vmatprep.subr.bf16.mxu1 %v15922_v1  ;;  %v3956_v63 = vshrl.u32 %v15924_v49, 16  ;;  %v10135_v43 = vrot.slane %v10133_v25, 3  ;;  %v3967_v47 = vrot.slane %v3965_v28, 2  ;;  %v3970_v52 = vrot.slane %v3968_v29, 3 }
 0x1a7   :  { %v10140_v35 = vrot.slane %v10138_v13, 2  ;;  %v10149_v9 = vrot.slane %v10147_v32, 2  ;;  %v10152_v48 = vrot.slane %v10150_v33, 3  ;;  %v9630_v56 = vor.u32 %v17512_v12, %v17509_v62  ;;  %v15943_v32 = vld [vmem:[%s19563_s0 + $0x104] sm:$0xff]  }
 0x1a8   :  { %14394 = vmatpush3.bf16.msra.mxu0 %v15917_v0  ;;  %v3959_v0 = vshll.u32 %v15924_v49, 16  ;;  %v3958_v17 = vrot.slane %v3956_v63, 2  ;;  %v15936_v49 = vld [vmem:[%s19563_s0 + $0x40] sm:$0xff]   ;;  %v10156_v57 = vshrl.u32 %v15931_v27, 16  ;;  %v3976_v58 = vrot.slane %v3974_v41, 2 }
 0x1a9   :  { %14862 = vmatpush3.bf16.msra.mxu1 %v15922_v1  ;;  %14431 = vmatprep.subr.bf16.mxu0 %v17456_v14  ;;  %v3420_v1 = vor.u32 %v3419_v22, %v3416_v21  ;;  %v10130_v21 = vshrl.u32 %v15925_v4, 16  ;;  %v10141_v22 = vshll.u32 %v15926_v42, 16  ;;  %v10159_v59 = vshll.u32 %v15931_v27, 16  ;;  %v15938_v4 = vld [vmem:[%s19563_s0 + $0x48] sm:$0xff]  }
 0x1aa   :  { %14360 = vmatmul.mubr.bf16.gmra.mrb[16].mxu0 %v3376_v19  ;;  %14899 = vmatprep.subr.bf16.mxu1 %v17461_v18  ;;  %v3961_v7 = vrot.slane %v3959_v0, 3  ;;  %v3986_v61 = vshll.u32 %v15932_v38, 16  ;;  %v3992_v62 = vshrl.u32 %v15936_v49, 16  ;;  %v9631_v12 = vsel %vm3278_vm4, %v9621_v30, %v9630_v56  ;;  %v15945_v27 = vld [vmem:[%s19563_s0 + $0x10c] sm:$0xff]  }
 0x1ab   :  { %14828 = vmatmul.mubr.bf16.gmra.mrb[16].mxu1 %v9559_v53  ;;  %14363 = vmatprep.mubr.bf16.mxu0 %v3385_v24  ;;  %v3421_v19 = vsel %vm3278_vm4, %v3411_v60, %v3420_v1  ;;  %v17523_v53 = vrot.slane %v3948_v36, 2  ;;  %v17525_v24 = vrot.slane %v3951_v6, 3  ;;  %v10132_v34 = vrot.slane %v10130_v21, 2  ;;  %v15941_v56 = vld [vmem:[%s19562_s1 + $0x1c8] sm:$0xff]  }
 0x1ac   :  { %14831 = vmatprep.mubr.bf16.mxu1 %v9568_v26  ;;  %v9612_v26 = vor.u32 %v9611_v45, %v9608_v44  ;;  %v10143_v37 = vrot.slane %v10141_v22, 3  ;;  %v3430_v40 = vsel %vm3278_vm4, %v3420_v1, %v3429_v23  ;;  %v3977_v44 = vshll.u32 %v15930_v2, 16  ;;  %v15933_v45 = vld [vmem:[%s19563_s0 + $0xec] sm:$0xff]  }
 0x1ad   :  { %v3983_v60 = vshrl.u32 %v15932_v38, 16  ;;  %v3962_v42 = vor.u32 %v3961_v7, %v3958_v17  ;;  %v10165_v63 = vshrl.u32 %v15933_v45, 16  ;;  %v10136_v0 = vor.u32 %v10135_v43, %v10132_v34  ;;  %v15942_v2 = vld [vmem:[%s19563_s0 + $0x50] sm:$0xff]   ;;  %v15948_v38 = vld [vmem:[%s19563_s0 + $0x60] sm:$0xff]  }
 0x1ae   :  { %v9613_v8 = vsel %vm3278_vm4, %v9603_v3, %v9612_v26  ;;  %v3979_v54 = vrot.slane %v3977_v44, 3  ;;  %v10144_v1 = vor.u32 %v10143_v37, %v10140_v35  ;;  %v10168_v3 = vshll.u32 %v15933_v45, 16 }
 0x1af   :  { %v3995_v36 = vshll.u32 %v15936_v49, 16  ;;  %v10161_v17 = vrot.slane %v10159_v59, 3  ;;  %v3985_v7 = vrot.slane %v3983_v60, 2  ;;  %v3988_v13 = vrot.slane %v3986_v61, 3  ;;  %v15934_v49 = vld [vmem:[%s19562_s1 + $0x1c8] sm:$0xff]  }
 0x1b0   :  { %v10167_v15 = vrot.slane %v10165_v63, 2  ;;  %v10170_v21 = vrot.slane %v10168_v3, 3  ;;  %v4001_v22 = vshrl.u32 %v15938_v4, 16  ;;  %v4004_v29 = vshll.u32 %v15938_v4, 16  ;;  %v15950_v3 = vld [vmem:[%s19563_s0 + $0x68] sm:$0xff]   ;;  %v15940_v4 = vld [vmem:[%s19562_s1 + $0x1d0] sm:$0xff]  }
 0x1b1   :  { %v3980_v34 = vor.u32 %v3979_v54, %v3976_v58  ;;  %v4013_v41 = vshll.u32 %v15942_v2, 16  ;;  %v4028_v58 = vshrl.u32 %v15948_v38, 16  ;;  %v4031_v59 = vshll.u32 %v15948_v38, 16  ;;  %v15957_v38 = vld [vmem:[%s19563_s0 + $0x12c] sm:$0xff]  }
 0x1b2   :  { %14364 = vmatmul.mubr.bf16.gmra.mrb[20].mxu0 %v3394_v46  ;;  %v3439_v46 = vsel %vm3278_vm4, %v3429_v23, %v3438_v31  ;;  %v10145_v23 = vsel %vm3278_vm4, %v10136_v0, %v10144_v1  ;;  %v17578_v37 = vrot.slane %v4001_v22, 2  ;;  %v17591_v44 = vrot.slane %v4004_v29, 3 }
 0x1b3   :  { %14832 = vmatmul.mubr.bf16.gmra.mrb[20].mxu1 %v9577_v50  ;;  %14367 = vmatprep.mubr.bf16.mxu0 %v3403_v55  ;;  %v9622_v50 = vsel %vm3278_vm4, %v9612_v26, %v9621_v30  ;;  %v3447_v55 = vor.u32 %v17507_v5, %v17493_v51  ;;  %v3954_v51 = vor.u32 %v17525_v24, %v17523_v53  ;;  %v10158_v5 = vrot.slane %v10156_v57, 2  ;;  %v15944_v30 = vld [vmem:[%s19563_s0 + $0x58] sm:$0xff]  }
 0x1b4   :  { %14835 = vmatprep.mubr.bf16.mxu1 %v9586_v39  ;;  %v15937_v39 = vld [vmem:[%s19563_s0 + $0xf4] sm:$0xff]   ;;  %v3994_v53 = vrot.slane %v3992_v62, 2  ;;  %v3997_v24 = vrot.slane %v3995_v36, 3  ;;  %v10153_v26 = vor.u32 %v10152_v48, %v10149_v9  ;;  %v10201_v57 = vshrl.u32 %v15945_v27, 16 }
 0x1b5   :  { %v10174_v6 = vshrl.u32 %v15937_v39, 16  ;;  %v10177_v11 = vshll.u32 %v15937_v39, 16  ;;  %v17576_v35 = vor.u32 %v10161_v17, %v10158_v5  ;;  %v10204_v39 = vshll.u32 %v15945_v27, 16 }
 0x1b6   :  { %v3989_v63 = vor.u32 %v3988_v13, %v3985_v7  ;;  %v17604_v0 = vor.u32 %v3997_v24, %v3994_v53  ;;  %v17629_v17 = vrot.slane %v4031_v59, 3  ;;  %v15954_v7 = vld [vmem:[%s19563_s0 + $0x70] sm:$0xff]  }
 0x1b7   :  { %v17565_v25 = vrot.slane %v10174_v6, 2  ;;  %v10179_v28 = vrot.slane %v10177_v11, 3  ;;  %v10163_v48 = vsel %vm3278_vm4, %v10153_v26, %v17576_v35  ;;  %v17622_v11 = vrot.slane %v10204_v39, 3 }
 0x1b8   :  { %v3990_v22 = vsel %vm3278_vm4, %v3980_v34, %v3989_v63  ;;  %v4046_v29 = vshrl.u32 %v15954_v7, 16  ;;  %v10240_v39 = vshll.u32 %v15957_v38, 16 }
 0x1b9   :  { %v10180_v13 = vor.u32 %v10179_v28, %v17565_v25  ;;  %v3999_v25 = vsel %vm3278_vm4, %v3989_v63, %v17604_v0 }
 0x1ba   :  { %14368 = vmatmul.mubr.bf16.gmra.mrb[24].mxu0 %v3412_v10  ;;  %v3448_v10 = vsel %vm3278_vm4, %v3438_v31, %v3447_v55  ;;  %v4022_v55 = vshll.u32 %v15944_v30, 16 }
 0x1bb   :  { %14836 = vmatmul.mubr.bf16.gmra.mrb[24].mxu1 %v9595_v16  ;;  %14371 = vmatprep.mubr.bf16.mxu0 %v3421_v19  ;;  %v15939_v16 = vld [vmem:[%s19563_s0 + $0xfc] sm:$0xff]   ;;  %v3963_v19 = vsel %vm3278_vm4, %v3954_v51, %v3962_v42  ;;  %v10171_v51 = vor.u32 %v10170_v21, %v10167_v15  ;;  %v4037_v21 = vshrl.u32 %v15950_v3, 16 }
 0x1bc   :  { %14839 = vmatprep.mubr.bf16.mxu1 %v9604_v20  ;;  %v3971_v20 = vor.u32 %v3970_v52, %v3967_v47  ;;  %v10183_v31 = vshrl.u32 %v15939_v16, 16  ;;  %v10186_v33 = vshll.u32 %v15939_v16, 16  ;;  %v10154_v47 = vsel %vm3278_vm4, %v10144_v1, %v10153_v26  ;;  %v15953_v26 = vld [vmem:[%s19562_s1 + $0x1d8] sm:$0xff]  }
 0x1bd   :  { %v10195_v52 = vshll.u32 %v15943_v32, 16  ;;  %v17615_v6 = vrot.slane %v4022_v55, 3  ;;  %v17627_v16 = vrot.slane %v4028_v58, 2  ;;  %v10172_v24 = vsel %vm3278_vm4, %v17576_v35, %v10171_v51  ;;  %v15958_v58 = vld [vmem:[%s19562_s1 + $0x1e8] sm:$0xff]  }
 0x1be   :  { %v3972_v43 = vsel %vm3278_vm4, %v3962_v42, %v3971_v20  ;;  %v17593_v45 = vrot.slane %v10183_v31, 2  ;;  %v3981_v9 = vsel %vm3278_vm4, %v3971_v20, %v3980_v34  ;;  %v10188_v60 = vrot.slane %v10186_v33, 3  ;;  %v15956_v33 = vld [vmem:[%s19563_s0 + $0x78] sm:$0xff]  }
 0x1bf   :  { %v4015_v42 = vrot.slane %v4013_v41, 3  ;;  %v10197_v62 = vrot.slane %v10195_v52, 3  ;;  %v10181_v28 = vsel %vm3278_vm4, %v10171_v51, %v10180_v13  ;;  %v4049_v31 = vshll.u32 %v15954_v7, 16  ;;  %v15962_v7 = vld [vmem:[%s19563_s0 + $0x88] sm:$0xff]  }
 0x1c0   :  { %v10189_v34 = vor.u32 %v10188_v60, %v17593_v45  ;;  %v17661_v35 = vrot.slane %v4037_v21, 2  ;;  %v4055_v52 = vshrl.u32 %v15956_v33, 16  ;;  %v10237_v55 = vshrl.u32 %v15957_v38, 16  ;;  %v15976_v21 = vld [vmem:[%s19562_s1 + $0x1f8] sm:$0xff]  }
 0x1c1   :  { %v17677_v45 = vrot.slane %v4049_v31, 3  ;;  %v17755_v31 = vld [vmem:[%s19562_s1 + $0x200] sm:$0xff]  }
 0x1c2   :  { %14372 = vmatmul.mubr.bf16.gmra.mrb[28].mxu0 %v3430_v40  ;;  %v4010_v40 = vshrl.u32 %v15942_v2, 16  ;;  %v17692_v60 = vrot.slane %v4055_v52, 2  ;;  %v17704_v51 = vrot.slane %v10237_v55, 2 }
 0x1c3   :  { %14840 = vmatmul.mubr.bf16.gmra.mrb[28].mxu1 %v9613_v8  ;;  %14375 = vmatprep.mubr.bf16.mxu0 %v3439_v46  ;;  %v15949_v8 = vld [vmem:[%s19563_s0 + $0x114] sm:$0xff]   ;;  %v10192_v46 = vshrl.u32 %v15943_v32, 16 }
 0x1c4   :  { %14843 = vmatprep.mubr.bf16.mxu1 %v9622_v50  ;;  %v4019_v50 = vshrl.u32 %v15944_v30, 16  ;;  %v4012_v61 = vrot.slane %v4010_v40, 2  ;;  %v10210_v54 = vshrl.u32 %v15949_v8, 16  ;;  %v10213_v1 = vshll.u32 %v15949_v8, 16  ;;  %v15952_v40 = vld [vmem:[%s19562_s1 + $0x1e0] sm:$0xff]  }
 0x1c5   :  { %v10194_v5 = vrot.slane %v10192_v46, 2  ;;  %v4007_v30 = vor.u32 %v17591_v44, %v17578_v37  ;;  %v17675_v44 = vrot.slane %v4046_v29, 2  ;;  %v4076_v29 = vshll.u32 %v15962_v7, 16 }
 0x1c6   :  { %v17613_v36 = vrot.slane %v4019_v50, 2  ;;  %v17636_v15 = vrot.slane %v10210_v54, 2  ;;  %v17641_v20 = vrot.slane %v10213_v1, 3  ;;  %v4016_v37 = vor.u32 %v4015_v42, %v4012_v61  ;;  %v15960_v61 = vld [vmem:[%s19563_s0 + $0x80] sm:$0xff]   ;;  %v15967_v54 = vld [vmem:[%s19562_s1 + $0x1e8] sm:$0xff]  }
 0x1c7   :  { %v10198_v8 = vor.u32 %v10197_v62, %v10194_v5  ;;  %v4064_v5 = vshrl.u32 %v15960_v61, 16  ;;  %v15964_v62 = vld [vmem:[%s19562_s1 + $0x1f0] sm:$0xff]  }
 0x1c8   :  { %v4025_v63 = vor.u32 %v17615_v6, %v17613_v36  ;;  %v4067_v36 = vshll.u32 %v15960_v61, 16  ;;  %v15975_v6 = vld [vmem:[%s19562_s1 + $0x1f0] sm:$0xff]  }
 0x1c9   :  { %v10199_v59 = vsel %vm3278_vm4, %v10189_v34, %v10198_v8 }
 0x1ca   :  { %14376 = vmatmul.mubr.bf16.gmra.mrb[32].mxu0 %v3448_v10  ;;  %v15951_v10 = vld [vmem:[%s19563_s0 + $0x11c] sm:$0xff]  }
 0x1cb   :  { %14844 = vmatmul.mubr.bf16.gmra.mrb[32].mxu1 %v9631_v12  ;;  %14395 = vmatprep.mubr.bf16.mxu0 %v3963_v19  ;;  %v17620_v12 = vrot.slane %v10201_v57, 2  ;;  %v15955_v19 = vld [vmem:[%s19563_s0 + $0x124] sm:$0xff]   ;;  %v10219_v53 = vshrl.u32 %v15951_v10, 16  ;;  %v10222_v2 = vshll.u32 %v15951_v10, 16  ;;  %v4017_v57 = vsel %vm3278_vm4, %v4007_v30, %v4016_v37 }
 0x1cc   :  { %14863 = vmatprep.mubr.bf16.mxu1 %v10145_v23  ;;  %v15946_v23 = vld [vmem:[%s19562_s1 + $0x1d8] sm:$0xff]   ;;  %v10228_v32 = vshrl.u32 %v15955_v19, 16  ;;  %v10231_v41 = vshll.u32 %v15955_v19, 16  ;;  %v4026_v10 = vsel %vm3278_vm4, %v4016_v37, %v4025_v63 }
 0x1cd   :  { %v10207_v1 = vor.u32 %v17622_v11, %v17620_v12  ;;  %v10242_v12 = vrot.slane %v10240_v39, 3  ;;  %v15971_v19 = vld [vmem:[%s19562_s1 + $0x1f8] sm:$0xff]   ;;  %v15969_v39 = vld [vmem:[%s19563_s0 + $0x14c] sm:$0xff]  }
 0x1ce   :  { %v17679_v46 = vrot.slane %v10228_v32, 2  ;;  %v10233_v50 = vrot.slane %v10231_v41, 3  ;;  %v16069_v32 = vmov 0  }
 0x1cf   :  { %15581 = vset.pattern.permute.xlu0 %v16069_v32  ;;  %15582 = vset.pattern.permute.xlu1 %v16069_v32  ;;  %v10243_v52 = vor.u32 %v10242_v12, %v17704_v51  ;;  %22 = vst [vmem:[%s19565_s3] sm:$0xf] %v16069_v32  ;;  %23 = vst [vmem:[%s19565_s3 + $0x4] sm:$0xf] %v16069_v32 }
 0x1d0   :  { %24 = vst [vmem:[%s19565_s3 + $0x8] sm:$0xf] %v16069_v32  ;;  %25 = vst [vmem:[%s19565_s3 + $0xc] sm:$0xf] %v16069_v32 }
 0x1d1   :  { %26 = vst [vmem:[%s19565_s3 + $0x10] sm:$0xf] %v16069_v32  ;;  %63 = vst [vmem:[%s19565_s3 + $0xa4] sm:$0xf] %v16069_v32 }
 0x1d2   :  { %14396 = vmatmul.mubr.bf16.vlgmr.msra.gmra.mrb[0].mxu0 %v3972_v43  ;;  %v17671_v43 = vrot.slane %v10219_v53, 2  ;;  %v4052_v53 = vor.u32 %v17677_v45, %v17675_v44  ;;  %64 = vst [vmem:[%s19565_s3 + $0xa8] sm:$0xf] %v16069_v32  ;;  %65 = vst [vmem:[%s19565_s3 + $0xac] sm:$0xf] %v16069_v32 }
 0x1d3   :  { %14864 = vmatmul.mubr.bf16.vlgmr.msra.gmra.mrb[0].mxu1 %v10154_v47  ;;  %14432 = vmatpush3.bf16.msra.mxu0 %v17456_v14  ;;  %v15947_v14 = vld [vmem:[%s19562_s1 + $0x1d0] sm:$0xff]   ;;  %v17673_v47 = vrot.slane %v10222_v2, 3  ;;  %v10234_v2 = vor.u32 %v10233_v50, %v17679_v46  ;;  %66 = vst [vmem:[%s19565_s3 + $0xb0] sm:$0xf] %v16069_v32  ;;  %67 = vst [vmem:[%s19565_s3 + $0xb4] sm:$0xf] %v16069_v32 }
 0x1d4   :  { %14399 = vmatprep.mubr.bf16.mxu0 %v3981_v9  ;;  %14867 = vmatprep.mubr.bf16.mxu1 %v10163_v48  ;;  %v4058_v9 = vshll.u32 %v15956_v33, 16  ;;  %v15959_v48 = vld [vmem:[%s19562_s1 + $0x1e0] sm:$0xff]   ;;  %68 = vst [vmem:[%s19565_s3 + $0xb8] sm:$0xf] %v16069_v32  ;;  %69 = vst [vmem:[%s19565_s3 + $0xbc] sm:$0xf] %v16069_v32 }
 0x1d5   :  { %14433 = vmatprep.subr.bf16.mxu0 %v15934_v49  ;;  %14900 = vmatpush3.bf16.msra.mxu1 %v17461_v18  ;;  %v4040_v18 = vshll.u32 %v15950_v3, 16  ;;  %v4034_v3 = vor.u32 %v17629_v17, %v17627_v16  ;;  %v10244_v61 = vsel %vm3278_vm4, %v10234_v2, %v10243_v52  ;;  %70 = vst [vmem:[%s19565_s3 + $0xc0] sm:$0xf] %v16069_v32  ;;  %108 = vst [vmem:[%s19565_s3 + $0x158] sm:$0xf] %v16069_v32 }
 0x1d6   :  { %14901 = vmatprep.subr.bf16.mxu1 %v15941_v56  ;;  %v17697_v42 = vrot.slane %v4058_v9, 3  ;;  %109 = vst [vmem:[%s19565_s3 + $0x15c] sm:$0xf] %v16069_v32  ;;  %110 = vst [vmem:[%s19565_s3 + $0x160] sm:$0xf] %v16069_v32 }
 0x1d7   :  { %14434 = vmatpush3.bf16.msra.mxu0 %v15934_v49  ;;  %v17663_v27 = vrot.slane %v4040_v18, 3  ;;  %v4008_v49 = vsel %vm3278_vm4, %v17604_v0, %v4007_v30  ;;  %v15961_v0 = vld [vmem:[%s19563_s0 + $0x134] sm:$0xff]   ;;  %v4035_v16 = vsel %vm3278_vm4, %v4025_v63, %v4034_v3  ;;  %v10225_v18 = vor.u32 %v17673_v47, %v17671_v43  ;;  %111 = vst [vmem:[%s19565_s3 + $0x164] sm:$0xf] %v16069_v32 }
 0x1d8   :  { %14435 = vmatprep.subr.bf16.mxu0 %v15940_v4  ;;  %v10246_v11 = vshrl.u32 %v15961_v0, 16  ;;  %v10249_v17 = vshll.u32 %v15961_v0, 16  ;;  %v4078_v43 = vrot.slane %v4076_v29, 3  ;;  %v4061_v44 = vor.u32 %v17697_v42, %v17692_v60  ;;  %v15970_v60 = vld [vmem:[%s19563_s0 + $0xa0] sm:$0xff]   ;;  %v15972_v63 = vld [vmem:[%s19563_s0 + $0x154] sm:$0xff]  }
 0x1d9   :  { %14902 = vmatpush3.bf16.msra.mxu1 %v15941_v56  ;;  %v10190_v56 = vsel %vm3278_vm4, %v10180_v13, %v10189_v34  ;;  %v15966_v34 = vld [vmem:[%s19563_s0 + $0x144] sm:$0xff]   ;;  %v10235_v38 = vsel %vm3278_vm4, %v10225_v18, %v10234_v2  ;;  %27 = vst [vmem:[%s19565_s3 + $0x14] sm:$0xf] %v16069_v32  ;;  %28 = vst [vmem:[%s19565_s3 + $0x18] sm:$0xf] %v16069_v32 }
 0x1da   :  { %14400 = vmatmul.mubr.bf16.gmra.mrb[4].mxu0 %v3990_v22  ;;  %14903 = vmatprep.subr.bf16.mxu1 %v15947_v14  ;;  %v4043_v22 = vor.u32 %v17663_v27, %v17661_v35  ;;  %v10264_v46 = vshrl.u32 %v15966_v34, 16  ;;  %29 = vst [vmem:[%s19565_s3 + $0x1c] sm:$0xf] %v16069_v32  ;;  %30 = vst [vmem:[%s19565_s3 + $0x20] sm:$0xf] %v16069_v32 }
 0x1db   :  { %14868 = vmatmul.mubr.bf16.gmra.mrb[4].mxu1 %v10172_v24  ;;  %14403 = vmatprep.mubr.bf16.mxu0 %v3999_v25  ;;  %v10248_v24 = vrot.slane %v10246_v11, 2  ;;  %v15965_v25 = vld [vmem:[%s19563_s0 + $0x90] sm:$0xff]   ;;  %v10282_v11 = vshrl.u32 %v15972_v63, 16  ;;  %31 = vst [vmem:[%s19565_s3 + $0x24] sm:$0xf] %v16069_v32 }
 0x1dc   :  { %14871 = vmatprep.mubr.bf16.mxu1 %v10181_v28  ;;  %14436 = vmatpush3.bf16.msra.mxu0 %v15940_v4  ;;  %v10216_v4 = vor.u32 %v17641_v20, %v17636_v15  ;;  %v4066_v15 = vrot.slane %v4064_v5, 2  ;;  %v4069_v20 = vrot.slane %v4067_v36, 3  ;;  %v17750_v28 = vld [vmem:[%s19562_s1 + $0x200] sm:$0xff]   ;;  %v4044_v33 = vsel %vm3278_vm4, %v4034_v3, %v4043_v22  ;;  %32 = vst [vmem:[%s19565_s3 + $0x28] sm:$0xf] %v16069_v32 }
 0x1dd   :  { %14437 = vmatprep.subr.bf16.mxu0 %v15946_v23  ;;  %14904 = vmatpush3.bf16.msra.mxu1 %v15947_v14  ;;  %v10208_v14 = vsel %vm3278_vm4, %v10198_v8, %v10207_v1  ;;  %v4053_v27 = vsel %vm3278_vm4, %v4043_v22, %v4052_v53  ;;  %v4082_v8 = vshrl.u32 %v15965_v25, 16  ;;  %v4085_v47 = vshll.u32 %v15965_v25, 16  ;;  %33 = vst [vmem:[%s19565_s3 + $0x2c] sm:$0xf] %v16069_v32 }
 0x1de   :  { %14905 = vmatprep.subr.bf16.mxu1 %v15953_v26  ;;  %v10217_v13 = vsel %vm3278_vm4, %v10207_v1, %v10216_v4  ;;  %v10226_v35 = vsel %vm3278_vm4, %v10216_v4, %v10225_v18  ;;  %v4070_v9 = vor.u32 %v4069_v20, %v4066_v15  ;;  %v10273_v3 = vshrl.u32 %v15969_v39, 16  ;;  %34 = vst [vmem:[%s19565_s3 + $0x30] sm:$0xf] %v16069_v32 }
 0x1df   :  { %v4084_v55 = vrot.slane %v4082_v8, 2  ;;  %v10276_v4 = vshll.u32 %v15969_v39, 16  ;;  %v4103_v36 = vshll.u32 %v15970_v60, 16  ;;  %v15978_v8 = vld [vmem:[%s19563_s0 + $0x20] sm:$0xff]   ;;  %35 = vst [vmem:[%s19565_s3 + $0x34] sm:$0xf] %v16069_v32 }
 0x1e0   :  { %14438 = vmatpush3.bf16.msra.mxu0 %v15946_v23  ;;  %v15963_v23 = vld [vmem:[%s19563_s0 + $0x13c] sm:$0xff]   ;;  %v4071_v42 = vsel %vm3278_vm4, %v4061_v44, %v4070_v9  ;;  %v10275_v15 = vrot.slane %v10273_v3, 2  ;;  %36 = vst [vmem:[%s19565_s3 + $0x38] sm:$0xf] %v16069_v32  ;;  %37 = vst [vmem:[%s19565_s3 + $0x3c] sm:$0xf] %v16069_v32 }
 0x1e1   :  { %14439 = vmatprep.subr.bf16.mxu0 %v15952_v40  ;;  %14906 = vmatpush3.bf16.msra.mxu1 %v15953_v26  ;;  %v4073_v26 = vshrl.u32 %v15962_v7, 16  ;;  %v10255_v30 = vshrl.u32 %v15963_v23, 16  ;;  %v10258_v41 = vshll.u32 %v15963_v23, 16  ;;  %v4105_v22 = vrot.slane %v4103_v36, 3  ;;  %38 = vst [vmem:[%s19565_s3 + $0x40] sm:$0xf] %v16069_v32 }
 0x1e2   :  { %14404 = vmatmul.mubr.bf16.gmra.mrb[8].mxu0 %v4008_v49  ;;  %14907 = vmatprep.subr.bf16.mxu1 %v15959_v48  ;;  %v10267_v49 = vshll.u32 %v15966_v34, 16  ;;  %39 = vst [vmem:[%s19565_s3 + $0x44] sm:$0xf] %v16069_v32  ;;  %40 = vst [vmem:[%s19565_s3 + $0x48] sm:$0xf] %v16069_v32 }
 0x1e3   :  { %14872 = vmatmul.mubr.bf16.gmra.mrb[8].mxu1 %v10190_v56  ;;  %14407 = vmatprep.mubr.bf16.mxu0 %v4017_v57  ;;  %v4075_v37 = vrot.slane %v4073_v26, 2  ;;  %v10257_v45 = vrot.slane %v10255_v30, 2  ;;  %v15968_v56 = vld [vmem:[%s19563_s0 + $0x98] sm:$0xff]   ;;  %v4087_v57 = vrot.slane %v4085_v47, 3  ;;  %41 = vst [vmem:[%s19565_s3 + $0x4c] sm:$0xf] %v16069_v32 }
 0x1e4   :  { %14875 = vmatprep.mubr.bf16.mxu1 %v10199_v59  ;;  %14440 = vmatpush3.bf16.msra.mxu0 %v15952_v40  ;;  %v10251_v40 = vrot.slane %v10249_v17, 3  ;;  %v10266_v59 = vrot.slane %v10264_v46, 2  ;;  %v4091_v0 = vshrl.u32 %v15968_v56, 16  ;;  %v4094_v1 = vshll.u32 %v15968_v56, 16  ;;  %v15977_v47 = vld [vmem:[%s19563_s0 + $0x18] sm:$0xf8]  }
 0x1e5   :  { %14441 = vmatprep.subr.bf16.mxu0 %v15958_v58  ;;  %14908 = vmatpush3.bf16.msra.mxu1 %v15959_v48  ;;  %v10260_v48 = vrot.slane %v10258_v41, 3  ;;  %v4079_v5 = vor.u32 %v4078_v43, %v4075_v37  ;;  %v4088_v12 = vor.u32 %v4087_v57, %v4084_v55  ;;  %v15979_v46 = vld [vmem:[%s19563_s0 + $0xcc] sm:$0xf8]   ;;  %v4617_v55 = vrot.slane %v15978_v8, 3  ;;  %42 = vst [vmem:[%s19565_s3 + $0x50] sm:$0xf] %v16069_v32 }
 0x1e6   :  { %14909 = vmatprep.subr.bf16.mxu1 %v15967_v54  ;;  %v10252_v50 = vor.u32 %v10251_v40, %v10248_v24  ;;  %v4093_v7 = vrot.slane %v4091_v0, 2  ;;  %v10796_v56 = vrot.slane %v15979_v46, 3  ;;  %v16003_v46 = vld [vmem:[%s19563_s0 + $0x114] sm:$0xff]   ;;  %43 = vst [vmem:[%s19565_s3 + $0x54] sm:$0xf] %v16069_v32 }
 0x1e7   :  { %v4080_v20 = vsel %vm3278_vm4, %v4070_v9, %v4079_v5  ;;  %v4089_v18 = vsel %vm3278_vm4, %v4079_v5, %v4088_v12  ;;  %v15980_v9 = vld [vmem:[%s19563_s0 + $0xd4] sm:$0xff]   ;;  %44 = vst [vmem:[%s19565_s3 + $0x58] sm:$0xf] %v16069_v32  ;;  %45 = vst [vmem:[%s19565_s3 + $0x5c] sm:$0xf] %v16069_v32 }
 0x1e8   :  { %14442 = vmatpush3.bf16.msra.mxu0 %v15958_v58  ;;  %v4062_v58 = vsel %vm3278_vm4, %v4052_v53, %v4061_v44  ;;  %v10253_v51 = vsel %vm3278_vm4, %v10243_v52, %v10252_v50  ;;  %v10284_v53 = vrot.slane %v10282_v11, 2  ;;  %v10797_v57 = vrot.slane %v15980_v9, 3  ;;  %v15986_v5 = vld [vmem:[%s19563_s0 + $0x38] sm:$0xff]   ;;  %v15988_v11 = vld [vmem:[%s19562_s1 + $0x208] sm:$0xff]   ;;  %46 = vst [vmem:[%s19565_s3 + $0x60] sm:$0xf] %v16069_v32 }
 0x1e9   :  { %14443 = vmatprep.subr.bf16.mxu0 %v15964_v62  ;;  %14910 = vmatpush3.bf16.msra.mxu1 %v15967_v54  ;;  %v10269_v54 = vrot.slane %v10267_v49, 3  ;;  %v16021_v9 = vld [vmem:[%s19562_s1 + $0x228] sm:$0xff]   ;;  %47 = vst [vmem:[%s19565_s3 + $0x64] sm:$0xf] %v16069_v32  ;;  %48 = vst [vmem:[%s19565_s3 + $0x68] sm:$0xf] %v16069_v32 }
 0x1ea   :  { %14408 = vmatmul.mubr.bf16.gmra.mrb[12].mxu0 %v4026_v10  ;;  %14911 = vmatprep.subr.bf16.mxu1 %v15975_v6  ;;  %v10261_v10 = vor.u32 %v10260_v48, %v10257_v45  ;;  %49 = vst [vmem:[%s19565_s3 + $0x6c] sm:$0xf] %v16069_v32  ;;  %50 = vst [vmem:[%s19565_s3 + $0x70] sm:$0xf] %v16069_v32 }
 0x1eb   :  { %14876 = vmatmul.mubr.bf16.gmra.mrb[12].mxu1 %v10208_v14  ;;  %14411 = vmatprep.mubr.bf16.mxu0 %v4035_v16  ;;  %v10285_v14 = vshll.u32 %v15972_v63, 16  ;;  %v15974_v16 = vld [vmem:[%s19563_s0 + $0x15c] ss:$0 sps:$4 sm:$0x77]   ;;  %v10270_v17 = vor.u32 %v10269_v54, %v10266_v59  ;;  %v15984_v54 = vld [vmem:[%s19563_s0 + $0x30] sm:$0xff]   ;;  %v15985_v63 = vld [vmem:[%s19563_s0 + $0xe4] sm:$0xff]  }
 0x1ec   :  { %14879 = vmatprep.mubr.bf16.mxu1 %v10217_v13  ;;  %14444 = vmatpush3.bf16.msra.mxu0 %v15964_v62  ;;  %v4100_v62 = vshrl.u32 %v15970_v60, 16  ;;  %v4096_v13 = vrot.slane %v4094_v1, 3  ;;  %v10262_v23 = vsel %vm3278_vm4, %v10252_v50, %v10261_v10  ;;  %v10291_v29 = vshrl.u32 %v15974_v16, 16  ;;  %v15983_v59 = vld [vmem:[%s19563_s0 + $0xdc] sm:$0xff]   ;;  %51 = vst [vmem:[%s19565_s3 + $0x74] sm:$0xf] %v16069_v32 }
 0x1ed   :  { %14445 = vmatprep.subr.bf16.mxu0 %v15971_v19  ;;  %14912 = vmatpush3.bf16.msra.mxu1 %v15975_v6  ;;  %v15973_v6 = vld [vmem:[%s19563_s0 + $0xa8] ss:$0 sps:$4 sm:$0x77]   ;;  %v10287_v24 = vrot.slane %v10285_v14, 3  ;;  %v10271_v25 = vsel %vm3278_vm4, %v10261_v10, %v10270_v17  ;;  %v4616_v50 = vrot.slane %v15977_v47, 3  ;;  %v10799_v0 = vrot.slane %v15983_v59, 3 }
 0x1ee   :  { %14913 = vmatprep.subr.bf16.mxu1 %v15976_v21  ;;  %v4109_v2 = vshrl.u32 %v15973_v6, 16  ;;  %v4112_v26 = vshll.u32 %v15973_v6, 16  ;;  %v4097_v30 = vor.u32 %v4096_v13, %v4093_v7  ;;  %v4621_v1 = vrot.slane %v15984_v54, 3  ;;  %v15990_v6 = vld [vmem:[%s19563_s0 + $0x40] sm:$0xff]   ;;  %v15991_v14 = vld [vmem:[%s19563_s0 + $0xf4] sm:$0xff]   ;;  %v15999_v47 = vld [vmem:[%s19563_s0 + $0x10c] sm:$0xff]  }
 0x1ef   :  { %v10801_v3 = vrot.slane %v15985_v63, 3  ;;  %v10800_v36 = vsel %vm4615_vm5, %v10797_v57, %v10799_v0  ;;  %v4625_v13 = vrot.slane %v15990_v6, 3  ;;  %v16008_v63 = vld [vmem:[%s19563_s0 + $0x70] sm:$0xff]   ;;  %52 = vst [vmem:[%s19565_s3 + $0x78] sm:$0xf] %v16069_v32 }
 0x1f0   :  { %14446 = vmatpush3.bf16.msra.mxu0 %v15971_v19  ;;  %v10278_v19 = vrot.slane %v10276_v4, 3  ;;  %v4111_v40 = vrot.slane %v4109_v2, 2  ;;  %v4114_v41 = vrot.slane %v4112_v26, 3  ;;  %v4098_v43 = vsel %vm3278_vm4, %v4088_v12, %v4097_v30  ;;  %v16000_v2 = vld [vmem:[%s19562_s1 + $0x218] sm:$0xff]   ;;  %v118_v6 = vld [vmem:[%s19564_s2 + $0x30] sm:$0xff] }
 0x1f1   :  { %14914 = vmatpush3.bf16.msra.mxu1 %v15976_v21  ;;  %14483 = vmatprep.subr.bf16.mxu0 %v17750_v28  ;;  %v4102_v21 = vrot.slane %v4100_v62, 2  ;;  %v15987_v62 = vld [vmem:[%s19563_s0 + $0xec] sm:$0xff]   ;;  %v10802_v12 = vsel %vm4615_vm5, %v10799_v0, %v10801_v3  ;;  %v16007_v26 = vld [vmem:[%s19562_s1 + $0x218] sm:$0xff]   ;;  %v16009_v0 = vld [vmem:[%s19563_s0 + $0x124] sm:$0xff]   ;;  %53 = vst [vmem:[%s19565_s3 + $0x7c] sm:$0xf] %v16069_v32 }
 0x1f2   :  { %14412 = vmatmul.mubr.bf16.gmra.mrb[16].mxu0 %v4044_v33  ;;  %14951 = vmatprep.subr.bf16.mxu1 %v17755_v31  ;;  %v10294_v33 = vshll.u32 %v15974_v16, 16  ;;  %v10279_v34 = vor.u32 %v10278_v19, %v10275_v15  ;;  %v4115_v48 = vor.u32 %v4114_v41, %v4111_v40  ;;  %v15995_v16 = vld [vmem:[%s19562_s1 + $0x208] sm:$0xff]   ;;  %v10803_v7 = vrot.slane %v15987_v62, 3  ;;  %v15994_v15 = vld [vmem:[%s19562_s1 + $0x210] sm:$0xff]   ;;  %v16006_v40 = vld [vmem:[%s19562_s1 + $0x220] sm:$0xff]  }
 0x1f3   :  { %14880 = vmatmul.mubr.bf16.gmra.mrb[16].mxu1 %v10226_v35  ;;  %14415 = vmatprep.mubr.bf16.mxu0 %v4053_v27  ;;  %v4106_v35 = vor.u32 %v4105_v22, %v4102_v21  ;;  %v10288_v27 = vor.u32 %v10287_v24, %v10284_v53  ;;  %v10805_v19 = vrot.slane %v15991_v14, 3  ;;  %v112_v21 = vld [vmem:[%s19564_s2] sm:$0xff]  ;;  %v15996_v53 = vld [vmem:[%s19563_s0 + $0x50] sm:$0xff]   ;;  %54 = vst [vmem:[%s19565_s3 + $0x80] sm:$0xf] %v16069_v32 }
 0x1f4   :  { %14883 = vmatprep.mubr.bf16.mxu1 %v10235_v38  ;;  %v10293_v38 = vrot.slane %v10291_v29, 2  ;;  %v10296_v37 = vrot.slane %v10294_v33, 3  ;;  %v10280_v44 = vsel %vm3278_vm4, %v10270_v17, %v10279_v34  ;;  %v4623_v17 = vrot.slane %v15986_v5, 3  ;;  %6003 = vperm.xlu0 %15581, %v112_v21   ;;  %v16013_v41 = vld [vmem:[%s19562_s1 + $0x220] sm:$0xff]   ;;  %v117_v5 = vld [vmem:[%s19564_s2 + $0x28] sm:$0xff] }
 0x1f5   :  { %v4107_v45 = vsel %vm3278_vm4, %v4097_v30, %v4106_v35  ;;  %v10289_v52 = vsel %vm3278_vm4, %v10279_v34, %v10288_v27  ;;  %v4116_v39 = vsel %vm3278_vm4, %v4106_v35, %v4115_v48  ;;  %v10806_v24 = vsel %vm4615_vm5, %v10803_v7, %v10805_v19  ;;  %v114_v30 = vld [vmem:[%s19564_s2 + $0x10] sm:$0xff]  ;;  %v113_v35 = vld [vmem:[%s19564_s2 + $0x8] sm:$0xff]  ;;  %55 = vst [vmem:[%s19565_s3 + $0x84] sm:$0xf] %v16069_v32 }
 0x1f6   :  { %v10297_v49 = vor.u32 %v10296_v37, %v10293_v38  ;;  %v4624_v22 = vsel %vm4615_vm5, %v4621_v1, %v4623_v17  ;;  %v4629_v34 = vrot.slane %v15996_v53, 3  ;;  %6013 = vperm.xlu1 %15582, %v114_v30   ;;  %v15998_v37 = vld [vmem:[%s19563_s0 + $0x58] sm:$0xff]   ;;  %v16011_v14 = vld [vmem:[%s19563_s0 + $0x12c] sm:$0xff]   ;;  %v16020_v30 = vld [vmem:[%s19563_s0 + $0x144] sm:$0xff]   ;;  %56 = vst [vmem:[%s19565_s3 + $0x88] sm:$0xf] %v16069_v32 }
 0x1f7   :  { %v4631_v48 = vrot.slane %v15998_v37, 3  ;;  %v121_v21 = vld [vmem:[%s19564_s2 + $0x48] sm:$0xff]  ;;  %v10825_v37 = vrot.slane %v16020_v30, 3  ;;  %57 = vst [vmem:[%s19565_s3 + $0x8c] sm:$0xf] %v16069_v32 }
 0x1f8   :  { %v10298_v60 = vsel %vm3278_vm4, %v10288_v27, %v10297_v49  ;;  %6008 = vperm.xlu0 %15581, %v113_v35   ;;  %v115_v49 = vld [vmem:[%s19564_s2 + $0x18] sm:$0xff]  ;;  %v16016_v53 = vld [vmem:[%s19563_s0 + $0x88] sm:$0xff]   ;;  %v124_v35 = vld [vmem:[%s19564_s2 + $0x60] sm:$0xff]  ;;  %58 = vst [vmem:[%s19565_s3 + $0x90] sm:$0xf] %v16069_v32 }
 0x1f9   :  { %v4632_v59 = vsel %vm4615_vm5, %v4629_v34, %v4631_v48  ;;  %59 = vst [vmem:[%s19565_s3 + $0x94] sm:$0xf] %v16069_v32  ;;  %60 = vst [vmem:[%s19565_s3 + $0x98] sm:$0xf] %v16069_v32 }
 0x1fa   :  { %14416 = vmatmul.mubr.bf16.gmra.mrb[20].mxu0 %v4062_v58  ;;  %v15981_v58 = vld [vmem:[%s19563_s0 + $0x28] sm:$0xff]   ;;  %6018 = vperm.xlu1 %15582, %v115_v49   ;;  %61 = vst [vmem:[%s19565_s3 + $0x9c] sm:$0xf] %v16069_v32  ;;  %62 = vst [vmem:[%s19565_s3 + $0xa0] sm:$0xf] %v16069_v32 }
 0x1fb   :  { %14884 = vmatmul.mubr.bf16.gmra.mrb[20].mxu1 %v10244_v61  ;;  %14419 = vmatprep.mubr.bf16.mxu0 %v4071_v42  ;;  %v4618_v61 = vsel %vm4615_vm5, %v4616_v50, %v4617_v55  ;;  %v10798_v42 = vsel %vm4615_vm5, %v10796_v56, %v10797_v57  ;;  %v10811_v50 = vrot.slane %v15999_v47, 3  ;;  %v116_v56 = vld [vmem:[%s19564_s2 + $0x20] sm:$0xff]  ;;  %v10813_v57 = vrot.slane %v16003_v46, 3  ;;  %v126_v47 = vld [vmem:[%s19564_s2 + $0x70] sm:$0xff]  ;;  %71 = vst [vmem:[%s19565_s3 + $0xc4] sm:$0xf] %v16069_v32 }
 0x1fc   :  { %14887 = vmatprep.mubr.bf16.mxu1 %v10253_v51  ;;  %v4619_v51 = vrot.slane %v15981_v58, 3  ;;  %v16029_v58 = vld [vmem:[%s19562_s1 + $0x230] sm:$0xff]   ;;  %6023 = vperm.xlu0 %15581, %v116_v56   ;;  %72 = vst [vmem:[%s19565_s3 + $0xc8] sm:$0xf] %v16069_v32  ;;  %73 = vst [vmem:[%s19565_s3 + $0xcc] sm:$0xf] %v16069_v32 }
 0x1fd   :  { %v18029_v46 = vld [vmem:[%s19563_s0 + $0x154] sm:$0xff]   ;;  %74 = vst [vmem:[%s19565_s3 + $0xd0] sm:$0xf] %v16069_v32  ;;  %75 = vst [vmem:[%s19565_s3 + $0xd4] sm:$0xf] %v16069_v32 }
 0x1fe   :  { %v4620_v4 = vsel %vm4615_vm5, %v4617_v55, %v4619_v51  ;;  %v4622_v10 = vsel %vm4615_vm5, %v4619_v51, %v4621_v1  ;;  %v10814_v51 = vsel %vm4615_vm5, %v10811_v50, %v10813_v57  ;;  %v16025_v1 = vld [vmem:[%s19562_s1 + $0x238] sm:$0xff]   ;;  %6028 = vperm.xlu1 %15582, %v117_v5   ;;  %76 = vst [vmem:[%s19565_s3 + $0xd8] sm:$0xf] %v16069_v32  ;;  %77 = vst [vmem:[%s19565_s3 + $0xdc] sm:$0xf] %v16069_v32 }
 0x1ff   :  { %78 = vst [vmem:[%s19565_s3 + $0xe0] sm:$0xf] %v16069_v32  ;;  %79 = vst [vmem:[%s19565_s3 + $0xe4] sm:$0xf] %v16069_v32 }
 0x200   :  { %6033 = vperm.xlu0 %15581, %v118_v6   ;;  %v16028_v6 = vld [vmem:[%s19563_s0 + $0x15c] ss:$0 sps:$4 sm:$0x77]   ;;  %80 = vst [vmem:[%s19565_s3 + $0xe8] sm:$0xf] %v16069_v32 }
 0x201   :  { %81 = vst [vmem:[%s19565_s3 + $0xec] sm:$0xf] %v16069_v32  ;;  %82 = vst [vmem:[%s19565_s3 + $0xf0] sm:$0xf] %v16069_v32 }
 0x202   :  { %14420 = vmatmul.mubr.bf16.gmra.mrb[24].mxu0 %v4080_v20  ;;  %v15992_v20 = vld [vmem:[%s19563_s0 + $0x48] sm:$0xff]   ;;  %83 = vst [vmem:[%s19565_s3 + $0xf4] sm:$0xf] %v16069_v32  ;;  %84 = vst [vmem:[%s19565_s3 + $0xf8] sm:$0xf] %v16069_v32 }
 0x203   :  { %14888 = vmatmul.mubr.bf16.gmra.mrb[24].mxu1 %v10262_v23  ;;  %14423 = vmatprep.mubr.bf16.mxu0 %v4089_v18  ;;  %v10804_v23 = vsel %vm4615_vm5, %v10801_v3, %v10803_v7  ;;  %v4626_v18 = vsel %vm4615_vm5, %v4623_v17, %v4625_v13  ;;  %v4627_v29 = vrot.slane %v15992_v20, 3  ;;  %v16030_v3 = vld [vmem:[%s19562_s1 + $0x238] sm:$0xff]   ;;  %v120_v20 = vld [vmem:[%s19564_s2 + $0x40] sm:$0xff]  ;;  %85 = vst [vmem:[%s19565_s3 + $0xfc] sm:$0xf] %v16069_v32 }
 0x204   :  { %14891 = vmatprep.mubr.bf16.mxu1 %v10271_v25  ;;  %v15997_v25 = vld [vmem:[%s19563_s0 + $0x104] sm:$0xff]   ;;  %6043 = vperm.xlu0 %15581, %v120_v20   ;;  %86 = vst [vmem:[%s19565_s3 + $0x100] sm:$0xf] %v16069_v32  ;;  %87 = vst [vmem:[%s19565_s3 + $0x104] sm:$0xf] %v16069_v32 }
 0x205   :  { %v10809_v27 = vrot.slane %v15997_v25, 3  ;;  %v4628_v38 = vsel %vm4615_vm5, %v4625_v13, %v4627_v29  ;;  %v16014_v13 = vld [vmem:[%s19563_s0 + $0x80] sm:$0xff]   ;;  %88 = vst [vmem:[%s19565_s3 + $0x108] sm:$0xf] %v16069_v32  ;;  %89 = vst [vmem:[%s19565_s3 + $0x10c] sm:$0xf] %v16069_v32 }
 0x206   :  { %v16017_v25 = vld [vmem:[%s19563_s0 + $0x13c] sm:$0xff]   ;;  %90 = vst [vmem:[%s19565_s3 + $0x110] sm:$0xf] %v16069_v32  ;;  %91 = vst [vmem:[%s19565_s3 + $0x114] sm:$0xf] %v16069_v32 }
 0x207   :  { %92 = vst [vmem:[%s19565_s3 + $0x118] sm:$0xf] %v16069_v32  ;;  %93 = vst [vmem:[%s19565_s3 + $0x11c] sm:$0xf] %v16069_v32 }
 0x208   :  { %94 = vst [vmem:[%s19565_s3 + $0x120] sm:$0xf] %v16069_v32  ;;  %95 = vst [vmem:[%s19565_s3 + $0x124] sm:$0xf] %v16069_v32 }
 0x209   :  { %96 = vst [vmem:[%s19565_s3 + $0x128] sm:$0xf] %v16069_v32  ;;  %97 = vst [vmem:[%s19565_s3 + $0x12c] sm:$0xf] %v16069_v32 }
 0x20a   :  { %14424 = vmatmul.mubr.bf16.gmra.mrb[28].mxu0 %v4098_v43  ;;  %v4630_v43 = vsel %vm4615_vm5, %v4627_v29, %v4629_v34  ;;  %98 = vst [vmem:[%s19565_s3 + $0x130] sm:$0xf] %v16069_v32  ;;  %99 = vst [vmem:[%s19565_s3 + $0x134] sm:$0xf] %v16069_v32 }
 0x20b   :  { %14892 = vmatmul.mubr.bf16.gmra.mrb[28].mxu1 %v10280_v44  ;;  %14427 = vmatprep.mubr.bf16.mxu0 %v4107_v45  ;;  %v16002_v44 = vld [vmem:[%s19563_s0 + $0x60] sm:$0xff]   ;;  %100 = vst [vmem:[%s19565_s3 + $0x138] sm:$0xf] %v16069_v32  ;;  %101 = vst [vmem:[%s19565_s3 + $0x13c] sm:$0xf] %v16069_v32 }
 0x20c   :  { %14895 = vmatprep.mubr.bf16.mxu1 %v10289_v52  ;;  %v16012_v52 = vld [vmem:[%s19562_s1 + $0x228] sm:$0xff]   ;;  %v4633_v55 = vrot.slane %v16002_v44, 3  ;;  %v18023_v44 = vld [vmem:[%s19563_s0 + $0xa0] sm:$0xff]   ;;  %102 = vst [vmem:[%s19565_s3 + $0x140] sm:$0xf] %v16069_v32 }
 0x20d   :  { %103 = vst [vmem:[%s19565_s3 + $0x144] sm:$0xf] %v16069_v32  ;;  %104 = vst [vmem:[%s19565_s3 + $0x148] sm:$0xf] %v16069_v32 }
 0x20e   :  { %v4634_v54 = vsel %vm4615_vm5, %v4631_v48, %v4633_v55  ;;  %105 = vst [vmem:[%s19565_s3 + $0x14c] sm:$0xf] %v16069_v32  ;;  %106 = vst [vmem:[%s19565_s3 + $0x150] sm:$0xf] %v16069_v32 }
 0x20f   :  { %107 = vst [vmem:[%s19565_s3 + $0x154] sm:$0xf] %v16069_v32 }
 0x212   :  { %14428 = vmatmul.mubr.bf16.gmra.mrb[32].mxu0 %v4116_v39  ;;  %v16018_v39 = vld [vmem:[%s19562_s1 + $0x230] sm:$0xff]  }
 0x213   :  { %14896 = vmatmul.mubr.bf16.gmra.mrb[32].mxu1 %v10298_v60  ;;  %14447 = vmatprep.mubr.bf16.mxu0 %v4618_v61  ;;  %v16004_v60 = vld [vmem:[%s19563_s0 + $0x68] sm:$0xff]   ;;  %v16005_v61 = vld [vmem:[%s19563_s0 + $0x11c] sm:$0xff]  }
 0x214   :  { %14915 = vmatprep.mubr.bf16.mxu1 %v10798_v42  ;;  %v10812_v42 = vsel %vm4615_vm5, %v10809_v27, %v10811_v50  ;;  %v10815_v62 = vrot.slane %v16005_v61, 3  ;;  %v16031_v50 = vld [vmem:[%s19563_s0 + $0x18] sm:$0xf8]   ;;  %v10829_v61 = vrot.slane %v18029_v46, 3 }
 0x215   :  { %v16042_v46 = vld [vmem:[%s19563_s0 + $0xf4] sm:$0xff]  }
 0x216   :  { %v10816_v17 = vsel %vm4615_vm5, %v10813_v57, %v10815_v62  ;;  %v16034_v57 = vld [vmem:[%s19563_s0 + $0xd4] sm:$0xff]  }
 0x217   :  { %v11339_v5 = vshrl.u32 %v16034_v57, 16 }
 0x21a   :  { %14448 = vmatmul.mubr.bf16.vlgmr.msra.gmra.mrb[0].mxu0 %v4620_v4  ;;  %v4635_v4 = vrot.slane %v16004_v60, 3  ;;  %v4649_v60 = vrot.slane %v18023_v44, 3 }
 0x21b   :  { %14916 = vmatmul.mubr.bf16.vlgmr.msra.gmra.mrb[0].mxu1 %v10800_v36  ;;  %14484 = vmatpush3.bf16.msra.mxu0 %v17750_v28  ;;  %v16001_v28 = vld [vmem:[%s19562_s1 + $0x210] sm:$0xff]   ;;  %v4637_v36 = vrot.slane %v16008_v63, 3  ;;  %v5153_v63 = vshrl.u32 %v16031_v50, 16 }
 0x21c   :  { %14451 = vmatprep.mubr.bf16.mxu0 %v4622_v10  ;;  %14919 = vmatprep.mubr.bf16.mxu1 %v10802_v12  ;;  %v10817_v10 = vrot.slane %v16009_v0, 3  ;;  %v16010_v12 = vld [vmem:[%s19563_s0 + $0x78] sm:$0xff]  }
 0x21d   :  { %14485 = vmatprep.subr.bf16.mxu0 %v15988_v11  ;;  %14952 = vmatpush3.bf16.msra.mxu1 %v17755_v31  ;;  %v15993_v31 = vld [vmem:[%s19563_s0 + $0xfc] sm:$0xff]   ;;  %v4638_v7 = vsel %vm4615_vm5, %v4635_v4, %v4637_v36 }
 0x21e   :  { %14953 = vmatprep.subr.bf16.mxu1 %v15995_v16  ;;  %v10807_v33 = vrot.slane %v15993_v31, 3  ;;  %v4641_v31 = vrot.slane %v16014_v13, 3  ;;  %v131_v13 = vld [vmem:[%s19564_s2 + $0x98] sm:$0xff] }
 0x21f   :  { %14486 = vmatpush3.bf16.msra.mxu0 %v15988_v11  ;;  %v4636_v11 = vsel %vm4615_vm5, %v4633_v55, %v4635_v4  ;;  %v16033_v55 = vld [vmem:[%s19563_s0 + $0xcc] sm:$0xf8]  }
 0x220   :  { %14487 = vmatprep.subr.bf16.mxu0 %v15994_v15  ;;  %v10808_v8 = vsel %vm4615_vm5, %v10805_v19, %v10807_v33  ;;  %v10810_v45 = vsel %vm4615_vm5, %v10807_v33, %v10809_v27  ;;  %v16015_v19 = vld [vmem:[%s19563_s0 + $0x134] sm:$0xff]   ;;  %v4643_v27 = vrot.slane %v16016_v53, 3  ;;  %v11334_v4 = vshll.u32 %v16033_v55, 16  ;;  %v132_v53 = vld [vmem:[%s19564_s2 + $0xa0] sm:$0xff] }
 0x221   :  { %14954 = vmatpush3.bf16.msra.mxu1 %v15995_v16  ;;  %v119_v16 = vld [vmem:[%s19564_s2 + $0x38] sm:$0xff]  ;;  %v16019_v33 = vld [vmem:[%s19563_s0 + $0x90] sm:$0xff]  }
 0x222   :  { %14452 = vmatmul.mubr.bf16.gmra.mrb[4].mxu0 %v4624_v22  ;;  %14955 = vmatprep.subr.bf16.mxu1 %v16001_v28  ;;  %v10819_v22 = vrot.slane %v16011_v14, 3 }
 0x223   :  { %14920 = vmatmul.mubr.bf16.gmra.mrb[4].mxu1 %v10804_v23  ;;  %14455 = vmatprep.mubr.bf16.mxu0 %v4626_v18  ;;  %v10821_v23 = vrot.slane %v16015_v19, 3  ;;  %v122_v18 = vld [vmem:[%s19564_s2 + $0x50] sm:$0xff] }
 0x224   :  { %14923 = vmatprep.mubr.bf16.mxu1 %v10806_v24  ;;  %14488 = vmatpush3.bf16.msra.mxu0 %v15994_v15  ;;  %v10818_v15 = vsel %vm4615_vm5, %v10815_v62, %v10817_v10  ;;  %v11342_v62 = vshll.u32 %v16034_v57, 16 }
 0x225   :  { %14489 = vmatprep.subr.bf16.mxu0 %v16000_v2  ;;  %14956 = vmatpush3.bf16.msra.mxu1 %v16001_v28  ;;  %v4639_v28 = vrot.slane %v16010_v12, 3  ;;  %v10822_v34 = vsel %vm4615_vm5, %v10819_v22, %v10821_v23 }
 0x226   :  { %14957 = vmatprep.subr.bf16.mxu1 %v16007_v26  ;;  %6038 = vperm.xlu1 %15582, %v119_v16  }
 0x227   :  { %v4640_v24 = vsel %vm4615_vm5, %v4637_v36, %v4639_v28  ;;  %v4642_v29 = vsel %vm4615_vm5, %v4639_v28, %v4641_v31  ;;  %6053 = vperm.xlu0 %15581, %v122_v18   ;;  %v130_v36 = vld [vmem:[%s19564_s2 + $0x90] sm:$0xff]  ;;  %v16038_v18 = vld [vmem:[%s19563_s0 + $0xe4] sm:$0xff]  }
 0x228   :  { %14490 = vmatpush3.bf16.msra.mxu0 %v16000_v2  ;;  %v123_v2 = vld [vmem:[%s19564_s2 + $0x58] sm:$0xff] }
 0x229   :  { %14491 = vmatprep.subr.bf16.mxu0 %v16006_v40  ;;  %14958 = vmatpush3.bf16.msra.mxu1 %v16007_v26  ;;  %v10820_v26 = vsel %vm4615_vm5, %v10817_v10, %v10819_v22  ;;  %v16035_v10 = vld [vmem:[%s19563_s0 + $0x28] sm:$0xff]   ;;  %v11336_v22 = vrot.slane %v11334_v4, 4 }
 0x22a   :  { %14456 = vmatmul.mubr.bf16.gmra.mrb[8].mxu0 %v4628_v38  ;;  %14959 = vmatprep.subr.bf16.mxu1 %v16013_v41  ;;  %v4645_v38 = vrot.slane %v16019_v33, 3 }
 0x22b   :  { %14924 = vmatmul.mubr.bf16.gmra.mrb[8].mxu1 %v10808_v8  ;;  %14459 = vmatprep.mubr.bf16.mxu0 %v4630_v43  ;;  %v16022_v8 = vld [vmem:[%s19563_s0 + $0x98] sm:$0xff]   ;;  %v16023_v43 = vld [vmem:[%s19563_s0 + $0x14c] sm:$0xff]  }
 0x22c   :  { %14927 = vmatprep.mubr.bf16.mxu1 %v10810_v45  ;;  %14492 = vmatpush3.bf16.msra.mxu0 %v16006_v40  ;;  %v125_v40 = vld [vmem:[%s19564_s2 + $0x68] sm:$0xff]  ;;  %v4644_v45 = vsel %vm4615_vm5, %v4641_v31, %v4643_v27  ;;  %v4646_v49 = vsel %vm4615_vm5, %v4643_v27, %v4645_v38  ;;  %v11341_v31 = vrot.slane %v11339_v5, 3 }
 0x22d   :  { %14493 = vmatprep.subr.bf16.mxu0 %v16012_v52  ;;  %14960 = vmatpush3.bf16.msra.mxu1 %v16013_v41  ;;  %v10823_v41 = vrot.slane %v16017_v25, 3  ;;  %v5170_v25 = vshrl.u32 %v16035_v10, 16 }
 0x22e   :  { %14961 = vmatprep.subr.bf16.mxu1 %v16021_v9  ;;  %6048 = vperm.xlu1 %15582, %v121_v21  }
 0x22f   :  { %6063 = vperm.xlu0 %15581, %v124_v35   ;;  %v10824_v48 = vsel %vm4615_vm5, %v10821_v23, %v10823_v41  ;;  %v10826_v56 = vsel %vm4615_vm5, %v10823_v41, %v10825_v37  ;;  %v11344_v23 = vrot.slane %v11342_v62, 4  ;;  %v10831_v35 = vrot.slane %v16028_v6, 3 }
 0x230   :  { %14494 = vmatpush3.bf16.msra.mxu0 %v16012_v52  ;;  %v16032_v52 = vld [vmem:[%s19563_s0 + $0x20] sm:$0xff]   ;;  %v5172_v44 = vrot.slane %v5170_v25, 3 }
 0x231   :  { %14495 = vmatprep.subr.bf16.mxu0 %v16018_v39  ;;  %14962 = vmatpush3.bf16.msra.mxu1 %v16021_v9  ;;  %v127_v9 = vld [vmem:[%s19564_s2 + $0x78] sm:$0xff]  ;;  %v5161_v0 = vshrl.u32 %v16032_v52, 16  ;;  %v16046_v25 = vld [vmem:[%s19563_s0 + $0x104] sm:$0xff]  }
 0x232   :  { %14460 = vmatmul.mubr.bf16.gmra.mrb[12].mxu0 %v4632_v59  ;;  %14963 = vmatprep.subr.bf16.mxu1 %v16029_v58  ;;  %v10827_v59 = vrot.slane %v16023_v43, 3  ;;  %v134_v43 = vld [vmem:[%s19564_s2 + $0xb0] sm:$0xff] }
 0x233   :  { %14928 = vmatmul.mubr.bf16.gmra.mrb[12].mxu1 %v10812_v42  ;;  %14463 = vmatprep.mubr.bf16.mxu0 %v4634_v54  ;;  %v129_v42 = vld [vmem:[%s19564_s2 + $0x88] sm:$0xff]  ;;  %v5163_v20 = vrot.slane %v5161_v0, 3 }
 0x234   :  { %14931 = vmatprep.mubr.bf16.mxu1 %v10814_v51  ;;  %14496 = vmatpush3.bf16.msra.mxu0 %v16018_v39  ;;  %v128_v39 = vld [vmem:[%s19564_s2 + $0x80] sm:$0xff]  ;;  %v16027_v54 = vld [vmem:[%s19563_s0 + $0xa8] ss:$0 sps:$4 sm:$0x77]   ;;  %v5156_v51 = vshll.u32 %v16031_v50, 16  ;;  %v10830_v16 = vsel %vm4615_vm5, %v10827_v59, %v10829_v61 }
 0x235   :  { %14497 = vmatprep.subr.bf16.mxu0 %v16025_v1  ;;  %14964 = vmatpush3.bf16.msra.mxu1 %v16029_v58  ;;  %v4647_v58 = vrot.slane %v16022_v8, 3  ;;  %v11360_v8 = vshll.u32 %v16038_v18, 16 }
 0x236   :  { %14965 = vmatprep.subr.bf16.mxu1 %v16030_v3  ;;  %6058 = vperm.xlu1 %15582, %v123_v2   ;;  %v5158_v19 = vrot.slane %v5156_v51, 4  ;;  %v5173_v2 = vshll.u32 %v16035_v10, 16  ;;  %v11375_v10 = vshrl.u32 %v16042_v46, 16 }
 0x237   :  { %6073 = vperm.xlu0 %15581, %v126_v47   ;;  %v4648_v12 = vsel %vm4615_vm5, %v4645_v38, %v4647_v58  ;;  %v4650_v14 = vsel %vm4615_vm5, %v4647_v58, %v4649_v60  ;;  %v11345_v38 = vor.u32 %v11344_v23, %v11341_v31  ;;  %v16041_v58 = vld [vmem:[%s19563_s0 + $0x40] sm:$0xff]  }
 0x238   :  { %14498 = vmatpush3.bf16.msra.mxu0 %v16025_v1  ;;  %v5164_v1 = vshll.u32 %v16032_v52, 16  ;;  %v16039_v52 = vld [vmem:[%s19563_s0 + $0x38] sm:$0xff]   ;;  %v5197_v62 = vshrl.u32 %v16041_v58, 16 }
 0x239   :  { %14966 = vmatpush3.bf16.msra.mxu1 %v16030_v3  ;;  %v11331_v3 = vshrl.u32 %v16033_v55, 16  ;;  %v135_v55 = vld [vmem:[%s19564_s2 + $0xb8] sm:$0xff] }
 0x23a   :  { %14464 = vmatmul.mubr.bf16.gmra.mrb[16].mxu0 %v4636_v11  ;;  %6068 = vperm.xlu1 %15582, %v125_v40   ;;  %v10828_v11 = vsel %vm4615_vm5, %v10825_v37, %v10827_v59  ;;  %v5166_v28 = vrot.slane %v5164_v1, 4  ;;  %v11357_v37 = vshrl.u32 %v16038_v18, 16  ;;  %v5199_v31 = vrot.slane %v5197_v62, 3 }
 0x23b   :  { %14932 = vmatmul.mubr.bf16.gmra.mrb[16].mxu1 %v10816_v17  ;;  %14467 = vmatprep.mubr.bf16.mxu0 %v4638_v7  ;;  %v16036_v17 = vld [vmem:[%s19563_s0 + $0xdc] sm:$0xff]   ;;  %v16037_v7 = vld [vmem:[%s19563_s0 + $0x30] sm:$0xff]   ;;  %v11333_v21 = vrot.slane %v11331_v3, 3  ;;  %v137_v3 = vld [vmem:[%s19564_s2 + $0xc8] sm:$0xff] }
 0x23c   :  { %14935 = vmatprep.mubr.bf16.mxu1 %v10818_v15  ;;  %6083 = vperm.xlu0 %15581, %v128_v39   ;;  %v5155_v15 = vrot.slane %v5153_v63, 3  ;;  %v5179_v33 = vshrl.u32 %v16037_v7, 16  ;;  %v5182_v30 = vshll.u32 %v16037_v7, 16  ;;  %v5167_v40 = vor.u32 %v5166_v28, %v5163_v20  ;;  %v16040_v39 = vld [vmem:[%s19563_s0 + $0xec] sm:$0xff]   ;;  %v139_v28 = vld [vmem:[%s19564_s2 + $0xd8] sm:$0xff] }
 0x23d   :  { %v11337_v41 = vor.u32 %v11336_v22, %v11333_v21  ;;  %v5191_v63 = vshll.u32 %v16039_v52, 16  ;;  %v11366_v4 = vshrl.u32 %v16040_v39, 16  ;;  %v11369_v5 = vshll.u32 %v16040_v39, 16  ;;  %v16045_v20 = vld [vmem:[%s19563_s0 + $0x50] sm:$0xff]  }
 0x23e   :  { %6078 = vperm.xlu1 %15582, %v127_v9   ;;  %v5159_v27 = vor.u32 %v5158_v19, %v5155_v15  ;;  %v5184_v50 = vrot.slane %v5182_v30, 4  ;;  %v16044_v19 = vld [vmem:[%s19563_s0 + $0xfc] sm:$0xff]  }
 0x23f   :  { %v11346_v59 = vsel %vm5151_vm6, %v11337_v41, %v11345_v38  ;;  %v11368_v21 = vrot.slane %v11366_v4, 3  ;;  %v11371_v22 = vrot.slane %v11369_v5, 4  ;;  %v11384_v30 = vshrl.u32 %v16044_v19, 16  ;;  %v145_v4 = vld [vmem:[%s19564_s2 + $0x108] sm:$0xff] }
 0x240   :  { %6093 = vperm.xlu0 %15581, %v130_v36   ;;  %v5168_v57 = vsel %vm5151_vm6, %v5159_v27, %v5167_v40  ;;  %v5200_v36 = vshll.u32 %v16041_v58, 16  ;;  %v5218_v27 = vshll.u32 %v16045_v20, 16  ;;  %v16048_v58 = vld [vmem:[%s19563_s0 + $0x10c] sm:$0xff]  }
 0x241   :  { %v11372_v41 = vor.u32 %v11371_v22, %v11368_v21  ;;  %v11402_v5 = vshrl.u32 %v16048_v58, 16  ;;  %v11405_v62 = vshll.u32 %v16048_v58, 16 }
 0x242   :  { %14468 = vmatmul.mubr.bf16.gmra.mrb[20].mxu0 %v4640_v24  ;;  %6088 = vperm.xlu1 %15582, %v129_v42   ;;  %v4651_v24 = vrot.slane %v16027_v54, 3  ;;  %v11362_v42 = vrot.slane %v11360_v8, 4  ;;  %v5188_v54 = vshrl.u32 %v16039_v52, 16  ;;  %v5202_v23 = vrot.slane %v5200_v36, 4 }
 0x243   :  { %14936 = vmatmul.mubr.bf16.gmra.mrb[20].mxu1 %v10820_v26  ;;  %14471 = vmatprep.mubr.bf16.mxu0 %v4642_v29  ;;  %v11348_v26 = vshrl.u32 %v16036_v17, 16  ;;  %v11351_v29 = vshll.u32 %v16036_v17, 16  ;;  %v16043_v17 = vld [vmem:[%s19563_s0 + $0x48] sm:$0xff]   ;;  %v11393_v8 = vshrl.u32 %v16046_v25, 16  ;;  %v11404_v21 = vrot.slane %v11402_v5, 3 }
 0x244   :  { %14939 = vmatprep.mubr.bf16.mxu1 %v10822_v34  ;;  %v133_v34 = vld [vmem:[%s19564_s2 + $0xa8] sm:$0xff]  ;;  %6103 = vperm.xlu0 %15581, %v132_v53   ;;  %v4652_v47 = vsel %vm4615_vm5, %v4649_v60, %v4651_v24  ;;  %v11359_v60 = vrot.slane %v11357_v37, 3  ;;  %v11377_v53 = vrot.slane %v11375_v10, 3  ;;  %v11407_v22 = vrot.slane %v11405_v62, 4 }
 0x245   :  { %v11350_v9 = vrot.slane %v11348_v26, 3 }
 0x246   :  { %6098 = vperm.xlu1 %15582, %v131_v13   ;;  %v11363_v6 = vor.u32 %v11362_v42, %v11359_v60  ;;  %v11395_v42 = vrot.slane %v11393_v8, 3 }
 0x248   :  { %6113 = vperm.xlu0 %15581, %v134_v43   ;;  %v11396_v43 = vshll.u32 %v16046_v25, 16 }
 0x24a   :  { %14472 = vmatmul.mubr.bf16.gmra.mrb[24].mxu0 %v4644_v45  ;;  %v5175_v45 = vrot.slane %v5173_v2, 4  ;;  %6108 = vperm.xlu1 %15582, %v133_v34   ;;  %v140_v2 = vld [vmem:[%s19564_s2 + $0xe0] sm:$0xff]  ;;  %v11387_v34 = vshll.u32 %v16044_v19, 16  ;;  %v16051_v19 = vld [vmem:[%s19563_s0 + $0x68] sm:$0xff]  }
 0x24b   :  { %14940 = vmatmul.mubr.bf16.gmra.mrb[24].mxu1 %v10824_v48  ;;  %14475 = vmatprep.mubr.bf16.mxu0 %v4646_v49  ;;  %v11353_v48 = vrot.slane %v11351_v29, 4  ;;  %v5181_v49 = vrot.slane %v5179_v33, 3  ;;  %v5206_v29 = vshrl.u32 %v16043_v17, 16  ;;  %v5209_v33 = vshll.u32 %v16043_v17, 16 }
 0x24c   :  { %14943 = vmatprep.mubr.bf16.mxu1 %v10826_v56  ;;  %v10832_v56 = vsel %vm4615_vm5, %v10829_v61, %v10831_v35  ;;  %v136_v61 = vld [vmem:[%s19564_s2 + $0xc0] sm:$0xff]  ;;  %v5176_v51 = vor.u32 %v5175_v45, %v5172_v44  ;;  %v5215_v35 = vshrl.u32 %v16045_v20, 16 }
 0x24d   :  { %v11354_v0 = vor.u32 %v11353_v48, %v11350_v9  ;;  %v5185_v1 = vor.u32 %v5184_v50, %v5181_v49  ;;  %6123 = vperm.xlu0 %15581, %v136_v61   ;;  %v5208_v45 = vrot.slane %v5206_v29, 3  ;;  %v5211_v52 = vrot.slane %v5209_v33, 4  ;;  %v16047_v9 = vld [vmem:[%s19563_s0 + $0x58] sm:$0xff]  }
 0x24e   :  { %6118 = vperm.xlu1 %15582, %v135_v55   ;;  %v5177_v7 = vsel %vm5151_vm6, %v5167_v40, %v5176_v51  ;;  %v141_v40 = vld [vmem:[%s19564_s2 + $0xe8] sm:$0xff]  ;;  %v11386_v48 = vrot.slane %v11384_v30, 3  ;;  %v11389_v49 = vrot.slane %v11387_v34, 4  ;;  %v5217_v50 = vrot.slane %v5215_v35, 3  ;;  %v16050_v61 = vld [vmem:[%s19563_s0 + $0x114] sm:$0xff]   ;;  %v16052_v20 = vld [vmem:[%s19563_s0 + $0x11c] sm:$0xff]  }
 0x24f   :  { %v11355_v13 = vsel %vm5151_vm6, %v11345_v38, %v11354_v0  ;;  %v5186_v15 = vsel %vm5151_vm6, %v5176_v51, %v5185_v1  ;;  %v11364_v18 = vsel %vm5151_vm6, %v11354_v0, %v11363_v6  ;;  %v5203_v38 = vor.u32 %v5202_v23, %v5199_v31 }
 0x250   :  { %v5220_v55 = vrot.slane %v5218_v27, 4  ;;  %v5227_v51 = vshll.u32 %v16047_v9, 16  ;;  %v5212_v0 = vor.u32 %v5211_v52, %v5208_v45  ;;  %v5242_v29 = vshrl.u32 %v16051_v19, 16 }
 0x251   :  { %v5245_v33 = vshll.u32 %v16051_v19, 16  ;;  %v11420_v30 = vshrl.u32 %v16052_v20, 16  ;;  %v11423_v34 = vshll.u32 %v16052_v20, 16  ;;  %v11408_v35 = vor.u32 %v11407_v22, %v11404_v21  ;;  %v16062_v22 = vld [vmem:[%s19563_s0 + $0x144] sm:$0xff]  }
 0x252   :  { %14476 = vmatmul.mubr.bf16.gmra.mrb[28].mxu0 %v4648_v12  ;;  %v11378_v12 = vshll.u32 %v16042_v46, 16  ;;  %6128 = vperm.xlu1 %15582, %v137_v3   ;;  %v11398_v46 = vrot.slane %v11396_v43, 4  ;;  %v5221_v3 = vor.u32 %v5220_v55, %v5217_v50  ;;  %v5229_v17 = vrot.slane %v5227_v51, 4 }
 0x253   :  { %14944 = vmatmul.mubr.bf16.gmra.mrb[28].mxu1 %v10828_v11  ;;  %14479 = vmatprep.mubr.bf16.mxu0 %v4650_v14  ;;  %v138_v11 = vld [vmem:[%s19564_s2 + $0xd0] sm:$0xff]  ;;  %v5190_v14 = vrot.slane %v5188_v54, 3  ;;  %v144_v54 = vld [vmem:[%s19564_s2 + $0x100] sm:$0xff]  ;;  %v5247_v45 = vrot.slane %v5245_v33, 4  ;;  %v11422_v52 = vrot.slane %v11420_v30, 3  ;;  %v11465_v30 = vshrl.u32 %v16062_v22, 16 }
 0x254   :  { %14947 = vmatprep.mubr.bf16.mxu1 %v10830_v16  ;;  %v5193_v16 = vrot.slane %v5191_v63, 4  ;;  %6133 = vperm.xlu0 %15581, %v138_v11   ;;  %v11380_v24 = vrot.slane %v11378_v12, 4  ;;  %v5224_v63 = vshrl.u32 %v16047_v9, 16  ;;  %v11399_v10 = vor.u32 %v11398_v46, %v11395_v42 }
 0x255   :  { %v11411_v12 = vshrl.u32 %v16050_v61, 16  ;;  %v11414_v11 = vshll.u32 %v16050_v61, 16  ;;  %v11425_v9 = vrot.slane %v11423_v34, 4  ;;  %v11468_v34 = vshll.u32 %v16062_v22, 16 }
 0x256   :  { %v5194_v26 = vor.u32 %v5193_v16, %v5190_v14  ;;  %6138 = vperm.xlu1 %15582, %v139_v28   ;;  %v11381_v37 = vor.u32 %v11380_v24, %v11377_v53  ;;  %v146_v14 = vld [vmem:[%s19564_s2 + $0x110] sm:$0xff]  ;;  %v5226_v16 = vrot.slane %v5224_v63, 3  ;;  %v147_v28 = vld [vmem:[%s19564_s2 + $0x118] sm:$0xff] }
 0x257   :  { %v11413_v24 = vrot.slane %v11411_v12, 3  ;;  %v11416_v25 = vrot.slane %v11414_v11, 4 }
 0x258   :  { %6143 = vperm.xlu0 %15581, %v140_v2   ;;  %v5195_v44 = vsel %vm5151_vm6, %v5185_v1, %v5194_v26  ;;  %v5204_v39 = vsel %vm5151_vm6, %v5194_v26, %v5203_v38  ;;  %v11382_v60 = vsel %vm5151_vm6, %v11372_v41, %v11381_v37  ;;  %v11390_v1 = vor.u32 %v11389_v49, %v11386_v48  ;;  %v16054_v2 = vld [vmem:[%s19563_s0 + $0x124] sm:$0xff]   ;;  %v16056_v48 = vld [vmem:[%s19563_s0 + $0x12c] sm:$0xff]  }
 0x259   :  { %v5230_v26 = vor.u32 %v5229_v17, %v5226_v16  ;;  %v11432_v8 = vshll.u32 %v16054_v2, 16  ;;  %v11409_v49 = vsel %vm5151_vm6, %v11399_v10, %v11408_v35  ;;  %v11438_v63 = vshrl.u32 %v16056_v48, 16  ;;  %v16060_v16 = vld [vmem:[%s19563_s0 + $0x13c] sm:$0xff]   ;;  %v16061_v17 = vld [vmem:[%s19563_s0 + $0x90] sm:$0xff]  }
 0x25a   :  { %14480 = vmatmul.mubr.bf16.gmra.mrb[32].mxu0 %v4652_v47  ;;  %v142_v47 = vld [vmem:[%s19564_s2 + $0xf0] sm:$0xff]  ;;  %6148 = vperm.xlu1 %15582, %v141_v40   ;;  %v11400_v53 = vsel %vm5151_vm6, %v11390_v1, %v11399_v10  ;;  %v16059_v10 = vld [vmem:[%s19563_s0 + $0x88] sm:$0xff]  }
 0x25b   :  { %14948 = vmatmul.mubr.bf16.gmra.mrb[32].mxu1 %v10832_v56  ;;  %14499 = vmatprep.mubr.bf16.mxu0 %v5168_v57  ;;  %v143_v56 = vld [vmem:[%s19564_s2 + $0xf8] sm:$0xff]  ;;  %v11373_v57 = vsel %vm5151_vm6, %v11363_v6, %v11372_v41  ;;  %v5231_v43 = vsel %vm5151_vm6, %v5221_v3, %v5230_v26 }
 0x25c   :  { %14967 = vmatprep.mubr.bf16.mxu1 %v11346_v59  ;;  %v16049_v59 = vld [vmem:[%s19563_s0 + $0x60] sm:$0xff]   ;;  %6153 = vperm.xlu0 %15581, %v142_v47   ;;  %v16055_v47 = vld [vmem:[%s19563_s0 + $0x78] sm:$0xff]  }
 0x25d   :  { %v5233_v36 = vshrl.u32 %v16049_v59, 16  ;;  %v5236_v6 = vshll.u32 %v16049_v59, 16  ;;  %v11434_v59 = vrot.slane %v11432_v8, 4  ;;  %v5260_v42 = vshrl.u32 %v16055_v47, 16 }
 0x25e   :  { %6158 = vperm.xlu1 %15582, %v143_v56   ;;  %v5263_v46 = vshll.u32 %v16055_v47, 16 }
 0x25f   :  { %v5235_v31 = vrot.slane %v5233_v36, 3  ;;  %v5238_v23 = vrot.slane %v5236_v6, 4  ;;  %v5262_v36 = vrot.slane %v5260_v42, 3 }
 0x260   :  { %6163 = vperm.xlu0 %15581, %v144_v54   ;;  %v11426_v54 = vor.u32 %v11425_v9, %v11422_v52  ;;  %v5265_v6 = vrot.slane %v5263_v46, 4  ;;  %v16065_v52 = vld [vmem:[%s19563_s0 + $0xa0] sm:$0xff]  }
 0x261   :  { %v5239_v27 = vor.u32 %v5238_v23, %v5235_v31  ;;  %v5278_v23 = vshrl.u32 %v16059_v10, 16  ;;  %v5305_v42 = vshrl.u32 %v16065_v52, 16  ;;  %v5308_v46 = vshll.u32 %v16065_v52, 16 }
 0x262   :  { %14500 = vmatmul.mubr.bf16.vlgmr.msra.gmra.mrb[0].mxu0 %v5177_v7  ;;  %6168 = vperm.xlu1 %15582, %v145_v4   ;;  %v5213_v7 = vsel %vm5151_vm6, %v5203_v38, %v5212_v0  ;;  %v11417_v38 = vor.u32 %v11416_v25, %v11413_v24  ;;  %v5266_v31 = vor.u32 %v5265_v6, %v5262_v36  ;;  %v11459_v24 = vshll.u32 %v16060_v16, 16 }
 0x263   :  { %14968 = vmatmul.mubr.bf16.vlgmr.msra.gmra.mrb[0].mxu1 %v11355_v13  ;;  %14503 = vmatprep.mubr.bf16.mxu0 %v5186_v15  ;;  %v11391_v13 = vsel %vm5151_vm6, %v11381_v37, %v11390_v1  ;;  %v5222_v15 = vsel %vm5151_vm6, %v5212_v0, %v5221_v3  ;;  %v11429_v37 = vshrl.u32 %v16054_v2, 16  ;;  %v5240_v50 = vsel %vm5151_vm6, %v5230_v26, %v5239_v27 }
 0x264   :  { %14971 = vmatprep.mubr.bf16.mxu1 %v11364_v18  ;;  %v16053_v18 = vld [vmem:[%s19563_s0 + $0x70] sm:$0xff]   ;;  %6173 = vperm.xlu0 %15581, %v146_v14   ;;  %v11441_v0 = vshll.u32 %v16056_v48, 16  ;;  %v11427_v11 = vsel %vm5151_vm6, %v11417_v38, %v11426_v54  ;;  %v11440_v14 = vrot.slane %v11438_v63, 3  ;;  %v5287_v25 = vshrl.u32 %v16061_v17, 16 }
 0x265   :  { %v5251_v40 = vshrl.u32 %v16053_v18, 16  ;;  %v5254_v41 = vshll.u32 %v16053_v18, 16  ;;  %v11431_v58 = vrot.slane %v11429_v37, 3  ;;  %v5281_v18 = vshll.u32 %v16059_v10, 16 }
 0x266   :  { %6178 = vperm.xlu1 %15582, %v147_v28   ;;  %v5290_v2 = vshll.u32 %v16061_v17, 16  ;;  %v5289_v37 = vrot.slane %v5287_v25, 3  ;;  %v11467_v48 = vrot.slane %v11465_v30, 3  ;;  %v5307_v6 = vrot.slane %v5305_v42, 3 }
 0x267   :  { %v5253_v55 = vrot.slane %v5251_v40, 3  ;;  %v5256_v56 = vrot.slane %v5254_v41, 4  ;;  %v11435_v4 = vor.u32 %v11434_v59, %v11431_v58  ;;  %v5283_v40 = vrot.slane %v5281_v18, 4 }
 0x268   :  { %v5292_v8 = vrot.slane %v5290_v2, 4  ;;  %v5310_v10 = vrot.slane %v5308_v46, 4 }
 0x269   :  { %v5257_v51 = vor.u32 %v5256_v56, %v5253_v55  ;;  %v11436_v20 = vsel %vm5151_vm6, %v11426_v54, %v11435_v4 }
 0x26a   :  { %14504 = vmatmul.mubr.bf16.gmra.mrb[4].mxu0 %v5195_v44  ;;  %v5244_v44 = vrot.slane %v5242_v29, 3 }
 0x26b   :  { %14972 = vmatmul.mubr.bf16.gmra.mrb[4].mxu1 %v11373_v57  ;;  %14507 = vmatprep.mubr.bf16.mxu0 %v5204_v39  ;;  %v16057_v57 = vld [vmem:[%s19563_s0 + $0x80] sm:$0xff]   ;;  %v11418_v39 = vsel %vm5151_vm6, %v11408_v35, %v11417_v38  ;;  %v5267_v35 = vsel %vm5151_vm6, %v5257_v51, %v5266_v31  ;;  %v11461_v38 = vrot.slane %v11459_v24, 4 }
 0x26c   :  { %14975 = vmatprep.mubr.bf16.mxu1 %v11382_v60  ;;  %v16058_v60 = vld [vmem:[%s19563_s0 + $0x134] sm:$0xff]   ;;  %v5248_v61 = vor.u32 %v5247_v45, %v5244_v44  ;;  %v5269_v1 = vshrl.u32 %v16057_v57, 16  ;;  %v5272_v3 = vshll.u32 %v16057_v57, 16  ;;  %v16064_v45 = vld [vmem:[%s19563_s0 + $0x14c] sm:$0xff]   ;;  %v5293_v57 = vor.u32 %v5292_v8, %v5289_v37 }
 0x26d   :  { %v11447_v5 = vshrl.u32 %v16058_v60, 16  ;;  %v11450_v62 = vshll.u32 %v16058_v60, 16  ;;  %v11474_v59 = vshrl.u32 %v16064_v45, 16  ;;  %v11477_v60 = vshll.u32 %v16064_v45, 16 }
 0x26e   :  { %v5249_v12 = vsel %vm5151_vm6, %v5239_v27, %v5248_v61  ;;  %v5274_v19 = vrot.slane %v5272_v3, 4  ;;  %v5280_v27 = vrot.slane %v5278_v23, 3 }
 0x26f   :  { %v11449_v28 = vrot.slane %v11447_v5, 3  ;;  %v11452_v21 = vrot.slane %v11450_v62, 4  ;;  %v16067_v5 = vld [vmem:[%s19563_s0 + $0xa8] ss:$0 sps:$4 sm:$0xff]   ;;  %v11476_v62 = vrot.slane %v11474_v59, 3  ;;  %v11479_v36 = vrot.slane %v11477_v60, 4 }
 0x270   :  { %v5284_v55 = vor.u32 %v5283_v40, %v5280_v27 }
 0x271   :  { %v11453_v33 = vor.u32 %v11452_v21, %v11449_v28 }
 0x272   :  { %14508 = vmatmul.mubr.bf16.gmra.mrb[8].mxu0 %v5213_v7  ;;  %v5258_v7 = vsel %vm5151_vm6, %v5248_v61, %v5257_v51 }
 0x273   :  { %14976 = vmatmul.mubr.bf16.gmra.mrb[8].mxu1 %v11391_v13  ;;  %14511 = vmatprep.mubr.bf16.mxu0 %v5222_v15  ;;  %v11443_v13 = vrot.slane %v11441_v0, 4  ;;  %v5271_v15 = vrot.slane %v5269_v1, 3  ;;  %v5294_v1 = vsel %vm5151_vm6, %v5284_v55, %v5293_v57 }
 0x274   :  { %14979 = vmatprep.mubr.bf16.mxu1 %v11400_v53  ;;  %v11456_v53 = vshrl.u32 %v16060_v16, 16 }
 0x275   :  { %v11444_v26 = vor.u32 %v11443_v13, %v11440_v14  ;;  %v5275_v29 = vor.u32 %v5274_v19, %v5271_v15  ;;  %v5317_v13 = vshll.u32 %v16067_v5, 16  ;;  %v11480_v15 = vor.u32 %v11479_v36, %v11476_v62 }
 0x276   :  { %v11458_v41 = vrot.slane %v11456_v53, 3  ;;  %v5311_v19 = vor.u32 %v5310_v10, %v5307_v6 }
 0x277   :  { %v11445_v47 = vsel %vm5151_vm6, %v11435_v4, %v11444_v26  ;;  %v5276_v44 = vsel %vm5151_vm6, %v5266_v31, %v5275_v29  ;;  %v11454_v9 = vsel %vm5151_vm6, %v11444_v26, %v11453_v33  ;;  %v5285_v51 = vsel %vm5151_vm6, %v5275_v29, %v5284_v55 }
 0x278   :  { %v11462_v56 = vor.u32 %v11461_v38, %v11458_v41  ;;  %v5319_v23 = vrot.slane %v5317_v13, 4 }
 0x27a   :  { %14512 = vmatmul.mubr.bf16.gmra.mrb[12].mxu0 %v5231_v43  ;;  %v16063_v43 = vld [vmem:[%s19563_s0 + $0x98] sm:$0xff]   ;;  %v11463_v0 = vsel %vm5151_vm6, %v11453_v33, %v11462_v56 }
 0x27b   :  { %14980 = vmatmul.mubr.bf16.gmra.mrb[12].mxu1 %v11409_v49  ;;  %14515 = vmatprep.mubr.bf16.mxu0 %v5240_v50  ;;  %v11470_v49 = vrot.slane %v11468_v34, 4  ;;  %v16066_v50 = vld [vmem:[%s19563_s0 + $0x154] sm:$0xff]   ;;  %v5299_v58 = vshll.u32 %v16063_v43, 16  ;;  %v6004_v34 = vpop.permute.xlu0 %6003 }
 0x27c   :  { %14983 = vmatprep.mubr.bf16.mxu1 %v11418_v39  ;;  %v5296_v39 = vshrl.u32 %v16063_v43, 16  ;;  %v11483_v54 = vshrl.u32 %v16066_v50, 16  ;;  %v11486_v63 = vshll.u32 %v16066_v50, 16 }
 0x27d   :  { %v11471_v61 = vor.u32 %v11470_v49, %v11467_v48  ;;  %v5301_v4 = vrot.slane %v5299_v58, 4 }
 0x27e   :  { %v5298_v3 = vrot.slane %v5296_v39, 3  ;;  %v11485_v14 = vrot.slane %v11483_v54, 3  ;;  %v11488_v16 = vrot.slane %v11486_v63, 4 }
 0x27f   :  { %v11481_v18 = vsel %vm5151_vm6, %v11471_v61, %v11480_v15  ;;  %v6009_v27 = vpop.permute.xlu0 %6008 }
 0x280   :  { %v5302_v17 = vor.u32 %v5301_v4, %v5298_v3  ;;  %v11489_v21 = vor.u32 %v11488_v16, %v11485_v14 }
 0x282   :  { %14516 = vmatmul.mubr.bf16.gmra.mrb[16].mxu0 %v5249_v12  ;;  %v16068_v12 = vld [vmem:[%s19563_s0 + $0x15c] ss:$0 sps:$4 sm:$0xff]   ;;  %v5303_v22 = vsel %vm5151_vm6, %v5293_v57, %v5302_v17  ;;  %v5312_v53 = vsel %vm5151_vm6, %v5302_v17, %v5311_v19  ;;  %v11490_v2 = vsel %vm5151_vm6, %v11480_v15, %v11489_v21 }
 0x283   :  { %14984 = vmatmul.mubr.bf16.gmra.mrb[16].mxu1 %v11427_v11  ;;  %14519 = vmatprep.mubr.bf16.mxu0 %v5258_v7  ;;  %v11472_v11 = vsel %vm5151_vm6, %v11462_v56, %v11471_v61  ;;  %v5314_v7 = vshrl.u32 %v16067_v5, 16  ;;  %v11495_v28 = vshll.u32 %v16068_v12, 16  ;;  %v18654_v4 = vpop.permute.xlu0 %6023 }
 0x284   :  { %14987 = vmatprep.mubr.bf16.mxu1 %v11436_v20  ;;  %v11492_v20 = vshrl.u32 %v16068_v12, 16 }
 0x285   :  { %v5316_v31 = vrot.slane %v5314_v7, 3  ;;  %v11497_v25 = vrot.slane %v11495_v28, 4 }
 0x286   :  { %v11494_v24 = vrot.slane %v11492_v20, 3 }
 0x287   :  { %v5320_v26 = vor.u32 %v5319_v23, %v5316_v31 }
 0x288   :  { %v11498_v29 = vor.u32 %v11497_v25, %v11494_v24 }
 0x289   :  { %v5321_v33 = vsel %vm5151_vm6, %v5311_v19, %v5320_v26 }
 0x28a   :  { %14520 = vmatmul.mubr.bf16.gmra.mrb[20].mxu0 %v5267_v35  ;;  %v11499_v30 = vsel %vm5151_vm6, %v11489_v21, %v11498_v29  ;;  %v6014_v35 = vpop.permute.xlu1 %6013 }
 0x28b   :  { %14988 = vmatmul.mubr.bf16.gmra.mrb[20].mxu1 %v11445_v47  ;;  %14523 = vmatprep.mubr.bf16.mxu0 %v5276_v44 }
 0x28c   :  { %14991 = vmatprep.mubr.bf16.mxu1 %v11454_v9 }
 0x28e   :  { %v6019_v63 = vpop.permute.xlu1 %6018 }
 0x292   :  { %14524 = vmatmul.mubr.bf16.gmra.mrb[24].mxu0 %v5285_v51 }
 0x293   :  { %14992 = vmatmul.mubr.bf16.gmra.mrb[24].mxu1 %v11463_v0  ;;  %14527 = vmatprep.mubr.bf16.mxu0 %v5294_v1 }
 0x294   :  { %14995 = vmatprep.mubr.bf16.mxu1 %v11472_v11 }
 0x29a   :  { %14528 = vmatmul.mubr.bf16.gmra.mrb[28].mxu0 %v5303_v22 }
 0x29b   :  { %14996 = vmatmul.mubr.bf16.gmra.mrb[28].mxu1 %v11481_v18  ;;  %14531 = vmatprep.mubr.bf16.mxu0 %v5312_v53 }
 0x29c   :  { %14999 = vmatprep.mubr.bf16.mxu1 %v11490_v2 }
 0x2a2   :  { %14532 = vmatmul.mubr.bf16.gmra.mrb[32].mxu0 %v5321_v33 }
 0x2a3   :  { %15000 = vmatmul.mubr.bf16.gmra.mrb[32].mxu1 %v11499_v30 }
 0x335   :  { %v14501_v40 = vpop.f32.mrb[0].mxu0 }
 0x336   :  { %v13529_v41 = vpack.c.bf16 %v14501_v40, %v14501_v40  ;;  %v14969_v38 = vpop.f32.mrb[0].mxu1  ;;  %v5422_v37 = vpop.f32.mrb[1].mxu0  ;;  %v6183_v8 = vmul.f32 %v14501_v40, %v6014_v35 }
 0x337   :  { %v13565_v43 = vpack.c.bf16 %v14969_v38, %v14969_v38  ;;  %v13527_v47 = vpack.c.bf16 %v5422_v37, %v5422_v37  ;;  %v11600_v44 = vpop.f32.mrb[1].mxu1  ;;  %v18625_v45 = vpop.f32.mrb[2].mxu0  ;;  %v18627_v9 = vmul.f32 %v14969_v38, %v6014_v35  ;;  %v6181_v56 = vmul.f32 %v6004_v34, %v5422_v37 }
 0x338   :  { %v5825_v52 = vrot.slane %v13529_v41, 6  ;;  %v13563_v48 = vpack.c.bf16 %v11600_v44, %v11600_v44  ;;  %v18629_v32 = vpop.f32.mrb[2].mxu1  ;;  %v5425_v49 = vpop.f32.mrb[3].mxu0  ;;  %v13530_v59 = vpack.c.bf16 %v18625_v45, %v18625_v45  ;;  %v6261_v60 = vmul.f32 %v14501_v40, %v6183_v8 }
 0x339   :  { %v18631_v50 = vrot.slane %v13565_v43, 6  ;;  %v5820_v55 = vrot.slane %v13527_v47, 6  ;;  %v11603_v57 = vpop.f32.mrb[3].mxu1  ;;  %v12177_v46 = vmul.f32 %v11600_v44, %v6004_v34  ;;  %v13566_v54 = vpack.c.bf16 %v18629_v32, %v18629_v32 }
 0x33a   :  { %v5827_v39 = vrot.slane %v5825_v52, 4  ;;  %v11995_v58 = vrot.slane %v13563_v48, 6  ;;  %v18647_v51 = vmul.f32 %v14969_v38, %v18627_v9  ;;  %v18652_v1 = vrot.slane %v13530_v59, 6 }
 0x33b   :  { %v12002_v42 = vrot.slane %v18631_v50, 4  ;;  %5964 = vst [vmem:[%s19565_s3 + $0x10] sm:$0xc] %v5820_v55  ;;  %v5821_v0 = vrot.slane %v5820_v55, 4  ;;  %v13528_v3 = vpack.c.bf16 %v5425_v49, %v5425_v49  ;;  %v6259_v5 = vmul.f32 %v6181_v56, %v5422_v37 }
 0x33c   :  { %13490 = vst [vmem:[%s19565_s3 + $0xc4] sm:$0xc] %v11995_v58  ;;  %v18656_v62 = vrot.slane %v13566_v54, 6  ;;  %v6182_v36 = vmul.f32 %v6009_v27, %v5425_v49  ;;  %v13564_v6 = vpack.c.bf16 %v11603_v57, %v11603_v57  ;;  %v11996_v12 = vrot.slane %v11995_v58, 4 }
 0x33d   :  { %v18658_v10 = vpop.f32.mrb[4].mxu0  ;;  %v5829_v11 = vsel %vm18640_vm9, %v5827_v39, %v18652_v1  ;;  %v6184_v14 = vmul.f32 %v18625_v45, %v6019_v63  ;;  %v5822_v16 = vrot.slane %v13528_v3, 6  ;;  %v12180_v15 = vmul.f32 %v18629_v32, %v6019_v63 }
 0x33e   :  { %v18664_v17 = vpop.f32.mrb[4].mxu1  ;;  %v5438_v7 = vpop.f32.mrb[5].mxu0  ;;  %5967 = vst [vmem:[%s19565_s3 + $0x1c] sm:$0xf] %v5829_v11  ;;  %v12004_v13 = vsel %vm18640_vm9, %v12002_v42, %v18656_v62  ;;  %v6218_v19 = vadd.f32 %v6182_v36, %v6181_v56  ;;  %v6260_v20 = vmul.f32 %v6182_v36, %v5425_v49  ;;  %v11997_v23 = vrot.slane %v13564_v6, 6 }
 0x33f   :  { %v11616_v28 = vpop.f32.mrb[5].mxu1  ;;  %v18673_v21 = vpop.f32.mrb[6].mxu0  ;;  %13493 = vst [vmem:[%s19565_s3 + $0xd0] sm:$0xf] %v12004_v13  ;;  %v5823_v22 = vsel %vm18640_vm9, %v5821_v0, %v5822_v16  ;;  %v5824_v31 = vrot.slane %v5822_v16, 4  ;;  %v12178_v18 = vmul.f32 %v11603_v57, %v6009_v27  ;;  %v12255_v25 = vmul.f32 %v12177_v46, %v11600_v44 }
 0x340   :  { %v18680_v53 = vpop.f32.mrb[6].mxu1  ;;  %v18682_v24 = vpop.f32.mrb[7].mxu0  ;;  %5965 = vst [vmem:[%s19565_s3 + $0x14] sm:$0xf] %v5823_v22  ;;  %v6219_v2 = vadd.f32 %v6218_v19, %v6183_v8  ;;  %v6295_v26 = vadd.f32 %v6260_v20, %v6259_v5  ;;  %v13533_v29 = vpack.c.bf16 %v18658_v10, %v18658_v10  ;;  %v11998_v34 = vsel %vm18640_vm9, %v11996_v12, %v11997_v23 }
 0x341   :  { %v18689_v33 = vpop.f32.mrb[7].mxu1  ;;  %v5826_v30 = vsel %vm18640_vm9, %v5824_v31, %v5825_v52  ;;  %v11999_v35 = vrot.slane %v11997_v23, 4  ;;  %v12214_v27 = vadd.f32 %v12178_v18, %v12177_v46  ;;  %v5830_v40 = vrot.slane %v18652_v1, 4  ;;  %13491 = vst [vmem:[%s19565_s3 + $0xc8] sm:$0xf] %v11998_v34  ;;  %v18703_v8 = vpop.permute.xlu1 %6028 }
 0x342   :  { %v6262_v41 = vmul.f32 %v18625_v45, %v6184_v14  ;;  %5966 = vst [vmem:[%s19565_s3 + $0x18] sm:$0xf] %v5826_v30  ;;  %v6296_v38 = vadd.f32 %v6295_v26, %v6261_v60  ;;  %v12256_v37 = vmul.f32 %v12178_v18, %v11603_v57  ;;  %v12258_v43 = vmul.f32 %v18629_v32, %v12180_v15  ;;  %v6034_v52 = vpop.permute.xlu0 %6033 }
 0x343   :  { %v12001_v47 = vsel %vm18640_vm9, %v11999_v35, %v18631_v50  ;;  %v12215_v44 = vadd.f32 %v12214_v27, %v18627_v9  ;;  %v13569_v45 = vpack.c.bf16 %v18664_v17, %v18664_v17  ;;  %v18715_v49 = vrot.slane %v13533_v29, 6 }
 0x344   :  { %13492 = vst [vmem:[%s19565_s3 + $0xcc] sm:$0xf] %v12001_v47  ;;  %v12291_v48 = vadd.f32 %v12256_v37, %v12255_v25  ;;  %v13531_v55 = vpack.c.bf16 %v5438_v7, %v5438_v7  ;;  %v6185_v32 = vmul.f32 %v18654_v4, %v5438_v7  ;;  %v18721_v50 = vmul.f32 %v18658_v10, %v6034_v52 }
 0x345   :  { %v18718_v56 = vpop.f32.mrb[8].mxu0  ;;  %v18723_v9 = vrot.slane %v13569_v45, 6  ;;  %v6220_v57 = vadd.f32 %v6219_v2, %v6184_v14  ;;  %v6297_v39 = vadd.f32 %v6296_v38, %v6262_v41  ;;  %v13567_v54 = vpack.c.bf16 %v11616_v28, %v11616_v28  ;;  %v6039_v23 = vpop.permute.xlu1 %6038 }
 0x346   :  { %v18725_v58 = vpop.f32.mrb[8].mxu1  ;;  %v18727_v59 = vpop.f32.mrb[9].mxu0  ;;  %v12292_v60 = vadd.f32 %v12291_v48, %v18647_v51  ;;  %v5831_v42 = vrot.slane %v13531_v55, 6  ;;  %v6263_v46 = vmul.f32 %v6185_v32, %v5438_v7  ;;  %v12005_v1 = vrot.slane %v18656_v62, 4 }
 0x347   :  { %v18730_v63 = vpop.f32.mrb[9].mxu1  ;;  %v18732_v0 = vpop.f32.mrb[10].mxu0  ;;  %v6221_v3 = vadd.f32 %v6220_v57, %v6185_v32  ;;  %v12181_v5 = vmul.f32 %v11616_v28, %v18654_v4  ;;  %v12216_v36 = vadd.f32 %v12215_v44, %v12180_v15  ;;  %v5839_v11 = vrot.slane %v18715_v49, 4 }
 0x348   :  { %v18736_v6 = vpop.f32.mrb[10].mxu1  ;;  %v18738_v12 = vpop.f32.mrb[11].mxu0  ;;  %v5832_v51 = vsel %vm18640_vm9, %v5830_v40, %v5831_v42  ;;  %v6298_v14 = vadd.f32 %v6297_v39, %v6263_v46  ;;  %v12006_v16 = vrot.slane %v13567_v54, 6  ;;  %v12293_v13 = vadd.f32 %v12292_v60, %v12258_v43 }
 0x349   :  { %v18743_v7 = vpop.f32.mrb[11].mxu1  ;;  %5968 = vst [vmem:[%s19565_s3 + $0x20] sm:$0xf] %v5832_v51  ;;  %v12217_v62 = vadd.f32 %v12216_v36, %v12181_v5  ;;  %v12259_v4 = vmul.f32 %v12181_v5, %v11616_v28  ;;  %v13534_v15 = vpack.c.bf16 %v18673_v21, %v18673_v21  ;;  %v6265_v19 = vmul.f32 %v18658_v10, %v18721_v50  ;;  %v18764_v2 = vpop.permute.xlu0 %6043 }
 0x34a   :  { %v12014_v20 = vrot.slane %v18723_v9, 4  ;;  %v12007_v22 = vsel %vm18640_vm9, %v12005_v1, %v12006_v16  ;;  %v13570_v31 = vpack.c.bf16 %v18680_v53, %v18680_v53  ;;  %v5833_v18 = vrot.slane %v5831_v42, 4 }
 0x34b   :  { %13494 = vst [vmem:[%s19565_s3 + $0xd4] sm:$0xf] %v12007_v22  ;;  %v12294_v28 = vadd.f32 %v12293_v13, %v12259_v4  ;;  %v18760_v25 = vrot.slane %v13534_v15, 6  ;;  %v13532_v10 = vpack.c.bf16 %v18682_v24, %v18682_v24  ;;  %v12183_v26 = vmul.f32 %v18664_v17, %v6034_v52 }
 0x34c   :  { %v18767_v29 = vrot.slane %v13570_v31, 6  ;;  %v6186_v30 = vmul.f32 %v18703_v8, %v18682_v24  ;;  %v13568_v34 = vpack.c.bf16 %v18689_v33, %v18689_v33  ;;  %v12008_v27 = vrot.slane %v12006_v16, 4 }
 0x34d   :  { %v18773_v35 = vpop.f32.mrb[12].mxu0  ;;  %v5841_v40 = vsel %vm18640_vm9, %v5839_v11, %v18760_v25  ;;  %v6188_v41 = vmul.f32 %v18673_v21, %v6039_v23  ;;  %v5834_v38 = vrot.slane %v13532_v10, 6  ;;  %v12184_v44 = vmul.f32 %v18680_v53, %v6039_v23  ;;  %v6054_v15 = vpop.permute.xlu0 %6053 }
 0x34e   :  { %v18779_v37 = vpop.f32.mrb[12].mxu1  ;;  %v18781_v43 = vpop.f32.mrb[13].mxu0  ;;  %5971 = vst [vmem:[%s19565_s3 + $0x2c] sm:$0xf] %v5841_v40  ;;  %v12016_v47 = vsel %vm18640_vm9, %v12014_v20, %v18767_v29  ;;  %v6222_v45 = vadd.f32 %v6221_v3, %v6186_v30  ;;  %v6264_v52 = vmul.f32 %v6186_v30, %v18682_v24  ;;  %v12009_v39 = vrot.slane %v13568_v34, 6 }
 0x34f   :  { %v18791_v48 = vpop.f32.mrb[13].mxu1  ;;  %v18793_v55 = vpop.f32.mrb[14].mxu0  ;;  %13497 = vst [vmem:[%s19565_s3 + $0xe0] sm:$0xf] %v12016_v47  ;;  %v5835_v32 = vsel %vm18640_vm9, %v5833_v18, %v5834_v38  ;;  %v5836_v57 = vrot.slane %v5834_v38, 4  ;;  %v12182_v60 = vmul.f32 %v18689_v33, %v18703_v8  ;;  %v12261_v24 = vmul.f32 %v18664_v17, %v12183_v26 }
 0x350   :  { %v18802_v42 = vpop.f32.mrb[14].mxu1  ;;  %v18804_v46 = vpop.f32.mrb[15].mxu0  ;;  %5969 = vst [vmem:[%s19565_s3 + $0x24] sm:$0xf] %v5835_v32  ;;  %v6223_v54 = vadd.f32 %v6222_v45, %v18721_v50  ;;  %v6299_v1 = vadd.f32 %v6298_v14, %v6264_v52  ;;  %v13537_v3 = vpack.c.bf16 %v18718_v56, %v18718_v56  ;;  %v12010_v36 = vsel %vm18640_vm9, %v12008_v27, %v12009_v39 }
 0x351   :  { %v18813_v5 = vpop.f32.mrb[15].mxu1  ;;  %v5838_v8 = vsel %vm18640_vm9, %v5836_v57, %v18715_v49  ;;  %v12011_v17 = vrot.slane %v12009_v39, 4  ;;  %v12218_v11 = vadd.f32 %v12217_v62, %v12182_v60  ;;  %v5842_v51 = vrot.slane %v18760_v25, 4  ;;  %13495 = vst [vmem:[%s19565_s3 + $0xd8] sm:$0xf] %v12010_v36  ;;  %v18829_v14 = vpop.permute.xlu1 %6048 }
 0x352   :  { %v6266_v16 = vmul.f32 %v18673_v21, %v6188_v41  ;;  %5970 = vst [vmem:[%s19565_s3 + $0x28] sm:$0xf] %v5838_v8  ;;  %v6300_v50 = vadd.f32 %v6299_v1, %v6265_v19  ;;  %v12260_v49 = vmul.f32 %v12182_v60, %v18689_v33  ;;  %v12262_v4 = vmul.f32 %v18680_v53, %v12184_v44 }
 0x353   :  { %v12013_v62 = vsel %vm18640_vm9, %v12011_v17, %v18723_v9  ;;  %v12219_v21 = vadd.f32 %v12218_v11, %v12183_v26  ;;  %v13573_v13 = vpack.c.bf16 %v18725_v58, %v18725_v58  ;;  %v18840_v20 = vrot.slane %v13537_v3, 6 }
 0x354   :  { %13496 = vst [vmem:[%s19565_s3 + $0xdc] sm:$0xf] %v12013_v62  ;;  %v12295_v19 = vadd.f32 %v12294_v28, %v12260_v49  ;;  %v13535_v33 = vpack.c.bf16 %v18727_v59, %v18727_v59  ;;  %v6189_v53 = vmul.f32 %v18764_v2, %v18727_v59  ;;  %v18849_v9 = vmul.f32 %v18718_v56, %v6054_v15 }
 0x355   :  { %v18846_v22 = vpop.f32.mrb[16].mxu0  ;;  %v18851_v31 = vrot.slane %v13573_v13, 6  ;;  %v6224_v23 = vadd.f32 %v6223_v54, %v6188_v41  ;;  %v6301_v18 = vadd.f32 %v6300_v50, %v6266_v16  ;;  %v13571_v34 = vpack.c.bf16 %v18730_v63, %v18730_v63  ;;  %v6059_v17 = vpop.permute.xlu1 %6058 }
 0x356   :  { %v18853_v25 = vpop.f32.mrb[16].mxu1  ;;  %v18855_v28 = vpop.f32.mrb[17].mxu0  ;;  %v12296_v10 = vadd.f32 %v12295_v19, %v12261_v24  ;;  %v5843_v26 = vrot.slane %v13535_v33, 6  ;;  %v6267_v30 = vmul.f32 %v6189_v53, %v18727_v59  ;;  %v12017_v38 = vrot.slane %v18767_v29, 4 }
 0x357   :  { %v18860_v27 = vpop.f32.mrb[17].mxu1  ;;  %v18862_v40 = vpop.f32.mrb[18].mxu0  ;;  %v6225_v47 = vadd.f32 %v6224_v23, %v6189_v53  ;;  %v12185_v41 = vmul.f32 %v18730_v63, %v18764_v2  ;;  %v12220_v45 = vadd.f32 %v12219_v21, %v12184_v44  ;;  %v5851_v59 = vrot.slane %v18840_v20, 4 }
 0x358   :  { %v18867_v52 = vpop.f32.mrb[18].mxu1  ;;  %v18869_v32 = vpop.f32.mrb[19].mxu0  ;;  %v5844_v57 = vsel %vm18640_vm9, %v5842_v51, %v5843_v26  ;;  %v6302_v39 = vadd.f32 %v6301_v18, %v6267_v30  ;;  %v12018_v60 = vrot.slane %v13571_v34, 6  ;;  %v12297_v44 = vadd.f32 %v12296_v10, %v12262_v4 }
 0x359   :  { %v18874_v24 = vpop.f32.mrb[19].mxu1  ;;  %5972 = vst [vmem:[%s19565_s3 + $0x30] sm:$0xf] %v5844_v57  ;;  %v12221_v29 = vadd.f32 %v12220_v45, %v12185_v41  ;;  %v12263_v2 = vmul.f32 %v12185_v41, %v18730_v63  ;;  %v13538_v54 = vpack.c.bf16 %v18732_v0, %v18732_v0  ;;  %v6269_v1 = vmul.f32 %v18718_v56, %v18849_v9  ;;  %v18896_v16 = vpop.permute.xlu0 %6063 }
 0x35a   :  { %v12026_v3 = vrot.slane %v18851_v31, 4  ;;  %v12019_v8 = vsel %vm18640_vm9, %v12017_v38, %v12018_v60  ;;  %v13574_v36 = vpack.c.bf16 %v18736_v6, %v18736_v6  ;;  %v5845_v11 = vrot.slane %v5843_v26, 4 }
 0x35b   :  { %13498 = vst [vmem:[%s19565_s3 + $0xe4] sm:$0xf] %v12019_v8  ;;  %v12298_v63 = vadd.f32 %v12297_v44, %v12263_v2  ;;  %v18892_v51 = vrot.slane %v13538_v54, 6  ;;  %v13536_v56 = vpack.c.bf16 %v18738_v12, %v18738_v12  ;;  %v12187_v50 = vmul.f32 %v18725_v58, %v6054_v15 }
 0x35c   :  { %v18899_v49 = vrot.slane %v13574_v36, 6  ;;  %v6190_v4 = vmul.f32 %v18829_v14, %v18738_v12  ;;  %v13572_v62 = vpack.c.bf16 %v18743_v7, %v18743_v7  ;;  %v12020_v13 = vrot.slane %v12018_v60, 4 }
 0x35d   :  { %v18905_v21 = vpop.f32.mrb[20].mxu0  ;;  %v5853_v19 = vsel %vm18640_vm9, %v5851_v59, %v18892_v51  ;;  %v6192_v33 = vmul.f32 %v18732_v0, %v6059_v17  ;;  %v5846_v53 = vrot.slane %v13536_v56, 6  ;;  %v12188_v10 = vmul.f32 %v18736_v6, %v6059_v17 }
 0x35e   :  { %v18911_v23 = vpop.f32.mrb[20].mxu1  ;;  %v18913_v15 = vpop.f32.mrb[21].mxu0  ;;  %5975 = vst [vmem:[%s19565_s3 + $0x3c] sm:$0xf] %v5853_v19  ;;  %v12028_v18 = vsel %vm18640_vm9, %v12026_v3, %v18899_v49  ;;  %v6226_v26 = vadd.f32 %v6225_v47, %v6190_v4  ;;  %v6268_v30 = vmul.f32 %v6190_v4, %v18738_v12  ;;  %v12021_v59 = vrot.slane %v13572_v62, 6 }
 0x35f   :  { %v18923_v34 = vpop.f32.mrb[21].mxu1  ;;  %v18925_v38 = vpop.f32.mrb[22].mxu0  ;;  %13501 = vst [vmem:[%s19565_s3 + $0xf0] sm:$0xf] %v12028_v18  ;;  %v5847_v41 = vsel %vm18640_vm9, %v5845_v11, %v5846_v53  ;;  %v5848_v45 = vrot.slane %v5846_v53, 4  ;;  %v12186_v57 = vmul.f32 %v18743_v7, %v18829_v14  ;;  %v12265_v12 = vmul.f32 %v18725_v58, %v12187_v50 }
 0x360   :  { %v18934_v60 = vpop.f32.mrb[22].mxu1  ;;  %v18936_v47 = vpop.f32.mrb[23].mxu0  ;;  %5973 = vst [vmem:[%s19565_s3 + $0x34] sm:$0xf] %v5847_v41  ;;  %v6227_v2 = vadd.f32 %v6226_v26, %v18849_v9  ;;  %v6303_v44 = vadd.f32 %v6302_v39, %v6268_v30  ;;  %v13541_v54 = vpack.c.bf16 %v18773_v35, %v18773_v35  ;;  %v12022_v8 = vsel %vm18640_vm9, %v12020_v13, %v12021_v59 }
 0x361   :  { %v18945_v3 = vpop.f32.mrb[23].mxu1  ;;  %v5850_v14 = vsel %vm18640_vm9, %v5848_v45, %v18840_v20  ;;  %v12023_v58 = vrot.slane %v12021_v59, 4  ;;  %v12222_v36 = vadd.f32 %v12221_v29, %v12186_v57  ;;  %v5854_v17 = vrot.slane %v18892_v51, 4  ;;  %13499 = vst [vmem:[%s19565_s3 + $0xe8] sm:$0xf] %v12022_v8  ;;  %v18961_v39 = vpop.permute.xlu1 %6068 }
 0x362   :  { %v6270_v11 = vmul.f32 %v18732_v0, %v6192_v33  ;;  %5974 = vst [vmem:[%s19565_s3 + $0x38] sm:$0xf] %v5850_v14  ;;  %v6304_v9 = vadd.f32 %v6303_v44, %v6269_v1  ;;  %v12264_v20 = vmul.f32 %v12186_v57, %v18743_v7  ;;  %v12266_v56 = vmul.f32 %v18736_v6, %v12188_v10  ;;  %v6074_v4 = vpop.permute.xlu0 %6073 }
 0x363   :  { %v12025_v29 = vsel %vm18640_vm9, %v12023_v58, %v18851_v31  ;;  %v12223_v0 = vadd.f32 %v12222_v36, %v12187_v50  ;;  %v13577_v51 = vpack.c.bf16 %v18779_v37, %v18779_v37  ;;  %v18972_v62 = vrot.slane %v13541_v54, 6 }
 0x364   :  { %13500 = vst [vmem:[%s19565_s3 + $0xec] sm:$0xf] %v12025_v29  ;;  %v12299_v1 = vadd.f32 %v12298_v63, %v12264_v20  ;;  %v13539_v7 = vpack.c.bf16 %v18781_v43, %v18781_v43  ;;  %v6193_v6 = vmul.f32 %v18896_v16, %v18781_v43  ;;  %v18981_v31 = vmul.f32 %v18773_v35, %v6074_v4 }
 0x365   :  { %v18978_v13 = vpop.f32.mrb[24].mxu0  ;;  %v18983_v50 = vrot.slane %v13577_v51, 6  ;;  %v6228_v19 = vadd.f32 %v6227_v2, %v6192_v33  ;;  %v6305_v53 = vadd.f32 %v6304_v9, %v6270_v11  ;;  %v13575_v45 = vpack.c.bf16 %v18791_v48, %v18791_v48  ;;  %v6079_v51 = vpop.permute.xlu1 %6078 }
 0x366   :  { %v18985_v18 = vpop.f32.mrb[24].mxu1  ;;  %v18987_v63 = vpop.f32.mrb[25].mxu0  ;;  %v12300_v26 = vadd.f32 %v12299_v1, %v12265_v12  ;;  %v5855_v30 = vrot.slane %v13539_v7, 6  ;;  %v6271_v41 = vmul.f32 %v6193_v6, %v18781_v43  ;;  %v12029_v44 = vrot.slane %v18899_v49, 4 }
 0x367   :  { %v18992_v59 = vpop.f32.mrb[25].mxu1  ;;  %v18994_v57 = vpop.f32.mrb[26].mxu0  ;;  %v6229_v54 = vadd.f32 %v6228_v19, %v6193_v6  ;;  %v12189_v33 = vmul.f32 %v18791_v48, %v18896_v16  ;;  %v12224_v2 = vadd.f32 %v12223_v0, %v12188_v10  ;;  %v5863_v43 = vrot.slane %v18972_v62, 4 }
 0x368   :  { %v18999_v14 = vpop.f32.mrb[26].mxu1  ;;  %v19001_v12 = vpop.f32.mrb[27].mxu0  ;;  %v5856_v8 = vsel %vm18640_vm9, %v5854_v17, %v5855_v30  ;;  %v6306_v58 = vadd.f32 %v6305_v53, %v6271_v41  ;;  %v12030_v36 = vrot.slane %v13575_v45, 6  ;;  %v12301_v10 = vadd.f32 %v12300_v26, %v12266_v56 }
 0x369   :  { %v19006_v11 = vpop.f32.mrb[27].mxu1  ;;  %5976 = vst [vmem:[%s19565_s3 + $0x40] sm:$0xf] %v5856_v8  ;;  %v12225_v49 = vadd.f32 %v12224_v2, %v12189_v33  ;;  %v12267_v16 = vmul.f32 %v12189_v33, %v18791_v48  ;;  %v13542_v9 = vpack.c.bf16 %v18793_v55, %v18793_v55  ;;  %v6273_v20 = vmul.f32 %v18773_v35, %v18981_v31  ;;  %v19028_v7 = vpop.permute.xlu0 %6083 }
 0x36a   :  { %v12038_v17 = vrot.slane %v18983_v50, 4  ;;  %v12031_v29 = vsel %vm18640_vm9, %v12029_v44, %v12030_v36  ;;  %v13578_v0 = vpack.c.bf16 %v18802_v42, %v18802_v42  ;;  %v5857_v1 = vrot.slane %v5855_v30, 4 }
 0x36b   :  { %13502 = vst [vmem:[%s19565_s3 + $0xf4] sm:$0xf] %v12031_v29  ;;  %v12302_v48 = vadd.f32 %v12301_v10, %v12267_v16  ;;  %v19024_v56 = vrot.slane %v13542_v9, 6  ;;  %v13540_v35 = vpack.c.bf16 %v18804_v46, %v18804_v46  ;;  %v12191_v6 = vmul.f32 %v18779_v37, %v6074_v4 }
 0x36c   :  { %v19031_v19 = vrot.slane %v13578_v0, 6  ;;  %v6194_v53 = vmul.f32 %v18961_v39, %v18804_v46  ;;  %v13576_v26 = vpack.c.bf16 %v18813_v5, %v18813_v5  ;;  %v12032_v41 = vrot.slane %v12030_v36, 4 }
 0x36d   :  { %v19037_v30 = vpop.f32.mrb[28].mxu0  ;;  %v5865_v45 = vsel %vm18640_vm9, %v5863_v43, %v19024_v56  ;;  %v6196_v44 = vmul.f32 %v18793_v55, %v6079_v51  ;;  %v5858_v33 = vrot.slane %v13540_v35, 6  ;;  %v12192_v36 = vmul.f32 %v18802_v42, %v6079_v51 }
 0x36e   :  { %v19043_v2 = vpop.f32.mrb[28].mxu1  ;;  %v19045_v4 = vpop.f32.mrb[29].mxu0  ;;  %5979 = vst [vmem:[%s19565_s3 + $0x4c] sm:$0xf] %v5865_v45  ;;  %v12040_v8 = vsel %vm18640_vm9, %v12038_v17, %v19031_v19  ;;  %v6230_v16 = vadd.f32 %v6229_v54, %v6194_v53  ;;  %v6272_v43 = vmul.f32 %v6194_v53, %v18804_v46  ;;  %v12033_v35 = vrot.slane %v13576_v26, 6 }
 0x36f   :  { %v19055_v10 = vpop.f32.mrb[29].mxu1  ;;  %v19057_v9 = vpop.f32.mrb[30].mxu0  ;;  %13505 = vst [vmem:[%s19565_s3 + $0x100] sm:$0xf] %v12040_v8  ;;  %v5859_v29 = vsel %vm18640_vm9, %v5857_v1, %v5858_v33  ;;  %v5860_v0 = vrot.slane %v5858_v33, 4  ;;  %v12190_v17 = vmul.f32 %v18813_v5, %v18961_v39  ;;  %v12269_v46 = vmul.f32 %v18779_v37, %v12191_v6 }
 0x370   :  { %v19066_v51 = vpop.f32.mrb[30].mxu1  ;;  %v19068_v54 = vpop.f32.mrb[31].mxu0  ;;  %5977 = vst [vmem:[%s19565_s3 + $0x44] sm:$0xf] %v5859_v29  ;;  %v6231_v53 = vadd.f32 %v6230_v16, %v18981_v31  ;;  %v6307_v45 = vadd.f32 %v6306_v58, %v6272_v43  ;;  %v13545_v1 = vpack.c.bf16 %v18846_v22, %v18846_v22  ;;  %v12034_v33 = vsel %vm18640_vm9, %v12032_v41, %v12033_v35 }
 0x371   :  { %19573 = vst [vmem:[#allocation3_spill] sm:$0xff] %v19068_v54  ;;  %v19077_v26 = vpop.f32.mrb[31].mxu1  ;;  %v5862_v39 = vsel %vm18640_vm9, %v5860_v0, %v18972_v62  ;;  %v12035_v37 = vrot.slane %v12033_v35, 4  ;;  %v12226_v8 = vadd.f32 %v12225_v49, %v12190_v17  ;;  %v5866_v54 = vrot.slane %v19024_v56, 4  ;;  %13503 = vst [vmem:[%s19565_s3 + $0xf8] sm:$0xf] %v12034_v33  ;;  %v19093_v58 = vpop.permute.xlu1 %6088 }
 0x372   :  { %v6274_v29 = vmul.f32 %v18793_v55, %v6196_v44  ;;  %5978 = vst [vmem:[%s19565_s3 + $0x48] sm:$0xf] %v5862_v39  ;;  %v6308_v31 = vadd.f32 %v6307_v45, %v6273_v20  ;;  %v12268_v62 = vmul.f32 %v12190_v17, %v18813_v5  ;;  %v12270_v41 = vmul.f32 %v18802_v42, %v12192_v36  ;;  %v6094_v16 = vpop.permute.xlu0 %6093 }
 0x373   :  { %v12037_v49 = vsel %vm18640_vm9, %v12035_v37, %v18983_v50  ;;  %v12227_v55 = vadd.f32 %v12226_v8, %v12191_v6  ;;  %v13581_v56 = vpack.c.bf16 %v18853_v25, %v18853_v25  ;;  %v19104_v43 = vrot.slane %v13545_v1, 6 }
 0x374   :  { %13504 = vst [vmem:[%s19565_s3 + $0xfc] sm:$0xf] %v12037_v49  ;;  %v12303_v20 = vadd.f32 %v12302_v48, %v12268_v62  ;;  %v13543_v5 = vpack.c.bf16 %v18855_v28, %v18855_v28  ;;  %v6197_v42 = vmul.f32 %v19028_v7, %v18855_v28  ;;  %v6199_v50 = vmul.f32 %v18846_v22, %v6094_v16 }
 0x375   :  { %v19110_v0 = vpop.f32.mrb[32].mxu0  ;;  %v19113_v6 = vrot.slane %v13581_v56, 6  ;;  %v6232_v35 = vadd.f32 %v6231_v53, %v6196_v44  ;;  %v6309_v17 = vadd.f32 %v6308_v31, %v6274_v29  ;;  %v13579_v37 = vpack.c.bf16 %v18860_v27, %v18860_v27 }
 0x376   :  { %v19115_v45 = vpop.f32.mrb[32].mxu1  ;;  %v19117_v39 = vpop.f32.mrb[33].mxu0  ;;  %v12304_v48 = vadd.f32 %v12303_v20, %v12269_v46  ;;  %v5867_v1 = vrot.slane %v13543_v5, 6  ;;  %v6275_v33 = vmul.f32 %v6197_v42, %v18855_v28  ;;  %v12041_v49 = vrot.slane %v19031_v19, 4 }
 0x377   :  { %v19122_v8 = vpop.f32.mrb[33].mxu1  ;;  %v19124_v62 = vpop.f32.mrb[34].mxu0  ;;  %v6233_v56 = vadd.f32 %v6232_v35, %v6197_v42  ;;  %v12193_v44 = vmul.f32 %v18860_v27, %v19028_v7  ;;  %v12228_v53 = vadd.f32 %v12227_v55, %v12192_v36  ;;  %v5875_v28 = vrot.slane %v19104_v43, 4 }
 0x378   :  { %19574 = vst [vmem:[#allocation4_spill] sm:$0xff] %v19122_v8  ;;  %v19129_v29 = vpop.f32.mrb[34].mxu1  ;;  %v19131_v46 = vpop.f32.mrb[35].mxu0  ;;  %v5868_v31 = vsel %vm18640_vm9, %v5866_v54, %v5867_v1  ;;  %v6310_v20 = vadd.f32 %v6309_v17, %v6275_v33  ;;  %v12042_v5 = vrot.slane %v13579_v37, 6  ;;  %v12305_v36 = vadd.f32 %v12304_v48, %v12270_v41 }
 0x379   :  { %19575 = vst [vmem:[#allocation5_spill] sm:$0xff] %v19131_v46  ;;  %v19136_v8 = vpop.f32.mrb[35].mxu1  ;;  %5980 = vst [vmem:[%s19565_s3 + $0x50] sm:$0xf] %v5868_v31  ;;  %v12229_v19 = vadd.f32 %v12228_v53, %v12193_v44  ;;  %v12271_v7 = vmul.f32 %v12193_v44, %v18860_v27  ;;  %v13546_v55 = vpack.c.bf16 %v18862_v40, %v18862_v40  ;;  %v12050_v35 = vrot.slane %v19113_v6, 4 }
 0x37a   :  { %19576 = vst [vmem:[#allocation6_spill] sm:$0xff] %v19136_v8  ;;  %v6277_v42 = vmul.f32 %v18846_v22, %v6199_v50  ;;  %v12043_v54 = vsel %vm18640_vm9, %v12041_v49, %v12042_v5  ;;  %v13582_v17 = vpack.c.bf16 %v18867_v52, %v18867_v52  ;;  %v5869_v33 = vrot.slane %v5867_v1, 4  ;;  %v6099_v22 = vpop.permute.xlu1 %6098 }
 0x37b   :  { %13506 = vst [vmem:[%s19565_s3 + $0x104] sm:$0xf] %v12043_v54  ;;  %v12306_v27 = vadd.f32 %v12305_v36, %v12271_v7  ;;  %v19153_v41 = vrot.slane %v13546_v55, 6  ;;  %v13544_v48 = vpack.c.bf16 %v18869_v32, %v18869_v32  ;;  %v12195_v37 = vmul.f32 %v18853_v25, %v6094_v16  ;;  %v6104_v55 = vpop.permute.xlu0 %6103 }
 0x37c   :  { %v19158_v44 = vrot.slane %v13582_v17, 6  ;;  %v6198_v49 = vmul.f32 %v19093_v58, %v18869_v32  ;;  %v13580_v1 = vpack.c.bf16 %v18874_v24, %v18874_v24  ;;  %v12044_v53 = vrot.slane %v12042_v5, 4 }
 0x37d   :  { %v5877_v31 = vsel %vm18640_vm9, %v5875_v28, %v19153_v41  ;;  %v6200_v7 = vmul.f32 %v18862_v40, %v6099_v22  ;;  %v5870_v36 = vrot.slane %v13544_v48, 6  ;;  %v12196_v54 = vmul.f32 %v18867_v52, %v6099_v22 }
 0x37e   :  { %5983 = vst [vmem:[%s19565_s3 + $0x5c] sm:$0xf] %v5877_v31  ;;  %v12052_v16 = vsel %vm18640_vm9, %v12050_v35, %v19158_v44  ;;  %v6234_v17 = vadd.f32 %v6233_v56, %v6198_v49  ;;  %v6276_v5 = vmul.f32 %v6198_v49, %v18869_v32  ;;  %v12045_v8 = vrot.slane %v13580_v1, 6 }
 0x37f   :  { %13509 = vst [vmem:[%s19565_s3 + $0x110] sm:$0xf] %v12052_v16  ;;  %v5871_v28 = vsel %vm18640_vm9, %v5869_v33, %v5870_v36  ;;  %v5872_v48 = vrot.slane %v5870_v36, 4  ;;  %v12194_v31 = vmul.f32 %v18874_v24, %v19093_v58  ;;  %v12273_v46 = vmul.f32 %v18853_v25, %v12195_v37 }
 0x380   :  { %5981 = vst [vmem:[%s19565_s3 + $0x54] sm:$0xf] %v5871_v28  ;;  %v6235_v56 = vadd.f32 %v6234_v17, %v6199_v50  ;;  %v6311_v32 = vadd.f32 %v6310_v20, %v6276_v5  ;;  %v13549_v35 = vpack.c.bf16 %v18905_v21, %v18905_v21  ;;  %v12046_v22 = vsel %vm18640_vm9, %v12044_v53, %v12045_v8  ;;  %v6109_v17 = vpop.permute.xlu1 %6108 }
 0x381   :  { %v5874_v33 = vsel %vm18640_vm9, %v5872_v48, %v19104_v43  ;;  %v12047_v49 = vrot.slane %v12045_v8, 4  ;;  %v12230_v58 = vadd.f32 %v12229_v19, %v12194_v31  ;;  %v5878_v25 = vrot.slane %v19153_v41, 4  ;;  %13507 = vst [vmem:[%s19565_s3 + $0x108] sm:$0xf] %v12046_v22  ;;  %v6114_v41 = vpop.permute.xlu0 %6113 }
 0x382   :  { %v6278_v1 = vmul.f32 %v18862_v40, %v6200_v7  ;;  %5982 = vst [vmem:[%s19565_s3 + $0x58] sm:$0xf] %v5874_v33  ;;  %v6312_v50 = vadd.f32 %v6311_v32, %v6277_v42  ;;  %v12272_v43 = vmul.f32 %v12194_v31, %v18874_v24  ;;  %v12274_v20 = vmul.f32 %v18867_v52, %v12196_v54 }
 0x383   :  { %v12049_v8 = vsel %vm18640_vm9, %v12047_v49, %v19113_v6  ;;  %v12231_v19 = vadd.f32 %v12230_v58, %v12195_v37  ;;  %v13585_v40 = vpack.c.bf16 %v18911_v23, %v18911_v23  ;;  %v5885_v53 = vrot.slane %v13549_v35, 6 }
 0x384   :  { %13508 = vst [vmem:[%s19565_s3 + $0x10c] sm:$0xf] %v12049_v8  ;;  %v12307_v42 = vadd.f32 %v12306_v27, %v12272_v43  ;;  %v13547_v24 = vpack.c.bf16 %v18913_v15, %v18913_v15  ;;  %v6201_v52 = vmul.f32 %v6104_v55, %v18913_v15  ;;  %v6203_v36 = vmul.f32 %v18905_v21, %v6114_v41 }
 0x385   :  { %v19216_v16 = vrot.slane %v13585_v40, 6  ;;  %v6236_v6 = vadd.f32 %v6235_v56, %v6200_v7  ;;  %v6313_v37 = vadd.f32 %v6312_v50, %v6278_v1  ;;  %v13583_v27 = vpack.c.bf16 %v18923_v34, %v18923_v34 }
 0x386   :  { %v12308_v5 = vadd.f32 %v12307_v42, %v12273_v46  ;;  %v5879_v28 = vrot.slane %v13547_v24, 6  ;;  %v6279_v48 = vmul.f32 %v6201_v52, %v18913_v15  ;;  %v12053_v31 = vrot.slane %v19158_v44, 4 }
 0x387   :  { %v6237_v32 = vadd.f32 %v6236_v6, %v6201_v52  ;;  %v12197_v35 = vmul.f32 %v18923_v34, %v6104_v55  ;;  %v12232_v33 = vadd.f32 %v12231_v19, %v12196_v54  ;;  %v5887_v22 = vrot.slane %v5885_v53, 4 }
 0x388   :  { %v5880_v49 = vsel %vm18640_vm9, %v5878_v25, %v5879_v28  ;;  %v6314_v7 = vadd.f32 %v6313_v37, %v6279_v48  ;;  %v12054_v56 = vrot.slane %v13583_v27, 6  ;;  %v12309_v58 = vadd.f32 %v12308_v5, %v12274_v20  ;;  %v6124_v5 = vpop.permute.xlu0 %6123 }
 0x389   :  { %5984 = vst [vmem:[%s19565_s3 + $0x60] sm:$0xf] %v5880_v49  ;;  %v12233_v15 = vadd.f32 %v12232_v33, %v12197_v35  ;;  %v12275_v46 = vmul.f32 %v12197_v35, %v18923_v34  ;;  %v13550_v44 = vpack.c.bf16 %v18925_v38, %v18925_v38  ;;  %v6281_v55 = vmul.f32 %v18905_v21, %v6203_v36  ;;  %v6119_v21 = vpop.permute.xlu1 %6118 }
 0x38a   :  { %v12062_v54 = vrot.slane %v19216_v16, 4  ;;  %v12055_v25 = vsel %vm18640_vm9, %v12053_v31, %v12054_v56  ;;  %v13586_v1 = vpack.c.bf16 %v18934_v60, %v18934_v60  ;;  %v5881_v50 = vrot.slane %v5879_v28, 4 }
 0x38b   :  { %13510 = vst [vmem:[%s19565_s3 + $0x114] sm:$0xf] %v12055_v25  ;;  %v12310_v34 = vadd.f32 %v12309_v58, %v12275_v46  ;;  %v19240_v43 = vrot.slane %v13550_v44, 6  ;;  %v13548_v20 = vpack.c.bf16 %v18936_v47, %v18936_v47  ;;  %v12199_v8 = vmul.f32 %v18911_v23, %v6114_v41 }
 0x38c   :  { %v19245_v19 = vrot.slane %v13586_v1, 6  ;;  %v6202_v40 = vmul.f32 %v6109_v17, %v18936_v47  ;;  %v13584_v42 = vpack.c.bf16 %v18945_v3, %v18945_v3  ;;  %v12056_v24 = vrot.slane %v12054_v56, 4  ;;  %v6134_v1 = vpop.permute.xlu0 %6133 }
 0x38d   :  { %v5889_v52 = vsel %vm18640_vm9, %v5887_v22, %v19240_v43  ;;  %v6204_v6 = vmul.f32 %v18925_v38, %v6119_v21  ;;  %v5882_v37 = vrot.slane %v13548_v20, 6  ;;  %v12200_v28 = vmul.f32 %v18934_v60, %v6119_v21 }
 0x38e   :  { %5987 = vst [vmem:[%s19565_s3 + $0x6c] sm:$0xf] %v5889_v52  ;;  %v12064_v41 = vsel %vm18640_vm9, %v12062_v54, %v19245_v19  ;;  %v6238_v48 = vadd.f32 %v6237_v32, %v6202_v40  ;;  %v6280_v27 = vmul.f32 %v6202_v40, %v18936_v47  ;;  %v12057_v33 = vrot.slane %v13584_v42, 6 }
 0x38f   :  { %13513 = vst [vmem:[%s19565_s3 + $0x120] sm:$0xf] %v12064_v41  ;;  %v5883_v31 = vsel %vm18640_vm9, %v5881_v50, %v5882_v37  ;;  %v5884_v35 = vrot.slane %v5882_v37, 4  ;;  %v12198_v22 = vmul.f32 %v18945_v3, %v6109_v17  ;;  %v12277_v49 = vmul.f32 %v18911_v23, %v12199_v8 }
 0x390   :  { %5985 = vst [vmem:[%s19565_s3 + $0x64] sm:$0xf] %v5883_v31  ;;  %v6239_v32 = vadd.f32 %v6238_v48, %v6203_v36  ;;  %v6315_v56 = vadd.f32 %v6314_v7, %v6280_v27  ;;  %v13553_v47 = vpack.c.bf16 %v18978_v13, %v18978_v13  ;;  %v12058_v58 = vsel %vm18640_vm9, %v12056_v24, %v12057_v33 }
 0x391   :  { %v5886_v46 = vsel %vm18640_vm9, %v5884_v35, %v5885_v53  ;;  %v12059_v44 = vrot.slane %v12057_v33, 4  ;;  %v12234_v54 = vadd.f32 %v12233_v15, %v12198_v22  ;;  %v5890_v17 = vrot.slane %v19240_v43, 4  ;;  %13511 = vst [vmem:[%s19565_s3 + $0x118] sm:$0xf] %v12058_v58 }
 0x392   :  { %v6282_v23 = vmul.f32 %v18925_v38, %v6204_v6  ;;  %5986 = vst [vmem:[%s19565_s3 + $0x68] sm:$0xf] %v5886_v46  ;;  %v6316_v36 = vadd.f32 %v6315_v56, %v6281_v55  ;;  %v12276_v53 = vmul.f32 %v12198_v22, %v18945_v3  ;;  %v12278_v7 = vmul.f32 %v18934_v60, %v12200_v28 }
 0x393   :  { %v12061_v15 = vsel %vm18640_vm9, %v12059_v44, %v19216_v16  ;;  %v12235_v25 = vadd.f32 %v12234_v54, %v12199_v8  ;;  %v13589_v38 = vpack.c.bf16 %v18985_v18, %v18985_v18  ;;  %v5897_v50 = vrot.slane %v13553_v47, 6  ;;  %v6129_v8 = vpop.permute.xlu1 %6128 }
 0x394   :  { %13512 = vst [vmem:[%s19565_s3 + $0x11c] sm:$0xf] %v12061_v15  ;;  %v12311_v55 = vadd.f32 %v12310_v34, %v12276_v53  ;;  %v13551_v3 = vpack.c.bf16 %v18987_v63, %v18987_v63  ;;  %v6205_v60 = vmul.f32 %v6124_v5, %v18987_v63  ;;  %v6207_v43 = vmul.f32 %v18978_v13, %v6134_v1  ;;  %v6144_v15 = vpop.permute.xlu0 %6143 }
 0x395   :  { %v19300_v20 = vrot.slane %v13589_v38, 6  ;;  %v6240_v16 = vadd.f32 %v6239_v32, %v6204_v6  ;;  %v6317_v21 = vadd.f32 %v6316_v36, %v6282_v23  ;;  %v13587_v34 = vpack.c.bf16 %v18992_v59, %v18992_v59 }
 0x396   :  { %v12312_v40 = vadd.f32 %v12311_v55, %v12277_v49  ;;  %v5891_v42 = vrot.slane %v13551_v3, 6  ;;  %v6283_v24 = vmul.f32 %v6205_v60, %v18987_v63  ;;  %v12065_v52 = vrot.slane %v19245_v19, 4 }
 0x397   :  { %v6241_v37 = vadd.f32 %v6240_v16, %v6205_v60  ;;  %v12201_v41 = vmul.f32 %v18992_v59, %v6124_v5  ;;  %v12236_v48 = vadd.f32 %v12235_v25, %v12200_v28  ;;  %v5899_v27 = vrot.slane %v5897_v50, 4 }
 0x398   :  { %v5892_v31 = vsel %vm18640_vm9, %v5890_v17, %v5891_v42  ;;  %v6318_v6 = vadd.f32 %v6317_v21, %v6283_v24  ;;  %v12066_v35 = vrot.slane %v13587_v34, 6  ;;  %v12313_v22 = vadd.f32 %v12312_v40, %v12278_v7 }
 0x399   :  { %5988 = vst [vmem:[%s19565_s3 + $0x70] sm:$0xf] %v5892_v31  ;;  %v12237_v63 = vadd.f32 %v12236_v48, %v12201_v41  ;;  %v12279_v33 = vmul.f32 %v12201_v41, %v18992_v59  ;;  %v13554_v19 = vpack.c.bf16 %v18994_v57, %v18994_v57  ;;  %v6285_v5 = vmul.f32 %v18978_v13, %v6207_v43  ;;  %v6139_v13 = vpop.permute.xlu1 %6138 }
 0x39a   :  { %v12074_v28 = vrot.slane %v19300_v20, 4  ;;  %v12067_v49 = vsel %vm18640_vm9, %v12065_v52, %v12066_v35  ;;  %v13590_v32 = vpack.c.bf16 %v18999_v14, %v18999_v14  ;;  %v5893_v56 = vrot.slane %v5891_v42, 4 }
 0x39b   :  { %13514 = vst [vmem:[%s19565_s3 + $0x124] sm:$0xf] %v12067_v49  ;;  %v12314_v59 = vadd.f32 %v12313_v22, %v12279_v33  ;;  %v19324_v47 = vrot.slane %v13554_v19, 6  ;;  %v13552_v46 = vpack.c.bf16 %v19001_v12, %v19001_v12  ;;  %v12203_v58 = vmul.f32 %v18985_v18, %v6134_v1 }
 0x39c   :  { %v19329_v44 = vrot.slane %v13590_v32, 6  ;;  %v6206_v54 = vmul.f32 %v6129_v8, %v19001_v12  ;;  %v13588_v17 = vpack.c.bf16 %v19006_v11, %v19006_v11  ;;  %v12068_v23 = vrot.slane %v12066_v35, 4 }
 0x39d   :  { %v5901_v36 = vsel %vm18640_vm9, %v5899_v27, %v19324_v47  ;;  %v6208_v53 = vmul.f32 %v18994_v57, %v6139_v13  ;;  %v5894_v7 = vrot.slane %v13552_v46, 6  ;;  %v12204_v38 = vmul.f32 %v18999_v14, %v6139_v13 }
 0x39e   :  { %5991 = vst [vmem:[%s19565_s3 + $0x7c] sm:$0xf] %v5901_v36  ;;  %v12076_v25 = vsel %vm18640_vm9, %v12074_v28, %v19329_v44  ;;  %v6242_v1 = vadd.f32 %v6241_v37, %v6206_v54  ;;  %v6284_v55 = vmul.f32 %v6206_v54, %v19001_v12  ;;  %v12069_v16 = vrot.slane %v13588_v17, 6 }
 0x39f   :  { %13517 = vst [vmem:[%s19565_s3 + $0x130] sm:$0xf] %v12076_v25  ;;  %v5895_v3 = vsel %vm18640_vm9, %v5893_v56, %v5894_v7  ;;  %v5896_v60 = vrot.slane %v5894_v7, 4  ;;  %v12202_v21 = vmul.f32 %v19006_v11, %v6129_v8  ;;  %v12281_v40 = vmul.f32 %v18985_v18, %v12203_v58 }
 0x3a0   :  { %5989 = vst [vmem:[%s19565_s3 + $0x74] sm:$0xf] %v5895_v3  ;;  %v6243_v42 = vadd.f32 %v6242_v1, %v6207_v43  ;;  %v6319_v24 = vadd.f32 %v6318_v6, %v6284_v55  ;;  %v13557_v12 = vpack.c.bf16 %v19037_v30, %v19037_v30  ;;  %v12070_v52 = vsel %vm18640_vm9, %v12068_v23, %v12069_v16  ;;  %v6154_v6 = vpop.permute.xlu0 %6153  ;;  %v19577_v3 = vld [vmem:[#allocation3_spill] sm:$0xff] }
 0x3a1   :  { %v5898_v34 = vsel %vm18640_vm9, %v5896_v60, %v5897_v50  ;;  %v12071_v37 = vrot.slane %v12069_v16, 4  ;;  %v12238_v41 = vadd.f32 %v12237_v63, %v12202_v21  ;;  %v5902_v8 = vrot.slane %v19324_v47, 4  ;;  %13515 = vst [vmem:[%s19565_s3 + $0x128] sm:$0xf] %v12070_v52 }
 0x3a2   :  { %v6286_v18 = vmul.f32 %v18994_v57, %v6208_v53  ;;  %5990 = vst [vmem:[%s19565_s3 + $0x78] sm:$0xf] %v5898_v34  ;;  %v6320_v43 = vadd.f32 %v6319_v24, %v6285_v5  ;;  %v12280_v50 = vmul.f32 %v12202_v21, %v19006_v11  ;;  %v12282_v48 = vmul.f32 %v18999_v14, %v12204_v38  ;;  %v6149_v5 = vpop.permute.xlu1 %6148 }
 0x3a3   :  { %v12073_v27 = vsel %vm18640_vm9, %v12071_v37, %v19300_v20  ;;  %v12239_v31 = vadd.f32 %v12238_v41, %v12203_v58  ;;  %v13593_v57 = vpack.c.bf16 %v19043_v2, %v19043_v2  ;;  %v5909_v63 = vrot.slane %v13557_v12, 6 }
 0x3a4   :  { %13516 = vst [vmem:[%s19565_s3 + $0x12c] sm:$0xf] %v12073_v27  ;;  %v12315_v35 = vadd.f32 %v12314_v59, %v12280_v50  ;;  %v13555_v11 = vpack.c.bf16 %v19045_v4, %v19045_v4  ;;  %v6209_v14 = vmul.f32 %v6144_v15, %v19045_v4  ;;  %v6211_v33 = vmul.f32 %v19037_v30, %v6154_v6 }
 0x3a5   :  { %v19384_v22 = vrot.slane %v13593_v57, 6  ;;  %v6244_v20 = vadd.f32 %v6243_v42, %v6208_v53  ;;  %v6321_v19 = vadd.f32 %v6320_v43, %v6286_v18  ;;  %v13591_v56 = vpack.c.bf16 %v19055_v10, %v19055_v10 }
 0x3a6   :  { %v12316_v28 = vadd.f32 %v12315_v35, %v12281_v40  ;;  %v5903_v49 = vrot.slane %v13555_v11, 6  ;;  %v6287_v32 = vmul.f32 %v6209_v14, %v19045_v4  ;;  %v12077_v59 = vrot.slane %v19329_v44, 4 }
 0x3a7   :  { %v6245_v47 = vadd.f32 %v6244_v20, %v6209_v14  ;;  %v12205_v46 = vmul.f32 %v19055_v10, %v6144_v15  ;;  %v12240_v13 = vadd.f32 %v12239_v31, %v12204_v38  ;;  %v5911_v58 = vrot.slane %v5909_v63, 4  ;;  %v6164_v31 = vpop.permute.xlu0 %6163 }
 0x3a8   :  { %v5904_v54 = vsel %vm18640_vm9, %v5902_v8, %v5903_v49  ;;  %v6322_v17 = vadd.f32 %v6321_v19, %v6287_v32  ;;  %v12078_v23 = vrot.slane %v13591_v56, 6  ;;  %v12317_v53 = vadd.f32 %v12316_v28, %v12282_v48 }
 0x3a9   :  { %5992 = vst [vmem:[%s19565_s3 + $0x80] sm:$0xf] %v5904_v54  ;;  %v12241_v4 = vadd.f32 %v12240_v13, %v12205_v46  ;;  %v12283_v36 = vmul.f32 %v12205_v46, %v19055_v10  ;;  %v13558_v44 = vpack.c.bf16 %v19057_v9, %v19057_v9  ;;  %v6289_v7 = vmul.f32 %v19037_v30, %v6211_v33  ;;  %v6159_v30 = vpop.permute.xlu1 %6158 }
 0x3aa   :  { %v12086_v15 = vrot.slane %v19384_v22, 4  ;;  %v12079_v25 = vsel %vm18640_vm9, %v12077_v59, %v12078_v23  ;;  %v13594_v38 = vpack.c.bf16 %v19066_v51, %v19066_v51  ;;  %v5905_v1 = vrot.slane %v5903_v49, 4 }
 0x3ab   :  { %13518 = vst [vmem:[%s19565_s3 + $0x134] sm:$0xf] %v12079_v25  ;;  %v12318_v10 = vadd.f32 %v12317_v53, %v12283_v36  ;;  %v19408_v55 = vrot.slane %v13558_v44, 6  ;;  %v13556_v60 = vpack.c.bf16 %v19577_v3, %v19577_v3  ;;  %v12207_v16 = vmul.f32 %v19043_v2, %v6154_v6  ;;  %v19578_v53 = vld [vmem:[#allocation4_spill] sm:$0xff] }
 0x3ac   :  { %v19413_v21 = vrot.slane %v13594_v38, 6  ;;  %v6210_v40 = vmul.f32 %v6149_v5, %v19577_v3  ;;  %v13592_v42 = vpack.c.bf16 %v19077_v26, %v19077_v26  ;;  %v12080_v24 = vrot.slane %v12078_v23, 4 }
 0x3ad   :  { %v5913_v12 = vsel %vm18640_vm9, %v5911_v58, %v19408_v55  ;;  %v6212_v34 = vmul.f32 %v19057_v9, %v6159_v30  ;;  %v5906_v52 = vrot.slane %v13556_v60, 6  ;;  %v12208_v41 = vmul.f32 %v19066_v51, %v6159_v30  ;;  %v6169_v54 = vpop.permute.xlu1 %6168 }
 0x3ae   :  { %5995 = vst [vmem:[%s19565_s3 + $0x8c] sm:$0xf] %v5913_v12  ;;  %v12088_v37 = vsel %vm18640_vm9, %v12086_v15, %v19413_v21  ;;  %v6246_v8 = vadd.f32 %v6245_v47, %v6210_v40  ;;  %v6288_v18 = vmul.f32 %v6210_v40, %v19577_v3  ;;  %v12081_v48 = vrot.slane %v13592_v42, 6 }
 0x3af   :  { %13521 = vst [vmem:[%s19565_s3 + $0x140] sm:$0xf] %v12088_v37  ;;  %v5907_v43 = vsel %vm18640_vm9, %v5905_v1, %v5906_v52  ;;  %v5908_v50 = vrot.slane %v5906_v52, 4  ;;  %v12206_v27 = vmul.f32 %v19077_v26, %v6149_v5  ;;  %v12285_v57 = vmul.f32 %v19043_v2, %v12207_v16 }
 0x3b0   :  { %5993 = vst [vmem:[%s19565_s3 + $0x84] sm:$0xf] %v5907_v43  ;;  %v6247_v6 = vadd.f32 %v6246_v8, %v6211_v33  ;;  %v6323_v35 = vadd.f32 %v6322_v17, %v6288_v18  ;;  %v13561_v11 = vpack.c.bf16 %v19110_v0, %v19110_v0  ;;  %v12082_v20 = vsel %vm18640_vm9, %v12080_v24, %v12081_v48  ;;  %v6174_v17 = vpop.permute.xlu0 %6173  ;;  %v19579_v8 = vld [vmem:[#allocation5_spill] sm:$0xff] }
 0x3b1   :  { %v5910_v14 = vsel %vm18640_vm9, %v5908_v50, %v5909_v63  ;;  %v12083_v19 = vrot.slane %v12081_v48, 4  ;;  %v12242_v5 = vadd.f32 %v12241_v4, %v12206_v27  ;;  %v5914_v28 = vrot.slane %v19408_v55, 4  ;;  %13519 = vst [vmem:[%s19565_s3 + $0x138] sm:$0xf] %v12082_v20  ;;  %v19580_v20 = vld [vmem:[#allocation6_spill] sm:$0xff] }
 0x3b2   :  { %v6290_v2 = vmul.f32 %v19057_v9, %v6212_v34  ;;  %5994 = vst [vmem:[%s19565_s3 + $0x88] sm:$0xf] %v5910_v14  ;;  %v6324_v33 = vadd.f32 %v6323_v35, %v6289_v7  ;;  %v12284_v63 = vmul.f32 %v12206_v27, %v19077_v26  ;;  %v12286_v49 = vmul.f32 %v19066_v51, %v12208_v41 }
 0x3b3   :  { %v12085_v32 = vsel %vm18640_vm9, %v12083_v19, %v19384_v22  ;;  %v12243_v56 = vadd.f32 %v12242_v5, %v12207_v16  ;;  %v13597_v9 = vpack.c.bf16 %v19115_v45, %v19115_v45  ;;  %v19464_v47 = vrot.slane %v13561_v11, 6 }
 0x3b4   :  { %13520 = vst [vmem:[%s19565_s3 + $0x13c] sm:$0xf] %v12085_v32  ;;  %v12319_v59 = vadd.f32 %v12318_v10, %v12284_v63  ;;  %v13559_v26 = vpack.c.bf16 %v19117_v39, %v19117_v39  ;;  %v6213_v51 = vmul.f32 %v6164_v31, %v19117_v39  ;;  %v12089_v46 = vrot.slane %v19413_v21, 4 }
 0x3b5   :  { %v19470_v13 = vrot.slane %v13597_v9, 6  ;;  %v6248_v22 = vadd.f32 %v6247_v6, %v6212_v34  ;;  %v6325_v58 = vadd.f32 %v6324_v33, %v6290_v2  ;;  %v13595_v44 = vpack.c.bf16 %v19578_v53, %v19578_v53  ;;  %v6179_v34 = vpop.permute.xlu1 %6178 }
 0x3b6   :  { %v12320_v23 = vadd.f32 %v12319_v59, %v12285_v57  ;;  %v5915_v4 = vrot.slane %v13559_v26, 6  ;;  %v6291_v36 = vmul.f32 %v6213_v51, %v19117_v39  ;;  %v6215_v7 = vmul.f32 %v19110_v0, %v6174_v17 }
 0x3b7   :  { %v6249_v15 = vadd.f32 %v6248_v22, %v6213_v51  ;;  %v12209_v25 = vmul.f32 %v19578_v53, %v6164_v31  ;;  %v12244_v38 = vadd.f32 %v12243_v56, %v12208_v41  ;;  %v5923_v1 = vrot.slane %v19464_v47, 4 }
 0x3b8   :  { %v5916_v10 = vsel %vm18640_vm9, %v5914_v28, %v5915_v4  ;;  %v6326_v55 = vadd.f32 %v6325_v58, %v6291_v36  ;;  %v12090_v3 = vrot.slane %v13595_v44, 6  ;;  %v12321_v30 = vadd.f32 %v12320_v23, %v12286_v49 }
 0x3b9   :  { %5996 = vst [vmem:[%s19565_s3 + $0x90] sm:$0xf] %v5916_v10  ;;  %v12245_v39 = vadd.f32 %v12244_v38, %v12209_v25  ;;  %v12287_v60 = vmul.f32 %v12209_v25, %v19578_v53  ;;  %v13562_v16 = vpack.c.bf16 %v19124_v62, %v19124_v62  ;;  %v12098_v21 = vrot.slane %v19470_v13, 4 }
 0x3ba   :  { %v12091_v40 = vsel %vm18640_vm9, %v12089_v46, %v12090_v3  ;;  %v13598_v42 = vpack.c.bf16 %v19129_v29, %v19129_v29  ;;  %v5917_v52 = vrot.slane %v5915_v4, 4  ;;  %v16070_v41 = vmov 0.0  }
 0x3bb   :  { %13522 = vst [vmem:[%s19565_s3 + $0x144] sm:$0xf] %v12091_v40  ;;  %v12322_v24 = vadd.f32 %v12321_v30, %v12287_v60  ;;  %v5924_v12 = vrot.slane %v13562_v16, 6  ;;  %21 = vst [vmem:[%s19566_s4] sm:$0x3] %v16070_v41  ;;  %v13560_v18 = vpack.c.bf16 %v19579_v8, %v19579_v8  ;;  %v6214_v43 = vmul.f32 %v6169_v54, %v19579_v8 }
 0x3bc   :  { %v12099_v37 = vrot.slane %v13598_v42, 6  ;;  %v6293_v50 = vmul.f32 %v19110_v0, %v6215_v7  ;;  %v6216_v31 = vmul.f32 %v19124_v62, %v6179_v34  ;;  %v12092_v14 = vrot.slane %v12090_v3, 4 }
 0x3bd   :  { %v5925_v48 = vsel %vm18640_vm9, %v5923_v1, %v5924_v12  ;;  %v5926_v27 = vrot.slane %v5924_v12, 4  ;;  %v5918_v35 = vrot.slane %v13560_v18, 6  ;;  %v6250_v11 = vadd.f32 %v6249_v15, %v6214_v43 }
 0x3be   :  { %5999 = vst [vmem:[%s19565_s3 + $0x9c] sm:$0xf] %v5925_v48  ;;  %v12100_v57 = vsel %vm18640_vm9, %v12098_v21, %v12099_v37  ;;  %v12101_v6 = vrot.slane %v12099_v37, 4  ;;  %v6292_v0 = vmul.f32 %v6214_v43, %v19579_v8  ;;  %v13596_v19 = vpack.c.bf16 %v19580_v20, %v19580_v20 }
 0x3bf   :  { %6000 = vst [vmem:[%s19565_s3 + $0xa0] sm:$0x3] %v5926_v27  ;;  %13525 = vst [vmem:[%s19565_s3 + $0x150] sm:$0xf] %v12100_v57  ;;  %v12210_v5 = vmul.f32 %v19580_v20, %v6169_v54  ;;  %v12211_v28 = vmul.f32 %v19115_v45, %v6174_v17  ;;  %v5919_v2 = vsel %vm18640_vm9, %v5917_v52, %v5918_v35  ;;  %v5920_v33 = vrot.slane %v5918_v35, 4 }
 0x3c0   :  { %13526 = vst [vmem:[%s19565_s3 + $0x154] sm:$0x3] %v12101_v6  ;;  %v6251_v63 = vadd.f32 %v6250_v11, %v6215_v7  ;;  %5997 = vst [vmem:[%s19565_s3 + $0x94] sm:$0xf] %v5919_v2  ;;  %v6327_v49 = vadd.f32 %v6326_v55, %v6292_v0  ;;  %v12093_v32 = vrot.slane %v13596_v19, 6  ;;  %v6294_v59 = vmul.f32 %v19124_v62, %v6216_v31 }
 0x3c1   :  { %v12246_v56 = vadd.f32 %v12245_v39, %v12210_v5  ;;  %v12288_v9 = vmul.f32 %v12210_v5, %v19580_v20  ;;  %v12212_v26 = vmul.f32 %v19129_v29, %v6179_v34  ;;  %v5922_v51 = vsel %vm18640_vm9, %v5920_v33, %v19464_v47 }
 0x3c2   :  { %v6252_v46 = vadd.f32 %v6251_v63, %v6216_v31  ;;  %5998 = vst [vmem:[%s19565_s3 + $0x98] sm:$0xf] %v5922_v51  ;;  %v6328_v22 = vadd.f32 %v6327_v49, %v6293_v50  ;;  %v12094_v58 = vsel %vm18640_vm9, %v12092_v14, %v12093_v32  ;;  %v12095_v54 = vrot.slane %v12093_v32, 4  ;;  %v6217_v12 = vld [vmem:[%s19566_s4] sm:$0x3] }
 0x3c3   :  { %v12247_v17 = vadd.f32 %v12246_v56, %v12211_v28  ;;  %v12289_v23 = vmul.f32 %v19115_v45, %v12211_v28  ;;  %13523 = vst [vmem:[%s19565_s3 + $0x148] sm:$0xf] %v12094_v58  ;;  %v12323_v4 = vadd.f32 %v12322_v24, %v12288_v9  ;;  %v12290_v44 = vmul.f32 %v19129_v29, %v12212_v26 }
 0x3c4   :  { %v6253_v62 = vrot.slane %v6252_v46, 4  ;;  %v6329_v47 = vadd.f32 %v6328_v22, %v6294_v59  ;;  %v12097_v36 = vsel %vm18640_vm9, %v12095_v54, %v19470_v13 }
 0x3c5   :  { %v12248_v53 = vadd.f32 %v12247_v17, %v12212_v26  ;;  %13524 = vst [vmem:[%s19565_s3 + $0x14c] sm:$0xf] %v12097_v36  ;;  %v12324_v45 = vadd.f32 %v12323_v4, %v12289_v23 }
 0x3c6   :  { %v6254_v7 = vadd.f32 %v6253_v62, %v6252_v46  ;;  %v6330_v15 = vrot.slane %v6329_v47, 4 }
 0x3c7   :  { %v12249_v25 = vrot.slane %v12248_v53, 4  ;;  %v12325_v1 = vadd.f32 %v12324_v45, %v12290_v44 }
 0x3c8   :  { %v6255_v38 = vrot.slane %v6254_v7, 2  ;;  %v6331_v10 = vadd.f32 %v6330_v15, %v6329_v47 }
 0x3c9   :  { %v12250_v55 = vadd.f32 %v12249_v25, %v12248_v53  ;;  %v12326_v39 = vrot.slane %v12325_v1, 4 }
 0x3ca   :  { %v6256_v3 = vadd.f32 %v6255_v38, %v6254_v7  ;;  %v6332_v60 = vrot.slane %v6331_v10, 2 }
 0x3cb   :  { %v12251_v61 = vrot.slane %v12250_v55, 2  ;;  %v12327_v13 = vadd.f32 %v12326_v39, %v12325_v1 }
 0x3cc   :  { %v6257_v30 = vrot.slane %v6256_v3, 1  ;;  %v6333_v16 = vadd.f32 %v6332_v60, %v6331_v10 }
 0x3cd   :  { %v12252_v29 = vadd.f32 %v12251_v61, %v12250_v55  ;;  %v12328_v21 = vrot.slane %v12327_v13, 2 }
 0x3ce   :  { %v6334_v40 = vrot.slane %v6333_v16, 1  ;;  %v6258_v34 = vadd.f32 %v6257_v30, %v6256_v3 }
 0x3cf   :  { %v12253_v42 = vrot.slane %v12252_v29, 1  ;;  %v12329_v24 = vadd.f32 %v12328_v21, %v12327_v13 }
 0x3d0   :  { %v6335_v52 = vadd.f32 %v6334_v40, %v6333_v16 }
 0x3d1   :  { %v12330_v37 = vrot.slane %v12329_v24, 1  ;;  %v12254_v18 = vadd.f32 %v12253_v42, %v12252_v29 }
 0x3d2   :  { %v6337_v41 = vsel %vm6336_vm10, %v6258_v34, %v6335_v52 }
 0x3d3   :  { %v6338_v8 = vadd.f32 %v6337_v41, %v6217_v12  ;;  %v12331_v43 = vadd.f32 %v12330_v37, %v12329_v24 }
 0x3d5   :  { %6339 = vst [vmem:[%s19566_s4] sm:$0x3] %v6338_v8  ;;  %v12332_v50 = vsel %vm6336_vm10, %v12254_v18, %v12331_v43 }
 0x3dc   :  { %v12213_v48 = vld [vmem:[%s19566_s4] sm:$0x3] }
 0x3dd   :  { %v12333_v27 = vadd.f32 %v12332_v50, %v12213_v48 }
 0x3df   :  { %12334 = vst [vmem:[%s19566_s4] sm:$0x3] %v12333_v27 }

</bundles_post_ra>
